<compile_context>
chip_gen: v7x
topology: tpu7x:2x2x1
jax: 0.10.0
libtpu: 0.0.40
codegen_flags: <defaults>
</compile_context>

<pallas_src>
import functools

import jax
import jax.numpy as jnp
from jax.experimental import pallas as pl
from jax.experimental.pallas import tpu as pltpu


def _round_up(x, m):
    return (x + m - 1) // m * m


def _wide_lut_kernel(ids_ref, tbl_ref, const_ref, o_ref, *, num_classes):
    # ids_ref:   (tb, 1)     int32 sample ids
    # tbl_ref:   (Vp, OUTp)  f32   row v = (e1-e0) @ W[:, v*E:(v+1)*E]^T (zero-padded)
    # const_ref: (1, OUTp)   f32   tile(e0, V) @ W^T + bias (zero-padded)
    # o_ref:     (tb, OUTp)  f32
    tb = ids_ref.shape[0]
    outp = tbl_ref.shape[1]
    ids = ids_ref[...]                                           # (tb, 1)
    acc = jnp.broadcast_to(const_ref[...], (tb, outp))           # (tb, OUTp)
    # Exactly one id match per row -> exact f32 gather of the table row.
    # V is tiny (static), so a fully unrolled select-accumulate on the VPU
    # beats feeding an 8-wide contraction to the MXU.
    for v in range(num_classes):
        row = tbl_ref[v, :][None, :]                             # (1, OUTp)
        acc = acc + jnp.where(ids == v, row, 0.0)                # broadcast select
    o_ref[...] = acc


def sample_variety_wide_forward(sample_loc, embed_w, lin_w, lin_b, *,
                                max_var, num_tiles=2):
    """sample_loc: (B,) int; embed_w: (num_embedding, E); lin_w: (OUT, V*E); lin_b: (OUT,).

    num_tiles: batch tiles in the grid. 2 lets v7x megacore shard the
    "parallel" axis across both TensorCores; use 1 on v5e/v6e to shave the
    (tiny) extra grid-step overhead.
    """
    B = sample_loc.shape[0]
    V = max_var + 1
    E = embed_w.shape[1]
    D = V * E
    OUT = lin_w.shape[0]
    assert lin_w.shape[1] == D

    # --- parameter prep (a few KB of one-time work; hoist/jit once per param
    #     set in real use so it is not re-run on every forward call) ---------
    e0 = embed_w[0].astype(jnp.float32)
    e1 = embed_w[1].astype(jnp.float32)
    w = lin_w.astype(jnp.float32)                                  # (OUT, D)
    const_row = jnp.tile(e0, (V,)) @ w.T + lin_b.astype(jnp.float32)   # (OUT,)
    w_blocks = w.reshape(OUT, V, E)                                # (OUT, V, E)
    table = jnp.einsum('e,ove->vo', e1 - e0, w_blocks)             # (V, OUT)

    # Lane-dense output (OUT -> multiple of 128) and sublane-legal table rows.
    OUTp = _round_up(OUT, 128)
    Vp = _round_up(V, 8)
    tbl = jnp.zeros((Vp, OUTp), jnp.float32).at[:V, :OUT].set(table)
    cst = jnp.zeros((1, OUTp), jnp.float32).at[0, :OUT].set(const_row)

    # --- batch tiling: num_tiles blocks, rounded to sublane multiples -------
    num_tiles = max(1, int(num_tiles))
    tb = _round_up(pl.cdiv(B, num_tiles), 8)
    grid_b = pl.cdiv(B, tb)
    Bp = grid_b * tb
    ids = sample_loc.astype(jnp.int32).reshape(B, 1)
    if Bp != B:
        ids = jnp.pad(ids, ((0, Bp - B), (0, 0)))    # padded rows use id 0 (valid)

    kernel = functools.partial(_wide_lut_kernel, num_classes=V)
    out = pl.pallas_call(
        kernel,
        out_shape=jax.ShapeDtypeStruct((Bp, OUTp), jnp.float32),
        grid_spec=pltpu.PrefetchScalarGridSpec(
            num_scalar_prefetch=0,
            grid=(grid_b,),
            in_specs=[
                pl.BlockSpec((tb, 1), lambda i: (i, 0)),       # raw ids (4 B/row)
                pl.BlockSpec((Vp, OUTp), lambda i: (0, 0)),    # (V, OUT) lookup table
                pl.BlockSpec((1, OUTp), lambda i: (0, 0)),     # constant output row
            ],
            out_specs=pl.BlockSpec((tb, OUTp), lambda i: (i, 0)),
        ),
        compiler_params=pltpu.CompilerParams(
            dimension_semantics=("parallel",)),
    )(ids, tbl, cst)
    return out[:B, :OUT]


def reference_forward(sample_loc, embed_w, lin_w, lin_b, *, max_var):
    """Pure-JAX f32 reference matching the PyTorch module exactly."""
    V = max_var + 1
    oh = jax.nn.one_hot(sample_loc, V, dtype=jnp.int32)          # (B, V) in {0,1}
    emb = embed_w[oh]                                            # (B, V, E)
    flat = emb.reshape(sample_loc.shape[0], -1)                  # (B, V*E)
    return flat @ lin_w.T + lin_b


if __name__ == "__main__":
    # Small, module-consistent shapes; B chosen so the grid exercises the
    # cdiv/padding path (1000 -> 2 tiles of 504 with 8 padded rows).
    B = 1000
    max_var = 7          # -> V = 8 one-hot classes
    V = max_var + 1
    embedding_dim = 16   # E
    num_embedding = 4    # embedding table rows (only 0/1 are ever indexed)
    inp_layer = V * embedding_dim        # 128
    out_layer = 32

    key = jax.random.PRNGKey(0)
    k_ids, k_emb, k_w, k_b = jax.random.split(key, 4)

    embed_w = jax.random.normal(k_emb, (num_embedding, embedding_dim), dtype=jnp.float32)
    bound = 1.0 / (inp_layer ** 0.5)
    lin_w = jax.random.uniform(k_w, (out_layer, inp_layer), minval=-bound, maxval=bound,
                               dtype=jnp.float32)
    lin_b = jax.random.uniform(k_b, (out_layer,), minval=-bound, maxval=bound,
                               dtype=jnp.float32)

    sample_loc = jax.random.randint(k_ids, (B,), 0, max_var + 1, dtype=jnp.int32)

    out = sample_variety_wide_forward(sample_loc, embed_w, lin_w, lin_b,
                                      max_var=max_var, num_tiles=2)
    out = jax.block_until_ready(out)

    ref = reference_forward(sample_loc, embed_w, lin_w, lin_b, max_var=max_var)
    assert out.shape == (B, out_layer)
    # Kernel math is pure f32 (only summation grouping differs from reference).
    assert jnp.allclose(out, ref, atol=1e-4, rtol=1e-4), "mismatch vs reference"

    print("KERNEL_OK")
</pallas_src>

<mosaic_0001>
module attributes {stable_mosaic.version = 11 : i64} {
  func.func @_wide_lut_kernel(%arg0: i32, %arg1: memref<504x1xi32, #tpu.memory_space<vmem>>, %arg2: memref<8x128xf32, #tpu.memory_space<vmem>>, %arg3: memref<1x128xf32, #tpu.memory_space<vmem>>, %arg4: memref<504x128xf32, #tpu.memory_space<vmem>>) attributes {dimension_semantics = [#tpu.dimension_semantics<parallel>], iteration_bounds = array<i64: 2>, scalar_prefetch = 0 : i64, scratch_operands = 0 : i64, tpu.core_type = #tpu.core_type<tc>, window_params = [{transform_indices = @transform_0, window_bounds = array<i64: 504, 1>}, {pipeline_mode = #tpu.pipeline_mode<synchronous>, transform_indices = @transform_1, window_bounds = array<i64: 8, 128>}, {pipeline_mode = #tpu.pipeline_mode<synchronous>, transform_indices = @transform_2, window_bounds = array<i64: 1, 128>}, {transform_indices = @transform_3, window_bounds = array<i64: 504, 128>}]} {
    %c0 = arith.constant 0 : index
    %c0_0 = arith.constant 0 : index
    %0 = vector.load %arg1[%c0, %c0_0] : memref<504x1xi32, #tpu.memory_space<vmem>>, vector<504x1xi32>
    %c0_1 = arith.constant 0 : index
    %c0_2 = arith.constant 0 : index
    %1 = vector.load %arg3[%c0_1, %c0_2] : memref<1x128xf32, #tpu.memory_space<vmem>>, vector<1x128xf32>
    %2 = vector.shape_cast %1 : vector<1x128xf32> to vector<1x128xf32>
    %3 = vector.broadcast %2 : vector<1x128xf32> to vector<504x128xf32>
    %c0_3 = arith.constant 0 : index
    %c0_4 = arith.constant 0 : index
    %4 = vector.load %arg2[%c0_3, %c0_4] : memref<8x128xf32, #tpu.memory_space<vmem>>, vector<1x128xf32>
    %5 = vector.shape_cast %4 : vector<1x128xf32> to vector<128xf32>
    %6 = vector.shape_cast %5 : vector<128xf32> to vector<1x128xf32>
    %c0_i32 = arith.constant 0 : i32
    %7 = vector.broadcast %c0_i32 : i32 to vector<504x1xi32>
    %8 = arith.cmpi eq, %0, %7 : vector<504x1xi32>
    %cst = arith.constant 0.000000e+00 : f32
    %9 = vector.shape_cast %8 : vector<504x1xi1> to vector<504x1xi1>
    %10 = vector.broadcast %9 : vector<504x1xi1> to vector<504x128xi1>
    %11 = vector.shape_cast %6 : vector<1x128xf32> to vector<1x128xf32>
    %12 = vector.broadcast %11 : vector<1x128xf32> to vector<504x128xf32>
    %13 = vector.broadcast %cst : f32 to vector<504x128xf32>
    %14 = arith.select %10, %12, %13 : vector<504x128xi1>, vector<504x128xf32>
    %15 = arith.addf %3, %14 : vector<504x128xf32>
    %c1 = arith.constant 1 : index
    %c0_5 = arith.constant 0 : index
    %16 = vector.load %arg2[%c1, %c0_5] : memref<8x128xf32, #tpu.memory_space<vmem>>, vector<1x128xf32>
    %17 = vector.shape_cast %16 : vector<1x128xf32> to vector<128xf32>
    %18 = vector.shape_cast %17 : vector<128xf32> to vector<1x128xf32>
    %c1_i32 = arith.constant 1 : i32
    %19 = vector.broadcast %c1_i32 : i32 to vector<504x1xi32>
    %20 = arith.cmpi eq, %0, %19 : vector<504x1xi32>
    %cst_6 = arith.constant 0.000000e+00 : f32
    %21 = vector.shape_cast %20 : vector<504x1xi1> to vector<504x1xi1>
    %22 = vector.broadcast %21 : vector<504x1xi1> to vector<504x128xi1>
    %23 = vector.shape_cast %18 : vector<1x128xf32> to vector<1x128xf32>
    %24 = vector.broadcast %23 : vector<1x128xf32> to vector<504x128xf32>
    %25 = vector.broadcast %cst_6 : f32 to vector<504x128xf32>
    %26 = arith.select %22, %24, %25 : vector<504x128xi1>, vector<504x128xf32>
    %27 = arith.addf %15, %26 : vector<504x128xf32>
    %c2 = arith.constant 2 : index
    %c0_7 = arith.constant 0 : index
    %28 = vector.load %arg2[%c2, %c0_7] : memref<8x128xf32, #tpu.memory_space<vmem>>, vector<1x128xf32>
    %29 = vector.shape_cast %28 : vector<1x128xf32> to vector<128xf32>
    %30 = vector.shape_cast %29 : vector<128xf32> to vector<1x128xf32>
    %c2_i32 = arith.constant 2 : i32
    %31 = vector.broadcast %c2_i32 : i32 to vector<504x1xi32>
    %32 = arith.cmpi eq, %0, %31 : vector<504x1xi32>
    %cst_8 = arith.constant 0.000000e+00 : f32
    %33 = vector.shape_cast %32 : vector<504x1xi1> to vector<504x1xi1>
    %34 = vector.broadcast %33 : vector<504x1xi1> to vector<504x128xi1>
    %35 = vector.shape_cast %30 : vector<1x128xf32> to vector<1x128xf32>
    %36 = vector.broadcast %35 : vector<1x128xf32> to vector<504x128xf32>
    %37 = vector.broadcast %cst_8 : f32 to vector<504x128xf32>
    %38 = arith.select %34, %36, %37 : vector<504x128xi1>, vector<504x128xf32>
    %39 = arith.addf %27, %38 : vector<504x128xf32>
    %c3 = arith.constant 3 : index
    %c0_9 = arith.constant 0 : index
    %40 = vector.load %arg2[%c3, %c0_9] : memref<8x128xf32, #tpu.memory_space<vmem>>, vector<1x128xf32>
    %41 = vector.shape_cast %40 : vector<1x128xf32> to vector<128xf32>
    %42 = vector.shape_cast %41 : vector<128xf32> to vector<1x128xf32>
    %c3_i32 = arith.constant 3 : i32
    %43 = vector.broadcast %c3_i32 : i32 to vector<504x1xi32>
    %44 = arith.cmpi eq, %0, %43 : vector<504x1xi32>
    %cst_10 = arith.constant 0.000000e+00 : f32
    %45 = vector.shape_cast %44 : vector<504x1xi1> to vector<504x1xi1>
    %46 = vector.broadcast %45 : vector<504x1xi1> to vector<504x128xi1>
    %47 = vector.shape_cast %42 : vector<1x128xf32> to vector<1x128xf32>
    %48 = vector.broadcast %47 : vector<1x128xf32> to vector<504x128xf32>
    %49 = vector.broadcast %cst_10 : f32 to vector<504x128xf32>
    %50 = arith.select %46, %48, %49 : vector<504x128xi1>, vector<504x128xf32>
    %51 = arith.addf %39, %50 : vector<504x128xf32>
    %c4 = arith.constant 4 : index
    %c0_11 = arith.constant 0 : index
    %52 = vector.load %arg2[%c4, %c0_11] : memref<8x128xf32, #tpu.memory_space<vmem>>, vector<1x128xf32>
    %53 = vector.shape_cast %52 : vector<1x128xf32> to vector<128xf32>
    %54 = vector.shape_cast %53 : vector<128xf32> to vector<1x128xf32>
    %c4_i32 = arith.constant 4 : i32
    %55 = vector.broadcast %c4_i32 : i32 to vector<504x1xi32>
    %56 = arith.cmpi eq, %0, %55 : vector<504x1xi32>
    %cst_12 = arith.constant 0.000000e+00 : f32
    %57 = vector.shape_cast %56 : vector<504x1xi1> to vector<504x1xi1>
    %58 = vector.broadcast %57 : vector<504x1xi1> to vector<504x128xi1>
    %59 = vector.shape_cast %54 : vector<1x128xf32> to vector<1x128xf32>
    %60 = vector.broadcast %59 : vector<1x128xf32> to vector<504x128xf32>
    %61 = vector.broadcast %cst_12 : f32 to vector<504x128xf32>
    %62 = arith.select %58, %60, %61 : vector<504x128xi1>, vector<504x128xf32>
    %63 = arith.addf %51, %62 : vector<504x128xf32>
    %c5 = arith.constant 5 : index
    %c0_13 = arith.constant 0 : index
    %64 = vector.load %arg2[%c5, %c0_13] : memref<8x128xf32, #tpu.memory_space<vmem>>, vector<1x128xf32>
    %65 = vector.shape_cast %64 : vector<1x128xf32> to vector<128xf32>
    %66 = vector.shape_cast %65 : vector<128xf32> to vector<1x128xf32>
    %c5_i32 = arith.constant 5 : i32
    %67 = vector.broadcast %c5_i32 : i32 to vector<504x1xi32>
    %68 = arith.cmpi eq, %0, %67 : vector<504x1xi32>
    %cst_14 = arith.constant 0.000000e+00 : f32
    %69 = vector.shape_cast %68 : vector<504x1xi1> to vector<504x1xi1>
    %70 = vector.broadcast %69 : vector<504x1xi1> to vector<504x128xi1>
    %71 = vector.shape_cast %66 : vector<1x128xf32> to vector<1x128xf32>
    %72 = vector.broadcast %71 : vector<1x128xf32> to vector<504x128xf32>
    %73 = vector.broadcast %cst_14 : f32 to vector<504x128xf32>
    %74 = arith.select %70, %72, %73 : vector<504x128xi1>, vector<504x128xf32>
    %75 = arith.addf %63, %74 : vector<504x128xf32>
    %c6 = arith.constant 6 : index
    %c0_15 = arith.constant 0 : index
    %76 = vector.load %arg2[%c6, %c0_15] : memref<8x128xf32, #tpu.memory_space<vmem>>, vector<1x128xf32>
    %77 = vector.shape_cast %76 : vector<1x128xf32> to vector<128xf32>
    %78 = vector.shape_cast %77 : vector<128xf32> to vector<1x128xf32>
    %c6_i32 = arith.constant 6 : i32
    %79 = vector.broadcast %c6_i32 : i32 to vector<504x1xi32>
    %80 = arith.cmpi eq, %0, %79 : vector<504x1xi32>
    %cst_16 = arith.constant 0.000000e+00 : f32
    %81 = vector.shape_cast %80 : vector<504x1xi1> to vector<504x1xi1>
    %82 = vector.broadcast %81 : vector<504x1xi1> to vector<504x128xi1>
    %83 = vector.shape_cast %78 : vector<1x128xf32> to vector<1x128xf32>
    %84 = vector.broadcast %83 : vector<1x128xf32> to vector<504x128xf32>
    %85 = vector.broadcast %cst_16 : f32 to vector<504x128xf32>
    %86 = arith.select %82, %84, %85 : vector<504x128xi1>, vector<504x128xf32>
    %87 = arith.addf %75, %86 : vector<504x128xf32>
    %c7 = arith.constant 7 : index
    %c0_17 = arith.constant 0 : index
    %88 = vector.load %arg2[%c7, %c0_17] : memref<8x128xf32, #tpu.memory_space<vmem>>, vector<1x128xf32>
    %89 = vector.shape_cast %88 : vector<1x128xf32> to vector<128xf32>
    %90 = vector.shape_cast %89 : vector<128xf32> to vector<1x128xf32>
    %c7_i32 = arith.constant 7 : i32
    %91 = vector.broadcast %c7_i32 : i32 to vector<504x1xi32>
    %92 = arith.cmpi eq, %0, %91 : vector<504x1xi32>
    %cst_18 = arith.constant 0.000000e+00 : f32
    %93 = vector.shape_cast %92 : vector<504x1xi1> to vector<504x1xi1>
    %94 = vector.broadcast %93 : vector<504x1xi1> to vector<504x128xi1>
    %95 = vector.shape_cast %90 : vector<1x128xf32> to vector<1x128xf32>
    %96 = vector.broadcast %95 : vector<1x128xf32> to vector<504x128xf32>
    %97 = vector.broadcast %cst_18 : f32 to vector<504x128xf32>
    %98 = arith.select %94, %96, %97 : vector<504x128xi1>, vector<504x128xf32>
    %99 = arith.addf %87, %98 : vector<504x128xf32>
    %c0_19 = arith.constant 0 : index
    %c0_20 = arith.constant 0 : index
    %100 = vector.load %arg4[%c0_19, %c0_20] : memref<504x128xf32, #tpu.memory_space<vmem>>, vector<504x128xf32>
    tpu.vector_store %arg4[%c0_19, %c0_20], %99 {strides = array<i32>} : memref<504x128xf32, #tpu.memory_space<vmem>>, vector<504x128xf32>,
    return
  }
  func.func @transform_0(%arg0: i32) -> (i32, i32) {
    %c0_i32 = arith.constant 0 : i32
    %c0_i32_0 = arith.constant 0 : i32
    return %arg0, %c0_i32 : i32, i32
  }
  func.func @transform_1(%arg0: i32) -> (i32, i32) {
    %c0_i32 = arith.constant 0 : i32
    %c0_i32_0 = arith.constant 0 : i32
    %c0_i32_1 = arith.constant 0 : i32
    return %c0_i32, %c0_i32_0 : i32, i32
  }
  func.func @transform_2(%arg0: i32) -> (i32, i32) {
    %c0_i32 = arith.constant 0 : i32
    %c0_i32_0 = arith.constant 0 : i32
    %c0_i32_1 = arith.constant 0 : i32
    return %c0_i32, %c0_i32_0 : i32, i32
  }
  func.func @transform_3(%arg0: i32) -> (i32, i32) {
    %c0_i32 = arith.constant 0 : i32
    %c0_i32_0 = arith.constant 0 : i32
    return %arg0, %c0_i32 : i32, i32
  }
}

</mosaic_0001>

<bundles_post_ra>
// kernel: tpu_custom_call.1
= control target key start
LH: loop header
LB: loop body
LE: loop exit
PB: predicated region body
PF: predicated region fallthrough
CT: control target
= control target key end

     0   :  { %8 = vsyncpa [#allocation3], 0  ;;  %s10278_s0 = inlined_call_operand.vmem [shape: s32[1008,1], index: 0, kind: input, shape index: {}]   ;;  %s10279_s1 = inlined_call_operand.vmem [shape: f32[8,128], index: 1, kind: input, shape index: {}]   ;;  %s10280_s2 = inlined_call_operand.vmem [shape: f32[1,128], index: 2, kind: input, shape index: {}]   ;;  %s10281_s3 = inlined_call_operand.hbm [shape: f32[1008,128], index: 3, kind: output, shape index: {}]  }
   0x1   :  { %10 = vsyncpa [#allocation3 + $0x1], 0  ;;  %s4834_s12 = smov 0   ;;  %s4836_s13 = smov 0  }
   0x2   :  { %s4838_s14 = smov 0   ;;  %s4840_s15 = smov 0  }
   0x3 LB: > { %s4855_s16 = sadd.s32 4294967295, %s4808_s15   ;;  %s4453_s17 = sadd.s32 4294967294, %s4808_s15   ;;  %s4808_s15 = sphi %s4840_s15, %s11768_s15   ;;  %s4804_s14 = sphi %s4838_s14, %s11767_s14   ;;  %s4800_s13 = sphi %s4836_s13, %s11766_s13   ;;  %s4796_s12 = sphi %s4834_s12, %s11765_s12  }
   0x4   : > { %s4859_s18 = sadd.s32 1, %s4808_s15   ;;  %s91_s19 = sadd.s32 1, %s4804_s14 }
   0x5   : > { %s88_s20 = ssub.s32 %s4808_s15, %s4859_s18  ;;  %p101_p0 = scmp.ne.s32.totalorder %s4804_s14, %s4800_s13 }
   0x6   : > { %p89_p1 = scmp.eq.s32.totalorder %s88_s20, 0  ;;  %p102_p2 = scmp.eq.s32.totalorder %s4855_s16, 1 }
   0x7   : > { %p107_p3 = scmp.ne.s32.totalorder %s4800_s13, %s4796_s12  ;;  %p108_p4 = scmp.eq.s32.totalorder %s4453_s17, 1 }
   0x8   : > { %s4870_s21 = scalar_select %p89_p1, %s4804_s14, %s91_s19  }
   0x9   : > { %p4872_p5 = por %p102_p2, %p101_p0  ;;  %p4876_p6 = por %p108_p4, %p107_p3 }
   0xa   : > { %p4456_p7 = scmp.ge.s32.totalorder %s4808_s15, 1  ;;  %p141_p8 = scmp.lt.s32.totalorder %s4808_s15, 3 }
   0xc   : > { %p142_p9 = pnand %p4456_p7, %p141_p8 }
   0xe   : > { %145 = sbr.rel (%p142_p9) target bundleno = 1187 (0x4a3), region = 32 }
  0x15   : > { %s165_s24 = smul.u32 63, %s4855_s16  ;;  %v10466_v0 = vmov 0   ;;  %s162_s27 = sand.u32 1, %s4800_s13  }
  0x16   : > { %4515 = vset.pattern.permute.xlu1 %v10466_v0  ;;  %4514 = vset.pattern.permute.xlu0 %v10466_v0  ;;  %s4470_s11 = smul.u32 8064, %s4855_s16  ;;  %s4811_s26 = smov [#allocation2]  }
  0x17   : > { %p166_p10 = scmp.lt.s32.totalorder %s165_s24, 125 }
  0x18   : > { %s10229_s20 = scalar_lea.hbm %s10281_s3, %s4470_s11 }
  0x19   : > { %s11770_s24 = smov (!%p166_p10, %s165_s24), 125 }
  0x1a   : > { %s4457_s25 = sshll.u32 %s11770_s24, 3  ;;  %s10237_s24 = scalar_lea.sflag [#allocation3], %s162_s27 }
  0x1b   : > { %s4888_s28 = scalar_lea.vmem %s10278_s0, %s4457_s25 }
  0x1c   : > { %v4891_v1 = vld [vmem:[%s4888_s28 + $0x10] sm:$0xff]  ;;  %v4894_v2 = vld [vmem:[%s4888_s28] sm:$0xff]  ;;  %v4897_v3 = vld [vmem:[%s4888_s28 + $0x18] sm:$0xff] }
  0x1d   : > { %10642 = vst [vmem:[#allocation5_spill] sm:$0xff] %v4891_v1  ;;  %10643 = vst [vmem:[#allocation6_spill] sm:$0xff] %v4894_v2  ;;  %vm245_vm0 = vcmp.eq.s32.totalorder %v4891_v1, 0  ;;  %vm243_vm1 = vcmp.eq.s32.totalorder %v4894_v2, 0  ;;  %vm246_vm2 = vcmp.eq.s32.totalorder %v4897_v3, 0  ;;  %v4903_v4 = vld [vmem:[%s4888_s28 + $0x8] sm:$0xff] }
  0x1e   : > { %v308_v5 = vsel %vm245_vm0, 1, %v10466_v0  ;;  %v306_v6 = vsel %vm243_vm1, 1, %v10466_v0  ;;  %vm244_vm3 = vcmp.eq.s32.totalorder %v4903_v4, 0  ;;  %v4909_v7 = vld [vmem:[%s4888_s28 + $0x28] sm:$0xff]  ;;  %v4912_v8 = vld [vmem:[%s4888_s28 + $0x20] sm:$0xff]  ;;  %v309_v9 = vsel %vm246_vm2, 1, %v10466_v0 }
  0x1f   : > { %376 = vperm.xlu1 %4515, %v308_v5   ;;  %370 = vperm.xlu0 %4514, %v306_v6   ;;  %v307_v10 = vsel %vm244_vm3, 1, %v10466_v0  ;;  %vm248_vm4 = vcmp.eq.s32.totalorder %v4909_v7, 0  ;;  %vm247_vm5 = vcmp.eq.s32.totalorder %v4912_v8, 0  ;;  %v4919_v11 = vld [vmem:[%s4888_s28 + $0x38] sm:$0xff]  ;;  %v4922_v12 = vld [vmem:[%s4888_s28 + $0x30] sm:$0xff]  ;;  %v4929_v15 = vld [vmem:[%s4888_s28 + $0x48] sm:$0xff] }
  0x20   : > { %v311_v13 = vsel %vm248_vm4, 1, %v10466_v0  ;;  %v310_v14 = vsel %vm247_vm5, 1, %v10466_v0  ;;  %vm250_vm6 = vcmp.eq.s32.totalorder %v4919_v11, 0  ;;  %vm249_vm7 = vcmp.eq.s32.totalorder %v4922_v12, 0  ;;  %v4932_v16 = vld [vmem:[%s4888_s28 + $0x40] sm:$0xff]  ;;  %v4939_v19 = vld [vmem:[%s4888_s28 + $0x58] sm:$0xff] }
  0x21   : > { %v313_v17 = vsel %vm250_vm6, 1, %v10466_v0  ;;  %v312_v18 = vsel %vm249_vm7, 1, %v10466_v0  ;;  %vm252_vm8 = vcmp.eq.s32.totalorder %v4929_v15, 0  ;;  %vm251_vm9 = vcmp.eq.s32.totalorder %v4932_v16, 0  ;;  %v4942_v20 = vld [vmem:[%s4888_s28 + $0x50] sm:$0xff]  ;;  %v4949_v23 = vld [vmem:[%s4888_s28 + $0x68] sm:$0xff] }
  0x22   : > { %v315_v21 = vsel %vm252_vm8, 1, %v10466_v0  ;;  %v314_v22 = vsel %vm251_vm9, 1, %v10466_v0  ;;  %vm254_vm10 = vcmp.eq.s32.totalorder %v4939_v19, 0  ;;  %vm253_vm11 = vcmp.eq.s32.totalorder %v4942_v20, 0  ;;  %v4952_v24 = vld [vmem:[%s4888_s28 + $0x60] sm:$0xff]  ;;  %v4959_v27 = vld [vmem:[%s4888_s28 + $0x78] sm:$0xff] }
  0x23   : > { %379 = vperm.xlu1 %4515, %v309_v9   ;;  %373 = vperm.xlu0 %4514, %v307_v10   ;;  %v317_v25 = vsel %vm254_vm10, 1, %v10466_v0  ;;  %v316_v26 = vsel %vm253_vm11, 1, %v10466_v0  ;;  %vm256_vm12 = vcmp.eq.s32.totalorder %v4949_v23, 0  ;;  %vm255_vm13 = vcmp.eq.s32.totalorder %v4952_v24, 0  ;;  %v4962_v28 = vld [vmem:[%s4888_s28 + $0x70] sm:$0xff]  ;;  %v4969_v31 = vld [vmem:[%s4888_s28 + $0x88] sm:$0xff] }
  0x24   : > { %v319_v29 = vsel %vm256_vm12, 1, %v10466_v0  ;;  %v318_v30 = vsel %vm255_vm13, 1, %v10466_v0  ;;  %vm258_vm14 = vcmp.eq.s32.totalorder %v4959_v27, 0  ;;  %vm257_vm15 = vcmp.eq.s32.totalorder %v4962_v28, 0  ;;  %v4972_v32 = vld [vmem:[%s4888_s28 + $0x80] sm:$0xff]  ;;  %v4979_v35 = vld [vmem:[%s4888_s28 + $0x98] sm:$0xff] }
  0x25   : > { %v321_v33 = vsel %vm258_vm14, 1, %v10466_v0  ;;  %v320_v34 = vsel %vm257_vm15, 1, %v10466_v0  ;;  %vm260_vm0 = vcmp.eq.s32.totalorder %v4969_v31, 0  ;;  %vm259_vm1 = vcmp.eq.s32.totalorder %v4972_v32, 0  ;;  %v4982_v36 = vld [vmem:[%s4888_s28 + $0x90] sm:$0xff]  ;;  %v4989_v39 = vld [vmem:[%s4888_s28 + $0xa8] sm:$0xff] }
  0x26   : > { %v323_v37 = vsel %vm260_vm0, 1, %v10466_v0  ;;  %v322_v38 = vsel %vm259_vm1, 1, %v10466_v0  ;;  %vm262_vm2 = vcmp.eq.s32.totalorder %v4979_v35, 0  ;;  %vm261_vm3 = vcmp.eq.s32.totalorder %v4982_v36, 0  ;;  %v4992_v40 = vld [vmem:[%s4888_s28 + $0xa0] sm:$0xff]  ;;  %v4999_v43 = vld [vmem:[%s4888_s28 + $0xb8] sm:$0xff] }
  0x27   : > { %385 = vperm.xlu1 %4515, %v311_v13   ;;  %382 = vperm.xlu0 %4514, %v310_v14   ;;  %v325_v41 = vsel %vm262_vm2, 1, %v10466_v0  ;;  %v324_v42 = vsel %vm261_vm3, 1, %v10466_v0  ;;  %vm264_vm4 = vcmp.eq.s32.totalorder %v4989_v39, 0  ;;  %vm263_vm5 = vcmp.eq.s32.totalorder %v4992_v40, 0  ;;  %v5002_v44 = vld [vmem:[%s4888_s28 + $0xb0] sm:$0xff]  ;;  %v5009_v47 = vld [vmem:[%s4888_s28 + $0xc8] sm:$0xff] }
  0x28   : > { %v327_v45 = vsel %vm264_vm4, 1, %v10466_v0  ;;  %v326_v46 = vsel %vm263_vm5, 1, %v10466_v0  ;;  %vm266_vm6 = vcmp.eq.s32.totalorder %v4999_v43, 0  ;;  %vm265_vm7 = vcmp.eq.s32.totalorder %v5002_v44, 0  ;;  %v5012_v48 = vld [vmem:[%s4888_s28 + $0xc0] sm:$0xff]  ;;  %v5019_v51 = vld [vmem:[%s4888_s28 + $0xd8] sm:$0xff] }
  0x29   : > { %v329_v49 = vsel %vm266_vm6, 1, %v10466_v0  ;;  %v328_v50 = vsel %vm265_vm7, 1, %v10466_v0  ;;  %vm268_vm8 = vcmp.eq.s32.totalorder %v5009_v47, 0  ;;  %vm267_vm9 = vcmp.eq.s32.totalorder %v5012_v48, 0  ;;  %v5022_v52 = vld [vmem:[%s4888_s28 + $0xd0] sm:$0xff]  ;;  %v5029_v55 = vld [vmem:[%s4888_s28 + $0xe8] sm:$0xff] }
  0x2a   : > { %v331_v53 = vsel %vm268_vm8, 1, %v10466_v0  ;;  %v330_v54 = vsel %vm267_vm9, 1, %v10466_v0  ;;  %vm270_vm10 = vcmp.eq.s32.totalorder %v5019_v51, 0  ;;  %vm269_vm11 = vcmp.eq.s32.totalorder %v5022_v52, 0  ;;  %v5032_v56 = vld [vmem:[%s4888_s28 + $0xe0] sm:$0xff]  ;;  %v5039_v59 = vld [vmem:[%s4888_s28 + $0xf8] sm:$0xff] }
  0x2b   : > { %391 = vperm.xlu1 %4515, %v313_v17   ;;  %388 = vperm.xlu0 %4514, %v312_v18   ;;  %v333_v57 = vsel %vm270_vm10, 1, %v10466_v0  ;;  %v332_v58 = vsel %vm269_vm11, 1, %v10466_v0  ;;  %vm272_vm12 = vcmp.eq.s32.totalorder %v5029_v55, 0  ;;  %vm271_vm13 = vcmp.eq.s32.totalorder %v5032_v56, 0  ;;  %v5042_v60 = vld [vmem:[%s4888_s28 + $0xf0] sm:$0xff]  ;;  %v5049_v63 = vld [vmem:[%s4888_s28 + $0x108] sm:$0xff] }
  0x2c   : > { %v335_v61 = vsel %vm272_vm12, 1, %v10466_v0  ;;  %v334_v62 = vsel %vm271_vm13, 1, %v10466_v0  ;;  %vm274_vm14 = vcmp.eq.s32.totalorder %v5039_v59, 0  ;;  %vm273_vm15 = vcmp.eq.s32.totalorder %v5042_v60, 0  ;;  %v5052_v5 = vld [vmem:[%s4888_s28 + $0x100] sm:$0xff]  ;;  %v5059_v10 = vld [vmem:[%s4888_s28 + $0x118] sm:$0xff] }
  0x2d   : > { %v337_v6 = vsel %vm274_vm14, 1, %v10466_v0  ;;  %v336_v9 = vsel %vm273_vm15, 1, %v10466_v0  ;;  %vm276_vm0 = vcmp.eq.s32.totalorder %v5049_v63, 0  ;;  %vm275_vm1 = vcmp.eq.s32.totalorder %v5052_v5, 0  ;;  %v5062_v13 = vld [vmem:[%s4888_s28 + $0x110] sm:$0xff]  ;;  %v5069_v18 = vld [vmem:[%s4888_s28 + $0x128] sm:$0xff] }
  0x2e   : > { %v339_v14 = vsel %vm276_vm0, 1, %v10466_v0  ;;  %v338_v17 = vsel %vm275_vm1, 1, %v10466_v0  ;;  %vm278_vm2 = vcmp.eq.s32.totalorder %v5059_v10, 0  ;;  %vm277_vm3 = vcmp.eq.s32.totalorder %v5062_v13, 0 }
  0x2f   : > { %397 = vperm.xlu1 %4515, %v315_v21   ;;  %394 = vperm.xlu0 %4514, %v314_v22   ;;  %v5072_v21 = vld [vmem:[%s4888_s28 + $0x120] sm:$0xff]  ;;  %v341_v22 = vsel %vm278_vm2, 1, %v10466_v0  ;;  %vm280_vm4 = vcmp.eq.s32.totalorder %v5069_v18, 0 }
  0x30   : > { %vm279_vm5 = vcmp.eq.s32.totalorder %v5072_v21, 0 }
  0x33   : > { %403 = vperm.xlu1 %4515, %v317_v25   ;;  %400 = vperm.xlu0 %4514, %v316_v26   ;;  %v340_v25 = vsel %vm277_vm3, 1, %v10466_v0  ;;  %v5079_v26 = vld [vmem:[%s4888_s28 + $0x138] sm:$0xff] }
  0x34   : > { %vm282_vm6 = vcmp.eq.s32.totalorder %v5079_v26, 0 }
  0x37   : > { %409 = vperm.xlu1 %4515, %v319_v29   ;;  %406 = vperm.xlu0 %4514, %v318_v30   ;;  %v5082_v29 = vld [vmem:[%s4888_s28 + $0x130] sm:$0xff]  ;;  %v343_v30 = vsel %vm280_vm4, 1, %v10466_v0 }
  0x38   : > { %vm281_vm7 = vcmp.eq.s32.totalorder %v5082_v29, 0 }
  0x3b   : > { %415 = vperm.xlu1 %4515, %v321_v33   ;;  %412 = vperm.xlu0 %4514, %v320_v34   ;;  %v342_v33 = vsel %vm279_vm5, 1, %v10466_v0  ;;  %v5089_v34 = vld [vmem:[%s4888_s28 + $0x148] sm:$0xff] }
  0x3c   : > { %vm284_vm8 = vcmp.eq.s32.totalorder %v5089_v34, 0 }
  0x3f   : > { %421 = vperm.xlu1 %4515, %v323_v37   ;;  %418 = vperm.xlu0 %4514, %v322_v38   ;;  %v5092_v37 = vld [vmem:[%s4888_s28 + $0x140] sm:$0xff]  ;;  %v345_v38 = vsel %vm282_vm6, 1, %v10466_v0 }
  0x40   : > { %vm283_vm9 = vcmp.eq.s32.totalorder %v5092_v37, 0 }
  0x43   : > { %427 = vperm.xlu1 %4515, %v325_v41   ;;  %424 = vperm.xlu0 %4514, %v324_v42   ;;  %v344_v41 = vsel %vm281_vm7, 1, %v10466_v0  ;;  %v5099_v42 = vld [vmem:[%s4888_s28 + $0x158] sm:$0xff] }
  0x44   : > { %vm286_vm10 = vcmp.eq.s32.totalorder %v5099_v42, 0 }
  0x47   : > { %433 = vperm.xlu1 %4515, %v327_v45   ;;  %430 = vperm.xlu0 %4514, %v326_v46   ;;  %v5102_v45 = vld [vmem:[%s4888_s28 + $0x150] sm:$0xff]  ;;  %v347_v46 = vsel %vm284_vm8, 1, %v10466_v0 }
  0x48   : > { %vm285_vm11 = vcmp.eq.s32.totalorder %v5102_v45, 0 }
  0x4b   : > { %439 = vperm.xlu1 %4515, %v329_v49   ;;  %436 = vperm.xlu0 %4514, %v328_v50   ;;  %v346_v49 = vsel %vm283_vm9, 1, %v10466_v0  ;;  %v5109_v50 = vld [vmem:[%s4888_s28 + $0x168] sm:$0xff] }
  0x4c   : > { %vm288_vm12 = vcmp.eq.s32.totalorder %v5109_v50, 0 }
  0x4f   : > { %445 = vperm.xlu1 %4515, %v331_v53   ;;  %442 = vperm.xlu0 %4514, %v330_v54   ;;  %v5112_v53 = vld [vmem:[%s4888_s28 + $0x160] sm:$0xff]  ;;  %v349_v54 = vsel %vm286_vm10, 1, %v10466_v0 }
  0x50   : > { %vm287_vm13 = vcmp.eq.s32.totalorder %v5112_v53, 0 }
  0x53   : > { %451 = vperm.xlu1 %4515, %v333_v57   ;;  %448 = vperm.xlu0 %4514, %v332_v58   ;;  %v348_v57 = vsel %vm285_vm11, 1, %v10466_v0  ;;  %v5119_v58 = vld [vmem:[%s4888_s28 + $0x178] sm:$0xff] }
  0x54   : > { %vm290_vm14 = vcmp.eq.s32.totalorder %v5119_v58, 0 }
  0x57   : > { %457 = vperm.xlu1 %4515, %v335_v61   ;;  %454 = vperm.xlu0 %4514, %v334_v62   ;;  %v5122_v61 = vld [vmem:[%s4888_s28 + $0x170] sm:$0xff]  ;;  %v351_v62 = vsel %vm288_vm12, 1, %v10466_v0 }
  0x58   : > { %vm289_vm15 = vcmp.eq.s32.totalorder %v5122_v61, 0 }
  0x5b   : > { %463 = vperm.xlu1 %4515, %v337_v6   ;;  %460 = vperm.xlu0 %4514, %v336_v9   ;;  %v350_v6 = vsel %vm287_vm13, 1, %v10466_v0  ;;  %v5129_v9 = vld [vmem:[%s4888_s28 + $0x188] sm:$0xff] }
  0x5c   : > { %vm292_vm0 = vcmp.eq.s32.totalorder %v5129_v9, 0 }
  0x5f   : > { %469 = vperm.xlu1 %4515, %v339_v14   ;;  %466 = vperm.xlu0 %4514, %v338_v17   ;;  %v5132_v14 = vld [vmem:[%s4888_s28 + $0x180] sm:$0xff]  ;;  %v353_v17 = vsel %vm290_vm14, 1, %v10466_v0  ;;  %vm752_vm14 = vcmp.eq.s32.totalorder %v4894_v2, 1 }
  0x60   : > { %10644 = vst [vmem:[#allocation7_spill] sm:$0xff] %v5132_v14  ;;  %vm291_vm1 = vcmp.eq.s32.totalorder %v5132_v14, 0 }
  0x63   : > { %475 = vperm.xlu1 %4515, %v341_v22   ;;  %472 = vperm.xlu0 %4514, %v340_v25   ;;  %v352_v22 = vsel %vm289_vm15, 1, %v10466_v0  ;;  %v5139_v25 = vld [vmem:[%s4888_s28 + $0x198] sm:$0xff] }
  0x64   : > { %10645 = vst [vmem:[#allocation8_spill] sm:$0xff] %v5139_v25  ;;  %vm294_vm2 = vcmp.eq.s32.totalorder %v5139_v25, 0 }
  0x67   : > { %481 = vperm.xlu1 %4515, %v343_v30   ;;  %478 = vperm.xlu0 %4514, %v342_v33   ;;  %v5142_v30 = vld [vmem:[%s4888_s28 + $0x190] sm:$0xff]  ;;  %v355_v33 = vsel %vm292_vm0, 1, %v10466_v0  ;;  %vm754_vm0 = vcmp.eq.s32.totalorder %v4891_v1, 1 }
  0x68   : > { %10646 = vst [vmem:[#allocation9_spill] sm:$0xff] %v5142_v30  ;;  %vm293_vm3 = vcmp.eq.s32.totalorder %v5142_v30, 0 }
  0x6b   : > { %487 = vperm.xlu1 %4515, %v345_v38   ;;  %484 = vperm.xlu0 %4514, %v344_v41   ;;  %v354_v38 = vsel %vm291_vm1, 1, %v10466_v0  ;;  %v5149_v41 = vld [vmem:[%s4888_s28 + $0x1a8] sm:$0xff]  ;;  %vm753_vm1 = vcmp.eq.s32.totalorder %v4903_v4, 1 }
  0x6c   : > { %10647 = vst [vmem:[#allocation10_spill] sm:$0xff] %v5149_v41  ;;  %vm296_vm4 = vcmp.eq.s32.totalorder %v5149_v41, 0 }
  0x6f   : > { %493 = vperm.xlu1 %4515, %v347_v46   ;;  %490 = vperm.xlu0 %4514, %v346_v49   ;;  %v5152_v46 = vld [vmem:[%s4888_s28 + $0x1a0] sm:$0xff]  ;;  %v357_v49 = vsel %vm294_vm2, 1, %v10466_v0  ;;  %vm756_vm2 = vcmp.eq.s32.totalorder %v4912_v8, 1 }
  0x70   : > { %10648 = vst [vmem:[#allocation11_spill] sm:$0xff] %v5152_v46  ;;  %vm295_vm5 = vcmp.eq.s32.totalorder %v5152_v46, 0  ;;  %v819_v1 = vsel %vm756_vm2, 1, %v10466_v0  ;;  %vm772_vm2 = vcmp.eq.s32.totalorder %v4992_v40, 1 }
  0x73   : > { %499 = vperm.xlu1 %4515, %v349_v54   ;;  %496 = vperm.xlu0 %4514, %v348_v57   ;;  %v356_v54 = vsel %vm293_vm3, 1, %v10466_v0  ;;  %v5159_v57 = vld [vmem:[%s4888_s28 + $0x1b8] sm:$0xff]  ;;  %vm755_vm3 = vcmp.eq.s32.totalorder %v4897_v3, 1 }
  0x74   : > { %10649 = vst [vmem:[#allocation12_spill] sm:$0xff] %v5159_v57  ;;  %vm298_vm6 = vcmp.eq.s32.totalorder %v5159_v57, 0  ;;  %v5182_v57 = vld [vmem:[%s4888_s28 + $0x1d0] sm:$0xff]  ;;  %v818_v2 = vsel %vm755_vm3, 1, %v10466_v0  ;;  %vm771_vm3 = vcmp.eq.s32.totalorder %v4979_v35, 1 }
  0x75   : > { %vm301_vm11 = vcmp.eq.s32.totalorder %v5182_v57, 0 }
  0x77   : > { %505 = vperm.xlu1 %4515, %v351_v62   ;;  %502 = vperm.xlu0 %4514, %v350_v6   ;;  %v5162_v62 = vld [vmem:[%s4888_s28 + $0x1b0] sm:$0xff]  ;;  %v359_v6 = vsel %vm296_vm4, 1, %v10466_v0  ;;  %vm758_vm4 = vcmp.eq.s32.totalorder %v4922_v12, 1 }
  0x78   : > { %10650 = vst [vmem:[#allocation13_spill] sm:$0xff] %v5162_v62  ;;  %vm297_vm7 = vcmp.eq.s32.totalorder %v5162_v62, 0  ;;  %v364_v62 = vsel %vm301_vm11, 1, %v10466_v0  ;;  %vm763_vm11 = vcmp.eq.s32.totalorder %v4939_v19, 1 }
  0x7b   : > { %511 = vperm.xlu1 %4515, %v353_v17   ;;  %508 = vperm.xlu0 %4514, %v352_v22   ;;  %v358_v17 = vsel %vm295_vm5, 1, %v10466_v0  ;;  %v5169_v22 = vld [vmem:[%s4888_s28 + $0x1c8] sm:$0xff]  ;;  %vm757_vm5 = vcmp.eq.s32.totalorder %v4909_v7, 1 }
  0x7c   : > { %10651 = vst [vmem:[#allocation14_spill] sm:$0xff] %v5169_v22  ;;  %vm300_vm8 = vcmp.eq.s32.totalorder %v5169_v22, 0  ;;  %v5192_v22 = vld [vmem:[%s4888_s28 + $0x1e0] sm:$0xff] }
  0x7d   : > { %v363_v41 = vsel %vm300_vm8, 1, %v10466_v0  ;;  %10654 = vst [vmem:[#allocation17_spill] sm:$0xff] %v5192_v22  ;;  %vm303_vm13 = vcmp.eq.s32.totalorder %v5192_v22, 0  ;;  %vm762_vm8 = vcmp.eq.s32.totalorder %v4942_v20, 1 }
  0x7f   : > { %517 = vperm.xlu1 %4515, %v355_v33   ;;  %514 = vperm.xlu0 %4514, %v354_v38   ;;  %v5172_v33 = vld [vmem:[%s4888_s28 + $0x1c0] sm:$0xff]  ;;  %v361_v38 = vsel %vm298_vm6, 1, %v10466_v0  ;;  %vm760_vm6 = vcmp.eq.s32.totalorder %v4932_v16, 1 }
  0x80   : > { %10652 = vst [vmem:[#allocation15_spill] sm:$0xff] %v5172_v33  ;;  %vm299_vm9 = vcmp.eq.s32.totalorder %v5172_v33, 0 }
  0x83   : > { %523 = vperm.xlu1 %4515, %v357_v49   ;;  %520 = vperm.xlu0 %4514, %v356_v54   ;;  %v360_v49 = vsel %vm297_vm7, 1, %v10466_v0  ;;  %v5179_v54 = vld [vmem:[%s4888_s28 + $0x1d8] sm:$0xff]  ;;  %vm759_vm7 = vcmp.eq.s32.totalorder %v4919_v11, 1 }
  0x84   : > { %10653 = vst [vmem:[#allocation16_spill] sm:$0xff] %v5179_v54  ;;  %vm302_vm10 = vcmp.eq.s32.totalorder %v5179_v54, 0  ;;  %v366_v54 = vsel %vm303_vm13, 1, %v10466_v0  ;;  %vm765_vm13 = vcmp.eq.s32.totalorder %v4949_v23, 1 }
  0x85   : > { %v365_v33 = vsel %vm302_vm10, 1, %v10466_v0  ;;  %vm764_vm10 = vcmp.eq.s32.totalorder %v4952_v24, 1 }
  0x87   : > { %529 = vperm.xlu1 %4515, %v359_v6   ;;  %526 = vperm.xlu0 %4514, %v358_v17   ;;  %v362_v6 = vsel %vm299_vm9, 1, %v10466_v0  ;;  %v5189_v17 = vld [vmem:[%s4888_s28 + $0x1e8] sm:$0xff]  ;;  %vm761_vm9 = vcmp.eq.s32.totalorder %v4929_v15, 1 }
  0x88   : > { %vm304_vm12 = vcmp.eq.s32.totalorder %v5189_v17, 0 }
  0x8b   : > { %535 = vperm.xlu1 %4515, %v361_v38   ;;  %532 = vperm.xlu0 %4514, %v360_v49   ;;  %v5199_v38 = vld [vmem:[%s4888_s28 + $0x1f0] sm:$0xff]  ;;  %v367_v49 = vsel %vm304_vm12, 1, %v10466_v0  ;;  %vm766_vm12 = vcmp.eq.s32.totalorder %v4962_v28, 1 }
  0x8c   : > { %10655 = vst [vmem:[#allocation18_spill] sm:$0xff] %v5199_v38  ;;  %vm305_vm15 = vcmp.eq.s32.totalorder %v5199_v38, 0 }
  0x8f   : > { %541 = vperm.xlu1 %4515, %v363_v41   ;;  %538 = vperm.xlu0 %4514, %v362_v6   ;;  %v815_v41 = vsel %vm752_vm14, 1, %v10466_v0  ;;  %v368_v6 = vsel %vm305_vm15, 1, %v10466_v0  ;;  %vm768_vm14 = vcmp.eq.s32.totalorder %v4972_v32, 1  ;;  %vm767_vm15 = vcmp.eq.s32.totalorder %v4959_v27, 1 }
  0x93   : > { %547 = vperm.xlu1 %4515, %v365_v33   ;;  %544 = vperm.xlu0 %4514, %v364_v62   ;;  %v817_v62 = vsel %vm754_vm0, 1, %v10466_v0  ;;  %v816_v33 = vsel %vm753_vm1, 1, %v10466_v0  ;;  %vm770_vm0 = vcmp.eq.s32.totalorder %v4982_v36, 1  ;;  %vm769_vm1 = vcmp.eq.s32.totalorder %v4969_v31, 1 }
  0x97   : > { %553 = vperm.xlu1 %4515, %v367_v49   ;;  %550 = vperm.xlu0 %4514, %v366_v54  }
  0x9b   : > { %879 = vperm.xlu1 %4515, %v815_v41   ;;  %556 = vperm.xlu0 %4514, %v368_v6  }
  0x9e   : > { %v5213_v49 = vpop.permute.xlu1 %376  ;;  %v5215_v54 = vpop.permute.xlu0 %370 }
  0x9f   : > { %10656 = vst [vmem:[#allocation19_spill] sm:$0xff] %v5213_v49  ;;  %10657 = vst [vmem:[#allocation20_spill] sm:$0xff] %v5215_v54  ;;  %885 = vperm.xlu1 %4515, %v817_v62   ;;  %882 = vperm.xlu0 %4514, %v816_v33   ;;  %v821_v49 = vsel %vm758_vm4, 1, %v10466_v0  ;;  %v820_v54 = vsel %vm757_vm5, 1, %v10466_v0  ;;  %vm774_vm4 = vcmp.eq.s32.totalorder %v5002_v44, 1  ;;  %vm773_vm5 = vcmp.eq.s32.totalorder %v4989_v39, 1 }
  0xa2   : > { %v5221_v41 = vpop.permute.xlu1 %379  ;;  %v5223_v6 = vpop.permute.xlu0 %373 }
  0xa3   : > { %10658 = vst [vmem:[#allocation21_spill] sm:$0xff] %v5221_v41  ;;  %10659 = vst [vmem:[#allocation22_spill] sm:$0xff] %v5223_v6  ;;  %891 = vperm.xlu1 %4515, %v819_v1   ;;  %888 = vperm.xlu0 %4514, %v818_v2   ;;  %v823_v41 = vsel %vm760_vm6, 1, %v10466_v0  ;;  %v822_v6 = vsel %vm759_vm7, 1, %v10466_v0  ;;  %vm776_vm6 = vcmp.eq.s32.totalorder %v5012_v48, 1  ;;  %vm775_vm7 = vcmp.eq.s32.totalorder %v4999_v43, 1 }
  0xa6   : > { %v5229_v62 = vpop.permute.xlu1 %385  ;;  %v5231_v33 = vpop.permute.xlu0 %382 }
  0xa7   : > { %10660 = vst [vmem:[#allocation23_spill] sm:$0xff] %v5229_v62  ;;  %10661 = vst [vmem:[#allocation24_spill] sm:$0xff] %v5231_v33  ;;  %897 = vperm.xlu1 %4515, %v821_v49   ;;  %894 = vperm.xlu0 %4514, %v820_v54   ;;  %v825_v62 = vsel %vm762_vm8, 1, %v10466_v0  ;;  %v824_v33 = vsel %vm761_vm9, 1, %v10466_v0  ;;  %vm778_vm8 = vcmp.eq.s32.totalorder %v5022_v52, 1  ;;  %vm777_vm9 = vcmp.eq.s32.totalorder %v5009_v47, 1 }
  0xaa   : > { %v5237_v1 = vpop.permute.xlu1 %391  ;;  %v5239_v2 = vpop.permute.xlu0 %388 }
  0xab   : > { %10662 = vst [vmem:[#allocation25_spill] sm:$0xff] %v5237_v1  ;;  %10663 = vst [vmem:[#allocation26_spill] sm:$0xff] %v5239_v2  ;;  %903 = vperm.xlu1 %4515, %v823_v41   ;;  %900 = vperm.xlu0 %4514, %v822_v6   ;;  %v827_v1 = vsel %vm764_vm10, 1, %v10466_v0  ;;  %v826_v2 = vsel %vm763_vm11, 1, %v10466_v0  ;;  %vm780_vm10 = vcmp.eq.s32.totalorder %v5032_v56, 1  ;;  %vm779_vm11 = vcmp.eq.s32.totalorder %v5019_v51, 1 }
  0xae   : > { %v5245_v49 = vpop.permute.xlu1 %397  ;;  %v5247_v54 = vpop.permute.xlu0 %394 }
  0xaf   : > { %10664 = vst [vmem:[#allocation27_spill] sm:$0xff] %v5245_v49  ;;  %10665 = vst [vmem:[#allocation28_spill] sm:$0xff] %v5247_v54  ;;  %909 = vperm.xlu1 %4515, %v825_v62   ;;  %906 = vperm.xlu0 %4514, %v824_v33   ;;  %v829_v49 = vsel %vm766_vm12, 1, %v10466_v0  ;;  %v828_v54 = vsel %vm765_vm13, 1, %v10466_v0  ;;  %vm782_vm12 = vcmp.eq.s32.totalorder %v5042_v60, 1  ;;  %vm781_vm13 = vcmp.eq.s32.totalorder %v5029_v55, 1 }
  0xb2   : > { %v5253_v41 = vpop.permute.xlu1 %403  ;;  %v5255_v6 = vpop.permute.xlu0 %400 }
  0xb3   : > { %10666 = vst [vmem:[#allocation29_spill] sm:$0xff] %v5253_v41  ;;  %10667 = vst [vmem:[#allocation30_spill] sm:$0xff] %v5255_v6  ;;  %915 = vperm.xlu1 %4515, %v827_v1   ;;  %912 = vperm.xlu0 %4514, %v826_v2   ;;  %v831_v41 = vsel %vm768_vm14, 1, %v10466_v0  ;;  %v830_v6 = vsel %vm767_vm15, 1, %v10466_v0  ;;  %vm784_vm14 = vcmp.eq.s32.totalorder %v5052_v5, 1  ;;  %vm783_vm15 = vcmp.eq.s32.totalorder %v5039_v59, 1 }
  0xb6   : > { %v5261_v62 = vpop.permute.xlu1 %409  ;;  %v5263_v33 = vpop.permute.xlu0 %406 }
  0xb7   : > { %10668 = vst [vmem:[#allocation31_spill] sm:$0xff] %v5261_v62  ;;  %10669 = vst [vmem:[#allocation32_spill] sm:$0xff] %v5263_v33  ;;  %921 = vperm.xlu1 %4515, %v829_v49   ;;  %918 = vperm.xlu0 %4514, %v828_v54   ;;  %v833_v62 = vsel %vm770_vm0, 1, %v10466_v0  ;;  %v832_v33 = vsel %vm769_vm1, 1, %v10466_v0  ;;  %vm786_vm0 = vcmp.eq.s32.totalorder %v5062_v13, 1  ;;  %vm785_vm1 = vcmp.eq.s32.totalorder %v5049_v63, 1 }
  0xba   : > { %v5269_v1 = vpop.permute.xlu1 %415  ;;  %v5271_v2 = vpop.permute.xlu0 %412 }
  0xbb   : > { %10670 = vst [vmem:[#allocation33_spill] sm:$0xff] %v5269_v1  ;;  %10671 = vst [vmem:[#allocation34_spill] sm:$0xff] %v5271_v2  ;;  %927 = vperm.xlu1 %4515, %v831_v41   ;;  %924 = vperm.xlu0 %4514, %v830_v6   ;;  %v835_v1 = vsel %vm772_vm2, 1, %v10466_v0  ;;  %v834_v2 = vsel %vm771_vm3, 1, %v10466_v0  ;;  %vm788_vm2 = vcmp.eq.s32.totalorder %v5072_v21, 1  ;;  %vm787_vm3 = vcmp.eq.s32.totalorder %v5059_v10, 1 }
  0xbe   : > { %v5277_v49 = vpop.permute.xlu1 %421  ;;  %v5279_v54 = vpop.permute.xlu0 %418 }
  0xbf   : > { %10672 = vst [vmem:[#allocation35_spill] sm:$0xff] %v5277_v49  ;;  %10673 = vst [vmem:[#allocation36_spill] sm:$0xff] %v5279_v54  ;;  %933 = vperm.xlu1 %4515, %v833_v62   ;;  %930 = vperm.xlu0 %4514, %v832_v33   ;;  %v837_v49 = vsel %vm774_vm4, 1, %v10466_v0  ;;  %v836_v54 = vsel %vm773_vm5, 1, %v10466_v0  ;;  %vm790_vm4 = vcmp.eq.s32.totalorder %v5082_v29, 1  ;;  %vm789_vm5 = vcmp.eq.s32.totalorder %v5069_v18, 1 }
  0xc2   : > { %v5285_v41 = vpop.permute.xlu1 %427  ;;  %v5287_v6 = vpop.permute.xlu0 %424 }
  0xc3   : > { %10674 = vst [vmem:[#allocation37_spill] sm:$0xff] %v5285_v41  ;;  %10675 = vst [vmem:[#allocation38_spill] sm:$0xff] %v5287_v6  ;;  %939 = vperm.xlu1 %4515, %v835_v1   ;;  %936 = vperm.xlu0 %4514, %v834_v2   ;;  %v839_v41 = vsel %vm776_vm6, 1, %v10466_v0  ;;  %v838_v6 = vsel %vm775_vm7, 1, %v10466_v0  ;;  %vm792_vm6 = vcmp.eq.s32.totalorder %v5092_v37, 1  ;;  %vm791_vm7 = vcmp.eq.s32.totalorder %v5079_v26, 1 }
  0xc6   : > { %v5293_v62 = vpop.permute.xlu1 %433  ;;  %v5295_v33 = vpop.permute.xlu0 %430 }
  0xc7   : > { %10676 = vst [vmem:[#allocation39_spill] sm:$0xff] %v5293_v62  ;;  %10677 = vst [vmem:[#allocation40_spill] sm:$0xff] %v5295_v33  ;;  %945 = vperm.xlu1 %4515, %v837_v49   ;;  %942 = vperm.xlu0 %4514, %v836_v54   ;;  %v841_v62 = vsel %vm778_vm8, 1, %v10466_v0  ;;  %v840_v33 = vsel %vm777_vm9, 1, %v10466_v0  ;;  %vm794_vm8 = vcmp.eq.s32.totalorder %v5102_v45, 1  ;;  %vm793_vm9 = vcmp.eq.s32.totalorder %v5089_v34, 1 }
  0xca   : > { %v5301_v1 = vpop.permute.xlu1 %439  ;;  %v5303_v2 = vpop.permute.xlu0 %436 }
  0xcb   : > { %10678 = vst [vmem:[#allocation41_spill] sm:$0xff] %v5301_v1  ;;  %10679 = vst [vmem:[#allocation42_spill] sm:$0xff] %v5303_v2  ;;  %951 = vperm.xlu1 %4515, %v839_v41   ;;  %948 = vperm.xlu0 %4514, %v838_v6   ;;  %v843_v1 = vsel %vm780_vm10, 1, %v10466_v0  ;;  %v842_v2 = vsel %vm779_vm11, 1, %v10466_v0  ;;  %vm796_vm10 = vcmp.eq.s32.totalorder %v5112_v53, 1  ;;  %vm795_vm11 = vcmp.eq.s32.totalorder %v5099_v42, 1 }
  0xce   : > { %v5309_v49 = vpop.permute.xlu1 %445  ;;  %v5311_v54 = vpop.permute.xlu0 %442 }
  0xcf   : > { %10680 = vst [vmem:[#allocation43_spill] sm:$0xff] %v5309_v49  ;;  %10681 = vst [vmem:[#allocation44_spill] sm:$0xff] %v5311_v54  ;;  %957 = vperm.xlu1 %4515, %v841_v62   ;;  %954 = vperm.xlu0 %4514, %v840_v33   ;;  %v845_v49 = vsel %vm782_vm12, 1, %v10466_v0  ;;  %v844_v54 = vsel %vm781_vm13, 1, %v10466_v0  ;;  %vm798_vm12 = vcmp.eq.s32.totalorder %v5122_v61, 1  ;;  %vm797_vm13 = vcmp.eq.s32.totalorder %v5109_v50, 1 }
  0xd2   : > { %v5317_v41 = vpop.permute.xlu1 %451  ;;  %v5319_v6 = vpop.permute.xlu0 %448 }
  0xd3   : > { %10682 = vst [vmem:[#allocation45_spill] sm:$0xff] %v5317_v41  ;;  %10683 = vst [vmem:[#allocation46_spill] sm:$0xff] %v5319_v6  ;;  %963 = vperm.xlu1 %4515, %v843_v1   ;;  %960 = vperm.xlu0 %4514, %v842_v2   ;;  %v847_v41 = vsel %vm784_vm14, 1, %v10466_v0  ;;  %v846_v6 = vsel %vm783_vm15, 1, %v10466_v0  ;;  %vm800_vm14 = vcmp.eq.s32.totalorder %v5132_v14, 1  ;;  %vm799_vm15 = vcmp.eq.s32.totalorder %v5119_v58, 1 }
  0xd6   : > { %v5325_v62 = vpop.permute.xlu1 %457  ;;  %v5327_v33 = vpop.permute.xlu0 %454 }
  0xd7   : > { %10684 = vst [vmem:[#allocation47_spill] sm:$0xff] %v5325_v62  ;;  %10685 = vst [vmem:[#allocation48_spill] sm:$0xff] %v5327_v33  ;;  %969 = vperm.xlu1 %4515, %v845_v49   ;;  %966 = vperm.xlu0 %4514, %v844_v54   ;;  %v849_v62 = vsel %vm786_vm0, 1, %v10466_v0  ;;  %v848_v33 = vsel %vm785_vm1, 1, %v10466_v0  ;;  %vm802_vm0 = vcmp.eq.s32.totalorder %v5142_v30, 1  ;;  %vm801_vm1 = vcmp.eq.s32.totalorder %v5129_v9, 1 }
  0xda   : > { %v5333_v1 = vpop.permute.xlu1 %463  ;;  %v5335_v2 = vpop.permute.xlu0 %460 }
  0xdb   : > { %10686 = vst [vmem:[#allocation49_spill] sm:$0xff] %v5333_v1  ;;  %10687 = vst [vmem:[#allocation50_spill] sm:$0xff] %v5335_v2  ;;  %975 = vperm.xlu1 %4515, %v847_v41   ;;  %972 = vperm.xlu0 %4514, %v846_v6   ;;  %v851_v1 = vsel %vm788_vm2, 1, %v10466_v0  ;;  %v850_v2 = vsel %vm787_vm3, 1, %v10466_v0  ;;  %vm804_vm2 = vcmp.eq.s32.totalorder %v5152_v46, 1  ;;  %vm803_vm3 = vcmp.eq.s32.totalorder %v5139_v25, 1 }
  0xde   : > { %v5341_v49 = vpop.permute.xlu1 %469  ;;  %v5343_v54 = vpop.permute.xlu0 %466 }
  0xdf   : > { %10688 = vst [vmem:[#allocation51_spill] sm:$0xff] %v5341_v49  ;;  %10689 = vst [vmem:[#allocation52_spill] sm:$0xff] %v5343_v54  ;;  %981 = vperm.xlu1 %4515, %v849_v62   ;;  %978 = vperm.xlu0 %4514, %v848_v33   ;;  %v853_v49 = vsel %vm790_vm4, 1, %v10466_v0  ;;  %v852_v54 = vsel %vm789_vm5, 1, %v10466_v0 }
  0xe2   : > { %v5349_v41 = vpop.permute.xlu1 %475  ;;  %v5351_v6 = vpop.permute.xlu0 %472 }
  0xe3   : > { %10690 = vst [vmem:[#allocation53_spill] sm:$0xff] %v5349_v41  ;;  %10691 = vst [vmem:[#allocation54_spill] sm:$0xff] %v5351_v6  ;;  %987 = vperm.xlu1 %4515, %v851_v1   ;;  %984 = vperm.xlu0 %4514, %v850_v2   ;;  %v855_v41 = vsel %vm792_vm6, 1, %v10466_v0  ;;  %v854_v6 = vsel %vm791_vm7, 1, %v10466_v0 }
  0xe6   : > { %v5357_v62 = vpop.permute.xlu1 %481  ;;  %v5359_v33 = vpop.permute.xlu0 %478 }
  0xe7   : > { %10692 = vst [vmem:[#allocation55_spill] sm:$0xff] %v5357_v62  ;;  %10693 = vst [vmem:[#allocation56_spill] sm:$0xff] %v5359_v33  ;;  %993 = vperm.xlu1 %4515, %v853_v49   ;;  %990 = vperm.xlu0 %4514, %v852_v54   ;;  %v857_v62 = vsel %vm794_vm8, 1, %v10466_v0  ;;  %v856_v33 = vsel %vm793_vm9, 1, %v10466_v0  ;;  %vm810_vm8 = vcmp.eq.s32.totalorder %v5182_v57, 1 }
  0xea   : > { %v5365_v1 = vpop.permute.xlu1 %487  ;;  %v5367_v2 = vpop.permute.xlu0 %484 }
  0xeb   : > { %10694 = vst [vmem:[#allocation57_spill] sm:$0xff] %v5365_v1  ;;  %10695 = vst [vmem:[#allocation58_spill] sm:$0xff] %v5367_v2  ;;  %999 = vperm.xlu1 %4515, %v855_v41   ;;  %996 = vperm.xlu0 %4514, %v854_v6   ;;  %v859_v1 = vsel %vm796_vm10, 1, %v10466_v0  ;;  %v858_v2 = vsel %vm795_vm11, 1, %v10466_v0  ;;  %vm812_vm10 = vcmp.eq.s32.totalorder %v5192_v22, 1 }
  0xee   : > { %v5373_v49 = vpop.permute.xlu1 %493  ;;  %v5375_v54 = vpop.permute.xlu0 %490 }
  0xef   : > { %10696 = vst [vmem:[#allocation59_spill] sm:$0xff] %v5373_v49  ;;  %10697 = vst [vmem:[#allocation60_spill] sm:$0xff] %v5375_v54  ;;  %1005 = vperm.xlu1 %4515, %v857_v62   ;;  %1002 = vperm.xlu0 %4514, %v856_v33   ;;  %v861_v49 = vsel %vm798_vm12, 1, %v10466_v0  ;;  %v860_v54 = vsel %vm797_vm13, 1, %v10466_v0  ;;  %vm814_vm12 = vcmp.eq.s32.totalorder %v5199_v38, 1  ;;  %vm813_vm13 = vcmp.eq.s32.totalorder %v5189_v17, 1 }
  0xf2   : > { %v5381_v41 = vpop.permute.xlu1 %499  ;;  %v5383_v6 = vpop.permute.xlu0 %496 }
  0xf3   : > { %10698 = vst [vmem:[#allocation61_spill] sm:$0xff] %v5381_v41  ;;  %10699 = vst [vmem:[#allocation62_spill] sm:$0xff] %v5383_v6  ;;  %1011 = vperm.xlu1 %4515, %v859_v1   ;;  %1008 = vperm.xlu0 %4514, %v858_v2   ;;  %v863_v41 = vsel %vm800_vm14, 1, %v10466_v0  ;;  %v862_v6 = vsel %vm799_vm15, 1, %v10466_v0  ;;  %vm1262_vm14 = vcmp.eq.s32.totalorder %v4903_v4, 2 }
  0xf6   : > { %v5389_v62 = vpop.permute.xlu1 %505  ;;  %v5391_v33 = vpop.permute.xlu0 %502 }
  0xf7   : > { %10700 = vst [vmem:[#allocation63_spill] sm:$0xff] %v5389_v62  ;;  %10701 = vst [vmem:[#allocation64_spill] sm:$0xff] %v5391_v33  ;;  %1017 = vperm.xlu1 %4515, %v861_v49   ;;  %1014 = vperm.xlu0 %4514, %v860_v54   ;;  %v865_v62 = vsel %vm802_vm0, 1, %v10466_v0  ;;  %v864_v33 = vsel %vm801_vm1, 1, %v10466_v0  ;;  %vm1264_vm0 = vcmp.eq.s32.totalorder %v4897_v3, 2 }
  0xf8   : > { %v1327_v4 = vsel %vm1264_vm0, 1, %v10466_v0  ;;  %vm1280_vm0 = vcmp.eq.s32.totalorder %v4979_v35, 2 }
  0xfa   : > { %v5397_v1 = vpop.permute.xlu1 %511  ;;  %v5399_v2 = vpop.permute.xlu0 %508 }
  0xfb   : > { %10702 = vst [vmem:[#allocation65_spill] sm:$0xff] %v5397_v1  ;;  %10703 = vst [vmem:[#allocation66_spill] sm:$0xff] %v5399_v2  ;;  %1023 = vperm.xlu1 %4515, %v863_v41   ;;  %1020 = vperm.xlu0 %4514, %v862_v6   ;;  %v867_v1 = vsel %vm804_vm2, 1, %v10466_v0  ;;  %v866_v2 = vsel %vm803_vm3, 1, %v10466_v0  ;;  %v10706_v41 = vld [vmem:[#allocation13_spill] sm:$0xff]  ;;  %v10707_v6 = vld [vmem:[#allocation10_spill] sm:$0xff] }
  0xfc   : > { %vm806_vm4 = vcmp.eq.s32.totalorder %v10706_v41, 1  ;;  %vm805_vm5 = vcmp.eq.s32.totalorder %v10707_v6, 1  ;;  %vm1266_vm2 = vcmp.eq.s32.totalorder %v4909_v7, 2  ;;  %vm1265_vm3 = vcmp.eq.s32.totalorder %v4912_v8, 2 }
  0xfd   : > { %v1329_v3 = vsel %vm1266_vm2, 1, %v10466_v0  ;;  %vm1282_vm2 = vcmp.eq.s32.totalorder %v4989_v39, 2 }
  0xfe   : > { %v5405_v49 = vpop.permute.xlu1 %517  ;;  %v5407_v54 = vpop.permute.xlu0 %514  ;;  %v1345_v35 = vsel %vm1282_vm2, 1, %v10466_v0  ;;  %vm1298_vm2 = vcmp.eq.s32.totalorder %v5069_v18, 2 }
  0xff   : > { %10704 = vst [vmem:[#allocation67_spill] sm:$0xff] %v5405_v49  ;;  %10705 = vst [vmem:[#allocation68_spill] sm:$0xff] %v5407_v54  ;;  %1029 = vperm.xlu1 %4515, %v865_v62   ;;  %1026 = vperm.xlu0 %4514, %v864_v33   ;;  %v869_v49 = vsel %vm806_vm4, 1, %v10466_v0  ;;  %v868_v54 = vsel %vm805_vm5, 1, %v10466_v0  ;;  %v10710_v62 = vld [vmem:[#allocation15_spill] sm:$0xff]  ;;  %v10711_v33 = vld [vmem:[#allocation12_spill] sm:$0xff] }
 0x100   : > { %vm808_vm6 = vcmp.eq.s32.totalorder %v10710_v62, 1  ;;  %vm807_vm7 = vcmp.eq.s32.totalorder %v10711_v33, 1  ;;  %vm1268_vm4 = vcmp.eq.s32.totalorder %v4919_v11, 2  ;;  %vm1267_vm5 = vcmp.eq.s32.totalorder %v4922_v12, 2 }
 0x101   : > { %v1331_v7 = vsel %vm1268_vm4, 1, %v10466_v0  ;;  %v1330_v8 = vsel %vm1267_vm5, 1, %v10466_v0  ;;  %vm1284_vm4 = vcmp.eq.s32.totalorder %v4999_v43, 2  ;;  %vm1283_vm5 = vcmp.eq.s32.totalorder %v5002_v44, 2 }
 0x102   : > { %v5413_v30 = vpop.permute.xlu1 %523  ;;  %v5415_v14 = vpop.permute.xlu0 %520  ;;  %v1347_v39 = vsel %vm1284_vm4, 1, %v10466_v0  ;;  %vm1300_vm4 = vcmp.eq.s32.totalorder %v5079_v26, 2 }
 0x103   : > { %10708 = vst [vmem:[#allocation10_spill] sm:$0xff] %v5413_v30  ;;  %10709 = vst [vmem:[#allocation69_spill] sm:$0xff] %v5415_v14  ;;  %1035 = vperm.xlu1 %4515, %v867_v1   ;;  %1032 = vperm.xlu0 %4514, %v866_v2   ;;  %v871_v30 = vsel %vm808_vm6, 1, %v10466_v0  ;;  %v870_v14 = vsel %vm807_vm7, 1, %v10466_v0  ;;  %v10714_v1 = vld [vmem:[#allocation14_spill] sm:$0xff]  ;;  %vm1270_vm6 = vcmp.eq.s32.totalorder %v4929_v15, 2 }
 0x104   : > { %vm809_vm9 = vcmp.eq.s32.totalorder %v10714_v1, 1  ;;  %vm1269_vm7 = vcmp.eq.s32.totalorder %v4932_v16, 2  ;;  %v1333_v11 = vsel %vm1270_vm6, 1, %v10466_v0  ;;  %vm1286_vm6 = vcmp.eq.s32.totalorder %v5009_v47, 2 }
 0x105   : > { %v1332_v12 = vsel %vm1269_vm7, 1, %v10466_v0  ;;  %vm1285_vm7 = vcmp.eq.s32.totalorder %v5012_v48, 2  ;;  %v1349_v43 = vsel %vm1286_vm6, 1, %v10466_v0  ;;  %v1363_v18 = vsel %vm1300_vm4, 1, %v10466_v0 }
 0x106   : > { %v5421_v46 = vpop.permute.xlu1 %529  ;;  %v5423_v25 = vpop.permute.xlu0 %526  ;;  %v1348_v44 = vsel %vm1285_vm7, 1, %v10466_v0  ;;  %vm1302_vm6 = vcmp.eq.s32.totalorder %v5089_v34, 2  ;;  %vm1301_vm7 = vcmp.eq.s32.totalorder %v5092_v37, 2  ;;  %vm1316_vm4 = vcmp.eq.s32.totalorder %v10711_v33, 2 }
 0x107   : > { %10712 = vst [vmem:[#allocation12_spill] sm:$0xff] %v5421_v46  ;;  %10713 = vst [vmem:[#allocation70_spill] sm:$0xff] %v5423_v25  ;;  %1041 = vperm.xlu1 %4515, %v869_v49   ;;  %1038 = vperm.xlu0 %4514, %v868_v54   ;;  %v873_v46 = vsel %vm810_vm8, 1, %v10466_v0  ;;  %v872_v25 = vsel %vm809_vm9, 1, %v10466_v0  ;;  %v10717_v49 = vld [vmem:[#allocation16_spill] sm:$0xff]  ;;  %vm1272_vm8 = vcmp.eq.s32.totalorder %v4939_v19, 2 }
 0x108   : > { %vm811_vm11 = vcmp.eq.s32.totalorder %v10717_v49, 1  ;;  %vm1271_vm9 = vcmp.eq.s32.totalorder %v4942_v20, 2  ;;  %v1335_v15 = vsel %vm1272_vm8, 1, %v10466_v0  ;;  %vm1288_vm8 = vcmp.eq.s32.totalorder %v5019_v51, 2 }
 0x109   : > { %v1334_v16 = vsel %vm1271_vm9, 1, %v10466_v0  ;;  %vm1287_vm9 = vcmp.eq.s32.totalorder %v5022_v52, 2  ;;  %v1351_v47 = vsel %vm1288_vm8, 1, %v10466_v0  ;;  %v1365_v26 = vsel %vm1302_vm6, 1, %v10466_v0 }
 0x10a   : > { %v5429_v2 = vpop.permute.xlu1 %535  ;;  %v5431_v41 = vpop.permute.xlu0 %532  ;;  %v1350_v48 = vsel %vm1287_vm9, 1, %v10466_v0  ;;  %vm1304_vm8 = vcmp.eq.s32.totalorder %v5099_v42, 2  ;;  %vm1303_vm9 = vcmp.eq.s32.totalorder %v5102_v45, 2  ;;  %vm1318_vm6 = vcmp.eq.s32.totalorder %v10714_v1, 2 }
 0x10b   : > { %10715 = vst [vmem:[#allocation14_spill] sm:$0xff] %v5429_v2  ;;  %10716 = vst [vmem:[#allocation71_spill] sm:$0xff] %v5431_v41  ;;  %1047 = vperm.xlu1 %4515, %v871_v30   ;;  %1044 = vperm.xlu0 %4514, %v870_v14   ;;  %v875_v2 = vsel %vm812_vm10, 1, %v10466_v0  ;;  %v874_v41 = vsel %vm811_vm11, 1, %v10466_v0  ;;  %vm1274_vm10 = vcmp.eq.s32.totalorder %v4949_v23, 2  ;;  %vm1273_vm11 = vcmp.eq.s32.totalorder %v4952_v24, 2 }
 0x10c   : > { %v1337_v19 = vsel %vm1274_vm10, 1, %v10466_v0  ;;  %v1336_v20 = vsel %vm1273_vm11, 1, %v10466_v0  ;;  %vm1290_vm10 = vcmp.eq.s32.totalorder %v5029_v55, 2  ;;  %vm1289_vm11 = vcmp.eq.s32.totalorder %v5032_v56, 2 }
 0x10d   : > { %v1353_v51 = vsel %vm1290_vm10, 1, %v10466_v0  ;;  %v1352_v52 = vsel %vm1289_vm11, 1, %v10466_v0  ;;  %v1367_v34 = vsel %vm1304_vm8, 1, %v10466_v0  ;;  %v1366_v37 = vsel %vm1303_vm9, 1, %v10466_v0 }
 0x10e   : > { %v5437_v54 = vpop.permute.xlu1 %541  ;;  %v5439_v62 = vpop.permute.xlu0 %538  ;;  %vm1306_vm10 = vcmp.eq.s32.totalorder %v5109_v50, 2  ;;  %vm1305_vm11 = vcmp.eq.s32.totalorder %v5112_v53, 2  ;;  %v1381_v33 = vsel %vm1318_vm6, 1, %v10466_v0  ;;  %vm1320_vm8 = vcmp.eq.s32.totalorder %v10717_v49, 2 }
 0x10f   : > { %10718 = vst [vmem:[#allocation16_spill] sm:$0xff] %v5437_v54  ;;  %10719 = vst [vmem:[#allocation72_spill] sm:$0xff] %v5439_v62  ;;  %1053 = vperm.xlu1 %4515, %v873_v46   ;;  %1050 = vperm.xlu0 %4514, %v872_v25   ;;  %v877_v54 = vsel %vm814_vm12, 1, %v10466_v0  ;;  %v876_v62 = vsel %vm813_vm13, 1, %v10466_v0  ;;  %v10722_v25 = vld [vmem:[#allocation6_spill] sm:$0xff]  ;;  %vm1276_vm12 = vcmp.eq.s32.totalorder %v4959_v27, 2 }
 0x110   : > { %vm1261_vm15 = vcmp.eq.s32.totalorder %v10722_v25, 2  ;;  %vm1275_vm13 = vcmp.eq.s32.totalorder %v4962_v28, 2  ;;  %v1339_v23 = vsel %vm1276_vm12, 1, %v10466_v0  ;;  %vm1292_vm12 = vcmp.eq.s32.totalorder %v5039_v59, 2 }
 0x111   : > { %v1338_v24 = vsel %vm1275_vm13, 1, %v10466_v0  ;;  %vm1291_vm13 = vcmp.eq.s32.totalorder %v5042_v60, 2  ;;  %v1355_v55 = vsel %vm1292_vm12, 1, %v10466_v0  ;;  %v1369_v42 = vsel %vm1306_vm10, 1, %v10466_v0 }
 0x112   : > { %v5445_v14 = vpop.permute.xlu1 %547  ;;  %v5447_v30 = vpop.permute.xlu0 %544  ;;  %v1354_v56 = vsel %vm1291_vm13, 1, %v10466_v0  ;;  %v1368_v45 = vsel %vm1305_vm11, 1, %v10466_v0  ;;  %vm1308_vm12 = vcmp.eq.s32.totalorder %v5119_v58, 2  ;;  %vm1307_vm13 = vcmp.eq.s32.totalorder %v5122_v61, 2 }
 0x113   : > { %10720 = vst [vmem:[#allocation73_spill] sm:$0xff] %v5445_v14  ;;  %10721 = vst [vmem:[#allocation74_spill] sm:$0xff] %v5447_v30  ;;  %1059 = vperm.xlu1 %4515, %v875_v2   ;;  %1056 = vperm.xlu0 %4514, %v874_v41   ;;  %v1325_v14 = vsel %vm1262_vm14, 1, %v10466_v0  ;;  %v1324_v30 = vsel %vm1261_vm15, 1, %v10466_v0  ;;  %v10725_v41 = vld [vmem:[#allocation5_spill] sm:$0xff]  ;;  %vm1278_vm14 = vcmp.eq.s32.totalorder %v4969_v31, 2 }
 0x114   : > { %vm1263_vm1 = vcmp.eq.s32.totalorder %v10725_v41, 2  ;;  %v1328_v41 = vsel %vm1265_vm3, 1, %v10466_v0  ;;  %vm1277_vm15 = vcmp.eq.s32.totalorder %v4972_v32, 2  ;;  %v1341_v27 = vsel %vm1278_vm14, 1, %v10466_v0 }
 0x115   : > { %v1326_v25 = vsel %vm1263_vm1, 1, %v10466_v0  ;;  %v1340_v28 = vsel %vm1277_vm15, 1, %v10466_v0  ;;  %vm1279_vm1 = vcmp.eq.s32.totalorder %v4982_v36, 2  ;;  %v1343_v31 = vsel %vm1280_vm0, 1, %v10466_v0 }
 0x116   : > { %v5453_v46 = vpop.permute.xlu1 %553  ;;  %v5455_v22 = vpop.permute.xlu0 %550  ;;  %v1342_v32 = vsel %vm1279_vm1, 1, %v10466_v0  ;;  %vm1281_vm3 = vcmp.eq.s32.totalorder %v4992_v40, 2  ;;  %v1346_v40 = vsel %vm1283_vm5, 1, %v10466_v0  ;;  %vm1294_vm14 = vcmp.eq.s32.totalorder %v5049_v63, 2 }
 0x117   : > { %10723 = vst [vmem:[#allocation6_spill] sm:$0xff] %v5453_v46  ;;  %10724 = vst [vmem:[#allocation75_spill] sm:$0xff] %v5455_v22  ;;  %1065 = vperm.xlu1 %4515, %v877_v54   ;;  %1062 = vperm.xlu0 %4514, %v876_v62   ;;  %v1344_v36 = vsel %vm1281_vm3, 1, %v10466_v0  ;;  %vm1293_vm15 = vcmp.eq.s32.totalorder %v5052_v5, 2  ;;  %v1357_v59 = vsel %vm1294_vm14, 1, %v10466_v0  ;;  %vm1296_vm0 = vcmp.eq.s32.totalorder %v5059_v10, 2 }
 0x118   : > { %v1356_v60 = vsel %vm1293_vm15, 1, %v10466_v0  ;;  %vm1295_vm1 = vcmp.eq.s32.totalorder %v5062_v13, 2  ;;  %v1359_v63 = vsel %vm1296_vm0, 1, %v10466_v0  ;;  %vm1297_vm3 = vcmp.eq.s32.totalorder %v5072_v21, 2  ;;  %v6093_v46 = vld [vmem:[%s4888_s28 + $0x1b8] sm:$0xff] }
 0x119   : > { %v1358_v5 = vsel %vm1295_vm1, 1, %v10466_v0  ;;  %v1361_v10 = vsel %vm1298_vm2, 1, %v10466_v0  ;;  %v1360_v13 = vsel %vm1297_vm3, 1, %v10466_v0  ;;  %vm1299_vm5 = vcmp.eq.s32.totalorder %v5082_v29, 2  ;;  %10853 = vst [vmem:[#allocation186_spill] sm:$0xff] %v6093_v46 }
 0x11a   : > { %v5461_v2 = vpop.permute.xlu1 %879  ;;  %v5463_v38 = vpop.permute.xlu0 %556  ;;  %v1362_v21 = vsel %vm1299_vm5, 1, %v10466_v0  ;;  %v1364_v29 = vsel %vm1301_vm7, 1, %v10466_v0  ;;  %v1371_v50 = vsel %vm1308_vm12, 1, %v10466_v0  ;;  %v1370_v53 = vsel %vm1307_vm13, 1, %v10466_v0 }
 0x11b   : > { %10726 = vst [vmem:[#allocation5_spill] sm:$0xff] %v5461_v2  ;;  %10727 = vst [vmem:[#allocation76_spill] sm:$0xff] %v5463_v38  ;;  %1391 = vperm.xlu1 %4515, %v1325_v14   ;;  %1388 = vperm.xlu0 %4514, %v1324_v30   ;;  %vm1310_vm14 = vcmp.eq.s32.totalorder %v5129_v9, 2  ;;  %vm1314_vm2 = vcmp.eq.s32.totalorder %v10707_v6, 2  ;;  %v1379_v6 = vsel %vm1316_vm4, 1, %v10466_v0  ;;  %vm1319_vm9 = vcmp.eq.s32.totalorder %v5182_v57, 2 }
 0x11c   : > { %v1373_v58 = vsel %vm1310_vm14, 1, %v10466_v0  ;;  %vm1322_vm10 = vcmp.eq.s32.totalorder %v5189_v17, 2  ;;  %v6079_v2 = vld [vmem:[%s4888_s28 + $0x1a8] sm:$0xff] }
 0x11d   : > { %v1385_v57 = vsel %vm1322_vm10, 1, %v10466_v0 }
 0x11e   : > { %v5469_v62 = vpop.permute.xlu1 %885  ;;  %v5471_v54 = vpop.permute.xlu0 %882 }
 0x11f   : > { %10728 = vst [vmem:[#allocation77_spill] sm:$0xff] %v5469_v62  ;;  %10729 = vst [vmem:[#allocation78_spill] sm:$0xff] %v5471_v54  ;;  %1397 = vperm.xlu1 %4515, %v1327_v4   ;;  %1394 = vperm.xlu0 %4514, %v1326_v25   ;;  %v6065_v62 = vld [vmem:[%s4888_s28 + $0x198] sm:$0xff] }
 0x122   : > { %v5477_v14 = vpop.permute.xlu1 %891  ;;  %v5479_v30 = vpop.permute.xlu0 %888 }
 0x123   : > { %10730 = vst [vmem:[#allocation79_spill] sm:$0xff] %v5477_v14  ;;  %10731 = vst [vmem:[#allocation80_spill] sm:$0xff] %v5479_v30  ;;  %1403 = vperm.xlu1 %4515, %v1329_v3   ;;  %1400 = vperm.xlu0 %4514, %v1328_v41   ;;  %v6051_v14 = vld [vmem:[%s4888_s28 + $0x188] sm:$0xff] }
 0x126   : > { %v5485_v4 = vpop.permute.xlu1 %897  ;;  %v5487_v25 = vpop.permute.xlu0 %894 }
 0x127   : > { %10732 = vst [vmem:[#allocation81_spill] sm:$0xff] %v5485_v4  ;;  %10733 = vst [vmem:[#allocation82_spill] sm:$0xff] %v5487_v25  ;;  %1409 = vperm.xlu1 %4515, %v1331_v7   ;;  %1406 = vperm.xlu0 %4514, %v1330_v8   ;;  %v6037_v4 = vld [vmem:[%s4888_s28 + $0x178] sm:$0xff] }
 0x12a   : > { %v5493_v3 = vpop.permute.xlu1 %903  ;;  %v5495_v41 = vpop.permute.xlu0 %900 }
 0x12b   : > { %10734 = vst [vmem:[#allocation83_spill] sm:$0xff] %v5493_v3  ;;  %10735 = vst [vmem:[#allocation84_spill] sm:$0xff] %v5495_v41  ;;  %1415 = vperm.xlu1 %4515, %v1333_v11   ;;  %1412 = vperm.xlu0 %4514, %v1332_v12   ;;  %v6023_v3 = vld [vmem:[%s4888_s28 + $0x168] sm:$0xff] }
 0x12e   : > { %v5501_v7 = vpop.permute.xlu1 %909  ;;  %v5503_v8 = vpop.permute.xlu0 %906 }
 0x12f   : > { %10736 = vst [vmem:[#allocation85_spill] sm:$0xff] %v5501_v7  ;;  %10737 = vst [vmem:[#allocation86_spill] sm:$0xff] %v5503_v8  ;;  %1421 = vperm.xlu1 %4515, %v1335_v15   ;;  %1418 = vperm.xlu0 %4514, %v1334_v16   ;;  %v6009_v7 = vld [vmem:[%s4888_s28 + $0x158] sm:$0xff] }
 0x132   : > { %v5509_v11 = vpop.permute.xlu1 %915  ;;  %v5511_v12 = vpop.permute.xlu0 %912 }
 0x133   : > { %10738 = vst [vmem:[#allocation87_spill] sm:$0xff] %v5509_v11  ;;  %10739 = vst [vmem:[#allocation88_spill] sm:$0xff] %v5511_v12  ;;  %1427 = vperm.xlu1 %4515, %v1337_v19   ;;  %1424 = vperm.xlu0 %4514, %v1336_v20   ;;  %v5995_v11 = vld [vmem:[%s4888_s28 + $0x148] sm:$0xff] }
 0x136   : > { %v5517_v15 = vpop.permute.xlu1 %921  ;;  %v5519_v16 = vpop.permute.xlu0 %918 }
 0x137   : > { %10740 = vst [vmem:[#allocation89_spill] sm:$0xff] %v5517_v15  ;;  %10741 = vst [vmem:[#allocation90_spill] sm:$0xff] %v5519_v16  ;;  %1433 = vperm.xlu1 %4515, %v1339_v23   ;;  %1430 = vperm.xlu0 %4514, %v1338_v24   ;;  %v5981_v15 = vld [vmem:[%s4888_s28 + $0x138] sm:$0xff] }
 0x13a   : > { %v5525_v19 = vpop.permute.xlu1 %927  ;;  %v5527_v20 = vpop.permute.xlu0 %924 }
 0x13b   : > { %10742 = vst [vmem:[#allocation91_spill] sm:$0xff] %v5525_v19  ;;  %10743 = vst [vmem:[#allocation92_spill] sm:$0xff] %v5527_v20  ;;  %1439 = vperm.xlu1 %4515, %v1341_v27   ;;  %1436 = vperm.xlu0 %4514, %v1340_v28   ;;  %v5967_v19 = vld [vmem:[%s4888_s28 + $0x128] sm:$0xff] }
 0x13e   : > { %v5533_v23 = vpop.permute.xlu1 %933  ;;  %v5535_v24 = vpop.permute.xlu0 %930 }
 0x13f   : > { %10744 = vst [vmem:[#allocation93_spill] sm:$0xff] %v5533_v23  ;;  %10745 = vst [vmem:[#allocation94_spill] sm:$0xff] %v5535_v24  ;;  %1445 = vperm.xlu1 %4515, %v1343_v31   ;;  %1442 = vperm.xlu0 %4514, %v1342_v32   ;;  %v5953_v23 = vld [vmem:[%s4888_s28 + $0x118] sm:$0xff] }
 0x142   : > { %v5541_v27 = vpop.permute.xlu1 %939  ;;  %v5543_v28 = vpop.permute.xlu0 %936 }
 0x143   : > { %10746 = vst [vmem:[#allocation95_spill] sm:$0xff] %v5541_v27  ;;  %10747 = vst [vmem:[#allocation96_spill] sm:$0xff] %v5543_v28  ;;  %1451 = vperm.xlu1 %4515, %v1345_v35   ;;  %1448 = vperm.xlu0 %4514, %v1344_v36   ;;  %v5939_v27 = vld [vmem:[%s4888_s28 + $0x108] sm:$0xff] }
 0x146   : > { %v5549_v31 = vpop.permute.xlu1 %945  ;;  %v5551_v32 = vpop.permute.xlu0 %942 }
 0x147   : > { %10748 = vst [vmem:[#allocation97_spill] sm:$0xff] %v5549_v31  ;;  %10749 = vst [vmem:[#allocation98_spill] sm:$0xff] %v5551_v32  ;;  %1457 = vperm.xlu1 %4515, %v1347_v39   ;;  %1454 = vperm.xlu0 %4514, %v1346_v40   ;;  %v5925_v31 = vld [vmem:[%s4888_s28 + $0xf8] sm:$0xff] }
 0x14a   : > { %v5557_v35 = vpop.permute.xlu1 %951  ;;  %v5559_v36 = vpop.permute.xlu0 %948 }
 0x14b   : > { %10750 = vst [vmem:[#allocation99_spill] sm:$0xff] %v5557_v35  ;;  %10751 = vst [vmem:[#allocation100_spill] sm:$0xff] %v5559_v36  ;;  %1463 = vperm.xlu1 %4515, %v1349_v43   ;;  %1460 = vperm.xlu0 %4514, %v1348_v44   ;;  %v5911_v35 = vld [vmem:[%s4888_s28 + $0xe8] sm:$0xff] }
 0x14e   : > { %v5565_v39 = vpop.permute.xlu1 %957  ;;  %v5567_v40 = vpop.permute.xlu0 %954 }
 0x14f   : > { %10752 = vst [vmem:[#allocation101_spill] sm:$0xff] %v5565_v39  ;;  %10753 = vst [vmem:[#allocation102_spill] sm:$0xff] %v5567_v40  ;;  %1469 = vperm.xlu1 %4515, %v1351_v47   ;;  %1466 = vperm.xlu0 %4514, %v1350_v48   ;;  %v5897_v39 = vld [vmem:[%s4888_s28 + $0xd8] sm:$0xff] }
 0x152   : > { %v5573_v43 = vpop.permute.xlu1 %963  ;;  %v5575_v44 = vpop.permute.xlu0 %960 }
 0x153   : > { %10754 = vst [vmem:[#allocation103_spill] sm:$0xff] %v5573_v43  ;;  %10755 = vst [vmem:[#allocation104_spill] sm:$0xff] %v5575_v44  ;;  %1475 = vperm.xlu1 %4515, %v1353_v51   ;;  %1472 = vperm.xlu0 %4514, %v1352_v52   ;;  %v5883_v43 = vld [vmem:[%s4888_s28 + $0xc8] sm:$0xff] }
 0x156   : > { %v5581_v47 = vpop.permute.xlu1 %969  ;;  %v5583_v48 = vpop.permute.xlu0 %966 }
 0x157   : > { %10756 = vst [vmem:[#allocation105_spill] sm:$0xff] %v5581_v47  ;;  %10757 = vst [vmem:[#allocation106_spill] sm:$0xff] %v5583_v48  ;;  %1481 = vperm.xlu1 %4515, %v1355_v55   ;;  %1478 = vperm.xlu0 %4514, %v1354_v56   ;;  %v5869_v47 = vld [vmem:[%s4888_s28 + $0xb8] sm:$0xff] }
 0x15a   : > { %v5589_v51 = vpop.permute.xlu1 %975  ;;  %v5591_v52 = vpop.permute.xlu0 %972 }
 0x15b   : > { %10758 = vst [vmem:[#allocation107_spill] sm:$0xff] %v5589_v51  ;;  %10759 = vst [vmem:[#allocation108_spill] sm:$0xff] %v5591_v52  ;;  %1487 = vperm.xlu1 %4515, %v1357_v59   ;;  %1484 = vperm.xlu0 %4514, %v1356_v60   ;;  %v5855_v51 = vld [vmem:[%s4888_s28 + $0xa8] sm:$0xff] }
 0x15e   : > { %v5597_v55 = vpop.permute.xlu1 %981  ;;  %v5599_v56 = vpop.permute.xlu0 %978 }
 0x15f   : > { %10760 = vst [vmem:[#allocation109_spill] sm:$0xff] %v5597_v55  ;;  %10761 = vst [vmem:[#allocation110_spill] sm:$0xff] %v5599_v56  ;;  %1493 = vperm.xlu1 %4515, %v1359_v63   ;;  %1490 = vperm.xlu0 %4514, %v1358_v5   ;;  %v5841_v55 = vld [vmem:[%s4888_s28 + $0x98] sm:$0xff] }
 0x162   : > { %v5605_v59 = vpop.permute.xlu1 %987  ;;  %v5607_v60 = vpop.permute.xlu0 %984 }
 0x163   : > { %10762 = vst [vmem:[#allocation111_spill] sm:$0xff] %v5605_v59  ;;  %10763 = vst [vmem:[#allocation112_spill] sm:$0xff] %v5607_v60  ;;  %1499 = vperm.xlu1 %4515, %v1361_v10   ;;  %1496 = vperm.xlu0 %4514, %v1360_v13   ;;  %v5827_v59 = vld [vmem:[%s4888_s28 + $0x88] sm:$0xff] }
 0x166   : > { %v5613_v63 = vpop.permute.xlu1 %993  ;;  %v5615_v5 = vpop.permute.xlu0 %990 }
 0x167   : > { %10764 = vst [vmem:[#allocation113_spill] sm:$0xff] %v5613_v63  ;;  %10765 = vst [vmem:[#allocation114_spill] sm:$0xff] %v5615_v5  ;;  %1505 = vperm.xlu1 %4515, %v1363_v18   ;;  %1502 = vperm.xlu0 %4514, %v1362_v21   ;;  %v5813_v63 = vld [vmem:[%s4888_s28 + $0x78] sm:$0xff] }
 0x16a   : > { %v5621_v10 = vpop.permute.xlu1 %999  ;;  %v5623_v13 = vpop.permute.xlu0 %996 }
 0x16b   : > { %10766 = vst [vmem:[#allocation115_spill] sm:$0xff] %v5621_v10  ;;  %10767 = vst [vmem:[#allocation116_spill] sm:$0xff] %v5623_v13  ;;  %1511 = vperm.xlu1 %4515, %v1365_v26   ;;  %1508 = vperm.xlu0 %4514, %v1364_v29   ;;  %v5799_v10 = vld [vmem:[%s4888_s28 + $0x68] sm:$0xff] }
 0x16e   : > { %v5629_v18 = vpop.permute.xlu1 %1005  ;;  %v5631_v21 = vpop.permute.xlu0 %1002 }
 0x16f   : > { %10768 = vst [vmem:[#allocation117_spill] sm:$0xff] %v5629_v18  ;;  %10769 = vst [vmem:[#allocation118_spill] sm:$0xff] %v5631_v21  ;;  %1517 = vperm.xlu1 %4515, %v1367_v34   ;;  %1514 = vperm.xlu0 %4514, %v1366_v37   ;;  %v10772_v34 = vld [vmem:[#allocation7_spill] sm:$0xff]  ;;  %v5785_v18 = vld [vmem:[%s4888_s28 + $0x58] sm:$0xff] }
 0x170   : > { %vm1309_vm15 = vcmp.eq.s32.totalorder %v10772_v34, 2 }
 0x171   : > { %v1372_v61 = vsel %vm1309_vm15, 1, %v10466_v0 }
 0x172   : > { %v5637_v26 = vpop.permute.xlu1 %1011  ;;  %v5639_v29 = vpop.permute.xlu0 %1008 }
 0x173   : > { %10770 = vst [vmem:[#allocation119_spill] sm:$0xff] %v5637_v26  ;;  %10771 = vst [vmem:[#allocation120_spill] sm:$0xff] %v5639_v29  ;;  %1523 = vperm.xlu1 %4515, %v1369_v42   ;;  %1520 = vperm.xlu0 %4514, %v1368_v45   ;;  %v10775_v42 = vld [vmem:[#allocation8_spill] sm:$0xff]  ;;  %v10776_v45 = vld [vmem:[#allocation9_spill] sm:$0xff] }
 0x174   : > { %vm1312_vm0 = vcmp.eq.s32.totalorder %v10775_v42, 2  ;;  %vm1311_vm1 = vcmp.eq.s32.totalorder %v10776_v45, 2  ;;  %v1377_v42 = vsel %vm1314_vm2, 1, %v10466_v0 }
 0x175   : > { %v1375_v9 = vsel %vm1312_vm0, 1, %v10466_v0  ;;  %v1374_v34 = vsel %vm1311_vm1, 1, %v10466_v0 }
 0x176   : > { %v5645_v37 = vpop.permute.xlu1 %1017  ;;  %v5647_v21 = vpop.permute.xlu0 %1014 }
 0x177   : > { %10773 = vst [vmem:[#allocation7_spill] sm:$0xff] %v5645_v37  ;;  %10774 = vst [vmem:[#allocation121_spill] sm:$0xff] %v5647_v21  ;;  %1529 = vperm.xlu1 %4515, %v1371_v50   ;;  %1526 = vperm.xlu0 %4514, %v1370_v53   ;;  %v10779_v50 = vld [vmem:[#allocation11_spill] sm:$0xff] }
 0x178   : > { %vm1313_vm3 = vcmp.eq.s32.totalorder %v10779_v50, 2 }
 0x179   : > { %v1376_v45 = vsel %vm1313_vm3, 1, %v10466_v0 }
 0x17a   : > { %v5653_v29 = vpop.permute.xlu1 %1023  ;;  %v5655_v26 = vpop.permute.xlu0 %1020 }
 0x17b   : > { %10777 = vst [vmem:[#allocation8_spill] sm:$0xff] %v5653_v29  ;;  %10778 = vst [vmem:[#allocation9_spill] sm:$0xff] %v5655_v26  ;;  %1535 = vperm.xlu1 %4515, %v1373_v58   ;;  %1532 = vperm.xlu0 %4514, %v1372_v61   ;;  %v10782_v58 = vld [vmem:[#allocation13_spill] sm:$0xff]  ;;  %v5771_v29 = vld [vmem:[%s4888_s28 + $0x48] sm:$0xff] }
 0x17c   : > { %vm1315_vm5 = vcmp.eq.s32.totalorder %v10782_v58, 2 }
 0x17d   : > { %v1378_v50 = vsel %vm1315_vm5, 1, %v10466_v0 }
 0x17e   : > { %v5661_v53 = vpop.permute.xlu1 %1029  ;;  %v5663_v21 = vpop.permute.xlu0 %1026 }
 0x17f   : > { %10780 = vst [vmem:[#allocation11_spill] sm:$0xff] %v5661_v53  ;;  %10781 = vst [vmem:[#allocation122_spill] sm:$0xff] %v5663_v21  ;;  %1541 = vperm.xlu1 %4515, %v1375_v9   ;;  %1538 = vperm.xlu0 %4514, %v1374_v34   ;;  %v10785_v9 = vld [vmem:[#allocation15_spill] sm:$0xff] }
 0x180   : > { %vm1317_vm7 = vcmp.eq.s32.totalorder %v10785_v9, 2 }
 0x181   : > { %v1380_v58 = vsel %vm1317_vm7, 1, %v10466_v0  ;;  %vm1779_vm7 = vcmp.eq.s32.totalorder %v5771_v29, 3 }
 0x182   : > { %v5669_v61 = vpop.permute.xlu1 %1035  ;;  %v5671_v26 = vpop.permute.xlu0 %1032 }
 0x183   : > { %10783 = vst [vmem:[#allocation13_spill] sm:$0xff] %v5669_v61  ;;  %10784 = vst [vmem:[#allocation123_spill] sm:$0xff] %v5671_v26  ;;  %1547 = vperm.xlu1 %4515, %v1377_v42   ;;  %1544 = vperm.xlu0 %4514, %v1376_v45   ;;  %v1383_v45 = vsel %vm1320_vm8, 1, %v10466_v0  ;;  %v5757_v61 = vld [vmem:[%s4888_s28 + $0x38] sm:$0xff] }
 0x184   : > { %vm1777_vm5 = vcmp.eq.s32.totalorder %v5757_v61, 3 }
 0x186   : > { %v5677_v34 = vpop.permute.xlu1 %1041  ;;  %v5679_v21 = vpop.permute.xlu0 %1038 }
 0x187   : > { %10786 = vst [vmem:[#allocation15_spill] sm:$0xff] %v5677_v34  ;;  %10787 = vst [vmem:[#allocation124_spill] sm:$0xff] %v5679_v21  ;;  %1553 = vperm.xlu1 %4515, %v1379_v6   ;;  %1550 = vperm.xlu0 %4514, %v1378_v50   ;;  %v1382_v6 = vsel %vm1319_vm9, 1, %v10466_v0  ;;  %v10790_v50 = vld [vmem:[#allocation17_spill] sm:$0xff]  ;;  %v5743_v34 = vld [vmem:[%s4888_s28 + $0x28] sm:$0xff]  ;;  %vm1781_vm9 = vcmp.eq.s32.totalorder %v5785_v18, 3 }
 0x188   : > { %vm1321_vm11 = vcmp.eq.s32.totalorder %v10790_v50, 2  ;;  %vm1775_vm3 = vcmp.eq.s32.totalorder %v5743_v34, 3 }
 0x18a   : > { %v5685_v42 = vpop.permute.xlu1 %1047  ;;  %v5687_v1 = vpop.permute.xlu0 %1044 }
 0x18b   : > { %10788 = vst [vmem:[#allocation125_spill] sm:$0xff] %v5685_v42  ;;  %10789 = vst [vmem:[#allocation126_spill] sm:$0xff] %v5687_v1  ;;  %1559 = vperm.xlu1 %4515, %v1381_v33   ;;  %1556 = vperm.xlu0 %4514, %v1380_v58   ;;  %v1384_v33 = vsel %vm1321_vm11, 1, %v10466_v0  ;;  %v5700_v58 = vld [vmem:[%s4888_s28] sm:$0xff]  ;;  %v10793_v1 = vld [vmem:[#allocation18_spill] sm:$0xff]  ;;  %vm1783_vm11 = vcmp.eq.s32.totalorder %v5799_v10, 3 }
 0x18c   : > { %vm1770_vm12 = vcmp.eq.s32.totalorder %v5700_v58, 3  ;;  %vm1323_vm13 = vcmp.eq.s32.totalorder %v10793_v1, 2  ;;  %v5729_v42 = vld [vmem:[%s4888_s28 + $0x18] sm:$0xff] }
 0x18d   : > { %vm1773_vm1 = vcmp.eq.s32.totalorder %v5729_v42, 3 }
 0x18e   : > { %v5693_v9 = vpop.permute.xlu1 %1053  ;;  %v5695_v49 = vpop.permute.xlu0 %1050 }
 0x18f   : > { %10791 = vst [vmem:[#allocation17_spill] sm:$0xff] %v5693_v9  ;;  %10792 = vst [vmem:[#allocation127_spill] sm:$0xff] %v5695_v49  ;;  %1565 = vperm.xlu1 %4515, %v1383_v45   ;;  %1562 = vperm.xlu0 %4514, %v1382_v6   ;;  %v1833_v45 = vsel %vm1770_vm12, 1, %v10466_v0  ;;  %v1386_v6 = vsel %vm1323_vm13, 1, %v10466_v0  ;;  %v5711_v49 = vld [vmem:[%s4888_s28 + $0x10] sm:$0xff]  ;;  %v5715_v9 = vld [vmem:[%s4888_s28 + $0x8] sm:$0xff] }
 0x190   : > { %vm1772_vm14 = vcmp.eq.s32.totalorder %v5711_v49, 3  ;;  %vm1771_vm15 = vcmp.eq.s32.totalorder %v5715_v9, 3  ;;  %vm1785_vm13 = vcmp.eq.s32.totalorder %v5813_v63, 3 }
 0x192   : > { %v5704_v17 = vpop.permute.xlu1 %1059  ;;  %v5706_v50 = vpop.permute.xlu0 %1056 }
 0x193   : > { %10794 = vst [vmem:[#allocation18_spill] sm:$0xff] %v5704_v17  ;;  %10795 = vst [vmem:[#allocation128_spill] sm:$0xff] %v5706_v50  ;;  %1571 = vperm.xlu1 %4515, %v1385_v57   ;;  %1568 = vperm.xlu0 %4514, %v1384_v33   ;;  %v1835_v57 = vsel %vm1772_vm14, 1, %v10466_v0  ;;  %v1834_v33 = vsel %vm1771_vm15, 1, %v10466_v0  ;;  %v5725_v50 = vld [vmem:[%s4888_s28 + $0x20] sm:$0xff]  ;;  %vm1787_vm15 = vcmp.eq.s32.totalorder %v5827_v59, 3 }
 0x194   : > { %vm1774_vm0 = vcmp.eq.s32.totalorder %v5725_v50, 3 }
 0x196   : > { %v5718_v1 = vpop.permute.xlu1 %1065  ;;  %v5720_v17 = vpop.permute.xlu0 %1062 }
 0x197   : > { %10796 = vst [vmem:[#allocation129_spill] sm:$0xff] %v5718_v1  ;;  %10797 = vst [vmem:[#allocation130_spill] sm:$0xff] %v5720_v17  ;;  %1897 = vperm.xlu1 %4515, %v1833_v45   ;;  %1574 = vperm.xlu0 %4514, %v1386_v6   ;;  %v1837_v45 = vsel %vm1774_vm0, 1, %v10466_v0  ;;  %v1836_v6 = vsel %vm1773_vm1, 1, %v10466_v0  ;;  %v5739_v17 = vld [vmem:[%s4888_s28 + $0x30] sm:$0xff]  ;;  %vm1789_vm1 = vcmp.eq.s32.totalorder %v5841_v55, 3 }
 0x198   : > { %vm1776_vm2 = vcmp.eq.s32.totalorder %v5739_v17, 3 }
 0x19a   : > { %v5732_v21 = vpop.permute.xlu1 %1391  ;;  %v5734_v1 = vpop.permute.xlu0 %1388 }
 0x19b   : > { %10798 = vst [vmem:[#allocation131_spill] sm:$0xff] %v5732_v21  ;;  %10799 = vst [vmem:[#allocation132_spill] sm:$0xff] %v5734_v1  ;;  %1903 = vperm.xlu1 %4515, %v1835_v57   ;;  %1900 = vperm.xlu0 %4514, %v1834_v33   ;;  %v1839_v57 = vsel %vm1776_vm2, 1, %v10466_v0  ;;  %v1838_v33 = vsel %vm1775_vm3, 1, %v10466_v0  ;;  %v5753_v1 = vld [vmem:[%s4888_s28 + $0x40] sm:$0xff]  ;;  %vm1791_vm3 = vcmp.eq.s32.totalorder %v5855_v51, 3 }
 0x19c   : > { %vm1778_vm4 = vcmp.eq.s32.totalorder %v5753_v1, 3 }
 0x19e   : > { %v5746_v26 = vpop.permute.xlu1 %1397  ;;  %v5748_v21 = vpop.permute.xlu0 %1394 }
 0x19f   : > { %10800 = vst [vmem:[#allocation133_spill] sm:$0xff] %v5746_v26  ;;  %10801 = vst [vmem:[#allocation134_spill] sm:$0xff] %v5748_v21  ;;  %1909 = vperm.xlu1 %4515, %v1837_v45   ;;  %1906 = vperm.xlu0 %4514, %v1836_v6   ;;  %v1841_v45 = vsel %vm1778_vm4, 1, %v10466_v0  ;;  %v1840_v6 = vsel %vm1777_vm5, 1, %v10466_v0  ;;  %v5767_v21 = vld [vmem:[%s4888_s28 + $0x50] sm:$0xff]  ;;  %vm1793_vm5 = vcmp.eq.s32.totalorder %v5869_v47, 3 }
 0x1a0   : > { %vm1780_vm6 = vcmp.eq.s32.totalorder %v5767_v21, 3 }
 0x1a2   : > { %v5760_v53 = vpop.permute.xlu1 %1403  ;;  %v5762_v26 = vpop.permute.xlu0 %1400 }
 0x1a3   : > { %10802 = vst [vmem:[#allocation135_spill] sm:$0xff] %v5760_v53  ;;  %10803 = vst [vmem:[#allocation136_spill] sm:$0xff] %v5762_v26  ;;  %1915 = vperm.xlu1 %4515, %v1839_v57   ;;  %1912 = vperm.xlu0 %4514, %v1838_v33   ;;  %v1843_v57 = vsel %vm1780_vm6, 1, %v10466_v0  ;;  %v1842_v33 = vsel %vm1779_vm7, 1, %v10466_v0  ;;  %v5781_v26 = vld [vmem:[%s4888_s28 + $0x60] sm:$0xff]  ;;  %vm1795_vm7 = vcmp.eq.s32.totalorder %v5883_v43, 3 }
 0x1a4   : > { %vm1782_vm8 = vcmp.eq.s32.totalorder %v5781_v26, 3 }
 0x1a6   : > { %v5774_v37 = vpop.permute.xlu1 %1409  ;;  %v5776_v53 = vpop.permute.xlu0 %1406 }
 0x1a7   : > { %10804 = vst [vmem:[#allocation137_spill] sm:$0xff] %v5774_v37  ;;  %10805 = vst [vmem:[#allocation138_spill] sm:$0xff] %v5776_v53  ;;  %1921 = vperm.xlu1 %4515, %v1841_v45   ;;  %1918 = vperm.xlu0 %4514, %v1840_v6   ;;  %v1845_v45 = vsel %vm1782_vm8, 1, %v10466_v0  ;;  %v1844_v6 = vsel %vm1781_vm9, 1, %v10466_v0  ;;  %v5795_v53 = vld [vmem:[%s4888_s28 + $0x70] sm:$0xff]  ;;  %vm1797_vm9 = vcmp.eq.s32.totalorder %v5897_v39, 3 }
 0x1a8   : > { %vm1784_vm10 = vcmp.eq.s32.totalorder %v5795_v53, 3 }
 0x1aa   : > { %v5788_v13 = vpop.permute.xlu1 %1415  ;;  %v5790_v37 = vpop.permute.xlu0 %1412 }
 0x1ab   : > { %10806 = vst [vmem:[#allocation139_spill] sm:$0xff] %v5788_v13  ;;  %10807 = vst [vmem:[#allocation140_spill] sm:$0xff] %v5790_v37  ;;  %1927 = vperm.xlu1 %4515, %v1843_v57   ;;  %1924 = vperm.xlu0 %4514, %v1842_v33   ;;  %v1847_v57 = vsel %vm1784_vm10, 1, %v10466_v0  ;;  %v1846_v33 = vsel %vm1783_vm11, 1, %v10466_v0  ;;  %v5809_v37 = vld [vmem:[%s4888_s28 + $0x80] sm:$0xff]  ;;  %vm1799_vm11 = vcmp.eq.s32.totalorder %v5911_v35, 3 }
 0x1ac   : > { %vm1786_vm12 = vcmp.eq.s32.totalorder %v5809_v37, 3 }
 0x1ae   : > { %v5802_v5 = vpop.permute.xlu1 %1421  ;;  %v5804_v13 = vpop.permute.xlu0 %1418 }
 0x1af   : > { %10808 = vst [vmem:[#allocation141_spill] sm:$0xff] %v5802_v5  ;;  %10809 = vst [vmem:[#allocation142_spill] sm:$0xff] %v5804_v13  ;;  %1933 = vperm.xlu1 %4515, %v1845_v45   ;;  %1930 = vperm.xlu0 %4514, %v1844_v6   ;;  %v1849_v45 = vsel %vm1786_vm12, 1, %v10466_v0  ;;  %v1848_v6 = vsel %vm1785_vm13, 1, %v10466_v0  ;;  %v5823_v13 = vld [vmem:[%s4888_s28 + $0x90] sm:$0xff]  ;;  %vm1801_vm13 = vcmp.eq.s32.totalorder %v5925_v31, 3 }
 0x1b0   : > { %vm1788_vm14 = vcmp.eq.s32.totalorder %v5823_v13, 3 }
 0x1b2   : > { %v5816_v60 = vpop.permute.xlu1 %1427  ;;  %v5818_v5 = vpop.permute.xlu0 %1424 }
 0x1b3   : > { %10810 = vst [vmem:[#allocation143_spill] sm:$0xff] %v5816_v60  ;;  %10811 = vst [vmem:[#allocation144_spill] sm:$0xff] %v5818_v5  ;;  %1939 = vperm.xlu1 %4515, %v1847_v57   ;;  %1936 = vperm.xlu0 %4514, %v1846_v33   ;;  %v1851_v57 = vsel %vm1788_vm14, 1, %v10466_v0  ;;  %v1850_v33 = vsel %vm1787_vm15, 1, %v10466_v0  ;;  %v5837_v5 = vld [vmem:[%s4888_s28 + $0xa0] sm:$0xff]  ;;  %vm1803_vm15 = vcmp.eq.s32.totalorder %v5939_v27, 3 }
 0x1b4   : > { %vm1790_vm0 = vcmp.eq.s32.totalorder %v5837_v5, 3 }
 0x1b6   : > { %v5830_v56 = vpop.permute.xlu1 %1433  ;;  %v5832_v60 = vpop.permute.xlu0 %1430 }
 0x1b7   : > { %10812 = vst [vmem:[#allocation145_spill] sm:$0xff] %v5830_v56  ;;  %10813 = vst [vmem:[#allocation146_spill] sm:$0xff] %v5832_v60  ;;  %1945 = vperm.xlu1 %4515, %v1849_v45   ;;  %1942 = vperm.xlu0 %4514, %v1848_v6   ;;  %v1853_v45 = vsel %vm1790_vm0, 1, %v10466_v0  ;;  %v1852_v6 = vsel %vm1789_vm1, 1, %v10466_v0  ;;  %v5851_v60 = vld [vmem:[%s4888_s28 + $0xb0] sm:$0xff]  ;;  %vm1805_vm1 = vcmp.eq.s32.totalorder %v5953_v23, 3 }
 0x1b8   : > { %vm1792_vm2 = vcmp.eq.s32.totalorder %v5851_v60, 3 }
 0x1ba   : > { %v5844_v52 = vpop.permute.xlu1 %1439  ;;  %v5846_v56 = vpop.permute.xlu0 %1436 }
 0x1bb   : > { %10814 = vst [vmem:[#allocation147_spill] sm:$0xff] %v5844_v52  ;;  %10815 = vst [vmem:[#allocation148_spill] sm:$0xff] %v5846_v56  ;;  %1951 = vperm.xlu1 %4515, %v1851_v57   ;;  %1948 = vperm.xlu0 %4514, %v1850_v33   ;;  %v1855_v57 = vsel %vm1792_vm2, 1, %v10466_v0  ;;  %v1854_v33 = vsel %vm1791_vm3, 1, %v10466_v0  ;;  %v5865_v56 = vld [vmem:[%s4888_s28 + $0xc0] sm:$0xff]  ;;  %vm1807_vm3 = vcmp.eq.s32.totalorder %v5967_v19, 3 }
 0x1bc   : > { %vm1794_vm4 = vcmp.eq.s32.totalorder %v5865_v56, 3 }
 0x1be   : > { %v5858_v48 = vpop.permute.xlu1 %1445  ;;  %v5860_v52 = vpop.permute.xlu0 %1442 }
 0x1bf   : > { %10816 = vst [vmem:[#allocation149_spill] sm:$0xff] %v5858_v48  ;;  %10817 = vst [vmem:[#allocation150_spill] sm:$0xff] %v5860_v52  ;;  %1957 = vperm.xlu1 %4515, %v1853_v45   ;;  %1954 = vperm.xlu0 %4514, %v1852_v6   ;;  %v1857_v45 = vsel %vm1794_vm4, 1, %v10466_v0  ;;  %v1856_v6 = vsel %vm1793_vm5, 1, %v10466_v0  ;;  %v5879_v52 = vld [vmem:[%s4888_s28 + $0xd0] sm:$0xff]  ;;  %vm1809_vm5 = vcmp.eq.s32.totalorder %v5981_v15, 3 }
 0x1c0   : > { %vm1796_vm6 = vcmp.eq.s32.totalorder %v5879_v52, 3 }
 0x1c2   : > { %v5872_v44 = vpop.permute.xlu1 %1451  ;;  %v5874_v48 = vpop.permute.xlu0 %1448 }
 0x1c3   : > { %10818 = vst [vmem:[#allocation151_spill] sm:$0xff] %v5872_v44  ;;  %10819 = vst [vmem:[#allocation152_spill] sm:$0xff] %v5874_v48  ;;  %1963 = vperm.xlu1 %4515, %v1855_v57   ;;  %1960 = vperm.xlu0 %4514, %v1854_v33   ;;  %v1859_v57 = vsel %vm1796_vm6, 1, %v10466_v0  ;;  %v1858_v33 = vsel %vm1795_vm7, 1, %v10466_v0  ;;  %v5893_v48 = vld [vmem:[%s4888_s28 + $0xe0] sm:$0xff]  ;;  %vm1811_vm7 = vcmp.eq.s32.totalorder %v5995_v11, 3 }
 0x1c4   : > { %vm1798_vm8 = vcmp.eq.s32.totalorder %v5893_v48, 3 }
 0x1c6   : > { %v5886_v40 = vpop.permute.xlu1 %1457  ;;  %v5888_v44 = vpop.permute.xlu0 %1454 }
 0x1c7   : > { %10820 = vst [vmem:[#allocation153_spill] sm:$0xff] %v5886_v40  ;;  %10821 = vst [vmem:[#allocation154_spill] sm:$0xff] %v5888_v44  ;;  %1969 = vperm.xlu1 %4515, %v1857_v45   ;;  %1966 = vperm.xlu0 %4514, %v1856_v6   ;;  %v1861_v45 = vsel %vm1798_vm8, 1, %v10466_v0  ;;  %v1860_v6 = vsel %vm1797_vm9, 1, %v10466_v0  ;;  %v5907_v44 = vld [vmem:[%s4888_s28 + $0xf0] sm:$0xff]  ;;  %vm1813_vm9 = vcmp.eq.s32.totalorder %v6009_v7, 3 }
 0x1c8   : > { %vm1800_vm10 = vcmp.eq.s32.totalorder %v5907_v44, 3 }
 0x1ca   : > { %v5900_v36 = vpop.permute.xlu1 %1463  ;;  %v5902_v40 = vpop.permute.xlu0 %1460 }
 0x1cb   : > { %10822 = vst [vmem:[#allocation155_spill] sm:$0xff] %v5900_v36  ;;  %10823 = vst [vmem:[#allocation156_spill] sm:$0xff] %v5902_v40  ;;  %1975 = vperm.xlu1 %4515, %v1859_v57   ;;  %1972 = vperm.xlu0 %4514, %v1858_v33   ;;  %v1863_v57 = vsel %vm1800_vm10, 1, %v10466_v0  ;;  %v1862_v33 = vsel %vm1799_vm11, 1, %v10466_v0  ;;  %v5921_v40 = vld [vmem:[%s4888_s28 + $0x100] sm:$0xff]  ;;  %vm1815_vm11 = vcmp.eq.s32.totalorder %v6023_v3, 3 }
 0x1cc   : > { %vm1802_vm12 = vcmp.eq.s32.totalorder %v5921_v40, 3 }
 0x1ce   : > { %v5914_v32 = vpop.permute.xlu1 %1469  ;;  %v5916_v36 = vpop.permute.xlu0 %1466 }
 0x1cf   : > { %10824 = vst [vmem:[#allocation157_spill] sm:$0xff] %v5914_v32  ;;  %10825 = vst [vmem:[#allocation158_spill] sm:$0xff] %v5916_v36  ;;  %1981 = vperm.xlu1 %4515, %v1861_v45   ;;  %1978 = vperm.xlu0 %4514, %v1860_v6   ;;  %v1865_v45 = vsel %vm1802_vm12, 1, %v10466_v0  ;;  %v1864_v6 = vsel %vm1801_vm13, 1, %v10466_v0  ;;  %v5935_v36 = vld [vmem:[%s4888_s28 + $0x110] sm:$0xff]  ;;  %vm1817_vm13 = vcmp.eq.s32.totalorder %v6037_v4, 3 }
 0x1d0   : > { %vm1804_vm14 = vcmp.eq.s32.totalorder %v5935_v36, 3 }
 0x1d2   : > { %v5928_v28 = vpop.permute.xlu1 %1475  ;;  %v5930_v32 = vpop.permute.xlu0 %1472 }
 0x1d3   : > { %10826 = vst [vmem:[#allocation159_spill] sm:$0xff] %v5928_v28  ;;  %10827 = vst [vmem:[#allocation160_spill] sm:$0xff] %v5930_v32  ;;  %1987 = vperm.xlu1 %4515, %v1863_v57   ;;  %1984 = vperm.xlu0 %4514, %v1862_v33   ;;  %v1867_v57 = vsel %vm1804_vm14, 1, %v10466_v0  ;;  %v1866_v33 = vsel %vm1803_vm15, 1, %v10466_v0  ;;  %v5949_v32 = vld [vmem:[%s4888_s28 + $0x120] sm:$0xff]  ;;  %vm1819_vm15 = vcmp.eq.s32.totalorder %v6051_v14, 3 }
 0x1d4   : > { %vm1806_vm0 = vcmp.eq.s32.totalorder %v5949_v32, 3 }
 0x1d6   : > { %v5942_v24 = vpop.permute.xlu1 %1481  ;;  %v5944_v28 = vpop.permute.xlu0 %1478 }
 0x1d7   : > { %10828 = vst [vmem:[#allocation161_spill] sm:$0xff] %v5942_v24  ;;  %10829 = vst [vmem:[#allocation162_spill] sm:$0xff] %v5944_v28  ;;  %1993 = vperm.xlu1 %4515, %v1865_v45   ;;  %1990 = vperm.xlu0 %4514, %v1864_v6   ;;  %v1869_v45 = vsel %vm1806_vm0, 1, %v10466_v0  ;;  %v1868_v6 = vsel %vm1805_vm1, 1, %v10466_v0  ;;  %v5963_v28 = vld [vmem:[%s4888_s28 + $0x130] sm:$0xff]  ;;  %vm1821_vm1 = vcmp.eq.s32.totalorder %v6065_v62, 3 }
 0x1d8   : > { %vm1808_vm2 = vcmp.eq.s32.totalorder %v5963_v28, 3 }
 0x1da   : > { %v5956_v20 = vpop.permute.xlu1 %1487  ;;  %v5958_v24 = vpop.permute.xlu0 %1484 }
 0x1db   : > { %10830 = vst [vmem:[#allocation163_spill] sm:$0xff] %v5956_v20  ;;  %10831 = vst [vmem:[#allocation164_spill] sm:$0xff] %v5958_v24  ;;  %1999 = vperm.xlu1 %4515, %v1867_v57   ;;  %1996 = vperm.xlu0 %4514, %v1866_v33   ;;  %v1871_v57 = vsel %vm1808_vm2, 1, %v10466_v0  ;;  %v1870_v33 = vsel %vm1807_vm3, 1, %v10466_v0  ;;  %v5977_v24 = vld [vmem:[%s4888_s28 + $0x140] sm:$0xff]  ;;  %vm1823_vm3 = vcmp.eq.s32.totalorder %v6079_v2, 3 }
 0x1dc   : > { %vm1810_vm4 = vcmp.eq.s32.totalorder %v5977_v24, 3 }
 0x1de   : > { %v5970_v16 = vpop.permute.xlu1 %1493  ;;  %v5972_v20 = vpop.permute.xlu0 %1490 }
 0x1df   : > { %10832 = vst [vmem:[#allocation165_spill] sm:$0xff] %v5970_v16  ;;  %10833 = vst [vmem:[#allocation166_spill] sm:$0xff] %v5972_v20  ;;  %2005 = vperm.xlu1 %4515, %v1869_v45   ;;  %2002 = vperm.xlu0 %4514, %v1868_v6   ;;  %v1873_v45 = vsel %vm1810_vm4, 1, %v10466_v0  ;;  %v1872_v6 = vsel %vm1809_vm5, 1, %v10466_v0  ;;  %v5991_v20 = vld [vmem:[%s4888_s28 + $0x150] sm:$0xff]  ;;  %vm1825_vm5 = vcmp.eq.s32.totalorder %v6093_v46, 3 }
 0x1e0   : > { %vm1812_vm6 = vcmp.eq.s32.totalorder %v5991_v20, 3 }
 0x1e2   : > { %v5984_v12 = vpop.permute.xlu1 %1499  ;;  %v5986_v16 = vpop.permute.xlu0 %1496 }
 0x1e3   : > { %10834 = vst [vmem:[#allocation167_spill] sm:$0xff] %v5984_v12  ;;  %10835 = vst [vmem:[#allocation168_spill] sm:$0xff] %v5986_v16  ;;  %2011 = vperm.xlu1 %4515, %v1871_v57   ;;  %2008 = vperm.xlu0 %4514, %v1870_v33   ;;  %v1875_v57 = vsel %vm1812_vm6, 1, %v10466_v0  ;;  %v1874_v33 = vsel %vm1811_vm7, 1, %v10466_v0  ;;  %v6005_v16 = vld [vmem:[%s4888_s28 + $0x160] sm:$0xff] }
 0x1e4   : > { %vm1814_vm8 = vcmp.eq.s32.totalorder %v6005_v16, 3 }
 0x1e6   : > { %v5998_v8 = vpop.permute.xlu1 %1505  ;;  %v6000_v12 = vpop.permute.xlu0 %1502 }
 0x1e7   : > { %10836 = vst [vmem:[#allocation169_spill] sm:$0xff] %v5998_v8  ;;  %10837 = vst [vmem:[#allocation170_spill] sm:$0xff] %v6000_v12  ;;  %2017 = vperm.xlu1 %4515, %v1873_v45   ;;  %2014 = vperm.xlu0 %4514, %v1872_v6   ;;  %v1877_v45 = vsel %vm1814_vm8, 1, %v10466_v0  ;;  %v1876_v6 = vsel %vm1813_vm9, 1, %v10466_v0  ;;  %v6019_v12 = vld [vmem:[%s4888_s28 + $0x170] sm:$0xff] }
 0x1e8   : > { %vm1816_vm10 = vcmp.eq.s32.totalorder %v6019_v12, 3 }
 0x1ea   : > { %v6012_v41 = vpop.permute.xlu1 %1511  ;;  %v6014_v8 = vpop.permute.xlu0 %1508 }
 0x1eb   : > { %10838 = vst [vmem:[#allocation171_spill] sm:$0xff] %v6012_v41  ;;  %10839 = vst [vmem:[#allocation172_spill] sm:$0xff] %v6014_v8  ;;  %2023 = vperm.xlu1 %4515, %v1875_v57   ;;  %2020 = vperm.xlu0 %4514, %v1874_v33   ;;  %v1879_v57 = vsel %vm1816_vm10, 1, %v10466_v0  ;;  %v1878_v33 = vsel %vm1815_vm11, 1, %v10466_v0  ;;  %v6033_v8 = vld [vmem:[%s4888_s28 + $0x180] sm:$0xff] }
 0x1ec   : > { %vm1818_vm12 = vcmp.eq.s32.totalorder %v6033_v8, 3 }
 0x1ee   : > { %v6026_v25 = vpop.permute.xlu1 %1517  ;;  %v6028_v41 = vpop.permute.xlu0 %1514 }
 0x1ef   : > { %10840 = vst [vmem:[#allocation173_spill] sm:$0xff] %v6026_v25  ;;  %10841 = vst [vmem:[#allocation174_spill] sm:$0xff] %v6028_v41  ;;  %2029 = vperm.xlu1 %4515, %v1877_v45   ;;  %2026 = vperm.xlu0 %4514, %v1876_v6   ;;  %v1881_v45 = vsel %vm1818_vm12, 1, %v10466_v0  ;;  %v1880_v6 = vsel %vm1817_vm13, 1, %v10466_v0  ;;  %v6047_v41 = vld [vmem:[%s4888_s28 + $0x190] sm:$0xff]  ;;  %vm2280_vm12 = vcmp.eq.s32.totalorder %v5715_v9, 4 }
 0x1f0   : > { %vm1820_vm14 = vcmp.eq.s32.totalorder %v6047_v41, 3  ;;  %vm2279_vm13 = vcmp.eq.s32.totalorder %v5700_v58, 4 }
 0x1f2   : > { %v6040_v30 = vpop.permute.xlu1 %1523  ;;  %v6042_v25 = vpop.permute.xlu0 %1520 }
 0x1f3   : > { %10842 = vst [vmem:[#allocation175_spill] sm:$0xff] %v6040_v30  ;;  %10843 = vst [vmem:[#allocation176_spill] sm:$0xff] %v6042_v25  ;;  %2035 = vperm.xlu1 %4515, %v1879_v57   ;;  %2032 = vperm.xlu0 %4514, %v1878_v33   ;;  %v1883_v57 = vsel %vm1820_vm14, 1, %v10466_v0  ;;  %v1882_v33 = vsel %vm1819_vm15, 1, %v10466_v0  ;;  %v6061_v25 = vld [vmem:[%s4888_s28 + $0x1a0] sm:$0xff]  ;;  %vm2282_vm14 = vcmp.eq.s32.totalorder %v5729_v42, 4 }
 0x1f4   : > { %10846 = vst [vmem:[#allocation179_spill] sm:$0xff] %v6061_v25  ;;  %vm1822_vm0 = vcmp.eq.s32.totalorder %v6061_v25, 3  ;;  %v6135_v25 = vld [vmem:[%s4888_s28 + $0x1e8] sm:$0xff]  ;;  %vm2281_vm15 = vcmp.eq.s32.totalorder %v5711_v49, 4 }
 0x1f5   : > { %vm1831_vm11 = vcmp.eq.s32.totalorder %v6135_v25, 3 }
 0x1f6   : > { %v6054_v54 = vpop.permute.xlu1 %1529  ;;  %v6056_v30 = vpop.permute.xlu0 %1526 }
 0x1f7   : > { %10844 = vst [vmem:[#allocation177_spill] sm:$0xff] %v6054_v54  ;;  %10845 = vst [vmem:[#allocation178_spill] sm:$0xff] %v6056_v30  ;;  %2041 = vperm.xlu1 %4515, %v1881_v45   ;;  %2038 = vperm.xlu0 %4514, %v1880_v6   ;;  %v1885_v45 = vsel %vm1822_vm0, 1, %v10466_v0  ;;  %v1884_v6 = vsel %vm1821_vm1, 1, %v10466_v0  ;;  %v6075_v30 = vld [vmem:[%s4888_s28 + $0x1b0] sm:$0xff]  ;;  %vm2284_vm0 = vcmp.eq.s32.totalorder %v5743_v34, 4 }
 0x1f8   : > { %10849 = vst [vmem:[#allocation182_spill] sm:$0xff] %v6075_v30  ;;  %vm1824_vm2 = vcmp.eq.s32.totalorder %v6075_v30, 3  ;;  %vm2283_vm1 = vcmp.eq.s32.totalorder %v5725_v50, 4 }
 0x1fa   : > { %v6068_v38 = vpop.permute.xlu1 %1535  ;;  %v6070_v54 = vpop.permute.xlu0 %1532 }
 0x1fb   : > { %10847 = vst [vmem:[#allocation180_spill] sm:$0xff] %v6068_v38  ;;  %10848 = vst [vmem:[#allocation181_spill] sm:$0xff] %v6070_v54  ;;  %2047 = vperm.xlu1 %4515, %v1883_v57   ;;  %2044 = vperm.xlu0 %4514, %v1882_v33   ;;  %v1887_v57 = vsel %vm1824_vm2, 1, %v10466_v0  ;;  %v1886_v33 = vsel %vm1823_vm3, 1, %v10466_v0  ;;  %v6089_v54 = vld [vmem:[%s4888_s28 + $0x1c0] sm:$0xff]  ;;  %vm2286_vm2 = vcmp.eq.s32.totalorder %v5757_v61, 4 }
 0x1fc   : > { %10852 = vst [vmem:[#allocation185_spill] sm:$0xff] %v6089_v54  ;;  %vm1826_vm4 = vcmp.eq.s32.totalorder %v6089_v54, 3  ;;  %v6107_v54 = vld [vmem:[%s4888_s28 + $0x1c8] sm:$0xff]  ;;  %vm2285_vm3 = vcmp.eq.s32.totalorder %v5739_v17, 4 }
 0x1fd   : > { %10857 = vst [vmem:[#allocation190_spill] sm:$0xff] %v6107_v54  ;;  %vm1827_vm7 = vcmp.eq.s32.totalorder %v6107_v54, 3 }
 0x1fe   : > { %v6082_v22 = vpop.permute.xlu1 %1541  ;;  %v6084_v38 = vpop.permute.xlu0 %1538 }
 0x1ff   : > { %10850 = vst [vmem:[#allocation183_spill] sm:$0xff] %v6082_v22  ;;  %10851 = vst [vmem:[#allocation184_spill] sm:$0xff] %v6084_v38  ;;  %2053 = vperm.xlu1 %4515, %v1885_v45   ;;  %2050 = vperm.xlu0 %4514, %v1884_v6   ;;  %v1889_v45 = vsel %vm1826_vm4, 1, %v10466_v0  ;;  %v1888_v6 = vsel %vm1825_vm5, 1, %v10466_v0  ;;  %v6103_v38 = vld [vmem:[%s4888_s28 + $0x1d0] sm:$0xff]  ;;  %vm2288_vm4 = vcmp.eq.s32.totalorder %v5771_v29, 4 }
 0x200   : > { %10856 = vst [vmem:[#allocation189_spill] sm:$0xff] %v6103_v38  ;;  %vm1828_vm6 = vcmp.eq.s32.totalorder %v6103_v38, 3  ;;  %v6121_v38 = vld [vmem:[%s4888_s28 + $0x1d8] sm:$0xff]  ;;  %vm2287_vm5 = vcmp.eq.s32.totalorder %v5753_v1, 4 }
 0x201   : > { %10861 = vst [vmem:[#allocation194_spill] sm:$0xff] %v6121_v38  ;;  %vm1829_vm9 = vcmp.eq.s32.totalorder %v6121_v38, 3 }
 0x202   : > { %v6096_v30 = vpop.permute.xlu1 %1547  ;;  %v6098_v22 = vpop.permute.xlu0 %1544 }
 0x203   : > { %10854 = vst [vmem:[#allocation187_spill] sm:$0xff] %v6096_v30  ;;  %10855 = vst [vmem:[#allocation188_spill] sm:$0xff] %v6098_v22  ;;  %2059 = vperm.xlu1 %4515, %v1887_v57   ;;  %2056 = vperm.xlu0 %4514, %v1886_v33   ;;  %v1891_v57 = vsel %vm1828_vm6, 1, %v10466_v0  ;;  %v1890_v33 = vsel %vm1827_vm7, 1, %v10466_v0  ;;  %v6117_v22 = vld [vmem:[%s4888_s28 + $0x1e0] sm:$0xff]  ;;  %vm2290_vm6 = vcmp.eq.s32.totalorder %v5785_v18, 4 }
 0x204   : > { %10860 = vst [vmem:[#allocation193_spill] sm:$0xff] %v6117_v22  ;;  %vm1830_vm8 = vcmp.eq.s32.totalorder %v6117_v22, 3  ;;  %vm2289_vm7 = vcmp.eq.s32.totalorder %v5767_v21, 4 }
 0x206   : > { %v6110_v46 = vpop.permute.xlu1 %1553  ;;  %v6112_v30 = vpop.permute.xlu0 %1550 }
 0x207   : > { %10858 = vst [vmem:[#allocation191_spill] sm:$0xff] %v6110_v46  ;;  %10859 = vst [vmem:[#allocation192_spill] sm:$0xff] %v6112_v30  ;;  %2065 = vperm.xlu1 %4515, %v1889_v45   ;;  %2062 = vperm.xlu0 %4514, %v1888_v6   ;;  %v1893_v45 = vsel %vm1830_vm8, 1, %v10466_v0  ;;  %v1892_v6 = vsel %vm1829_vm9, 1, %v10466_v0  ;;  %v6131_v30 = vld [vmem:[%s4888_s28 + $0x1f0] sm:$0xff]  ;;  %vm2292_vm8 = vcmp.eq.s32.totalorder %v5799_v10, 4 }
 0x208   : > { %vm1832_vm10 = vcmp.eq.s32.totalorder %v6131_v30, 3  ;;  %vm2291_vm9 = vcmp.eq.s32.totalorder %v5781_v26, 4 }
 0x20a   : > { %v6124_v54 = vpop.permute.xlu1 %1559  ;;  %v6126_v46 = vpop.permute.xlu0 %1556 }
 0x20b   : > { %10862 = vst [vmem:[#allocation195_spill] sm:$0xff] %v6124_v54  ;;  %10863 = vst [vmem:[#allocation196_spill] sm:$0xff] %v6126_v46  ;;  %2071 = vperm.xlu1 %4515, %v1891_v57   ;;  %2068 = vperm.xlu0 %4514, %v1890_v33   ;;  %v1895_v57 = vsel %vm1832_vm10, 1, %v10466_v0  ;;  %v1894_v33 = vsel %vm1831_vm11, 1, %v10466_v0  ;;  %vm2294_vm10 = vcmp.eq.s32.totalorder %v5813_v63, 4  ;;  %vm2293_vm11 = vcmp.eq.s32.totalorder %v5795_v53, 4 }
 0x20e   : > { %v6138_v22 = vpop.permute.xlu1 %1565  ;;  %v6140_v38 = vpop.permute.xlu0 %1562 }
 0x20f   : > { %10864 = vst [vmem:[#allocation197_spill] sm:$0xff] %v6138_v22  ;;  %10865 = vst [vmem:[#allocation198_spill] sm:$0xff] %v6140_v38  ;;  %2077 = vperm.xlu1 %4515, %v1893_v45   ;;  %2074 = vperm.xlu0 %4514, %v1892_v6   ;;  %v2343_v22 = vsel %vm2280_vm12, 1, %v10466_v0  ;;  %v2342_v38 = vsel %vm2279_vm13, 1, %v10466_v0  ;;  %vm2296_vm12 = vcmp.eq.s32.totalorder %v5827_v59, 4  ;;  %vm2295_vm13 = vcmp.eq.s32.totalorder %v5809_v37, 4 }
 0x212   : > { %v6146_v46 = vpop.permute.xlu1 %1571  ;;  %v6148_v54 = vpop.permute.xlu0 %1568 }
 0x213   : > { %10866 = vst [vmem:[#allocation199_spill] sm:$0xff] %v6146_v46  ;;  %10867 = vst [vmem:[#allocation200_spill] sm:$0xff] %v6148_v54  ;;  %2083 = vperm.xlu1 %4515, %v1895_v57   ;;  %2080 = vperm.xlu0 %4514, %v1894_v33   ;;  %v2345_v46 = vsel %vm2282_vm14, 1, %v10466_v0  ;;  %v2344_v54 = vsel %vm2281_vm15, 1, %v10466_v0  ;;  %vm2298_vm14 = vcmp.eq.s32.totalorder %v5841_v55, 4  ;;  %vm2297_vm15 = vcmp.eq.s32.totalorder %v5823_v13, 4 }
 0x216   : > { %v6154_v45 = vpop.permute.xlu1 %1897  ;;  %v6156_v6 = vpop.permute.xlu0 %1574 }
 0x217   : > { %10868 = vst [vmem:[#allocation201_spill] sm:$0xff] %v6154_v45  ;;  %10869 = vst [vmem:[#allocation202_spill] sm:$0xff] %v6156_v6  ;;  %2409 = vperm.xlu1 %4515, %v2343_v22   ;;  %2406 = vperm.xlu0 %4514, %v2342_v38   ;;  %v2347_v45 = vsel %vm2284_vm0, 1, %v10466_v0  ;;  %v2346_v6 = vsel %vm2283_vm1, 1, %v10466_v0  ;;  %vm2300_vm0 = vcmp.eq.s32.totalorder %v5855_v51, 4  ;;  %vm2299_vm1 = vcmp.eq.s32.totalorder %v5837_v5, 4 }
 0x21a   : > { %v6162_v57 = vpop.permute.xlu1 %1903  ;;  %v6164_v33 = vpop.permute.xlu0 %1900 }
 0x21b   : > { %10870 = vst [vmem:[#allocation203_spill] sm:$0xff] %v6162_v57  ;;  %10871 = vst [vmem:[#allocation204_spill] sm:$0xff] %v6164_v33  ;;  %2415 = vperm.xlu1 %4515, %v2345_v46   ;;  %2412 = vperm.xlu0 %4514, %v2344_v54   ;;  %v2349_v57 = vsel %vm2286_vm2, 1, %v10466_v0  ;;  %v2348_v33 = vsel %vm2285_vm3, 1, %v10466_v0  ;;  %vm2302_vm2 = vcmp.eq.s32.totalorder %v5869_v47, 4  ;;  %vm2301_vm3 = vcmp.eq.s32.totalorder %v5851_v60, 4 }
 0x21e   : > { %v6170_v22 = vpop.permute.xlu1 %1909  ;;  %v6172_v38 = vpop.permute.xlu0 %1906 }
 0x21f   : > { %10872 = vst [vmem:[#allocation205_spill] sm:$0xff] %v6170_v22  ;;  %10873 = vst [vmem:[#allocation206_spill] sm:$0xff] %v6172_v38  ;;  %2421 = vperm.xlu1 %4515, %v2347_v45   ;;  %2418 = vperm.xlu0 %4514, %v2346_v6   ;;  %v2351_v22 = vsel %vm2288_vm4, 1, %v10466_v0  ;;  %v2350_v38 = vsel %vm2287_vm5, 1, %v10466_v0  ;;  %vm2304_vm4 = vcmp.eq.s32.totalorder %v5883_v43, 4  ;;  %vm2303_vm5 = vcmp.eq.s32.totalorder %v5865_v56, 4 }
 0x222   : > { %v6178_v46 = vpop.permute.xlu1 %1915  ;;  %v6180_v54 = vpop.permute.xlu0 %1912 }
 0x223   : > { %10874 = vst [vmem:[#allocation207_spill] sm:$0xff] %v6178_v46  ;;  %10875 = vst [vmem:[#allocation208_spill] sm:$0xff] %v6180_v54  ;;  %2427 = vperm.xlu1 %4515, %v2349_v57   ;;  %2424 = vperm.xlu0 %4514, %v2348_v33   ;;  %v2353_v46 = vsel %vm2290_vm6, 1, %v10466_v0  ;;  %v2352_v54 = vsel %vm2289_vm7, 1, %v10466_v0  ;;  %vm2306_vm6 = vcmp.eq.s32.totalorder %v5897_v39, 4  ;;  %vm2305_vm7 = vcmp.eq.s32.totalorder %v5879_v52, 4 }
 0x224   : > { %v2369_v43 = vsel %vm2306_vm6, 1, %v10466_v0  ;;  %vm2322_vm6 = vcmp.eq.s32.totalorder %v6009_v7, 4 }
 0x226   : > { %v6186_v45 = vpop.permute.xlu1 %1921  ;;  %v6188_v6 = vpop.permute.xlu0 %1918 }
 0x227   : > { %10876 = vst [vmem:[#allocation209_spill] sm:$0xff] %v6186_v45  ;;  %10877 = vst [vmem:[#allocation210_spill] sm:$0xff] %v6188_v6  ;;  %2433 = vperm.xlu1 %4515, %v2351_v22   ;;  %2430 = vperm.xlu0 %4514, %v2350_v38   ;;  %v2355_v45 = vsel %vm2292_vm8, 1, %v10466_v0  ;;  %v2354_v6 = vsel %vm2291_vm9, 1, %v10466_v0  ;;  %vm2308_vm8 = vcmp.eq.s32.totalorder %v5911_v35, 4  ;;  %vm2307_vm9 = vcmp.eq.s32.totalorder %v5893_v48, 4 }
 0x228   : > { %v2371_v39 = vsel %vm2308_vm8, 1, %v10466_v0  ;;  %v2370_v52 = vsel %vm2307_vm9, 1, %v10466_v0  ;;  %vm2324_vm8 = vcmp.eq.s32.totalorder %v6023_v3, 4  ;;  %vm2323_vm9 = vcmp.eq.s32.totalorder %v6005_v16, 4 }
 0x229   : > { %v2387_v7 = vsel %vm2324_vm8, 1, %v10466_v0  ;;  %vm2340_vm8 = vcmp.eq.s32.totalorder %v6135_v25, 4 }
 0x22a   : > { %v6194_v57 = vpop.permute.xlu1 %1927  ;;  %v6196_v33 = vpop.permute.xlu0 %1924 }
 0x22b   : > { %10878 = vst [vmem:[#allocation211_spill] sm:$0xff] %v6194_v57  ;;  %10879 = vst [vmem:[#allocation212_spill] sm:$0xff] %v6196_v33  ;;  %2439 = vperm.xlu1 %4515, %v2353_v46   ;;  %2436 = vperm.xlu0 %4514, %v2352_v54   ;;  %v2357_v57 = vsel %vm2294_vm10, 1, %v10466_v0  ;;  %v2356_v33 = vsel %vm2293_vm11, 1, %v10466_v0  ;;  %vm2310_vm10 = vcmp.eq.s32.totalorder %v5925_v31, 4  ;;  %vm2309_vm11 = vcmp.eq.s32.totalorder %v5907_v44, 4 }
 0x22c   : > { %v2373_v35 = vsel %vm2310_vm10, 1, %v10466_v0  ;;  %v2372_v48 = vsel %vm2309_vm11, 1, %v10466_v0  ;;  %vm2326_vm10 = vcmp.eq.s32.totalorder %v6037_v4, 4  ;;  %vm2325_vm11 = vcmp.eq.s32.totalorder %v6019_v12, 4 }
 0x22d   : > { %v2389_v3 = vsel %vm2326_vm10, 1, %v10466_v0  ;;  %v2388_v16 = vsel %vm2325_vm11, 1, %v10466_v0  ;;  %vm2788_vm10 = vcmp.eq.s32.totalorder %v5700_v58, 5  ;;  %vm2341_vm11 = vcmp.eq.s32.totalorder %v6131_v30, 4 }
 0x22e   : > { %v6202_v22 = vpop.permute.xlu1 %1933  ;;  %v6204_v38 = vpop.permute.xlu0 %1930  ;;  %v2851_v25 = vsel %vm2788_vm10, 1, %v10466_v0  ;;  %vm2804_vm10 = vcmp.eq.s32.totalorder %v5809_v37, 5 }
 0x22f   : > { %10880 = vst [vmem:[#allocation213_spill] sm:$0xff] %v6202_v22  ;;  %10881 = vst [vmem:[#allocation214_spill] sm:$0xff] %v6204_v38  ;;  %2445 = vperm.xlu1 %4515, %v2355_v45   ;;  %2442 = vperm.xlu0 %4514, %v2354_v6   ;;  %v2359_v22 = vsel %vm2296_vm12, 1, %v10466_v0  ;;  %v2358_v38 = vsel %vm2295_vm13, 1, %v10466_v0  ;;  %vm2312_vm12 = vcmp.eq.s32.totalorder %v5939_v27, 4  ;;  %vm2311_vm13 = vcmp.eq.s32.totalorder %v5921_v40, 4 }
 0x230   : > { %v2375_v31 = vsel %vm2312_vm12, 1, %v10466_v0  ;;  %v2374_v44 = vsel %vm2311_vm13, 1, %v10466_v0  ;;  %vm2328_vm12 = vcmp.eq.s32.totalorder %v6051_v14, 4  ;;  %vm2327_vm13 = vcmp.eq.s32.totalorder %v6033_v8, 4 }
 0x231   : > { %v2391_v4 = vsel %vm2328_vm12, 1, %v10466_v0  ;;  %v2390_v12 = vsel %vm2327_vm13, 1, %v10466_v0  ;;  %vm2790_vm12 = vcmp.eq.s32.totalorder %v5711_v49, 5  ;;  %vm2789_vm13 = vcmp.eq.s32.totalorder %v5715_v9, 5 }
 0x232   : > { %v6210_v46 = vpop.permute.xlu1 %1939  ;;  %v6212_v54 = vpop.permute.xlu0 %1936  ;;  %v2853_v30 = vsel %vm2790_vm12, 1, %v10466_v0  ;;  %v2852_v58 = vsel %vm2789_vm13, 1, %v10466_v0  ;;  %vm2806_vm12 = vcmp.eq.s32.totalorder %v5823_v13, 5  ;;  %vm2805_vm13 = vcmp.eq.s32.totalorder %v5827_v59, 5 }
 0x233   : > { %10882 = vst [vmem:[#allocation215_spill] sm:$0xff] %v6210_v46  ;;  %10883 = vst [vmem:[#allocation216_spill] sm:$0xff] %v6212_v54  ;;  %2451 = vperm.xlu1 %4515, %v2357_v57   ;;  %2448 = vperm.xlu0 %4514, %v2356_v33   ;;  %v2361_v46 = vsel %vm2298_vm14, 1, %v10466_v0  ;;  %v2360_v54 = vsel %vm2297_vm15, 1, %v10466_v0  ;;  %vm2314_vm14 = vcmp.eq.s32.totalorder %v5953_v23, 4  ;;  %vm2313_vm15 = vcmp.eq.s32.totalorder %v5935_v36, 4 }
 0x234   : > { %v2377_v27 = vsel %vm2314_vm14, 1, %v10466_v0  ;;  %v2376_v40 = vsel %vm2313_vm15, 1, %v10466_v0  ;;  %vm2330_vm14 = vcmp.eq.s32.totalorder %v6065_v62, 4  ;;  %vm2329_vm15 = vcmp.eq.s32.totalorder %v6047_v41, 4 }
 0x235   : > { %v2393_v14 = vsel %vm2330_vm14, 1, %v10466_v0  ;;  %v2392_v8 = vsel %vm2329_vm15, 1, %v10466_v0  ;;  %vm2792_vm14 = vcmp.eq.s32.totalorder %v5725_v50, 5  ;;  %vm2791_vm15 = vcmp.eq.s32.totalorder %v5729_v42, 5 }
 0x236   : > { %v6218_v45 = vpop.permute.xlu1 %1945  ;;  %v6220_v6 = vpop.permute.xlu0 %1942  ;;  %v2855_v9 = vsel %vm2792_vm14, 1, %v10466_v0  ;;  %v2854_v49 = vsel %vm2791_vm15, 1, %v10466_v0  ;;  %v2868_v37 = vsel %vm2805_vm13, 1, %v10466_v0  ;;  %vm2808_vm14 = vcmp.eq.s32.totalorder %v5837_v5, 5  ;;  %v10960_v5 = vld [vmem:[#allocation19_spill] sm:$0xff] }
 0x237   : > { %10884 = vst [vmem:[#allocation217_spill] sm:$0xff] %v6218_v45  ;;  %10885 = vst [vmem:[#allocation218_spill] sm:$0xff] %v6220_v6  ;;  %2457 = vperm.xlu1 %4515, %v2359_v22   ;;  %2454 = vperm.xlu0 %4514, %v2358_v38   ;;  %v2363_v45 = vsel %vm2300_vm0, 1, %v10466_v0  ;;  %v2362_v6 = vsel %vm2299_vm1, 1, %v10466_v0  ;;  %vm2316_vm0 = vcmp.eq.s32.totalorder %v5967_v19, 4  ;;  %vm2315_vm1 = vcmp.eq.s32.totalorder %v5949_v32, 4 }
 0x238   : > { %v2379_v23 = vsel %vm2316_vm0, 1, %v10466_v0  ;;  %v2378_v36 = vsel %vm2315_vm1, 1, %v10466_v0  ;;  %vm2332_vm0 = vcmp.eq.s32.totalorder %v6079_v2, 4  ;;  %vm2807_vm15 = vcmp.eq.s32.totalorder %v5841_v55, 5  ;;  %v6489_v55 = vld [vmem:[%s10279_s1] ss:$0 sm:$0xff] }
 0x239   : > { %v2395_v62 = vsel %vm2332_vm0, 1, %v10466_v0  ;;  %vm2794_vm0 = vcmp.eq.s32.totalorder %v5739_v17, 5  ;;  %v2871_v59 = vsel %vm2808_vm14, 1, %v10466_v0  ;;  %v2870_v13 = vsel %vm2807_vm15, 1, %v10466_v0 }
 0x23a   : > { %v6226_v57 = vpop.permute.xlu1 %1951  ;;  %v6228_v33 = vpop.permute.xlu0 %1948  ;;  %v2857_v42 = vsel %vm2794_vm0, 1, %v10466_v0  ;;  %vm2810_vm0 = vcmp.eq.s32.totalorder %v5851_v60, 5 }
 0x23b   : > { %10886 = vst [vmem:[#allocation219_spill] sm:$0xff] %v6226_v57  ;;  %10887 = vst [vmem:[#allocation220_spill] sm:$0xff] %v6228_v33  ;;  %2463 = vperm.xlu1 %4515, %v2361_v46   ;;  %2460 = vperm.xlu0 %4514, %v2360_v54   ;;  %v2365_v57 = vsel %vm2302_vm2, 1, %v10466_v0  ;;  %v2364_v33 = vsel %vm2301_vm3, 1, %v10466_v0  ;;  %vm2318_vm2 = vcmp.eq.s32.totalorder %v5981_v15, 4  ;;  %vm2317_vm3 = vcmp.eq.s32.totalorder %v5963_v28, 4 }
 0x23c   : > { %v2381_v19 = vsel %vm2318_vm2, 1, %v10466_v0  ;;  %v2380_v32 = vsel %vm2317_vm3, 1, %v10466_v0 }
 0x23e   : > { %v6234_v22 = vpop.permute.xlu1 %1957  ;;  %v6236_v38 = vpop.permute.xlu0 %1954 }
 0x23f   : > { %10888 = vst [vmem:[#allocation221_spill] sm:$0xff] %v6234_v22  ;;  %10889 = vst [vmem:[#allocation222_spill] sm:$0xff] %v6236_v38  ;;  %2469 = vperm.xlu1 %4515, %v2363_v45   ;;  %2466 = vperm.xlu0 %4514, %v2362_v6   ;;  %v2367_v22 = vsel %vm2304_vm4, 1, %v10466_v0  ;;  %v2366_v38 = vsel %vm2303_vm5, 1, %v10466_v0  ;;  %vm2320_vm4 = vcmp.eq.s32.totalorder %v5995_v11, 4  ;;  %vm2319_vm5 = vcmp.eq.s32.totalorder %v5977_v24, 4 }
 0x240   : > { %v2383_v15 = vsel %vm2320_vm4, 1, %v10466_v0  ;;  %v2382_v28 = vsel %vm2319_vm5, 1, %v10466_v0  ;;  %v2385_v11 = vsel %vm2322_vm6, 1, %v10466_v0 }
 0x242   : > { %v6242_v46 = vpop.permute.xlu1 %1963  ;;  %v6244_v54 = vpop.permute.xlu0 %1960 }
 0x243   : > { %10890 = vst [vmem:[#allocation223_spill] sm:$0xff] %v6242_v46  ;;  %10891 = vst [vmem:[#allocation224_spill] sm:$0xff] %v6244_v54  ;;  %2475 = vperm.xlu1 %4515, %v2365_v57   ;;  %2472 = vperm.xlu0 %4514, %v2364_v33   ;;  %v2368_v54 = vsel %vm2305_vm7, 1, %v10466_v0  ;;  %vm2321_vm7 = vcmp.eq.s32.totalorder %v5991_v20, 4  ;;  %v2386_v20 = vsel %vm2323_vm9, 1, %v10466_v0 }
 0x244   : > { %v2384_v24 = vsel %vm2321_vm7, 1, %v10466_v0 }
 0x246   : > { %v6250_v45 = vpop.permute.xlu1 %1969  ;;  %v6252_v6 = vpop.permute.xlu0 %1966 }
 0x247   : > { %10892 = vst [vmem:[#allocation225_spill] sm:$0xff] %v6250_v45  ;;  %10893 = vst [vmem:[#allocation226_spill] sm:$0xff] %v6252_v6  ;;  %2481 = vperm.xlu1 %4515, %v2367_v22   ;;  %2478 = vperm.xlu0 %4514, %v2366_v38   ;;  %v11041_v45 = vld [vmem:[#allocation69_spill] sm:$0xff] }
 0x24a   : > { %v6258_v57 = vpop.permute.xlu1 %1975  ;;  %v6260_v33 = vpop.permute.xlu0 %1972 }
 0x24b   : > { %10894 = vst [vmem:[#allocation227_spill] sm:$0xff] %v6258_v57  ;;  %10895 = vst [vmem:[#allocation228_spill] sm:$0xff] %v6260_v33  ;;  %2487 = vperm.xlu1 %4515, %v2369_v43   ;;  %2484 = vperm.xlu0 %4514, %v2368_v54   ;;  %v4601_v33 = vld [vmem:[%s4888_s28 + $0x180] sm:$0xff]  ;;  %v11037_v57 = vld [vmem:[#allocation68_spill] sm:$0xff] }
 0x24e   : > { %v6266_v22 = vpop.permute.xlu1 %1981  ;;  %v6268_v38 = vpop.permute.xlu0 %1978 }
 0x24f   : > { %10896 = vst [vmem:[#allocation229_spill] sm:$0xff] %v6266_v22  ;;  %10897 = vst [vmem:[#allocation230_spill] sm:$0xff] %v6268_v38  ;;  %2493 = vperm.xlu1 %4515, %v2371_v39   ;;  %2490 = vperm.xlu0 %4514, %v2370_v52   ;;  %v11032_v22 = vld [vmem:[#allocation65_spill] sm:$0xff] }
 0x252   : > { %v6274_v54 = vpop.permute.xlu1 %1987  ;;  %v6276_v43 = vpop.permute.xlu0 %1984 }
 0x253   : > { %10898 = vst [vmem:[#allocation231_spill] sm:$0xff] %v6274_v54  ;;  %10899 = vst [vmem:[#allocation232_spill] sm:$0xff] %v6276_v43  ;;  %2499 = vperm.xlu1 %4515, %v2373_v35   ;;  %2496 = vperm.xlu0 %4514, %v2372_v48   ;;  %v11027_v43 = vld [vmem:[#allocation63_spill] sm:$0xff] }
 0x254   : > { %v4599_v54 = vld [vmem:[%s4888_s28 + $0x170] sm:$0xff] }
 0x256   : > { %v6282_v39 = vpop.permute.xlu1 %1993  ;;  %v6284_v52 = vpop.permute.xlu0 %1990 }
 0x257   : > { %10900 = vst [vmem:[#allocation233_spill] sm:$0xff] %v6282_v39  ;;  %10901 = vst [vmem:[#allocation234_spill] sm:$0xff] %v6284_v52  ;;  %2505 = vperm.xlu1 %4515, %v2375_v31   ;;  %2502 = vperm.xlu0 %4514, %v2374_v44   ;;  %v4597_v52 = vld [vmem:[%s4888_s28 + $0x160] sm:$0xff] }
 0x25a   : > { %v6290_v35 = vpop.permute.xlu1 %1999  ;;  %v6292_v48 = vpop.permute.xlu0 %1996 }
 0x25b   : > { %10902 = vst [vmem:[#allocation235_spill] sm:$0xff] %v6290_v35  ;;  %10903 = vst [vmem:[#allocation236_spill] sm:$0xff] %v6292_v48  ;;  %2511 = vperm.xlu1 %4515, %v2377_v27   ;;  %2508 = vperm.xlu0 %4514, %v2376_v40  }
 0x25e   : > { %v6298_v31 = vpop.permute.xlu1 %2005  ;;  %v6300_v44 = vpop.permute.xlu0 %2002 }
 0x25f   : > { %10904 = vst [vmem:[#allocation237_spill] sm:$0xff] %v6298_v31  ;;  %10905 = vst [vmem:[#allocation238_spill] sm:$0xff] %v6300_v44  ;;  %2517 = vperm.xlu1 %4515, %v2379_v23   ;;  %2514 = vperm.xlu0 %4514, %v2378_v36   ;;  %v4595_v44 = vld [vmem:[%s4888_s28 + $0x150] sm:$0xff]  ;;  %v11020_v31 = vld [vmem:[#allocation58_spill] sm:$0xff] }
 0x262   : > { %v6306_v27 = vpop.permute.xlu1 %2011  ;;  %v6308_v40 = vpop.permute.xlu0 %2008 }
 0x263   : > { %10906 = vst [vmem:[#allocation239_spill] sm:$0xff] %v6306_v27  ;;  %10907 = vst [vmem:[#allocation240_spill] sm:$0xff] %v6308_v40  ;;  %2523 = vperm.xlu1 %4515, %v2381_v19   ;;  %2520 = vperm.xlu0 %4514, %v2380_v32  }
 0x266   : > { %v6314_v23 = vpop.permute.xlu1 %2017  ;;  %v6316_v36 = vpop.permute.xlu0 %2014 }
 0x267   : > { %10908 = vst [vmem:[#allocation241_spill] sm:$0xff] %v6314_v23  ;;  %10909 = vst [vmem:[#allocation242_spill] sm:$0xff] %v6316_v36  ;;  %2529 = vperm.xlu1 %4515, %v2383_v15   ;;  %2526 = vperm.xlu0 %4514, %v2382_v28   ;;  %v11012_v36 = vld [vmem:[#allocation52_spill] sm:$0xff]  ;;  %v11014_v23 = vld [vmem:[#allocation54_spill] sm:$0xff] }
 0x26a   : > { %v6322_v19 = vpop.permute.xlu1 %2023  ;;  %v6324_v32 = vpop.permute.xlu0 %2020 }
 0x26b   : > { %10910 = vst [vmem:[#allocation243_spill] sm:$0xff] %v6322_v19  ;;  %10911 = vst [vmem:[#allocation244_spill] sm:$0xff] %v6324_v32  ;;  %2535 = vperm.xlu1 %4515, %v2385_v11   ;;  %2532 = vperm.xlu0 %4514, %v2384_v24   ;;  %v4593_v19 = vld [vmem:[%s4888_s28 + $0x140] sm:$0xff] }
 0x26e   : > { %v6330_v15 = vpop.permute.xlu1 %2029  ;;  %v6332_v28 = vpop.permute.xlu0 %2026 }
 0x26f   : > { %10912 = vst [vmem:[#allocation245_spill] sm:$0xff] %v6330_v15  ;;  %10913 = vst [vmem:[#allocation246_spill] sm:$0xff] %v6332_v28  ;;  %2541 = vperm.xlu1 %4515, %v2387_v7   ;;  %2538 = vperm.xlu0 %4514, %v2386_v20   ;;  %v11008_v15 = vld [vmem:[#allocation50_spill] sm:$0xff] }
 0x272   : > { %v6338_v11 = vpop.permute.xlu1 %2035  ;;  %v6340_v24 = vpop.permute.xlu0 %2032 }
 0x273   : > { %10914 = vst [vmem:[#allocation247_spill] sm:$0xff] %v6338_v11  ;;  %10915 = vst [vmem:[#allocation248_spill] sm:$0xff] %v6340_v24  ;;  %2547 = vperm.xlu1 %4515, %v2389_v3   ;;  %2544 = vperm.xlu0 %4514, %v2388_v16   ;;  %v10918_v3 = vld [vmem:[#allocation179_spill] sm:$0xff]  ;;  %v11004_v11 = vld [vmem:[#allocation48_spill] sm:$0xff] }
 0x274   : > { %vm2331_vm1 = vcmp.eq.s32.totalorder %v10918_v3, 4 }
 0x275   : > { %v2394_v41 = vsel %vm2331_vm1, 1, %v10466_v0  ;;  %vm2793_vm1 = vcmp.eq.s32.totalorder %v5743_v34, 5 }
 0x276   : > { %v6346_v7 = vpop.permute.xlu1 %2041  ;;  %v6348_v20 = vpop.permute.xlu0 %2038  ;;  %v2856_v50 = vsel %vm2793_vm1, 1, %v10466_v0  ;;  %vm2809_vm1 = vcmp.eq.s32.totalorder %v5855_v51, 5 }
 0x277   : > { %10916 = vst [vmem:[#allocation249_spill] sm:$0xff] %v6346_v7  ;;  %10917 = vst [vmem:[#allocation250_spill] sm:$0xff] %v6348_v20  ;;  %2553 = vperm.xlu1 %4515, %v2391_v4   ;;  %2550 = vperm.xlu0 %4514, %v2390_v12   ;;  %v10921_v4 = vld [vmem:[#allocation186_spill] sm:$0xff]  ;;  %v2872_v51 = vsel %vm2809_vm1, 1, %v10466_v0 }
 0x278   : > { %vm2334_vm2 = vcmp.eq.s32.totalorder %v10921_v4, 4  ;;  %v10922_v12 = vld [vmem:[#allocation182_spill] sm:$0xff] }
 0x279   : > { %vm2333_vm3 = vcmp.eq.s32.totalorder %v10922_v12, 4  ;;  %v2397_v2 = vsel %vm2334_vm2, 1, %v10466_v0  ;;  %vm2796_vm2 = vcmp.eq.s32.totalorder %v5753_v1, 5 }
 0x27a   : > { %v6354_v16 = vpop.permute.xlu1 %2047  ;;  %v6356_v24 = vpop.permute.xlu0 %2044  ;;  %v2396_v3 = vsel %vm2333_vm3, 1, %v10466_v0  ;;  %vm2795_vm3 = vcmp.eq.s32.totalorder %v5757_v61, 5  ;;  %v2859_v34 = vsel %vm2796_vm2, 1, %v10466_v0  ;;  %vm560_vm2 = vcmp.eq.s32.totalorder %v10960_v5, 1 }
 0x27b   : > { %10919 = vst [vmem:[#allocation179_spill] sm:$0xff] %v6354_v16  ;;  %10920 = vst [vmem:[#allocation251_spill] sm:$0xff] %v6356_v24  ;;  %2559 = vperm.xlu1 %4515, %v2393_v14   ;;  %2556 = vperm.xlu0 %4514, %v2392_v8   ;;  %v10925_v14 = vld [vmem:[#allocation190_spill] sm:$0xff]  ;;  %v10926_v8 = vld [vmem:[#allocation185_spill] sm:$0xff]  ;;  %v2858_v17 = vsel %vm2795_vm3, 1, %v10466_v0  ;;  %v627_v5 = vsel %vm560_vm2, %v6489_v55, 0.0 }
 0x27c   : > { %vm2336_vm4 = vcmp.eq.s32.totalorder %v10925_v14, 4  ;;  %vm2335_vm5 = vcmp.eq.s32.totalorder %v10926_v8, 4 }
 0x27d   : > { %v2399_v4 = vsel %vm2336_vm4, 1, %v10466_v0  ;;  %v2398_v12 = vsel %vm2335_vm5, 1, %v10466_v0  ;;  %vm2798_vm4 = vcmp.eq.s32.totalorder %v5767_v21, 5  ;;  %vm2797_vm5 = vcmp.eq.s32.totalorder %v5771_v29, 5 }
 0x27e   : > { %v6362_v20 = vpop.permute.xlu1 %2053  ;;  %v6364_v7 = vpop.permute.xlu0 %2050  ;;  %v2861_v61 = vsel %vm2798_vm4, 1, %v10466_v0  ;;  %v2860_v1 = vsel %vm2797_vm5, 1, %v10466_v0  ;;  %vm2812_vm4 = vcmp.eq.s32.totalorder %v5865_v56, 5  ;;  %vm2811_vm5 = vcmp.eq.s32.totalorder %v5869_v47, 5  ;;  %v10965_v56 = vld [vmem:[#allocation22_spill] sm:$0xff]  ;;  %v10966_v47 = vld [vmem:[#allocation23_spill] sm:$0xff] }
 0x27f   : > { %10923 = vst [vmem:[#allocation186_spill] sm:$0xff] %v6362_v20  ;;  %10924 = vst [vmem:[#allocation182_spill] sm:$0xff] %v6364_v7  ;;  %2565 = vperm.xlu1 %4515, %v2395_v62   ;;  %2562 = vperm.xlu0 %4514, %v2394_v41   ;;  %v10929_v62 = vld [vmem:[#allocation194_spill] sm:$0xff]  ;;  %v10930_v41 = vld [vmem:[#allocation189_spill] sm:$0xff] }
 0x280   : > { %vm2338_vm6 = vcmp.eq.s32.totalorder %v10929_v62, 4  ;;  %vm2337_vm7 = vcmp.eq.s32.totalorder %v10930_v41, 4  ;;  %v2403_v62 = vsel %vm2340_vm8, 1, %v10466_v0  ;;  %vm2802_vm8 = vcmp.eq.s32.totalorder %v5795_v53, 5 }
 0x281   : > { %v2401_v14 = vsel %vm2338_vm6, 1, %v10466_v0  ;;  %v2400_v8 = vsel %vm2337_vm7, 1, %v10466_v0  ;;  %vm2800_vm6 = vcmp.eq.s32.totalorder %v5781_v26, 5  ;;  %vm2799_vm7 = vcmp.eq.s32.totalorder %v5785_v18, 5 }
 0x282   : > { %v6370_v24 = vpop.permute.xlu1 %2059  ;;  %v6372_v16 = vpop.permute.xlu0 %2056  ;;  %v2863_v21 = vsel %vm2800_vm6, 1, %v10466_v0  ;;  %v2862_v29 = vsel %vm2799_vm7, 1, %v10466_v0  ;;  %v2865_v18 = vsel %vm2802_vm8, 1, %v10466_v0  ;;  %vm559_vm7 = vcmp.eq.s32.totalorder %v10965_v56, 1 }
 0x283   : > { %10927 = vst [vmem:[#allocation190_spill] sm:$0xff] %v6370_v24  ;;  %10928 = vst [vmem:[#allocation185_spill] sm:$0xff] %v6372_v16  ;;  %2571 = vperm.xlu1 %4515, %v2397_v2   ;;  %2568 = vperm.xlu0 %4514, %v2396_v3   ;;  %v10933_v2 = vld [vmem:[#allocation193_spill] sm:$0xff]  ;;  %vm563_vm8 = vcmp.eq.s32.totalorder %v10966_v47, 1  ;;  %v626_v47 = vsel %vm559_vm7, %v6489_v55, 0.0  ;;  %v4591_v24 = vld [vmem:[%s4888_s28 + $0x130] sm:$0xff] }
 0x284   : > { %vm2339_vm9 = vcmp.eq.s32.totalorder %v10933_v2, 4  ;;  %v2404_v2 = vsel %vm2341_vm11, 1, %v10466_v0  ;;  %vm2803_vm11 = vcmp.eq.s32.totalorder %v5813_v63, 5  ;;  %v2869_v63 = vsel %vm2806_vm12, 1, %v10466_v0 }
 0x285   : > { %v2402_v41 = vsel %vm2339_vm9, 1, %v10466_v0  ;;  %vm2801_vm9 = vcmp.eq.s32.totalorder %v5799_v10, 5  ;;  %v2867_v10 = vsel %vm2804_vm10, 1, %v10466_v0  ;;  %v2866_v53 = vsel %vm2803_vm11, 1, %v10466_v0 }
 0x286   : > { %v6378_v7 = vpop.permute.xlu1 %2065  ;;  %v6380_v20 = vpop.permute.xlu0 %2062  ;;  %v2864_v26 = vsel %vm2801_vm9, 1, %v10466_v0 }
 0x287   : > { %10931 = vst [vmem:[#allocation194_spill] sm:$0xff] %v6378_v7  ;;  %10932 = vst [vmem:[#allocation189_spill] sm:$0xff] %v6380_v20  ;;  %2577 = vperm.xlu1 %4515, %v2399_v4   ;;  %2574 = vperm.xlu0 %4514, %v2398_v12   ;;  %v11001_v7 = vld [vmem:[#allocation45_spill] sm:$0xff] }
 0x28a   : > { %v6386_v3 = vpop.permute.xlu1 %2071  ;;  %v6388_v16 = vpop.permute.xlu0 %2068 }
 0x28b   : > { %10934 = vst [vmem:[#allocation193_spill] sm:$0xff] %v6386_v3  ;;  %10935 = vst [vmem:[#allocation252_spill] sm:$0xff] %v6388_v16  ;;  %2583 = vperm.xlu1 %4515, %v2401_v14   ;;  %2580 = vperm.xlu0 %4514, %v2400_v8   ;;  %v10997_v16 = vld [vmem:[#allocation43_spill] sm:$0xff]  ;;  %v4589_v3 = vld [vmem:[%s4888_s28 + $0x120] sm:$0xff] }
 0x28e   : > { %v6394_v4 = vpop.permute.xlu1 %2077  ;;  %v6396_v12 = vpop.permute.xlu0 %2074 }
 0x28f   : > { %10936 = vst [vmem:[#allocation253_spill] sm:$0xff] %v6394_v4  ;;  %10937 = vst [vmem:[#allocation254_spill] sm:$0xff] %v6396_v12  ;;  %2589 = vperm.xlu1 %4515, %v2403_v62   ;;  %2586 = vperm.xlu0 %4514, %v2402_v41   ;;  %v4587_v12 = vld [vmem:[%s4888_s28 + $0x110] sm:$0xff] }
 0x292   : > { %v6402_v14 = vpop.permute.xlu1 %2083  ;;  %v6404_v8 = vpop.permute.xlu0 %2080 }
 0x293   : > { %10938 = vst [vmem:[#allocation255_spill] sm:$0xff] %v6402_v14  ;;  %10939 = vst [vmem:[#allocation256_spill] sm:$0xff] %v6404_v8  ;;  %2915 = vperm.xlu1 %4515, %v2851_v25   ;;  %2592 = vperm.xlu0 %4514, %v2404_v2  }
 0x296   : > { %v6410_v62 = vpop.permute.xlu1 %2409  ;;  %v6412_v41 = vpop.permute.xlu0 %2406 }
 0x297   : > { %10940 = vst [vmem:[#allocation257_spill] sm:$0xff] %v6410_v62  ;;  %10941 = vst [vmem:[#allocation258_spill] sm:$0xff] %v6412_v41  ;;  %2921 = vperm.xlu1 %4515, %v2853_v30   ;;  %2918 = vperm.xlu0 %4514, %v2852_v58   ;;  %v4585_v41 = vld [vmem:[%s4888_s28 + $0x100] sm:$0xff]  ;;  %v10990_v62 = vld [vmem:[#allocation38_spill] sm:$0xff] }
 0x29a   : > { %v6418_v25 = vpop.permute.xlu1 %2415  ;;  %v6420_v2 = vpop.permute.xlu0 %2412 }
 0x29b   : > { %10942 = vst [vmem:[#allocation259_spill] sm:$0xff] %v6418_v25  ;;  %10943 = vst [vmem:[#allocation260_spill] sm:$0xff] %v6420_v2  ;;  %2927 = vperm.xlu1 %4515, %v2855_v9   ;;  %2924 = vperm.xlu0 %4514, %v2854_v49  }
 0x29e   : > { %v6426_v30 = vpop.permute.xlu1 %2421  ;;  %v6428_v58 = vpop.permute.xlu0 %2418 }
 0x29f   : > { %10944 = vst [vmem:[#allocation261_spill] sm:$0xff] %v6426_v30  ;;  %10945 = vst [vmem:[#allocation262_spill] sm:$0xff] %v6428_v58  ;;  %2933 = vperm.xlu1 %4515, %v2857_v42   ;;  %2930 = vperm.xlu0 %4514, %v2856_v50   ;;  %v10982_v58 = vld [vmem:[#allocation32_spill] sm:$0xff]  ;;  %v10984_v30 = vld [vmem:[#allocation34_spill] sm:$0xff] }
 0x2a0   : > { %vm570_vm7 = vcmp.eq.s32.totalorder %v10982_v58, 1  ;;  %v10989_v58 = vld [vmem:[#allocation37_spill] sm:$0xff] }
 0x2a2   : > { %v6434_v9 = vpop.permute.xlu1 %2427  ;;  %v6436_v49 = vpop.permute.xlu0 %2424 }
 0x2a3   : > { %10946 = vst [vmem:[#allocation263_spill] sm:$0xff] %v6434_v9  ;;  %10947 = vst [vmem:[#allocation264_spill] sm:$0xff] %v6436_v49  ;;  %2939 = vperm.xlu1 %4515, %v2859_v34   ;;  %2936 = vperm.xlu0 %4514, %v2858_v17   ;;  %v4583_v9 = vld [vmem:[%s4888_s28 + $0xf0] sm:$0xff] }
 0x2a6   : > { %v6442_v42 = vpop.permute.xlu1 %2433  ;;  %v6444_v50 = vpop.permute.xlu0 %2430 }
 0x2a7   : > { %10948 = vst [vmem:[#allocation265_spill] sm:$0xff] %v6442_v42  ;;  %10949 = vst [vmem:[#allocation266_spill] sm:$0xff] %v6444_v50  ;;  %2945 = vperm.xlu1 %4515, %v2861_v61   ;;  %2942 = vperm.xlu0 %4514, %v2860_v1   ;;  %v10978_v42 = vld [vmem:[#allocation30_spill] sm:$0xff] }
 0x2aa   : > { %v6450_v34 = vpop.permute.xlu1 %2439  ;;  %v6452_v17 = vpop.permute.xlu0 %2436 }
 0x2ab   : > { %10950 = vst [vmem:[#allocation267_spill] sm:$0xff] %v6450_v34  ;;  %10951 = vst [vmem:[#allocation268_spill] sm:$0xff] %v6452_v17  ;;  %2951 = vperm.xlu1 %4515, %v2863_v21   ;;  %2948 = vperm.xlu0 %4514, %v2862_v29   ;;  %v4582_v17 = vld [vmem:[%s4888_s28 + $0xd8] sm:$0xff] }
 0x2ae   : > { %v6458_v61 = vpop.permute.xlu1 %2445  ;;  %v6460_v1 = vpop.permute.xlu0 %2442 }
 0x2af   : > { %10952 = vst [vmem:[#allocation269_spill] sm:$0xff] %v6458_v61  ;;  %10953 = vst [vmem:[#allocation270_spill] sm:$0xff] %v6460_v1  ;;  %2957 = vperm.xlu1 %4515, %v2865_v18   ;;  %2954 = vperm.xlu0 %4514, %v2864_v26   ;;  %v4581_v61 = vld [vmem:[%s4888_s28 + $0xe0] sm:$0xff] }
 0x2b0   : > { %vm2816_vm15 = vcmp.eq.s32.totalorder %v4581_v61, 5 }
 0x2b2   : > { %v6466_v21 = vpop.permute.xlu1 %2451  ;;  %v6468_v29 = vpop.permute.xlu0 %2448 }
 0x2b3   : > { %10954 = vst [vmem:[#allocation271_spill] sm:$0xff] %v6466_v21  ;;  %10955 = vst [vmem:[#allocation272_spill] sm:$0xff] %v6468_v29  ;;  %2963 = vperm.xlu1 %4515, %v2867_v10   ;;  %2960 = vperm.xlu0 %4514, %v2866_v53   ;;  %v10972_v21 = vld [vmem:[#allocation27_spill] sm:$0xff] }
 0x2b4   : > { %vm567_vm14 = vcmp.eq.s32.totalorder %v10972_v21, 1 }
 0x2b6   : > { %v6474_v18 = vpop.permute.xlu1 %2457  ;;  %v6476_v26 = vpop.permute.xlu0 %2454 }
 0x2b7   : > { %10956 = vst [vmem:[#allocation273_spill] sm:$0xff] %v6474_v18  ;;  %10957 = vst [vmem:[#allocation274_spill] sm:$0xff] %v6476_v26  ;;  %2969 = vperm.xlu1 %4515, %v2869_v63   ;;  %2966 = vperm.xlu0 %4514, %v2868_v37   ;;  %v10961_v63 = vld [vmem:[#allocation20_spill] sm:$0xff]  ;;  %v2873_v37 = vsel %vm2810_vm0, 1, %v10466_v0  ;;  %v4580_v26 = vld [vmem:[%s4888_s28 + $0xc8] sm:$0xff]  ;;  %vm2815_vm0 = vcmp.eq.s32.totalorder %v4582_v17, 5 }
 0x2b8   : > { %vm558_vm3 = vcmp.eq.s32.totalorder %v10961_v63, 1  ;;  %vm2813_vm10 = vcmp.eq.s32.totalorder %v4580_v26, 5  ;;  %v630_v26 = vsel %vm563_vm8, %v6489_v55, 0.0 }
 0x2b9   : > { %v625_v63 = vsel %vm558_vm3, %v6489_v55, 0.0  ;;  %vm568_vm3 = vcmp.eq.s32.totalorder %v10978_v42, 1  ;;  %v10985_v42 = vld [vmem:[#allocation35_spill] sm:$0xff] }
 0x2ba   : > { %v6482_v10 = vpop.permute.xlu1 %2463  ;;  %v6484_v53 = vpop.permute.xlu0 %2460  ;;  %v635_v61 = vsel %vm568_vm3, %v6489_v55, 0.0 }
 0x2bb   : > { %10958 = vst [vmem:[#allocation275_spill] sm:$0xff] %v6482_v10  ;;  %10959 = vst [vmem:[#allocation276_spill] sm:$0xff] %v6484_v53  ;;  %2975 = vperm.xlu1 %4515, %v2871_v59   ;;  %2972 = vperm.xlu0 %4514, %v2870_v13   ;;  %v6504_v13 = vld [vmem:[%s10280_s2] ss:$0 sm:$0xff]  ;;  %v4579_v10 = vld [vmem:[%s4888_s28 + $0xd0] sm:$0xff] }
 0x2bc   : > { %v10964_v53 = vld [vmem:[#allocation21_spill] sm:$0xff]  ;;  %vm2814_vm9 = vcmp.eq.s32.totalorder %v4579_v10, 5  ;;  %v6516_v18 = vadd.f32 %v6504_v13, %v627_v5  ;;  %v6525_v56 = vadd.f32 %v6504_v13, %v625_v63  ;;  %v10971_v5 = vld [vmem:[#allocation26_spill] sm:$0xff]  ;;  %v6607_v25 = vadd.f32 %v6504_v13, %v635_v61 }
 0x2bd   : > { %vm561_vm6 = vcmp.eq.s32.totalorder %v10964_v53, 1  ;;  %v10967_v53 = vld [vmem:[#allocation24_spill] sm:$0xff]  ;;  %vm564_vm13 = vcmp.eq.s32.totalorder %v10971_v5, 1 }
 0x2be   : > { %v6497_v60 = vpop.permute.xlu1 %2469  ;;  %v6499_v59 = vpop.permute.xlu0 %2466  ;;  %v628_v29 = vsel %vm561_vm6, %v6489_v55, 0.0  ;;  %vm562_vm11 = vcmp.eq.s32.totalorder %v10967_v53, 1  ;;  %v10973_v53 = vmov 0   ;;  %v631_v50 = vsel %vm564_vm13, %v6489_v55, 0.0 }
 0x2bf   : > { %10962 = vst [vmem:[#allocation19_spill] sm:$0xff] %v6497_v60  ;;  %10963 = vst [vmem:[#allocation20_spill] sm:$0xff] %v6499_v59  ;;  %2981 = vperm.xlu1 %4515, %v2873_v37   ;;  %2978 = vperm.xlu0 %4514, %v2872_v51   ;;  %v2875_v60 = vsel %vm2812_vm4, 1, %v10466_v0  ;;  %v2874_v59 = vsel %vm2811_vm5, 1, %v10466_v0  ;;  %v10970_v0 = vld [vmem:[#allocation25_spill] sm:$0xff]  ;;  %v6536_v63 = vadd.f32 %v6504_v13, %v628_v29  ;;  %v629_v1 = vsel %vm562_vm11, %v6489_v55, 0.0 }
 0x2c0   : > { %vm565_vm12 = vcmp.eq.s32.totalorder %v10970_v0, 1  ;;  %v6542_v0 = vadd.f32 %v6504_v13, %v626_v47  ;;  %v634_v47 = vsel %vm567_vm14, %v6489_v55, 0.0  ;;  %v2878_v5 = vsel %vm2815_vm0, 1, %v10973_v53 }
 0x2c1   : > { %v632_v10 = vsel %vm565_vm12, %v6489_v55, 0.0  ;;  %vm2818_vm5 = vcmp.eq.s32.totalorder %v4583_v9, 5  ;;  %vm2820_vm11 = vcmp.eq.s32.totalorder %v4585_v41, 5  ;;  %v637_v9 = vsel %vm570_vm7, %v6489_v55, 0.0 }
 0x2c2   : > { %v6520_v37 = vpop.permute.xlu1 %2475  ;;  %v6522_v51 = vpop.permute.xlu0 %2472  ;;  %v6570_v21 = vadd.f32 %v6504_v13, %v632_v10  ;;  %vm577_vm14 = vcmp.eq.s32.totalorder %v10989_v58, 1  ;;  %v6638_v8 = vadd.f32 %v6504_v13, %v637_v9  ;;  %v10995_v58 = vld [vmem:[#allocation41_spill] sm:$0xff]  ;;  %vm2824_vm7 = vcmp.eq.s32.totalorder %v4589_v3, 5 }
 0x2c3   : > { %10968 = vst [vmem:[#allocation21_spill] sm:$0xff] %v6520_v37  ;;  %10969 = vst [vmem:[#allocation22_spill] sm:$0xff] %v6522_v51  ;;  %2987 = vperm.xlu1 %4515, %v2875_v60   ;;  %2984 = vperm.xlu0 %4514, %v2874_v59   ;;  %v2877_v37 = vsel %vm2814_vm9, 1, %v10973_v53  ;;  %v2876_v51 = vsel %vm2813_vm10, 1, %v10973_v53  ;;  %v6545_v60 = vadd.f32 %v6504_v13, %v630_v26  ;;  %v10974_v59 = vld [vmem:[#allocation28_spill] sm:$0xff]  ;;  %v10977_v26 = vld [vmem:[#allocation29_spill] sm:$0xff] }
 0x2c4   : > { %vm566_vm1 = vcmp.eq.s32.totalorder %v10974_v59, 1  ;;  %vm569_vm2 = vcmp.eq.s32.totalorder %v10977_v26, 1  ;;  %v6562_v59 = vadd.f32 %v6504_v13, %v629_v1  ;;  %v6576_v1 = vadd.f32 %v6504_v13, %v631_v50 }
 0x2c5   : > { %v633_v49 = vsel %vm566_vm1, %v6489_v55, 0.0  ;;  %v636_v17 = vsel %vm569_vm2, %v6489_v55, 0.0  ;;  %vm572_vm9 = vcmp.eq.s32.totalorder %v10984_v30, 1  ;;  %vm575_vm10 = vcmp.eq.s32.totalorder %v10985_v42, 1  ;;  %v10988_v42 = vld [vmem:[#allocation36_spill] sm:$0xff] }
 0x2c6   : > { %v6549_v34 = vpop.permute.xlu1 %2481  ;;  %v6551_v29 = vpop.permute.xlu0 %2478  ;;  %v6596_v26 = vadd.f32 %v6504_v13, %v633_v49  ;;  %v6604_v2 = vadd.f32 %v6504_v13, %v636_v17  ;;  %vm574_vm13 = vcmp.eq.s32.totalorder %v10988_v42, 1  ;;  %v10992_v30 = vld [vmem:[#allocation40_spill] sm:$0xff]  ;;  %vm2822_vm2 = vcmp.eq.s32.totalorder %v4587_v12, 5 }
 0x2c7   : > { %10975 = vst [vmem:[#allocation23_spill] sm:$0xff] %v6549_v34  ;;  %10976 = vst [vmem:[#allocation24_spill] sm:$0xff] %v6551_v29  ;;  %2993 = vperm.xlu1 %4515, %v2877_v37   ;;  %2990 = vperm.xlu0 %4514, %v2876_v51   ;;  %v10979_v34 = vld [vmem:[#allocation31_spill] sm:$0xff]  ;;  %v2879_v29 = vsel %vm2816_vm15, 1, %v10973_v53  ;;  %v4584_v37 = vld [vmem:[%s4888_s28 + $0xe8] sm:$0xff]  ;;  %vm576_vm15 = vcmp.eq.s32.totalorder %v10990_v62, 1 }
 0x2c8   : > { %vm571_vm4 = vcmp.eq.s32.totalorder %v10979_v34, 1  ;;  %vm2817_vm6 = vcmp.eq.s32.totalorder %v4584_v37, 5  ;;  %v6579_v34 = vadd.f32 %v6504_v13, %v634_v47  ;;  %v10983_v47 = vld [vmem:[#allocation33_spill] sm:$0xff]  ;;  %v639_v37 = vsel %vm572_vm9, %v6489_v55, 0.0 }
 0x2c9   : > { %v638_v50 = vsel %vm571_vm4, %v6489_v55, 0.0  ;;  %vm573_vm8 = vcmp.eq.s32.totalorder %v10983_v47, 1  ;;  %v10991_v47 = vld [vmem:[#allocation39_spill] sm:$0xff]  ;;  %vm578_vm1 = vcmp.eq.s32.totalorder %v10992_v30, 1  ;;  %v641_v41 = vsel %vm574_vm13, %v6489_v55, 0.0 }
 0x2ca   : > { %v6587_v51 = vpop.permute.xlu1 %2487  ;;  %v6589_v10 = vpop.permute.xlu0 %2484  ;;  %v6612_v49 = vadd.f32 %v6504_v13, %v638_v50  ;;  %v642_v50 = vsel %vm575_vm10, %v6489_v55, 0.0  ;;  %vm579_vm0 = vcmp.eq.s32.totalorder %v10991_v47, 1  ;;  %v645_v42 = vsel %vm578_vm1, %v6489_v55, 0.0 }
 0x2cb   : > { %10980 = vst [vmem:[#allocation25_spill] sm:$0xff] %v6587_v51  ;;  %10981 = vst [vmem:[#allocation26_spill] sm:$0xff] %v6589_v10  ;;  %2999 = vperm.xlu1 %4515, %v2879_v29   ;;  %2996 = vperm.xlu0 %4514, %v2878_v5   ;;  %v2881_v51 = vsel %vm2818_vm5, 1, %v10973_v53  ;;  %v2880_v10 = vsel %vm2817_vm6, 1, %v10973_v53  ;;  %v4586_v29 = vld [vmem:[%s4888_s28 + $0xf8] sm:$0xff]  ;;  %v640_v5 = vsel %vm573_vm8, %v6489_v55, 0.0  ;;  %v6649_v4 = vadd.f32 %v6504_v13, %v642_v50 }
 0x2cc   : > { %vm2819_vm12 = vcmp.eq.s32.totalorder %v4586_v29, 5  ;;  %v6641_v14 = vadd.f32 %v6504_v13, %v640_v5  ;;  %v644_v29 = vsel %vm577_vm14, %v6489_v55, 0.0  ;;  %v646_v50 = vsel %vm579_vm0, %v6489_v55, 0.0 }
 0x2cd   : > { %vm581_vm4 = vcmp.eq.s32.totalorder %v10995_v58, 1  ;;  %vm583_vm6 = vcmp.eq.s32.totalorder %v10997_v16, 1  ;;  %v2885_v62 = vsel %vm2822_vm2, 1, %v10973_v53  ;;  %v6678_v47 = vadd.f32 %v6504_v13, %v641_v41 }
 0x2ce   : > { %v6623_v17 = vpop.permute.xlu1 %2493  ;;  %v6625_v61 = vpop.permute.xlu0 %2490  ;;  %v6681_v30 = vadd.f32 %v6504_v13, %v644_v29  ;;  %v6689_v58 = vadd.f32 %v6504_v13, %v646_v50  ;;  %v648_v12 = vsel %vm581_vm4, %v6489_v55, 0.0  ;;  %v6698_v20 = vadd.f32 %v6504_v13, %v645_v42 }
 0x2cf   : > { %10986 = vst [vmem:[#allocation27_spill] sm:$0xff] %v6623_v17  ;;  %10987 = vst [vmem:[#allocation28_spill] sm:$0xff] %v6625_v61  ;;  %3005 = vperm.xlu1 %4515, %v2881_v51   ;;  %3002 = vperm.xlu0 %4514, %v2880_v10   ;;  %v2883_v17 = vsel %vm2820_vm11, 1, %v10973_v53  ;;  %v2882_v61 = vsel %vm2819_vm12, 1, %v10973_v53  ;;  %v4588_v51 = vld [vmem:[%s4888_s28 + $0x108] sm:$0xff]  ;;  %v6646_v10 = vadd.f32 %v6504_v13, %v639_v37  ;;  %v643_v37 = vsel %vm576_vm15, %v6489_v55, 0.0 }
 0x2d0   : > { %vm2821_vm3 = vcmp.eq.s32.totalorder %v4588_v51, 5  ;;  %v10998_v51 = vld [vmem:[#allocation44_spill] sm:$0xff]  ;;  %v650_v50 = vsel %vm583_vm6, %v6489_v55, 0.0  ;;  %vm585_vm10 = vcmp.eq.s32.totalorder %v11001_v7, 1  ;;  %v2887_v42 = vsel %vm2824_vm7, 1, %v10973_v53  ;;  %v4592_v7 = vld [vmem:[%s4888_s28 + $0x128] sm:$0xff] }
 0x2d1   : > { %vm582_vm9 = vcmp.eq.s32.totalorder %v10998_v51, 1  ;;  %v11002_v51 = vld [vmem:[#allocation46_spill] sm:$0xff]  ;;  %vm2826_vm13 = vcmp.eq.s32.totalorder %v4591_v24, 5  ;;  %vm2825_vm14 = vcmp.eq.s32.totalorder %v4592_v7, 5  ;;  %v652_v3 = vsel %vm585_vm10, %v6489_v55, 0.0 }
 0x2d2   : > { %v6657_v9 = vpop.permute.xlu1 %2499  ;;  %v6659_v5 = vpop.permute.xlu0 %2496  ;;  %vm584_vm11 = vcmp.eq.s32.totalorder %v11002_v51, 1  ;;  %v649_v16 = vsel %vm582_vm9, %v6489_v55, 0.0  ;;  %vm586_vm15 = vcmp.eq.s32.totalorder %v11004_v11, 1  ;;  %vm588_vm1 = vcmp.eq.s32.totalorder %v11008_v15, 1  ;;  %v11015_v15 = vld [vmem:[#allocation55_spill] sm:$0xff] }
 0x2d3   : > { %10993 = vst [vmem:[#allocation29_spill] sm:$0xff] %v6657_v9  ;;  %10994 = vst [vmem:[#allocation30_spill] sm:$0xff] %v6659_v5  ;;  %3011 = vperm.xlu1 %4515, %v2883_v17   ;;  %3008 = vperm.xlu0 %4514, %v2882_v61   ;;  %v10996_v9 = vld [vmem:[#allocation42_spill] sm:$0xff]  ;;  %v2884_v5 = vsel %vm2821_vm3, 1, %v10973_v53  ;;  %v4590_v17 = vld [vmem:[%s4888_s28 + $0x118] sm:$0xff]  ;;  %v6686_v61 = vadd.f32 %v6504_v13, %v643_v37  ;;  %v651_v28 = vsel %vm584_vm11, %v6489_v55, 0.0 }
 0x2d4   : > { %vm580_vm5 = vcmp.eq.s32.totalorder %v10996_v9, 1  ;;  %vm2823_vm8 = vcmp.eq.s32.totalorder %v4590_v17, 5  ;;  %v6714_v9 = vadd.f32 %v6504_v13, %v648_v12  ;;  %v6740_v11 = vadd.f32 %v6504_v13, %v649_v16 }
 0x2d5   : > { %v647_v37 = vsel %vm580_vm5, %v6489_v55, 0.0  ;;  %v2888_v51 = vsel %vm2825_vm14, 1, %v10973_v53  ;;  %v653_v32 = vsel %vm586_vm15, %v6489_v55, 0.0  ;;  %vm2828_vm3 = vcmp.eq.s32.totalorder %v4593_v19, 5 }
 0x2d6   : > { %v6693_v41 = vpop.permute.xlu1 %2505  ;;  %v6695_v29 = vpop.permute.xlu0 %2502  ;;  %v655_v7 = vsel %vm588_vm1, %v6489_v55, 0.0  ;;  %vm590_vm5 = vcmp.eq.s32.totalorder %v11012_v36, 1  ;;  %vm592_vm7 = vcmp.eq.s32.totalorder %v11014_v23, 1  ;;  %vm2830_vm9 = vcmp.eq.s32.totalorder %v4595_v44, 5  ;;  %v11019_v36 = vld [vmem:[#allocation57_spill] sm:$0xff]  ;;  %v11022_v23 = vld [vmem:[#allocation60_spill] sm:$0xff] }
 0x2d7   : > { %10999 = vst [vmem:[#allocation31_spill] sm:$0xff] %v6693_v41  ;;  %11000 = vst [vmem:[#allocation32_spill] sm:$0xff] %v6695_v29  ;;  %3017 = vperm.xlu1 %4515, %v2885_v62   ;;  %3014 = vperm.xlu0 %4514, %v2884_v5   ;;  %v11003_v41 = vld [vmem:[#allocation47_spill] sm:$0xff]  ;;  %v2886_v29 = vsel %vm2823_vm8, 1, %v10973_v53  ;;  %v6720_v5 = vadd.f32 %v6504_v13, %v647_v37  ;;  %v6723_v62 = vadd.f32 %v6504_v13, %v650_v50  ;;  %v11007_v50 = vld [vmem:[#allocation49_spill] sm:$0xff] }
 0x2d8   : > { %vm587_vm12 = vcmp.eq.s32.totalorder %v11003_v41, 1  ;;  %vm589_vm0 = vcmp.eq.s32.totalorder %v11007_v50, 1  ;;  %v6748_v41 = vadd.f32 %v6504_v13, %v652_v3  ;;  %v6774_v50 = vadd.f32 %v6504_v13, %v653_v32 }
 0x2d9   : > { %v654_v37 = vsel %vm587_vm12, %v6489_v55, 0.0  ;;  %v656_v24 = vsel %vm589_vm0, %v6489_v55, 0.0  ;;  %vm595_vm8 = vcmp.eq.s32.totalorder %v11015_v15, 1  ;;  %v6785_v27 = vadd.f32 %v6504_v13, %v655_v7  ;;  %v11018_v15 = vld [vmem:[#allocation56_spill] sm:$0xff] }
 0x2da   : > { %v6727_v17 = vpop.permute.xlu1 %2511  ;;  %v6729_v12 = vpop.permute.xlu0 %2508  ;;  %v6757_v16 = vadd.f32 %v6504_v13, %v654_v37  ;;  %v11013_v37 = vld [vmem:[#allocation53_spill] sm:$0xff]  ;;  %v6782_v40 = vadd.f32 %v6504_v13, %v656_v24  ;;  %v657_v19 = vsel %vm590_vm5, %v6489_v55, 0.0  ;;  %vm594_vm11 = vcmp.eq.s32.totalorder %v11018_v15, 1 }
 0x2db   : > { %11005 = vst [vmem:[#allocation33_spill] sm:$0xff] %v6727_v17  ;;  %11006 = vst [vmem:[#allocation34_spill] sm:$0xff] %v6729_v12  ;;  %3023 = vperm.xlu1 %4515, %v2887_v42   ;;  %3020 = vperm.xlu0 %4514, %v2886_v29   ;;  %v11009_v17 = vld [vmem:[#allocation51_spill] sm:$0xff]  ;;  %v2889_v12 = vsel %vm2826_vm13, 1, %v10973_v53  ;;  %v4594_v42 = vld [vmem:[%s4888_s28 + $0x138] sm:$0xff]  ;;  %v6754_v29 = vadd.f32 %v6504_v13, %v651_v28  ;;  %vm593_vm6 = vcmp.eq.s32.totalorder %v11013_v37, 1 }
 0x2dc   : > { %vm591_vm2 = vcmp.eq.s32.totalorder %v11009_v17, 1  ;;  %vm2827_vm4 = vcmp.eq.s32.totalorder %v4594_v42, 5  ;;  %v659_v42 = vsel %vm592_vm7, %v6489_v55, 0.0  ;;  %vm597_vm12 = vcmp.eq.s32.totalorder %v11019_v36, 1  ;;  %v11021_v37 = vld [vmem:[#allocation59_spill] sm:$0xff]  ;;  %v11025_v36 = vld [vmem:[#allocation61_spill] sm:$0xff] }
 0x2dd   : > { %v658_v28 = vsel %vm591_vm2, %v6489_v55, 0.0  ;;  %vm596_vm13 = vcmp.eq.s32.totalorder %v11020_v31, 1  ;;  %vm599_vm14 = vcmp.eq.s32.totalorder %v11021_v37, 1  ;;  %vm598_vm15 = vcmp.eq.s32.totalorder %v11022_v23, 1 }
 0x2de   : > { %v6765_v3 = vpop.permute.xlu1 %2517  ;;  %v6767_v17 = vpop.permute.xlu0 %2514  ;;  %v6790_v32 = vadd.f32 %v6504_v13, %v658_v28  ;;  %v662_v28 = vsel %vm595_vm8, %v6489_v55, 0.0  ;;  %v6816_v48 = vadd.f32 %v6504_v13, %v657_v19  ;;  %vm2832_vm0 = vcmp.eq.s32.totalorder %v4597_v52, 5 }
 0x2df   : > { %11010 = vst [vmem:[#allocation35_spill] sm:$0xff] %v6765_v3  ;;  %11011 = vst [vmem:[#allocation36_spill] sm:$0xff] %v6767_v17  ;;  %3029 = vperm.xlu1 %4515, %v2889_v12   ;;  %3026 = vperm.xlu0 %4514, %v2888_v51   ;;  %v2891_v3 = vsel %vm2828_vm3, 1, %v10973_v53  ;;  %v2890_v17 = vsel %vm2827_vm4, 1, %v10973_v53  ;;  %v4596_v12 = vld [vmem:[%s4888_s28 + $0x148] sm:$0xff]  ;;  %v660_v51 = vsel %vm593_vm6, %v6489_v55, 0.0  ;;  %v6827_v39 = vadd.f32 %v6504_v13, %v662_v28 }
 0x2e0   : > { %vm2829_vm10 = vcmp.eq.s32.totalorder %v4596_v12, 5  ;;  %v6819_v35 = vadd.f32 %v6504_v13, %v660_v51  ;;  %v661_v44 = vsel %vm594_vm11, %v6489_v55, 0.0  ;;  %v664_v12 = vsel %vm597_vm12, %v6489_v55, 0.0 }
 0x2e1   : > { %v666_v28 = vsel %vm599_vm14, %v6489_v55, 0.0  ;;  %v665_v15 = vsel %vm598_vm15, %v6489_v55, 0.0  ;;  %vm601_vm2 = vcmp.eq.s32.totalorder %v11025_v36, 1  ;;  %vm603_vm4 = vcmp.eq.s32.totalorder %v11027_v43, 1 }
 0x2e2   : > { %v6801_v24 = vpop.permute.xlu1 %2523  ;;  %v6803_v7 = vpop.permute.xlu0 %2520  ;;  %v2895_v31 = vsel %vm2832_vm0, 1, %v10973_v53  ;;  %v6856_v37 = vadd.f32 %v6504_v13, %v661_v44  ;;  %v6859_v23 = vadd.f32 %v6504_v13, %v664_v12  ;;  %vm2834_vm5 = vcmp.eq.s32.totalorder %v4599_v54, 5 }
 0x2e3   : > { %11016 = vst [vmem:[#allocation37_spill] sm:$0xff] %v6801_v24  ;;  %11017 = vst [vmem:[#allocation38_spill] sm:$0xff] %v6803_v7  ;;  %3035 = vperm.xlu1 %4515, %v2891_v3   ;;  %3032 = vperm.xlu0 %4514, %v2890_v17   ;;  %v2893_v24 = vsel %vm2830_vm9, 1, %v10973_v53  ;;  %v2892_v7 = vsel %vm2829_vm10, 1, %v10973_v53  ;;  %v4598_v3 = vld [vmem:[%s4888_s28 + $0x158] sm:$0xff]  ;;  %v6824_v17 = vadd.f32 %v6504_v13, %v659_v42  ;;  %v663_v42 = vsel %vm596_vm13, %v6489_v55, 0.0 }
 0x2e4   : > { %vm2831_vm1 = vcmp.eq.s32.totalorder %v4598_v3, 5  ;;  %v6867_v36 = vadd.f32 %v6504_v13, %v666_v28  ;;  %v668_v52 = vsel %vm601_vm2, %v6489_v55, 0.0  ;;  %v11029_v3 = vld [vmem:[#allocation64_spill] sm:$0xff]  ;;  %v6876_v38 = vadd.f32 %v6504_v13, %v665_v15 }
 0x2e5   : > { %vm602_vm7 = vcmp.eq.s32.totalorder %v11029_v3, 1  ;;  %v670_v28 = vsel %vm603_vm4, %v6489_v55, 0.0  ;;  %vm605_vm8 = vcmp.eq.s32.totalorder %v11032_v22, 1  ;;  %v11033_v3 = vld [vmem:[#allocation66_spill] sm:$0xff]  ;;  %v2897_v15 = vsel %vm2834_vm5, 1, %v10973_v53  ;;  %v4602_v22 = vld [vmem:[%s4888_s28 + $0x178] sm:$0xff] }
 0x2e6   : > { %v6835_v19 = vpop.permute.xlu1 %2529  ;;  %v6837_v51 = vpop.permute.xlu0 %2526  ;;  %11028 = vst [vmem:[#allocation41_spill] sm:$0xff] %v6867_v36  ;;  %vm604_vm9 = vcmp.eq.s32.totalorder %v11033_v3, 1  ;;  %v669_v43 = vsel %vm602_vm7, %v6489_v55, 0.0  ;;  %vm2836_vm11 = vcmp.eq.s32.totalorder %v4601_v33, 5  ;;  %vm2835_vm12 = vcmp.eq.s32.totalorder %v4602_v22, 5 }
 0x2e7   : > { %11023 = vst [vmem:[#allocation39_spill] sm:$0xff] %v6835_v19  ;;  %11024 = vst [vmem:[#allocation40_spill] sm:$0xff] %v6837_v51  ;;  %3041 = vperm.xlu1 %4515, %v2893_v24   ;;  %3038 = vperm.xlu0 %4514, %v2892_v7   ;;  %v11026_v19 = vld [vmem:[#allocation62_spill] sm:$0xff]  ;;  %v2894_v51 = vsel %vm2831_vm1, 1, %v10973_v53  ;;  %v6864_v7 = vadd.f32 %v6504_v13, %v663_v42  ;;  %v672_v54 = vsel %vm605_vm8, %v6489_v55, 0.0  ;;  %vm606_vm13 = vcmp.eq.s32.totalorder %v11037_v57, 1 }
 0x2e8   : > { %vm600_vm3 = vcmp.eq.s32.totalorder %v11026_v19, 1  ;;  %v4600_v24 = vld [vmem:[%s4888_s28 + $0x168] sm:$0xff]  ;;  %v6892_v19 = vadd.f32 %v6504_v13, %v668_v52  ;;  %v671_v6 = vsel %vm604_vm9, %v6489_v55, 0.0  ;;  %vm608_vm15 = vcmp.eq.s32.totalorder %v11041_v45, 1  ;;  %v11053_v45 = vld [vmem:[#allocation16_spill] sm:$0xff] }
 0x2e9   : > { %vm2833_vm6 = vcmp.eq.s32.totalorder %v4600_v24, 5  ;;  %v667_v42 = vsel %vm600_vm3, %v6489_v55, 0.0  ;;  %v6918_v57 = vadd.f32 %v6504_v13, %v669_v43  ;;  %v2898_v3 = vsel %vm2835_vm12, 1, %v10973_v53 }
 0x2ea   : > { %v6871_v44 = vpop.permute.xlu1 %2535  ;;  %v6873_v12 = vpop.permute.xlu0 %2532  ;;  %11035 = vst [vmem:[#allocation44_spill] sm:$0xff] %v6892_v19  ;;  %v673_v46 = vsel %vm606_vm13, %v6489_v55, 0.0  ;;  %v675_v22 = vsel %vm608_vm15, %v6489_v55, 0.0 }
 0x2eb   : > { %11030 = vst [vmem:[#allocation42_spill] sm:$0xff] %v6871_v44  ;;  %11031 = vst [vmem:[#allocation43_spill] sm:$0xff] %v6873_v12  ;;  %3047 = vperm.xlu1 %4515, %v2895_v31   ;;  %3044 = vperm.xlu0 %4514, %v2894_v51   ;;  %v11034_v44 = vld [vmem:[#allocation67_spill] sm:$0xff]  ;;  %v2896_v12 = vsel %vm2833_vm6, 1, %v10973_v53  ;;  %v6898_v51 = vadd.f32 %v6504_v13, %v667_v42  ;;  %v6901_v31 = vadd.f32 %v6504_v13, %v670_v28  ;;  %v11040_v28 = vld [vmem:[#allocation10_spill] sm:$0xff] }
 0x2ec   : > { %vm607_vm10 = vcmp.eq.s32.totalorder %v11034_v44, 1  ;;  %vm609_vm14 = vcmp.eq.s32.totalorder %v11040_v28, 1  ;;  %11042 = vst [vmem:[#allocation48_spill] sm:$0xff] %v6918_v57  ;;  %v6926_v44 = vadd.f32 %v6504_v13, %v672_v54  ;;  %v6952_v28 = vadd.f32 %v6504_v13, %v673_v46  ;;  %v4605_v57 = vld [vmem:[%s4888_s28 + $0x1a0] sm:$0xff] }
 0x2ed   : > { %11036 = vst [vmem:[#allocation45_spill] sm:$0xff] %v6901_v31  ;;  %v674_v42 = vsel %vm607_vm10, %v6489_v55, 0.0  ;;  %v4603_v31 = vld [vmem:[%s4888_s28 + $0x190] sm:$0xff]  ;;  %v676_v33 = vsel %vm609_vm14, %v6489_v55, 0.0  ;;  %vm615_vm6 = vcmp.eq.s32.totalorder %v11053_v45, 1  ;;  %v6963_v19 = vadd.f32 %v6504_v13, %v675_v22  ;;  %v11059_v45 = vld [vmem:[#allocation72_spill] sm:$0xff] }
 0x2ee   : > { %v6905_v24 = vpop.permute.xlu1 %2541  ;;  %v6907_v52 = vpop.permute.xlu0 %2538  ;;  %11044 = vst [vmem:[#allocation49_spill] sm:$0xff] %v6926_v44  ;;  %vm2838_vm1 = vcmp.eq.s32.totalorder %v4603_v31, 5  ;;  %v6935_v43 = vadd.f32 %v6504_v13, %v674_v42  ;;  %v11049_v44 = vld [vmem:[#allocation70_spill] sm:$0xff]  ;;  %11052 = vst [vmem:[#allocation54_spill] sm:$0xff] %v6952_v28  ;;  %vm2840_vm7 = vcmp.eq.s32.totalorder %v4605_v57, 5  ;;  %vm614_vm9 = vcmp.eq.s32.totalorder %v11059_v45, 1 }
 0x2ef   : > { %11038 = vst [vmem:[#allocation46_spill] sm:$0xff] %v6905_v24  ;;  %11039 = vst [vmem:[#allocation47_spill] sm:$0xff] %v6907_v52  ;;  %3053 = vperm.xlu1 %4515, %v2897_v15   ;;  %3050 = vperm.xlu0 %4514, %v2896_v12   ;;  %v11043_v24 = vld [vmem:[#allocation12_spill] sm:$0xff]  ;;  %v2899_v52 = vsel %vm2836_vm11, 1, %v10973_v53  ;;  %v4604_v15 = vld [vmem:[%s4888_s28 + $0x188] sm:$0xff]  ;;  %v6932_v12 = vadd.f32 %v6504_v13, %v671_v6  ;;  %vm610_vm3 = vcmp.eq.s32.totalorder %v11049_v44, 1 }
 0x2f0   : > { %vm611_vm0 = vcmp.eq.s32.totalorder %v11043_v24, 1  ;;  %vm2837_vm2 = vcmp.eq.s32.totalorder %v4604_v15, 5  ;;  %11046 = vst [vmem:[#allocation51_spill] sm:$0xff] %v6935_v43  ;;  %v11050_v42 = vld [vmem:[#allocation14_spill] sm:$0xff]  ;;  %v11051_v43 = vld [vmem:[#allocation71_spill] sm:$0xff]  ;;  %11055 = vst [vmem:[#allocation56_spill] sm:$0xff] %v6963_v19 }
 0x2f1   : > { %11045 = vst [vmem:[#allocation50_spill] sm:$0xff] %v6932_v12  ;;  %v678_v6 = vsel %vm611_vm0, %v6489_v55, 0.0  ;;  %vm613_vm4 = vcmp.eq.s32.totalorder %v11050_v42, 1  ;;  %vm612_vm5 = vcmp.eq.s32.totalorder %v11051_v43, 1  ;;  %v6960_v12 = vadd.f32 %v6504_v13, %v676_v33  ;;  %v11060_v44 = vld [vmem:[#allocation73_spill] sm:$0xff]  ;;  %v11062_v42 = vld [vmem:[#allocation6_spill] sm:$0xff] }
 0x2f2   : > { %v6943_v54 = vpop.permute.xlu1 %2547  ;;  %v6945_v24 = vpop.permute.xlu0 %2544  ;;  %v6968_v46 = vadd.f32 %v6504_v13, %v678_v6  ;;  %v677_v31 = vsel %vm610_vm3, %v6489_v55, 0.0  ;;  %v679_v15 = vsel %vm612_vm5, %v6489_v55, 0.0  ;;  %v682_v6 = vsel %vm615_vm6, %v6489_v55, 0.0  ;;  %v11063_v43 = vld [vmem:[#allocation75_spill] sm:$0xff] }
 0x2f3   : > { %11047 = vst [vmem:[#allocation52_spill] sm:$0xff] %v6943_v54  ;;  %11048 = vst [vmem:[#allocation53_spill] sm:$0xff] %v6945_v24  ;;  %3059 = vperm.xlu1 %4515, %v2899_v52   ;;  %3056 = vperm.xlu0 %4514, %v2898_v3   ;;  %v2901_v54 = vsel %vm2838_vm1, 1, %v10973_v53  ;;  %v2900_v24 = vsel %vm2837_vm2, 1, %v10973_v53  ;;  %v4606_v52 = vld [vmem:[%s4888_s28 + $0x198] sm:$0xff]  ;;  %v680_v3 = vsel %vm613_vm4, %v6489_v55, 0.0  ;;  %v7005_v36 = vadd.f32 %v6504_v13, %v682_v6 }
 0x2f4   : > { %11054 = vst [vmem:[#allocation55_spill] sm:$0xff] %v6960_v12  ;;  %vm2839_vm8 = vcmp.eq.s32.totalorder %v4606_v52, 5  ;;  %11056 = vst [vmem:[#allocation57_spill] sm:$0xff] %v6968_v46  ;;  %vm617_vm10 = vcmp.eq.s32.totalorder %v11060_v44, 1  ;;  %v11061_v46 = vld [vmem:[#allocation74_spill] sm:$0xff]  ;;  %vm619_vm12 = vcmp.eq.s32.totalorder %v11062_v42, 1  ;;  %v6994_v12 = vadd.f32 %v6504_v13, %v677_v31 }
 0x2f5   : > { %vm616_vm11 = vcmp.eq.s32.totalorder %v11061_v46, 1  ;;  %vm618_vm13 = vcmp.eq.s32.totalorder %v11063_v43, 1  ;;  %v6997_v19 = vadd.f32 %v6504_v13, %v680_v3  ;;  %v4607_v28 = vld [vmem:[%s4888_s28 + $0x1b0] sm:$0xff]  ;;  %11066 = vst [vmem:[#allocation62_spill] sm:$0xff] %v7005_v36  ;;  %v681_v57 = vsel %vm614_vm9, %v6489_v55, 0.0  ;;  %v11070_v46 = vld [vmem:[#allocation76_spill] sm:$0xff] }
 0x2f6   : > { %v6979_v33 = vpop.permute.xlu1 %2553  ;;  %v6981_v22 = vpop.permute.xlu0 %2550  ;;  %vm2842_vm14 = vcmp.eq.s32.totalorder %v4607_v28, 5  ;;  %v684_v52 = vsel %vm617_vm10, %v6489_v55, 0.0  ;;  %v686_v6 = vsel %vm619_vm12, %v6489_v55, 0.0  ;;  %v685_v45 = vsel %vm618_vm13, %v6489_v55, 0.0  ;;  %v7029_v44 = vld [vmem:[%s10279_s1 + $0x1] ss:$0 sm:$0xff] }
 0x2f7   : > { %11057 = vst [vmem:[#allocation58_spill] sm:$0xff] %v6979_v33  ;;  %11058 = vst [vmem:[#allocation59_spill] sm:$0xff] %v6981_v22  ;;  %3065 = vperm.xlu1 %4515, %v2901_v54   ;;  %3062 = vperm.xlu0 %4514, %v2900_v24   ;;  %v2903_v33 = vsel %vm2840_vm7, 1, %v10973_v53  ;;  %v2902_v22 = vsel %vm2839_vm8, 1, %v10973_v53  ;;  %v4608_v54 = vld [vmem:[%s4888_s28 + $0x1a8] sm:$0xff]  ;;  %v7002_v24 = vadd.f32 %v6504_v13, %v679_v15  ;;  %v683_v15 = vsel %vm616_vm11, %v6489_v55, 0.0 }
 0x2f8   : > { %11064 = vst [vmem:[#allocation60_spill] sm:$0xff] %v6997_v19  ;;  %vm2841_vm15 = vcmp.eq.s32.totalorder %v4608_v54, 5  ;;  %vm620_vm1 = vcmp.eq.s32.totalorder %v11070_v46, 1  ;;  %v2905_v42 = vsel %vm2842_vm14, 1, %v10973_v53  ;;  %v7039_v36 = vadd.f32 %v6504_v13, %v681_v57  ;;  %v11074_v54 = vld [vmem:[#allocation78_spill] sm:$0xff]  ;;  %v4611_v46 = vld [vmem:[%s4888_s28 + $0x1d0] sm:$0xff] }
 0x2f9   : > { %11065 = vst [vmem:[#allocation61_spill] sm:$0xff] %v7002_v24  ;;  %v2904_v43 = vsel %vm2841_vm15, 1, %v10973_v53  ;;  %v7042_v19 = vadd.f32 %v6504_v13, %v684_v52  ;;  %v4609_v24 = vld [vmem:[%s4888_s28 + $0x1c0] sm:$0xff]  ;;  %vm1068_vm5 = vcmp.eq.s32.totalorder %v11074_v54, 1  ;;  %v11079_v54 = vld [vmem:[#allocation80_spill] sm:$0xff]  ;;  %vm2846_vm9 = vcmp.eq.s32.totalorder %v4611_v46, 5 }
 0x2fa   : > { %v7013_v31 = vpop.permute.xlu1 %2559  ;;  %v7015_v3 = vpop.permute.xlu0 %2556  ;;  %vm2844_vm3 = vcmp.eq.s32.totalorder %v4609_v24, 5  ;;  %vm1070_vm7 = vcmp.eq.s32.totalorder %v11079_v54, 1 }
 0x2fb   : > { %11067 = vst [vmem:[#allocation63_spill] sm:$0xff] %v7013_v31  ;;  %11068 = vst [vmem:[#allocation64_spill] sm:$0xff] %v7015_v3  ;;  %v11069_v31 = vld [vmem:[#allocation5_spill] sm:$0xff]  ;;  %3071 = vperm.xlu1 %4515, %v2903_v33   ;;  %3068 = vperm.xlu0 %4514, %v2902_v22   ;;  %v4610_v33 = vld [vmem:[%s4888_s28 + $0x1b8] sm:$0xff]  ;;  %v7047_v22 = vadd.f32 %v6504_v13, %v683_v15  ;;  %v687_v15 = vsel %vm620_vm1, %v6489_v55, 0.0 }
 0x2fc   : > { %vm1067_vm0 = vcmp.eq.s32.totalorder %v11069_v31, 1  ;;  %v11071_v3 = vld [vmem:[#allocation77_spill] sm:$0xff]  ;;  %11072 = vst [vmem:[#allocation65_spill] sm:$0xff] %v7042_v19  ;;  %vm2843_vm4 = vcmp.eq.s32.totalorder %v4610_v33, 5  ;;  %v7050_v31 = vadd.f32 %v6504_v13, %v686_v6  ;;  %v7059_v19 = vadd.f32 %v6504_v13, %v685_v45 }
 0x2fd   : > { %vm1069_vm2 = vcmp.eq.s32.totalorder %v11071_v3, 1  ;;  %v1134_v28 = vsel %vm1067_vm0, %v7029_v44, 0.0  ;;  %v2907_v45 = vsel %vm2844_vm3, 1, %v10973_v53  ;;  %v1135_v3 = vsel %vm1068_vm5, %v7029_v44, 0.0 }
 0x2fe   : > { %11073 = vst [vmem:[#allocation66_spill] sm:$0xff] %v7050_v31  ;;  %v7054_v57 = vpop.permute.xlu1 %2565  ;;  %v7056_v52 = vpop.permute.xlu0 %2562  ;;  %11077 = vst [vmem:[#allocation10_spill] sm:$0xff] %v7059_v19  ;;  %v1136_v6 = vsel %vm1069_vm2, %v7029_v44, 0.0  ;;  %v11078_v31 = vld [vmem:[#allocation79_spill] sm:$0xff]  ;;  %v7075_v55 = vadd.f32 %v1134_v28, %v6525_v56  ;;  %v11082_v19 = vld [vmem:[#allocation82_spill] sm:$0xff]  ;;  %v1137_v28 = vsel %vm1070_vm7, %v7029_v44, 0.0 }
 0x2ff   : > { %11075 = vst [vmem:[#allocation67_spill] sm:$0xff] %v7054_v57  ;;  %11076 = vst [vmem:[#allocation68_spill] sm:$0xff] %v7056_v52  ;;  %vm1071_vm6 = vcmp.eq.s32.totalorder %v11078_v31, 1  ;;  %3077 = vperm.xlu1 %4515, %v2905_v42   ;;  %3074 = vperm.xlu0 %4514, %v2904_v43   ;;  %v11080_v57 = vld [vmem:[#allocation81_spill] sm:$0xff]  ;;  %v2906_v52 = vsel %vm2843_vm4, 1, %v10973_v53  ;;  %v4612_v31 = vld [vmem:[%s4888_s28 + $0x1c8] sm:$0xff]  ;;  %v7081_v42 = vadd.f32 %v6504_v13, %v687_v15 }
 0x300   : > { %vm1073_vm8 = vcmp.eq.s32.totalorder %v11080_v57, 1  ;;  %vm2845_vm10 = vcmp.eq.s32.totalorder %v4612_v31, 5  ;;  %v7084_v43 = vadd.f32 %v1136_v6, %v6516_v18  ;;  %v1138_v24 = vsel %vm1071_vm6, %v7029_v44, 0.0  ;;  %v11085_v18 = vld [vmem:[#allocation83_spill] sm:$0xff]  ;;  %v11086_v15 = vld [vmem:[#allocation84_spill] sm:$0xff]  ;;  %v11087_v6 = vld [vmem:[#allocation85_spill] sm:$0xff] }
 0x301   : > { %vm1072_vm11 = vcmp.eq.s32.totalorder %v11082_v19, 1  ;;  %v1140_v13 = vsel %vm1073_vm8, %v7029_v44, 0.0  ;;  %vm1075_vm12 = vcmp.eq.s32.totalorder %v11085_v18, 1  ;;  %vm1074_vm13 = vcmp.eq.s32.totalorder %v11086_v15, 1  ;;  %v11094_v18 = vld [vmem:[#allocation89_spill] sm:$0xff] }
 0x302   : > { %11081 = vst [vmem:[#allocation69_spill] sm:$0xff] %v7084_v43  ;;  %v7088_v33 = vpop.permute.xlu1 %2571  ;;  %v7090_v56 = vpop.permute.xlu0 %2568  ;;  %v7101_v19 = vadd.f32 %v1135_v3, %v6542_v0  ;;  %vm1077_vm14 = vcmp.eq.s32.totalorder %v11087_v6, 1  ;;  %v2908_v54 = vsel %vm2845_vm10, 1, %v10973_v53  ;;  %v7109_v57 = vadd.f32 %v1138_v24, %v6562_v59  ;;  %v4613_v43 = vld [vmem:[%s4888_s28 + $0x1e0] sm:$0xff]  ;;  %v11091_v24 = vld [vmem:[#allocation86_spill] sm:$0xff] }
 0x303   : > { %11083 = vst [vmem:[#allocation12_spill] sm:$0xff] %v7088_v33  ;;  %11084 = vst [vmem:[#allocation70_spill] sm:$0xff] %v7090_v56  ;;  %3083 = vperm.xlu1 %4515, %v2907_v45   ;;  %3080 = vperm.xlu0 %4514, %v2906_v52   ;;  %v2909_v56 = vsel %vm2846_vm9, 1, %v10973_v53  ;;  %v1139_v33 = vsel %vm1072_vm11, %v7029_v44, 0.0  ;;  %vm2848_vm15 = vcmp.eq.s32.totalorder %v4613_v43, 5  ;;  %v4614_v45 = vld [vmem:[%s4888_s28 + $0x1d8] sm:$0xff]  ;;  %v7115_v0 = vadd.f32 %v1137_v28, %v6536_v63 }
 0x304   : > { %vm2847_vm0 = vcmp.eq.s32.totalorder %v4614_v45, 5  ;;  %v7118_v52 = vadd.f32 %v1140_v13, %v6576_v1  ;;  %v1142_v3 = vsel %vm1075_vm12, %v7029_v44, 0.0  ;;  %v1141_v59 = vsel %vm1074_vm13, %v7029_v44, 0.0  ;;  %v11092_v1 = vld [vmem:[#allocation87_spill] sm:$0xff]  ;;  %v11093_v28 = vld [vmem:[#allocation88_spill] sm:$0xff]  ;;  %v11098_v45 = vld [vmem:[#allocation90_spill] sm:$0xff] }
 0x305   : > { %v1144_v63 = vsel %vm1077_vm14, %v7029_v44, 0.0  ;;  %vm1076_vm1 = vcmp.eq.s32.totalorder %v11091_v24, 1  ;;  %vm1079_vm2 = vcmp.eq.s32.totalorder %v11092_v1, 1  ;;  %vm1078_vm3 = vcmp.eq.s32.totalorder %v11093_v28, 1  ;;  %v11102_v24 = vld [vmem:[#allocation94_spill] sm:$0xff] }
 0x306   : > { %11088 = vst [vmem:[#allocation14_spill] sm:$0xff] %v7118_v52  ;;  %v7126_v46 = vpop.permute.xlu1 %2577  ;;  %v7128_v31 = vpop.permute.xlu0 %2574  ;;  %v7135_v13 = vadd.f32 %v1139_v33, %v6545_v60  ;;  %vm1081_vm4 = vcmp.eq.s32.totalorder %v11094_v18, 1  ;;  %v2911_v15 = vsel %vm2848_vm15, 1, %v10973_v53  ;;  %v2910_v6 = vsel %vm2847_vm0, 1, %v10973_v53  ;;  %v4615_v52 = vld [vmem:[%s4888_s28 + $0x1f0] sm:$0xff] }
 0x307   : > { %11089 = vst [vmem:[#allocation71_spill] sm:$0xff] %v7126_v46  ;;  %11090 = vst [vmem:[#allocation16_spill] sm:$0xff] %v7128_v31  ;;  %3089 = vperm.xlu1 %4515, %v2909_v56   ;;  %3086 = vperm.xlu0 %4514, %v2908_v54   ;;  %v7143_v31 = vadd.f32 %v1142_v3, %v6596_v26  ;;  %v7146_v46 = vadd.f32 %v1141_v59, %v6570_v21  ;;  %vm2850_vm5 = vcmp.eq.s32.totalorder %v4615_v52, 5  ;;  %v4616_v56 = vld [vmem:[%s4888_s28 + $0x1e8] sm:$0xff]  ;;  %v11099_v3 = vld [vmem:[#allocation91_spill] sm:$0xff] }
 0x308   : > { %vm2849_vm6 = vcmp.eq.s32.totalorder %v4616_v56, 5  ;;  %v7151_v60 = vadd.f32 %v1144_v63, %v6607_v25  ;;  %v1143_v43 = vsel %vm1076_vm1, %v7029_v44, 0.0  ;;  %v1146_v33 = vsel %vm1079_vm2, %v7029_v44, 0.0  ;;  %v11100_v59 = vld [vmem:[#allocation92_spill] sm:$0xff]  ;;  %v11101_v63 = vld [vmem:[#allocation93_spill] sm:$0xff] }
 0x309   : > { %v1145_v21 = vsel %vm1078_vm3, %v7029_v44, 0.0  ;;  %v1148_v25 = vsel %vm1081_vm4, %v7029_v44, 0.0  ;;  %vm1080_vm7 = vcmp.eq.s32.totalorder %v11098_v45, 1  ;;  %vm1083_vm8 = vcmp.eq.s32.totalorder %v11099_v3, 1 }
 0x30a   : > { %11095 = vst [vmem:[#allocation72_spill] sm:$0xff] %v7151_v60  ;;  %v7162_v26 = vpop.permute.xlu1 %2583  ;;  %v7164_v54 = vpop.permute.xlu0 %2580  ;;  %vm1082_vm9 = vcmp.eq.s32.totalorder %v11100_v59, 1  ;;  %vm1085_vm10 = vcmp.eq.s32.totalorder %v11101_v63, 1  ;;  %vm1084_vm11 = vcmp.eq.s32.totalorder %v11102_v24, 1  ;;  %v2913_v1 = vsel %vm2850_vm5, 1, %v10973_v53  ;;  %v4619_v24 = vld [vmem:[%s4888_s28 + $0x18] sm:$0xff] }
 0x30b   : > { %11096 = vst [vmem:[#allocation73_spill] sm:$0xff] %v7162_v26  ;;  %11097 = vst [vmem:[#allocation74_spill] sm:$0xff] %v7164_v54  ;;  %3095 = vperm.xlu1 %4515, %v2911_v15   ;;  %3092 = vperm.xlu0 %4514, %v2910_v6   ;;  %v2912_v28 = vsel %vm2849_vm6, 1, %v10973_v53  ;;  %v7177_v18 = vadd.f32 %v1143_v43, %v6579_v34  ;;  %v7180_v54 = vadd.f32 %v1146_v33, %v6638_v8  ;;  %v4617_v26 = vld [vmem:[%s4888_s28 + $0x8] sm:$0xff]  ;;  %v4618_v15 = vld [vmem:[%s4888_s28] sm:$0xff] }
 0x30c   : > { %vm3298_vm12 = vcmp.eq.s32.totalorder %v4617_v26, 6  ;;  %vm3297_vm13 = vcmp.eq.s32.totalorder %v4618_v15, 6  ;;  %v7185_v6 = vadd.f32 %v1145_v21, %v6604_v2  ;;  %v7188_v60 = vadd.f32 %v1148_v25, %v6646_v10  ;;  %v11105_v33 = vld [vmem:[#allocation95_spill] sm:$0xff]  ;;  %v11106_v21 = vld [vmem:[#allocation96_spill] sm:$0xff]  ;;  %v11107_v25 = vld [vmem:[#allocation97_spill] sm:$0xff] }
 0x30d   : > { %v1147_v52 = vsel %vm1080_vm7, %v7029_v44, 0.0  ;;  %v1150_v8 = vsel %vm1083_vm8, %v7029_v44, 0.0  ;;  %v1149_v2 = vsel %vm1082_vm9, %v7029_v44, 0.0  ;;  %v1152_v10 = vsel %vm1085_vm10, %v7029_v44, 0.0  ;;  %v11108_v15 = vld [vmem:[#allocation98_spill] sm:$0xff] }
 0x30e   : > { %v7196_v34 = vpop.permute.xlu1 %2589  ;;  %v7198_v56 = vpop.permute.xlu0 %2586  ;;  %v1151_v43 = vsel %vm1084_vm11, %v7029_v44, 0.0  ;;  %vm1087_vm14 = vcmp.eq.s32.totalorder %v11105_v33, 1  ;;  %vm1086_vm15 = vcmp.eq.s32.totalorder %v11106_v21, 1  ;;  %vm1089_vm0 = vcmp.eq.s32.totalorder %v11107_v25, 1 }
 0x30f   : > { %11103 = vst [vmem:[#allocation6_spill] sm:$0xff] %v7196_v34  ;;  %11104 = vst [vmem:[#allocation75_spill] sm:$0xff] %v7198_v56  ;;  %3101 = vperm.xlu1 %4515, %v2913_v1   ;;  %3098 = vperm.xlu0 %4514, %v2912_v28   ;;  %v3361_v45 = vsel %vm3298_vm12, 1, %v10973_v53  ;;  %v3360_v3 = vsel %vm3297_vm13, 1, %v10973_v53  ;;  %v7217_v59 = vadd.f32 %v1147_v52, %v6612_v49  ;;  %vm3300_vm1 = vcmp.eq.s32.totalorder %v4619_v24, 6  ;;  %v4620_v1 = vld [vmem:[%s4888_s28 + $0x10] sm:$0xff] }
 0x310   : > { %v7220_v63 = vadd.f32 %v1150_v8, %v6678_v47  ;;  %vm3299_vm2 = vcmp.eq.s32.totalorder %v4620_v1, 6  ;;  %v7225_v28 = vadd.f32 %v1149_v2, %v6641_v14  ;;  %v7228_v33 = vadd.f32 %v1152_v10, %v6686_v61  ;;  %v11111_v8 = vld [vmem:[#allocation99_spill] sm:$0xff]  ;;  %v11112_v2 = vld [vmem:[#allocation100_spill] sm:$0xff]  ;;  %v11113_v10 = vld [vmem:[#allocation101_spill] sm:$0xff] }
 0x311   : > { %v1154_v26 = vsel %vm1087_vm14, %v7029_v44, 0.0  ;;  %vm1088_vm3 = vcmp.eq.s32.totalorder %v11108_v15, 1  ;;  %v7237_v52 = vadd.f32 %v1151_v43, %v6649_v4  ;;  %v1153_v14 = vsel %vm1086_vm15, %v7029_v44, 0.0  ;;  %v4621_v15 = vld [vmem:[%s4888_s28 + $0x28] sm:$0xff] }
 0x312   : > { %v7232_v49 = vpop.permute.xlu1 %2915  ;;  %v7234_v47 = vpop.permute.xlu0 %2592  ;;  %v1156_v61 = vsel %vm1089_vm0, %v7029_v44, 0.0  ;;  %vm1091_vm4 = vcmp.eq.s32.totalorder %v11111_v8, 1  ;;  %vm1090_vm5 = vcmp.eq.s32.totalorder %v11112_v2, 1  ;;  %vm1093_vm6 = vcmp.eq.s32.totalorder %v11113_v10, 1  ;;  %v4622_v8 = vld [vmem:[%s4888_s28 + $0x20] sm:$0xff]  ;;  %v4625_v34 = vld [vmem:[%s4888_s28 + $0x48] sm:$0xff] }
 0x313   : > { %11109 = vst [vmem:[#allocation5_spill] sm:$0xff] %v7232_v49  ;;  %11110 = vst [vmem:[#allocation76_spill] sm:$0xff] %v7234_v47  ;;  %3427 = vperm.xlu1 %4515, %v3361_v45   ;;  %3424 = vperm.xlu0 %4514, %v3360_v3   ;;  %v3363_v4 = vsel %vm3300_vm1, 1, %v10973_v53  ;;  %v3362_v43 = vsel %vm3299_vm2, 1, %v10973_v53  ;;  %v7253_v21 = vadd.f32 %v1154_v26, %v6698_v20  ;;  %v1155_v25 = vsel %vm1088_vm3, %v7029_v44, 0.0  ;;  %v11114_v47 = vld [vmem:[#allocation102_spill] sm:$0xff] }
 0x314   : > { %vm3302_vm7 = vcmp.eq.s32.totalorder %v4621_v15, 6  ;;  %vm3301_vm8 = vcmp.eq.s32.totalorder %v4622_v8, 6  ;;  %v7259_v45 = vadd.f32 %v1153_v14, %v6681_v30  ;;  %v7262_v3 = vadd.f32 %v1156_v61, %v6720_v5  ;;  %v11117_v5 = vld [vmem:[#allocation103_spill] sm:$0xff]  ;;  %v11118_v14 = vld [vmem:[#allocation104_spill] sm:$0xff]  ;;  %v11119_v61 = vld [vmem:[#allocation105_spill] sm:$0xff] }
 0x315   : > { %v1158_v24 = vsel %vm1091_vm4, %v7029_v44, 0.0  ;;  %vm1092_vm9 = vcmp.eq.s32.totalorder %v11114_v47, 1  ;;  %v1157_v26 = vsel %vm1090_vm5, %v7029_v44, 0.0  ;;  %v1160_v30 = vsel %vm1093_vm6, %v7029_v44, 0.0  ;;  %v4623_v49 = vld [vmem:[%s4888_s28 + $0x38] sm:$0xff] }
 0x316   : > { %v7266_v1 = vpop.permute.xlu1 %2921  ;;  %v7268_v20 = vpop.permute.xlu0 %2918  ;;  %vm1095_vm10 = vcmp.eq.s32.totalorder %v11117_v5, 1  ;;  %vm1094_vm11 = vcmp.eq.s32.totalorder %v11118_v14, 1  ;;  %v7279_v47 = vadd.f32 %v1155_v25, %v6689_v58  ;;  %vm1097_vm12 = vcmp.eq.s32.totalorder %v11119_v61, 1  ;;  %v11125_v5 = vld [vmem:[#allocation109_spill] sm:$0xff] }
 0x317   : > { %11115 = vst [vmem:[#allocation77_spill] sm:$0xff] %v7266_v1  ;;  %11116 = vst [vmem:[#allocation78_spill] sm:$0xff] %v7268_v20  ;;  %3433 = vperm.xlu1 %4515, %v3363_v4   ;;  %3430 = vperm.xlu0 %4514, %v3362_v43   ;;  %v3365_v20 = vsel %vm3302_vm7, 1, %v10973_v53  ;;  %v3364_v2 = vsel %vm3301_vm8, 1, %v10973_v53  ;;  %v7287_v10 = vadd.f32 %v1158_v24, %v6740_v11  ;;  %v1159_v1 = vsel %vm1092_vm9, %v7029_v44, 0.0  ;;  %v4624_v4 = vld [vmem:[%s4888_s28 + $0x30] sm:$0xff] }
 0x318   : > { %vm3304_vm13 = vcmp.eq.s32.totalorder %v4623_v49, 6  ;;  %vm3303_vm14 = vcmp.eq.s32.totalorder %v4624_v4, 6  ;;  %v7293_v58 = vadd.f32 %v1157_v26, %v6714_v9  ;;  %v7296_v43 = vadd.f32 %v1160_v30, %v6754_v29  ;;  %v11122_v24 = vld [vmem:[#allocation106_spill] sm:$0xff]  ;;  %v11123_v29 = vld [vmem:[#allocation107_spill] sm:$0xff]  ;;  %v11124_v26 = vld [vmem:[#allocation108_spill] sm:$0xff] }
 0x319   : > { %v1162_v25 = vsel %vm1095_vm10, %v7029_v44, 0.0  ;;  %v1161_v11 = vsel %vm1094_vm11, %v7029_v44, 0.0  ;;  %v1164_v9 = vsel %vm1097_vm12, %v7029_v44, 0.0  ;;  %vm1096_vm15 = vcmp.eq.s32.totalorder %v11122_v24, 1  ;;  %v11128_v4 = vld [vmem:[#allocation110_spill] sm:$0xff] }
 0x31a   : > { %v7304_v15 = vpop.permute.xlu1 %2927  ;;  %v7306_v8 = vpop.permute.xlu0 %2924  ;;  %vm1099_vm0 = vcmp.eq.s32.totalorder %v11123_v29, 1  ;;  %vm1098_vm1 = vcmp.eq.s32.totalorder %v11124_v26, 1  ;;  %v7313_v30 = vadd.f32 %v1159_v1, %v6723_v62  ;;  %vm1101_vm2 = vcmp.eq.s32.totalorder %v11125_v5, 1  ;;  %v11132_v24 = vld [vmem:[#allocation114_spill] sm:$0xff] }
 0x31b   : > { %11120 = vst [vmem:[#allocation79_spill] sm:$0xff] %v7304_v15  ;;  %11121 = vst [vmem:[#allocation80_spill] sm:$0xff] %v7306_v8  ;;  %3439 = vperm.xlu1 %4515, %v3365_v20   ;;  %3436 = vperm.xlu0 %4514, %v3364_v2   ;;  %v3367_v14 = vsel %vm3304_vm13, 1, %v10973_v53  ;;  %v3366_v61 = vsel %vm3303_vm14, 1, %v10973_v53  ;;  %v7321_v8 = vadd.f32 %v1162_v25, %v6774_v50  ;;  %vm3306_vm3 = vcmp.eq.s32.totalorder %v4625_v34, 6  ;;  %v4626_v20 = vld [vmem:[%s4888_s28 + $0x40] sm:$0xff] }
 0x31c   : > { %v7324_v15 = vadd.f32 %v1161_v11, %v6748_v41  ;;  %vm3305_vm4 = vcmp.eq.s32.totalorder %v4626_v20, 6  ;;  %v7329_v62 = vadd.f32 %v1164_v9, %v6785_v27  ;;  %v1163_v49 = vsel %vm1096_vm15, %v7029_v44, 0.0  ;;  %v11129_v25 = vld [vmem:[#allocation111_spill] sm:$0xff]  ;;  %v11130_v11 = vld [vmem:[#allocation112_spill] sm:$0xff]  ;;  %v11131_v9 = vld [vmem:[#allocation113_spill] sm:$0xff] }
 0x31d   : > { %v1166_v1 = vsel %vm1099_vm0, %v7029_v44, 0.0  ;;  %v1165_v41 = vsel %vm1098_vm1, %v7029_v44, 0.0  ;;  %v1168_v27 = vsel %vm1101_vm2, %v7029_v44, 0.0  ;;  %vm1100_vm5 = vcmp.eq.s32.totalorder %v11128_v4, 1 }
 0x31e   : > { %v7340_v50 = vpop.permute.xlu1 %2933  ;;  %v7342_v2 = vpop.permute.xlu0 %2930  ;;  %vm1103_vm6 = vcmp.eq.s32.totalorder %v11129_v25, 1  ;;  %vm1102_vm7 = vcmp.eq.s32.totalorder %v11130_v11, 1  ;;  %vm1105_vm8 = vcmp.eq.s32.totalorder %v11131_v9, 1  ;;  %vm1104_vm9 = vcmp.eq.s32.totalorder %v11132_v24, 1  ;;  %v4629_v24 = vld [vmem:[%s4888_s28 + $0x68] sm:$0xff] }
 0x31f   : > { %11126 = vst [vmem:[#allocation81_spill] sm:$0xff] %v7340_v50  ;;  %11127 = vst [vmem:[#allocation82_spill] sm:$0xff] %v7342_v2  ;;  %3445 = vperm.xlu1 %4515, %v3367_v14   ;;  %3442 = vperm.xlu0 %4514, %v3366_v61   ;;  %v3369_v29 = vsel %vm3306_vm3, 1, %v10973_v53  ;;  %v3368_v26 = vsel %vm3305_vm4, 1, %v10973_v53  ;;  %v7355_v5 = vadd.f32 %v1163_v49, %v6757_v16  ;;  %v4627_v50 = vld [vmem:[%s4888_s28 + $0x58] sm:$0xff]  ;;  %v4628_v14 = vld [vmem:[%s4888_s28 + $0x50] sm:$0xff] }
 0x320   : > { %v7358_v2 = vadd.f32 %v1166_v1, %v6816_v48  ;;  %vm3308_vm10 = vcmp.eq.s32.totalorder %v4627_v50, 6  ;;  %vm3307_vm11 = vcmp.eq.s32.totalorder %v4628_v14, 6  ;;  %v7363_v61 = vadd.f32 %v1165_v41, %v6782_v40  ;;  %v11135_v1 = vld [vmem:[#allocation115_spill] sm:$0xff]  ;;  %v11136_v41 = vld [vmem:[#allocation116_spill] sm:$0xff]  ;;  %v11139_v14 = vld [vmem:[#allocation118_spill] sm:$0xff] }
 0x321   : > { %v7366_v56 = vadd.f32 %v1168_v27, %v6824_v17  ;;  %v1167_v34 = vsel %vm1100_vm5, %v7029_v44, 0.0  ;;  %v1170_v48 = vsel %vm1103_vm6, %v7029_v44, 0.0  ;;  %v1169_v40 = vsel %vm1102_vm7, %v7029_v44, 0.0  ;;  %v11137_v27 = vld [vmem:[#allocation117_spill] sm:$0xff] }
 0x322   : > { %v7374_v16 = vpop.permute.xlu1 %2939  ;;  %v7376_v20 = vpop.permute.xlu0 %2936  ;;  %v1172_v17 = vsel %vm1105_vm8, %v7029_v44, 0.0  ;;  %v1171_v49 = vsel %vm1104_vm9, %v7029_v44, 0.0  ;;  %vm1107_vm12 = vcmp.eq.s32.totalorder %v11135_v1, 1  ;;  %vm1106_vm13 = vcmp.eq.s32.totalorder %v11136_v41, 1 }
 0x323   : > { %11133 = vst [vmem:[#allocation83_spill] sm:$0xff] %v7374_v16  ;;  %11134 = vst [vmem:[#allocation84_spill] sm:$0xff] %v7376_v20  ;;  %3451 = vperm.xlu1 %4515, %v3369_v29   ;;  %3448 = vperm.xlu0 %4514, %v3368_v26   ;;  %vm1109_vm14 = vcmp.eq.s32.totalorder %v11137_v27, 1  ;;  %v3371_v4 = vsel %vm3308_vm10, 1, %v10973_v53  ;;  %v3370_v25 = vsel %vm3307_vm11, 1, %v10973_v53  ;;  %v7395_v11 = vadd.f32 %v1167_v34, %v6790_v32  ;;  %v4630_v29 = vld [vmem:[%s4888_s28 + $0x60] sm:$0xff] }
 0x324   : > { %v7398_v9 = vadd.f32 %v1170_v48, %v6856_v37  ;;  %vm3310_vm15 = vcmp.eq.s32.totalorder %v4629_v24, 6  ;;  %vm3309_vm0 = vcmp.eq.s32.totalorder %v4630_v29, 6  ;;  %v7403_v26 = vadd.f32 %v1169_v40, %v6819_v35  ;;  %v11142_v48 = vld [vmem:[#allocation119_spill] sm:$0xff]  ;;  %v11143_v40 = vld [vmem:[#allocation120_spill] sm:$0xff]  ;;  %v4633_v16 = vld [vmem:[%s4888_s28 + $0x88] sm:$0xff] }
 0x325   : > { %v7406_v1 = vadd.f32 %v1172_v17, %v6864_v7  ;;  %v1174_v50 = vsel %vm1107_vm12, %v7029_v44, 0.0  ;;  %vm1108_vm1 = vcmp.eq.s32.totalorder %v11139_v14, 1  ;;  %v7415_v34 = vadd.f32 %v1171_v49, %v6827_v39  ;;  %v11144_v17 = vld [vmem:[#allocation7_spill] sm:$0xff]  ;;  %v4631_v14 = vld [vmem:[%s4888_s28 + $0x78] sm:$0xff] }
 0x326   : > { %v7410_v32 = vpop.permute.xlu1 %2945  ;;  %v7412_v37 = vpop.permute.xlu0 %2942  ;;  %v1173_v35 = vsel %vm1106_vm13, %v7029_v44, 0.0  ;;  %v1176_v7 = vsel %vm1109_vm14, %v7029_v44, 0.0  ;;  %vm1111_vm2 = vcmp.eq.s32.totalorder %v11142_v48, 1  ;;  %vm1110_vm3 = vcmp.eq.s32.totalorder %v11143_v40, 1  ;;  %v4632_v48 = vld [vmem:[%s4888_s28 + $0x70] sm:$0xff] }
 0x327   : > { %11138 = vst [vmem:[#allocation85_spill] sm:$0xff] %v7406_v1  ;;  %11140 = vst [vmem:[#allocation86_spill] sm:$0xff] %v7410_v32  ;;  %3457 = vperm.xlu1 %4515, %v3371_v4   ;;  %3454 = vperm.xlu0 %4514, %v3370_v25   ;;  %vm1113_vm4 = vcmp.eq.s32.totalorder %v11144_v17, 1  ;;  %v3373_v39 = vsel %vm3310_vm15, 1, %v10973_v53  ;;  %v3372_v49 = vsel %vm3309_vm0, 1, %v10973_v53  ;;  %v7431_v41 = vadd.f32 %v1174_v50, %v6876_v38  ;;  %v11155_v32 = vld [vmem:[#allocation48_spill] sm:$0xff] }
 0x328   : > { %11141 = vst [vmem:[#allocation87_spill] sm:$0xff] %v7412_v37  ;;  %v1175_v27 = vsel %vm1108_vm1, %v7029_v44, 0.0  ;;  %vm3312_vm5 = vcmp.eq.s32.totalorder %v4631_v14, 6  ;;  %vm3311_vm6 = vcmp.eq.s32.totalorder %v4632_v48, 6  ;;  %v7437_v4 = vadd.f32 %v1173_v35, %v6859_v23  ;;  %v11147_v37 = vld [vmem:[#allocation121_spill] sm:$0xff] }
 0x329   : > { %11145 = vst [vmem:[#allocation88_spill] sm:$0xff] %v7431_v41  ;;  %v7440_v25 = vadd.f32 %v1176_v7, %v6898_v51  ;;  %v1178_v24 = vsel %vm1111_vm2, %v7029_v44, 0.0  ;;  %vm1112_vm7 = vcmp.eq.s32.totalorder %v11147_v37, 1  ;;  %v1177_v50 = vsel %vm1110_vm3, %v7029_v44, 0.0  ;;  %v11150_v51 = vld [vmem:[#allocation8_spill] sm:$0xff]  ;;  %v11151_v35 = vld [vmem:[#allocation9_spill] sm:$0xff] }
 0x32a   : > { %v7444_v29 = vpop.permute.xlu1 %2951  ;;  %v7446_v38 = vpop.permute.xlu0 %2948  ;;  %v1180_v23 = vsel %vm1113_vm4, %v7029_v44, 0.0  ;;  %vm1115_vm8 = vcmp.eq.s32.totalorder %v11150_v51, 1  ;;  %vm1114_vm9 = vcmp.eq.s32.totalorder %v11151_v35, 1  ;;  %v11152_v37 = vld [vmem:[#allocation41_spill] sm:$0xff]  ;;  %v3374_v40 = vsel %vm3311_vm6, 1, %v10973_v53  ;;  %v11168_v35 = vld [vmem:[#allocation15_spill] sm:$0xff] }
 0x32b   : > { %11146 = vst [vmem:[#allocation89_spill] sm:$0xff] %v7440_v25  ;;  %11148 = vst [vmem:[#allocation90_spill] sm:$0xff] %v7444_v29  ;;  %3463 = vperm.xlu1 %4515, %v3373_v39   ;;  %3460 = vperm.xlu0 %4514, %v3372_v49   ;;  %v7457_v7 = vadd.f32 %v1175_v27, %v11152_v37  ;;  %v11154_v29 = vld [vmem:[#allocation11_spill] sm:$0xff]  ;;  %v7465_v17 = vadd.f32 %v1178_v24, %v11155_v32  ;;  %v1179_v20 = vsel %vm1112_vm7, %v7029_v44, 0.0  ;;  %v4634_v39 = vld [vmem:[%s4888_s28 + $0x80] sm:$0xff] }
 0x32c   : > { %11149 = vst [vmem:[#allocation91_spill] sm:$0xff] %v7446_v38  ;;  %vm1117_vm10 = vcmp.eq.s32.totalorder %v11154_v29, 1  ;;  %v3375_v38 = vsel %vm3312_vm5, 1, %v10973_v53  ;;  %vm3314_vm11 = vcmp.eq.s32.totalorder %v4633_v16, 6  ;;  %vm3313_vm12 = vcmp.eq.s32.totalorder %v4634_v39, 6  ;;  %v11157_v49 = vld [vmem:[#allocation44_spill] sm:$0xff] }
 0x32d   : > { %11153 = vst [vmem:[#allocation92_spill] sm:$0xff] %v7457_v7  ;;  %11156 = vst [vmem:[#allocation93_spill] sm:$0xff] %v7465_v17  ;;  %v7471_v27 = vadd.f32 %v1177_v50, %v11157_v49  ;;  %v11159_v37 = vld [vmem:[#allocation50_spill] sm:$0xff]  ;;  %v1182_v14 = vsel %vm1115_vm8, %v7029_v44, 0.0  ;;  %v1181_v32 = vsel %vm1114_vm9, %v7029_v44, 0.0  ;;  %v1184_v50 = vsel %vm1117_vm10, %v7029_v44, 0.0 }
 0x32e   : > { %v7474_v29 = vadd.f32 %v1180_v23, %v11159_v37  ;;  %v7482_v48 = vpop.permute.xlu1 %2957  ;;  %v7484_v24 = vpop.permute.xlu0 %2954  ;;  %v11163_v49 = vld [vmem:[#allocation122_spill] sm:$0xff]  ;;  %v11164_v23 = vld [vmem:[#allocation13_spill] sm:$0xff]  ;;  %v11165_v37 = vld [vmem:[#allocation123_spill] sm:$0xff]  ;;  %vm1121_vm0 = vcmp.eq.s32.totalorder %v11168_v35, 1 }
 0x32f   : > { %11158 = vst [vmem:[#allocation94_spill] sm:$0xff] %v7471_v27  ;;  %11161 = vst [vmem:[#allocation96_spill] sm:$0xff] %v7482_v48  ;;  %vm1116_vm13 = vcmp.eq.s32.totalorder %v11163_v49, 1  ;;  %vm1119_vm14 = vcmp.eq.s32.totalorder %v11164_v23, 1  ;;  %vm1118_vm15 = vcmp.eq.s32.totalorder %v11165_v37, 1  ;;  %3469 = vperm.xlu1 %4515, %v3375_v38   ;;  %3466 = vperm.xlu0 %4514, %v3374_v40   ;;  %v11166_v51 = vld [vmem:[#allocation45_spill] sm:$0xff] }
 0x330   : > { %11160 = vst [vmem:[#allocation95_spill] sm:$0xff] %v7474_v29  ;;  %11162 = vst [vmem:[#allocation97_spill] sm:$0xff] %v7484_v24  ;;  %v7491_v29 = vadd.f32 %v1179_v20, %v11166_v51  ;;  %v3377_v48 = vsel %vm3314_vm11, 1, %v10973_v53  ;;  %v3376_v24 = vsel %vm3313_vm12, 1, %v10973_v53  ;;  %v11169_v17 = vld [vmem:[#allocation54_spill] sm:$0xff]  ;;  %v11171_v27 = vld [vmem:[#allocation49_spill] sm:$0xff] }
 0x331   : > { %v7499_v25 = vadd.f32 %v1182_v14, %v11169_v17  ;;  %v7502_v41 = vadd.f32 %v1181_v32, %v11171_v27  ;;  %v4635_v7 = vld [vmem:[%s4888_s28 + $0x98] sm:$0xff]  ;;  %v4636_v38 = vld [vmem:[%s4888_s28 + $0x90] sm:$0xff]  ;;  %v1183_v16 = vsel %vm1116_vm13, %v7029_v44, 0.0  ;;  %v1186_v39 = vsel %vm1119_vm14, %v7029_v44, 0.0  ;;  %v11178_v49 = vld [vmem:[#allocation125_spill] sm:$0xff] }
 0x332   : > { %11167 = vst [vmem:[#allocation98_spill] sm:$0xff] %v7491_v29  ;;  %vm3316_vm1 = vcmp.eq.s32.totalorder %v4635_v7, 6  ;;  %vm3315_vm2 = vcmp.eq.s32.totalorder %v4636_v38, 6  ;;  %v11173_v20 = vld [vmem:[#allocation56_spill] sm:$0xff]  ;;  %v1185_v17 = vsel %vm1118_vm15, %v7029_v44, 0.0  ;;  %v7518_v27 = vpop.permute.xlu1 %2963  ;;  %v7520_v14 = vpop.permute.xlu0 %2960  ;;  %v1188_v32 = vsel %vm1121_vm0, %v7029_v44, 0.0 }
 0x333   : > { %11170 = vst [vmem:[#allocation99_spill] sm:$0xff] %v7499_v25  ;;  %11172 = vst [vmem:[#allocation100_spill] sm:$0xff] %v7502_v41  ;;  %v7507_v40 = vadd.f32 %v1184_v50, %v11173_v20  ;;  %v11177_v50 = vld [vmem:[#allocation124_spill] sm:$0xff]  ;;  %vm1123_vm4 = vcmp.eq.s32.totalorder %v11178_v49, 1  ;;  %v11179_v51 = vld [vmem:[#allocation126_spill] sm:$0xff]  ;;  %3475 = vperm.xlu1 %4515, %v3377_v48   ;;  %3472 = vperm.xlu0 %4514, %v3376_v24   ;;  %v3379_v35 = vsel %vm3316_vm1, 1, %v10973_v53 }
 0x334   : > { %11175 = vst [vmem:[#allocation102_spill] sm:$0xff] %v7518_v27  ;;  %11176 = vst [vmem:[#allocation103_spill] sm:$0xff] %v7520_v14  ;;  %vm1120_vm3 = vcmp.eq.s32.totalorder %v11177_v50, 1  ;;  %vm1122_vm5 = vcmp.eq.s32.totalorder %v11179_v51, 1  ;;  %v11180_v23 = vld [vmem:[#allocation17_spill] sm:$0xff]  ;;  %v11181_v37 = vld [vmem:[#allocation127_spill] sm:$0xff] }
 0x335   : > { %11174 = vst [vmem:[#allocation101_spill] sm:$0xff] %v7507_v40  ;;  %vm1125_vm6 = vcmp.eq.s32.totalorder %v11180_v23, 1  ;;  %vm1124_vm7 = vcmp.eq.s32.totalorder %v11181_v37, 1  ;;  %v3378_v20 = vsel %vm3315_vm2, 1, %v10973_v53  ;;  %v11182_v14 = vld [vmem:[#allocation51_spill] sm:$0xff]  ;;  %v7536_v40 = vadd.f32 %v1186_v39, %v6994_v12  ;;  %v4637_v25 = vld [vmem:[%s4888_s28 + $0xa8] sm:$0xff] }
 0x336   : > { %v7533_v27 = vadd.f32 %v1183_v16, %v11182_v14  ;;  %vm3318_vm8 = vcmp.eq.s32.totalorder %v4637_v25, 6  ;;  %v4638_v48 = vld [vmem:[%s4888_s28 + $0xa0] sm:$0xff]  ;;  %v11183_v24 = vld [vmem:[#allocation55_spill] sm:$0xff]  ;;  %v1187_v7 = vsel %vm1120_vm3, %v7029_v44, 0.0  ;;  %v1190_v12 = vsel %vm1123_vm4, %v7029_v44, 0.0  ;;  %v7552_v38 = vpop.permute.xlu1 %2969  ;;  %v7554_v16 = vpop.permute.xlu0 %2966  ;;  %v11187_v14 = vld [vmem:[#allocation18_spill] sm:$0xff] }
 0x337   : > { %vm3317_vm9 = vcmp.eq.s32.totalorder %v4638_v48, 6  ;;  %v7541_v41 = vadd.f32 %v1185_v17, %v11183_v24  ;;  %v11184_v29 = vld [vmem:[#allocation61_spill] sm:$0xff]  ;;  %11185 = vst [vmem:[#allocation104_spill] sm:$0xff] %v7552_v38  ;;  %11186 = vst [vmem:[#allocation105_spill] sm:$0xff] %v7554_v16  ;;  %v1189_v39 = vsel %vm1122_vm5, %v7029_v44, 0.0  ;;  %v1191_v17 = vsel %vm1124_vm7, %v7029_v44, 0.0  ;;  %3481 = vperm.xlu1 %4515, %v3379_v35   ;;  %3478 = vperm.xlu0 %4514, %v3378_v20  }
 0x338   : > { %v7544_v1 = vadd.f32 %v1188_v32, %v11184_v29  ;;  %v1192_v29 = vsel %vm1125_vm6, %v7029_v44, 0.0  ;;  %vm1127_vm10 = vcmp.eq.s32.totalorder %v11187_v14, 1  ;;  %v11188_v32 = vld [vmem:[#allocation128_spill] sm:$0xff]  ;;  %v11189_v50 = vld [vmem:[#allocation129_spill] sm:$0xff]  ;;  %v3381_v49 = vsel %vm3318_vm8, 1, %v10973_v53  ;;  %v4640_v35 = vld [vmem:[%s4888_s28 + $0xb0] sm:$0xff] }
 0x339   : > { %vm1126_vm11 = vcmp.eq.s32.totalorder %v11188_v32, 1  ;;  %vm1129_vm12 = vcmp.eq.s32.totalorder %v11189_v50, 1  ;;  %v3380_v51 = vsel %vm3317_vm9, 1, %v10973_v53  ;;  %v11190_v23 = vld [vmem:[#allocation57_spill] sm:$0xff]  ;;  %v7576_v37 = vadd.f32 %v1190_v12, %v7039_v36  ;;  %v4639_v16 = vld [vmem:[%s4888_s28 + $0xb8] sm:$0xff]  ;;  %v11194_v48 = vld [vmem:[#allocation130_spill] sm:$0xff] }
 0x33a   : > { %v7573_v24 = vadd.f32 %v1187_v7, %v11190_v23  ;;  %vm3320_vm13 = vcmp.eq.s32.totalorder %v4639_v16, 6  ;;  %vm3319_vm14 = vcmp.eq.s32.totalorder %v4640_v35, 6  ;;  %v11192_v20 = vld [vmem:[#allocation60_spill] sm:$0xff]  ;;  %v7584_v38 = vadd.f32 %v1192_v29, %v7047_v22  ;;  %v7588_v7 = vpop.permute.xlu1 %2975  ;;  %v7590_v23 = vpop.permute.xlu0 %2972  ;;  %v11197_v36 = vld [vmem:[#allocation62_spill] sm:$0xff]  ;;  %v7604_v29 = vld [vmem:[%s10279_s1 + $0x2] ss:$0 sm:$0xff] }
 0x33b   : > { %11191 = vst [vmem:[#allocation106_spill] sm:$0xff] %v7576_v37  ;;  %v7581_v14 = vadd.f32 %v1189_v39, %v11192_v20  ;;  %v1194_v25 = vsel %vm1127_vm10, %v7029_v44, 0.0  ;;  %vm1128_vm15 = vcmp.eq.s32.totalorder %v11194_v48, 1  ;;  %11195 = vst [vmem:[#allocation108_spill] sm:$0xff] %v7588_v7  ;;  %v7593_v12 = vadd.f32 %v1191_v17, %v11197_v36  ;;  %v11199_v20 = vld [vmem:[#allocation131_spill] sm:$0xff]  ;;  %3487 = vperm.xlu1 %4515, %v3381_v49   ;;  %v11200_v48 = vld [vmem:[#allocation132_spill] sm:$0xff] }
 0x33c   : > { %11193 = vst [vmem:[#allocation107_spill] sm:$0xff] %v7584_v38  ;;  %11196 = vst [vmem:[#allocation109_spill] sm:$0xff] %v7590_v23  ;;  %v1193_v39 = vsel %vm1126_vm11, %v7029_v44, 0.0  ;;  %v1196_v22 = vsel %vm1129_vm12, %v7029_v44, 0.0  ;;  %vm1577_vm0 = vcmp.eq.s32.totalorder %v11199_v20, 1  ;;  %3484 = vperm.xlu0 %4514, %v3380_v51   ;;  %vm1576_vm1 = vcmp.eq.s32.totalorder %v11200_v48, 1 }
 0x33d   : > { %11198 = vst [vmem:[#allocation110_spill] sm:$0xff] %v7593_v12  ;;  %v11201_v17 = vld [vmem:[#allocation133_spill] sm:$0xff]  ;;  %v3383_v32 = vsel %vm3320_vm13, 1, %v10973_v53  ;;  %v3382_v50 = vsel %vm3319_vm14, 1, %v10973_v53  ;;  %v11202_v36 = vld [vmem:[#allocation10_spill] sm:$0xff]  ;;  %v1195_v7 = vsel %vm1128_vm15, %v7029_v44, 0.0  ;;  %v7623_v37 = vadd.f32 %v1196_v22, %v7081_v42 }
 0x33e   : > { %vm1579_vm2 = vcmp.eq.s32.totalorder %v11201_v17, 1  ;;  %v7614_v23 = vadd.f32 %v1194_v25, %v11202_v36  ;;  %v4641_v38 = vld [vmem:[%s4888_s28 + $0xc8] sm:$0xff]  ;;  %v4642_v20 = vld [vmem:[%s4888_s28 + $0xc0] sm:$0xff]  ;;  %v1644_v16 = vsel %vm1577_vm0, %v7604_v29, 0.0  ;;  %v7627_v35 = vpop.permute.xlu1 %2981  ;;  %v7629_v25 = vpop.permute.xlu0 %2978  ;;  %v1643_v44 = vsel %vm1576_vm1, %v7604_v29, 0.0  ;;  %v11208_v42 = vld [vmem:[#allocation135_spill] sm:$0xff] }
 0x33f   : > { %vm3322_vm3 = vcmp.eq.s32.totalorder %v4641_v38, 6  ;;  %vm3321_vm4 = vcmp.eq.s32.totalorder %v4642_v20, 6  ;;  %v11203_v49 = vld [vmem:[#allocation65_spill] sm:$0xff]  ;;  %11204 = vst [vmem:[#allocation111_spill] sm:$0xff] %v7623_v37  ;;  %v11205_v12 = vld [vmem:[#allocation134_spill] sm:$0xff]  ;;  %11206 = vst [vmem:[#allocation112_spill] sm:$0xff] %v7627_v35  ;;  %3493 = vperm.xlu1 %4515, %v3383_v32   ;;  %v7648_v17 = vadd.f32 %v1644_v16, %v7101_v19 }
 0x340   : > { %v7620_v51 = vadd.f32 %v1193_v39, %v11203_v49  ;;  %vm1578_vm5 = vcmp.eq.s32.totalorder %v11205_v12, 1  ;;  %11207 = vst [vmem:[#allocation113_spill] sm:$0xff] %v7629_v25  ;;  %v1646_v39 = vsel %vm1579_vm2, %v7604_v29, 0.0  ;;  %vm1581_vm6 = vcmp.eq.s32.totalorder %v11208_v42, 1  ;;  %v11209_v22 = vld [vmem:[#allocation136_spill] sm:$0xff]  ;;  %3490 = vperm.xlu0 %4514, %v3382_v50   ;;  %v11210_v12 = vld [vmem:[#allocation66_spill] sm:$0xff] }
 0x341   : > { %vm1580_vm7 = vcmp.eq.s32.totalorder %v11209_v22, 1  ;;  %v7640_v36 = vadd.f32 %v1195_v7, %v11210_v12  ;;  %v11211_v49 = vld [vmem:[#allocation137_spill] sm:$0xff]  ;;  %v3385_v25 = vsel %vm3322_vm3, 1, %v10973_v53  ;;  %v3384_v48 = vsel %vm3321_vm4, 1, %v10973_v53  ;;  %11212 = vst [vmem:[#allocation114_spill] sm:$0xff] %v7648_v17  ;;  %v4643_v37 = vld [vmem:[%s4888_s28 + $0xd8] sm:$0xff] }
 0x342   : > { %vm1583_vm8 = vcmp.eq.s32.totalorder %v11211_v49, 1  ;;  %v1645_v35 = vsel %vm1578_vm5, %v7604_v29, 0.0  ;;  %vm3324_vm9 = vcmp.eq.s32.totalorder %v4643_v37, 6  ;;  %v4644_v32 = vld [vmem:[%s4888_s28 + $0xd0] sm:$0xff]  ;;  %v7654_v7 = vadd.f32 %v1643_v44, %v7075_v55  ;;  %v7665_v20 = vpop.permute.xlu1 %2987  ;;  %v7667_v16 = vpop.permute.xlu0 %2984  ;;  %v11216_v44 = vld [vmem:[#allocation138_spill] sm:$0xff]  ;;  %v11219_v42 = vld [vmem:[#allocation69_spill] sm:$0xff] }
 0x343   : > { %vm3323_vm10 = vcmp.eq.s32.totalorder %v4644_v32, 6  ;;  %v7657_v50 = vadd.f32 %v1646_v39, %v7115_v0  ;;  %v1648_v38 = vsel %vm1581_vm6, %v7604_v29, 0.0  ;;  %v1647_v19 = vsel %vm1580_vm7, %v7604_v29, 0.0  ;;  %11214 = vst [vmem:[#allocation116_spill] sm:$0xff] %v7665_v20  ;;  %11215 = vst [vmem:[#allocation117_spill] sm:$0xff] %v7667_v16  ;;  %v11217_v0 = vld [vmem:[#allocation139_spill] sm:$0xff]  ;;  %3499 = vperm.xlu1 %4515, %v3385_v25  }
 0x344   : > { %v1650_v55 = vsel %vm1583_vm8, %v7604_v29, 0.0  ;;  %vm1582_vm11 = vcmp.eq.s32.totalorder %v11216_v44, 1  ;;  %vm1585_vm12 = vcmp.eq.s32.totalorder %v11217_v0, 1  ;;  %v11218_v39 = vld [vmem:[#allocation140_spill] sm:$0xff]  ;;  %3496 = vperm.xlu0 %4514, %v3384_v48   ;;  %v7674_v12 = vadd.f32 %v1645_v35, %v11219_v42  ;;  %v11220_v22 = vld [vmem:[#allocation141_spill] sm:$0xff]  ;;  %v4645_v17 = vld [vmem:[%s4888_s28 + $0xe8] sm:$0xff] }
 0x345   : > { %11213 = vst [vmem:[#allocation115_spill] sm:$0xff] %v7657_v50  ;;  %vm1584_vm13 = vcmp.eq.s32.totalorder %v11218_v39, 1  ;;  %vm1587_vm14 = vcmp.eq.s32.totalorder %v11220_v22, 1  ;;  %v3387_v49 = vsel %vm3324_vm9, 1, %v10973_v53  ;;  %v3386_v16 = vsel %vm3323_vm10, 1, %v10973_v53  ;;  %v4646_v25 = vld [vmem:[%s4888_s28 + $0xe0] sm:$0xff] }
 0x346   : > { %v7682_v20 = vadd.f32 %v1648_v38, %v7135_v13  ;;  %v7685_v50 = vadd.f32 %v1647_v19, %v7109_v57  ;;  %vm3326_vm15 = vcmp.eq.s32.totalorder %v4645_v17, 6  ;;  %vm3325_vm0 = vcmp.eq.s32.totalorder %v4646_v25, 6  ;;  %v7701_v13 = vpop.permute.xlu1 %2993  ;;  %v7703_v32 = vpop.permute.xlu0 %2990  ;;  %v11225_v38 = vld [vmem:[#allocation142_spill] sm:$0xff]  ;;  %v11226_v19 = vld [vmem:[#allocation143_spill] sm:$0xff]  ;;  %v11228_v44 = vld [vmem:[#allocation145_spill] sm:$0xff] }
 0x347   : > { %v7690_v35 = vadd.f32 %v1650_v55, %v7146_v46  ;;  %v1649_v37 = vsel %vm1582_vm11, %v7604_v29, 0.0  ;;  %v1652_v48 = vsel %vm1585_vm12, %v7604_v29, 0.0  ;;  %v1651_v57 = vsel %vm1584_vm13, %v7604_v29, 0.0  ;;  %11223 = vst [vmem:[#allocation120_spill] sm:$0xff] %v7701_v13  ;;  %11224 = vst [vmem:[#allocation7_spill] sm:$0xff] %v7703_v32  ;;  %v11227_v55 = vld [vmem:[#allocation144_spill] sm:$0xff]  ;;  %3505 = vperm.xlu1 %4515, %v3387_v49  }
 0x348   : > { %11221 = vst [vmem:[#allocation118_spill] sm:$0xff] %v7682_v20  ;;  %v1654_v46 = vsel %vm1587_vm14, %v7604_v29, 0.0  ;;  %vm1586_vm1 = vcmp.eq.s32.totalorder %v11225_v38, 1  ;;  %vm1589_vm2 = vcmp.eq.s32.totalorder %v11226_v19, 1  ;;  %vm1588_vm3 = vcmp.eq.s32.totalorder %v11227_v55, 1  ;;  %3502 = vperm.xlu0 %4514, %v3386_v16   ;;  %v11229_v0 = vld [vmem:[#allocation146_spill] sm:$0xff] }
 0x349   : > { %11222 = vst [vmem:[#allocation119_spill] sm:$0xff] %v7690_v35  ;;  %vm1591_vm4 = vcmp.eq.s32.totalorder %v11228_v44, 1  ;;  %vm1590_vm5 = vcmp.eq.s32.totalorder %v11229_v0, 1  ;;  %v3389_v39 = vsel %vm3326_vm15, 1, %v10973_v53  ;;  %v3388_v42 = vsel %vm3325_vm0, 1, %v10973_v53  ;;  %v11230_v22 = vld [vmem:[#allocation14_spill] sm:$0xff] }
 0x34a   : > { %v7716_v32 = vadd.f32 %v1649_v37, %v11230_v22  ;;  %v7719_v13 = vadd.f32 %v1652_v48, %v7177_v18  ;;  %v4647_v35 = vld [vmem:[%s4888_s28 + $0xf8] sm:$0xff]  ;;  %v4648_v49 = vld [vmem:[%s4888_s28 + $0xf0] sm:$0xff]  ;;  %v7724_v16 = vadd.f32 %v1651_v57, %v7143_v31  ;;  %v7727_v20 = vadd.f32 %v1654_v46, %v7185_v6  ;;  %v7735_v25 = vpop.permute.xlu1 %2999  ;;  %v7737_v37 = vpop.permute.xlu0 %2996  ;;  %v11235_v38 = vld [vmem:[#allocation149_spill] sm:$0xff] }
 0x34b   : > { %vm3328_vm6 = vcmp.eq.s32.totalorder %v4647_v35, 6  ;;  %vm3327_vm7 = vcmp.eq.s32.totalorder %v4648_v49, 6  ;;  %v1653_v17 = vsel %vm1586_vm1, %v7604_v29, 0.0  ;;  %v1656_v18 = vsel %vm1589_vm2, %v7604_v29, 0.0  ;;  %11231 = vst [vmem:[#allocation121_spill] sm:$0xff] %v7735_v25  ;;  %11232 = vst [vmem:[#allocation8_spill] sm:$0xff] %v7737_v37  ;;  %3511 = vperm.xlu1 %4515, %v3389_v39  }
 0x34c   : > { %v1655_v31 = vsel %vm1588_vm3, %v7604_v29, 0.0  ;;  %v1658_v6 = vsel %vm1591_vm4, %v7604_v29, 0.0  ;;  %v1657_v48 = vsel %vm1590_vm5, %v7604_v29, 0.0  ;;  %v11233_v57 = vld [vmem:[#allocation147_spill] sm:$0xff]  ;;  %3508 = vperm.xlu0 %4514, %v3388_v42   ;;  %v11234_v46 = vld [vmem:[#allocation148_spill] sm:$0xff]  ;;  %vm1595_vm10 = vcmp.eq.s32.totalorder %v11235_v38, 1 }
 0x34d   : > { %vm1593_vm8 = vcmp.eq.s32.totalorder %v11233_v57, 1  ;;  %vm1592_vm9 = vcmp.eq.s32.totalorder %v11234_v46, 1  ;;  %v3391_v19 = vsel %vm3328_vm6, 1, %v10973_v53  ;;  %v3390_v55 = vsel %vm3327_vm7, 1, %v10973_v53  ;;  %v11236_v44 = vld [vmem:[#allocation72_spill] sm:$0xff]  ;;  %v4649_v37 = vld [vmem:[%s4888_s28 + $0x108] sm:$0xff] }
 0x34e   : > { %v7756_v22 = vadd.f32 %v1653_v17, %v11236_v44  ;;  %v7759_v0 = vadd.f32 %v1656_v18, %v7217_v59  ;;  %vm3330_vm11 = vcmp.eq.s32.totalorder %v4649_v37, 6  ;;  %v4650_v39 = vld [vmem:[%s4888_s28 + $0x100] sm:$0xff]  ;;  %v7764_v42 = vadd.f32 %v1655_v31, %v7180_v54  ;;  %v11237_v49 = vld [vmem:[#allocation150_spill] sm:$0xff]  ;;  %v7771_v17 = vpop.permute.xlu1 %3005  ;;  %v7773_v59 = vpop.permute.xlu0 %3002  ;;  %v11240_v31 = vld [vmem:[#allocation151_spill] sm:$0xff] }
 0x34f   : > { %vm3329_vm12 = vcmp.eq.s32.totalorder %v4650_v39, 6  ;;  %v7767_v57 = vadd.f32 %v1658_v6, %v7225_v28  ;;  %v1660_v35 = vsel %vm1593_vm8, %v7604_v29, 0.0  ;;  %vm1594_vm13 = vcmp.eq.s32.totalorder %v11237_v49, 1  ;;  %11238 = vst [vmem:[#allocation9_spill] sm:$0xff] %v7771_v17  ;;  %11239 = vst [vmem:[#allocation41_spill] sm:$0xff] %v7773_v59  ;;  %3517 = vperm.xlu1 %4515, %v3391_v19   ;;  %v11241_v6 = vld [vmem:[#allocation152_spill] sm:$0xff] }
 0x350   : > { %v7776_v18 = vadd.f32 %v1657_v48, %v7188_v60  ;;  %v1659_v54 = vsel %vm1592_vm9, %v7604_v29, 0.0  ;;  %v1662_v28 = vsel %vm1595_vm10, %v7604_v29, 0.0  ;;  %vm1597_vm14 = vcmp.eq.s32.totalorder %v11240_v31, 1  ;;  %3514 = vperm.xlu0 %4514, %v3390_v55   ;;  %v11242_v44 = vld [vmem:[#allocation153_spill] sm:$0xff]  ;;  %v4651_v49 = vld [vmem:[%s4888_s28 + $0x118] sm:$0xff]  ;;  %v4652_v31 = vld [vmem:[%s4888_s28 + $0x110] sm:$0xff] }
 0x351   : > { %vm1596_vm15 = vcmp.eq.s32.totalorder %v11241_v6, 1  ;;  %vm1599_vm0 = vcmp.eq.s32.totalorder %v11242_v44, 1  ;;  %v3393_v60 = vsel %vm3330_vm11, 1, %v10973_v53  ;;  %v3392_v48 = vsel %vm3329_vm12, 1, %v10973_v53  ;;  %v11243_v59 = vld [vmem:[#allocation154_spill] sm:$0xff]  ;;  %v4655_v25 = vld [vmem:[%s4888_s28 + $0x138] sm:$0xff] }
 0x352   : > { %v7792_v46 = vadd.f32 %v1660_v35, %v7237_v52  ;;  %v1661_v38 = vsel %vm1594_vm13, %v7604_v29, 0.0  ;;  %vm3332_vm1 = vcmp.eq.s32.totalorder %v4651_v49, 6  ;;  %vm3331_vm2 = vcmp.eq.s32.totalorder %v4652_v31, 6  ;;  %v7805_v39 = vpop.permute.xlu1 %3011  ;;  %v7807_v52 = vpop.permute.xlu0 %3008  ;;  %v4653_v17 = vld [vmem:[%s4888_s28 + $0x128] sm:$0xff] }
 0x353   : > { %v7798_v19 = vadd.f32 %v1659_v54, %v7220_v63  ;;  %v7801_v55 = vadd.f32 %v1662_v28, %v7259_v45  ;;  %v1664_v37 = vsel %vm1597_vm14, %v7604_v29, 0.0  ;;  %vm1598_vm3 = vcmp.eq.s32.totalorder %v11243_v59, 1  ;;  %11244 = vst [vmem:[#allocation11_spill] sm:$0xff] %v7805_v39  ;;  %11245 = vst [vmem:[#allocation48_spill] sm:$0xff] %v7807_v52  ;;  %v11246_v45 = vld [vmem:[#allocation155_spill] sm:$0xff]  ;;  %v11247_v54 = vld [vmem:[#allocation156_spill] sm:$0xff]  ;;  %3523 = vperm.xlu1 %4515, %v3393_v60  }
 0x354   : > { %v1663_v35 = vsel %vm1596_vm15, %v7604_v29, 0.0  ;;  %v1666_v63 = vsel %vm1599_vm0, %v7604_v29, 0.0  ;;  %vm1601_vm4 = vcmp.eq.s32.totalorder %v11246_v45, 1  ;;  %vm1600_vm5 = vcmp.eq.s32.totalorder %v11247_v54, 1  ;;  %3520 = vperm.xlu0 %4514, %v3392_v48   ;;  %v11248_v28 = vld [vmem:[#allocation157_spill] sm:$0xff] }
 0x355   : > { %v7818_v59 = vadd.f32 %v1661_v38, %v7228_v33  ;;  %vm1603_vm6 = vcmp.eq.s32.totalorder %v11248_v28, 1  ;;  %v3395_v52 = vsel %vm3332_vm1, 1, %v10973_v53  ;;  %v3394_v6 = vsel %vm3331_vm2, 1, %v10973_v53  ;;  %v4654_v60 = vld [vmem:[%s4888_s28 + $0x120] sm:$0xff] }
 0x356   : > { %v7826_v44 = vadd.f32 %v1664_v37, %v7279_v47  ;;  %v1665_v39 = vsel %vm1598_vm3, %v7604_v29, 0.0  ;;  %vm3334_vm7 = vcmp.eq.s32.totalorder %v4653_v17, 6  ;;  %vm3333_vm8 = vcmp.eq.s32.totalorder %v4654_v60, 6  ;;  %v7843_v49 = vpop.permute.xlu1 %3017  ;;  %v7845_v31 = vpop.permute.xlu0 %3014  ;;  %v11251_v37 = vld [vmem:[#allocation158_spill] sm:$0xff]  ;;  %v11254_v45 = vld [vmem:[#allocation161_spill] sm:$0xff] }
 0x357   : > { %v7832_v33 = vadd.f32 %v1663_v35, %v7253_v21  ;;  %v7835_v48 = vadd.f32 %v1666_v63, %v7293_v58  ;;  %v1668_v38 = vsel %vm1601_vm4, %v7604_v29, 0.0  ;;  %v1667_v47 = vsel %vm1600_vm5, %v7604_v29, 0.0  ;;  %11249 = vst [vmem:[#allocation44_spill] sm:$0xff] %v7843_v49  ;;  %11250 = vst [vmem:[#allocation50_spill] sm:$0xff] %v7845_v31  ;;  %v11252_v58 = vld [vmem:[#allocation159_spill] sm:$0xff]  ;;  %v11253_v35 = vld [vmem:[#allocation160_spill] sm:$0xff]  ;;  %3529 = vperm.xlu1 %4515, %v3395_v52  }
 0x358   : > { %v1670_v21 = vsel %vm1603_vm6, %v7604_v29, 0.0  ;;  %vm1602_vm9 = vcmp.eq.s32.totalorder %v11251_v37, 1  ;;  %vm1605_vm10 = vcmp.eq.s32.totalorder %v11252_v58, 1  ;;  %vm1604_vm11 = vcmp.eq.s32.totalorder %v11253_v35, 1  ;;  %3526 = vperm.xlu0 %4514, %v3394_v6   ;;  %v4656_v52 = vld [vmem:[%s4888_s28 + $0x130] sm:$0xff]  ;;  %v11258_v60 = vld [vmem:[#allocation162_spill] sm:$0xff] }
 0x359   : > { %v7852_v63 = vadd.f32 %v1665_v39, %v7262_v3  ;;  %vm1607_vm12 = vcmp.eq.s32.totalorder %v11254_v45, 1  ;;  %v3397_v54 = vsel %vm3334_vm7, 1, %v10973_v53  ;;  %v3396_v28 = vsel %vm3333_vm8, 1, %v10973_v53  ;;  %v11262_v37 = vld [vmem:[#allocation166_spill] sm:$0xff] }
 0x35a   : > { %v7860_v31 = vadd.f32 %v1668_v38, %v7313_v30  ;;  %v7863_v49 = vadd.f32 %v1667_v47, %v7287_v10  ;;  %vm3336_vm13 = vcmp.eq.s32.totalorder %v4655_v25, 6  ;;  %vm3335_vm14 = vcmp.eq.s32.totalorder %v4656_v52, 6  ;;  %v7879_v30 = vpop.permute.xlu1 %3023  ;;  %v7881_v6 = vpop.permute.xlu0 %3020  ;;  %v11259_v38 = vld [vmem:[#allocation163_spill] sm:$0xff]  ;;  %v11260_v47 = vld [vmem:[#allocation164_spill] sm:$0xff] }
 0x35b   : > { %v7868_v3 = vadd.f32 %v1670_v21, %v7324_v15  ;;  %v1669_v17 = vsel %vm1602_vm9, %v7604_v29, 0.0  ;;  %v1672_v39 = vsel %vm1605_vm10, %v7604_v29, 0.0  ;;  %v1671_v10 = vsel %vm1604_vm11, %v7604_v29, 0.0  ;;  %11256 = vst [vmem:[#allocation13_spill] sm:$0xff] %v7879_v30  ;;  %11257 = vst [vmem:[#allocation123_spill] sm:$0xff] %v7881_v6  ;;  %3535 = vperm.xlu1 %4515, %v3397_v54   ;;  %v11261_v21 = vld [vmem:[#allocation165_spill] sm:$0xff] }
 0x35c   : > { %v1674_v15 = vsel %vm1607_vm12, %v7604_v29, 0.0  ;;  %vm1606_vm15 = vcmp.eq.s32.totalorder %v11258_v60, 1  ;;  %vm1609_vm0 = vcmp.eq.s32.totalorder %v11259_v38, 1  ;;  %vm1608_vm1 = vcmp.eq.s32.totalorder %v11260_v47, 1  ;;  %3532 = vperm.xlu0 %4514, %v3396_v28   ;;  %v4657_v30 = vld [vmem:[%s4888_s28 + $0x148] sm:$0xff]  ;;  %v4658_v54 = vld [vmem:[%s4888_s28 + $0x140] sm:$0xff] }
 0x35d   : > { %11255 = vst [vmem:[#allocation122_spill] sm:$0xff] %v7868_v3  ;;  %vm1611_vm2 = vcmp.eq.s32.totalorder %v11261_v21, 1  ;;  %vm1610_vm3 = vcmp.eq.s32.totalorder %v11262_v37, 1  ;;  %v3399_v58 = vsel %vm3336_vm13, 1, %v10973_v53  ;;  %v3398_v35 = vsel %vm3335_vm14, 1, %v10973_v53  ;;  %v4659_v37 = vld [vmem:[%s4888_s28 + $0x158] sm:$0xff] }
 0x35e   : > { %v7894_v45 = vadd.f32 %v1669_v17, %v7296_v43  ;;  %v7897_v6 = vadd.f32 %v1672_v39, %v7355_v5  ;;  %vm3338_vm4 = vcmp.eq.s32.totalorder %v4657_v30, 6  ;;  %vm3337_vm5 = vcmp.eq.s32.totalorder %v4658_v54, 6  ;;  %v7913_v5 = vpop.permute.xlu1 %3029  ;;  %v7915_v52 = vpop.permute.xlu0 %3026  ;;  %v11265_v39 = vld [vmem:[#allocation167_spill] sm:$0xff]  ;;  %v11268_v54 = vld [vmem:[#allocation170_spill] sm:$0xff] }
 0x35f   : > { %v7902_v28 = vadd.f32 %v1671_v10, %v7321_v8  ;;  %v7905_v3 = vadd.f32 %v1674_v15, %v7363_v61  ;;  %v1673_v25 = vsel %vm1606_vm15, %v7604_v29, 0.0  ;;  %v1676_v43 = vsel %vm1609_vm0, %v7604_v29, 0.0  ;;  %11263 = vst [vmem:[#allocation45_spill] sm:$0xff] %v7913_v5  ;;  %11264 = vst [vmem:[#allocation15_spill] sm:$0xff] %v7915_v52  ;;  %3541 = vperm.xlu1 %4515, %v3399_v58   ;;  %v11266_v10 = vld [vmem:[#allocation168_spill] sm:$0xff]  ;;  %v11267_v15 = vld [vmem:[#allocation169_spill] sm:$0xff] }
 0x360   : > { %v1675_v8 = vsel %vm1608_vm1, %v7604_v29, 0.0  ;;  %v1678_v61 = vsel %vm1611_vm2, %v7604_v29, 0.0  ;;  %v1677_v17 = vsel %vm1610_vm3, %v7604_v29, 0.0  ;;  %vm1613_vm6 = vcmp.eq.s32.totalorder %v11265_v39, 1  ;;  %3538 = vperm.xlu0 %4514, %v3398_v35   ;;  %v4660_v58 = vld [vmem:[%s4888_s28 + $0x150] sm:$0xff]  ;;  %v4663_v5 = vld [vmem:[%s4888_s28 + $0x178] sm:$0xff] }
 0x361   : > { %vm1612_vm7 = vcmp.eq.s32.totalorder %v11266_v10, 1  ;;  %vm1615_vm8 = vcmp.eq.s32.totalorder %v11267_v15, 1  ;;  %v3401_v60 = vsel %vm3338_vm4, 1, %v10973_v53  ;;  %v3400_v38 = vsel %vm3337_vm5, 1, %v10973_v53 }
 0x362   : > { %v7934_v47 = vadd.f32 %v1673_v25, %v7329_v62  ;;  %v7937_v21 = vadd.f32 %v1676_v43, %v7395_v11  ;;  %vm3340_vm9 = vcmp.eq.s32.totalorder %v4659_v37, 6  ;;  %vm3339_vm10 = vcmp.eq.s32.totalorder %v4660_v58, 6  ;;  %v7949_v62 = vpop.permute.xlu1 %3035  ;;  %v7951_v11 = vpop.permute.xlu0 %3032  ;;  %v11271_v43 = vld [vmem:[#allocation171_spill] sm:$0xff] }
 0x363   : > { %v7942_v35 = vadd.f32 %v1675_v8, %v7358_v2  ;;  %v7945_v39 = vadd.f32 %v1678_v61, %v7403_v26  ;;  %v1680_v30 = vsel %vm1613_vm6, %v7604_v29, 0.0  ;;  %vm1614_vm11 = vcmp.eq.s32.totalorder %v11268_v54, 1  ;;  %11269 = vst [vmem:[#allocation54_spill] sm:$0xff] %v7949_v62  ;;  %11270 = vst [vmem:[#allocation49_spill] sm:$0xff] %v7951_v11  ;;  %3547 = vperm.xlu1 %4515, %v3401_v60   ;;  %v11272_v8 = vld [vmem:[#allocation172_spill] sm:$0xff]  ;;  %v11273_v61 = vld [vmem:[#allocation173_spill] sm:$0xff] }
 0x364   : > { %v7954_v25 = vadd.f32 %v1677_v17, %v7366_v56  ;;  %v1679_v2 = vsel %vm1612_vm7, %v7604_v29, 0.0  ;;  %v1682_v26 = vsel %vm1615_vm8, %v7604_v29, 0.0  ;;  %vm1617_vm12 = vcmp.eq.s32.totalorder %v11271_v43, 1  ;;  %3544 = vperm.xlu0 %4514, %v3400_v38   ;;  %v4661_v54 = vld [vmem:[%s4888_s28 + $0x168] sm:$0xff]  ;;  %v4662_v43 = vld [vmem:[%s4888_s28 + $0x160] sm:$0xff]  ;;  %v11284_v62 = vld [vmem:[#allocation92_spill] sm:$0xff] }
 0x365   : > { %vm1616_vm13 = vcmp.eq.s32.totalorder %v11272_v8, 1  ;;  %vm1619_vm14 = vcmp.eq.s32.totalorder %v11273_v61, 1  ;;  %v3403_v56 = vsel %vm3340_vm9, 1, %v10973_v53  ;;  %v3402_v17 = vsel %vm3339_vm10, 1, %v10973_v53  ;;  %v11276_v11 = vld [vmem:[#allocation174_spill] sm:$0xff] }
 0x366   : > { %v7970_v10 = vadd.f32 %v1680_v30, %v7415_v34  ;;  %v1681_v15 = vsel %vm1614_vm11, %v7604_v29, 0.0  ;;  %vm3342_vm15 = vcmp.eq.s32.totalorder %v4661_v54, 6  ;;  %vm3341_vm0 = vcmp.eq.s32.totalorder %v4662_v43, 6  ;;  %v7983_v58 = vpop.permute.xlu1 %3041  ;;  %v7985_v34 = vpop.permute.xlu0 %3038 }
 0x367   : > { %v7976_v60 = vadd.f32 %v1679_v2, %v7398_v9  ;;  %v7979_v38 = vadd.f32 %v1682_v26, %v7437_v4  ;;  %v1684_v37 = vsel %vm1617_vm12, %v7604_v29, 0.0  ;;  %vm1618_vm1 = vcmp.eq.s32.totalorder %v11276_v11, 1  ;;  %11277 = vst [vmem:[#allocation125_spill] sm:$0xff] %v7983_v58  ;;  %11278 = vst [vmem:[#allocation126_spill] sm:$0xff] %v7985_v34  ;;  %v11279_v4 = vld [vmem:[#allocation175_spill] sm:$0xff]  ;;  %v11280_v2 = vld [vmem:[#allocation176_spill] sm:$0xff]  ;;  %3553 = vperm.xlu1 %4515, %v3403_v56  }
 0x368   : > { %11274 = vst [vmem:[#allocation56_spill] sm:$0xff] %v7970_v10  ;;  %v1683_v30 = vsel %vm1616_vm13, %v7604_v29, 0.0  ;;  %v1686_v9 = vsel %vm1619_vm14, %v7604_v29, 0.0  ;;  %vm1621_vm2 = vcmp.eq.s32.totalorder %v11279_v4, 1  ;;  %vm1620_vm3 = vcmp.eq.s32.totalorder %v11280_v2, 1  ;;  %3550 = vperm.xlu0 %4514, %v3402_v17   ;;  %v11281_v11 = vld [vmem:[#allocation85_spill] sm:$0xff] }
 0x369   : > { %11275 = vst [vmem:[#allocation124_spill] sm:$0xff] %v7979_v38  ;;  %v7996_v26 = vadd.f32 %v1681_v15, %v11281_v11  ;;  %v11283_v58 = vld [vmem:[#allocation177_spill] sm:$0xff]  ;;  %v3405_v34 = vsel %vm3342_vm15, 1, %v10973_v53  ;;  %v3404_v8 = vsel %vm3341_vm0, 1, %v10973_v53  ;;  %v8004_v61 = vadd.f32 %v1684_v37, %v11284_v62  ;;  %v4664_v56 = vld [vmem:[%s4888_s28 + $0x170] sm:$0xff]  ;;  %v11286_v17 = vld [vmem:[#allocation88_spill] sm:$0xff] }
 0x36a   : > { %vm1623_vm4 = vcmp.eq.s32.totalorder %v11283_v58, 1  ;;  %v1685_v52 = vsel %vm1618_vm1, %v7604_v29, 0.0  ;;  %vm3344_vm5 = vcmp.eq.s32.totalorder %v4663_v5, 6  ;;  %vm3343_vm6 = vcmp.eq.s32.totalorder %v4664_v56, 6  ;;  %v11288_v11 = vld [vmem:[#allocation94_spill] sm:$0xff]  ;;  %v8021_v43 = vpop.permute.xlu1 %3047  ;;  %v8023_v37 = vpop.permute.xlu0 %3044  ;;  %v11295_v4 = vld [vmem:[#allocation89_spill] sm:$0xff] }
 0x36b   : > { %11282 = vst [vmem:[#allocation17_spill] sm:$0xff] %v7996_v26  ;;  %11285 = vst [vmem:[#allocation127_spill] sm:$0xff] %v8004_v61  ;;  %v8010_v15 = vadd.f32 %v1683_v30, %v11286_v17  ;;  %v8013_v58 = vadd.f32 %v1686_v9, %v11288_v11  ;;  %v1688_v54 = vsel %vm1621_vm2, %v7604_v29, 0.0  ;;  %v1687_v62 = vsel %vm1620_vm3, %v7604_v29, 0.0  ;;  %v11292_v17 = vld [vmem:[#allocation178_spill] sm:$0xff]  ;;  %v11293_v9 = vld [vmem:[#allocation180_spill] sm:$0xff]  ;;  %3559 = vperm.xlu1 %4515, %v3405_v34  }
 0x36c   : > { %11290 = vst [vmem:[#allocation61_spill] sm:$0xff] %v8021_v43  ;;  %11291 = vst [vmem:[#allocation18_spill] sm:$0xff] %v8023_v37  ;;  %v1690_v30 = vsel %vm1623_vm4, %v7604_v29, 0.0  ;;  %vm1622_vm7 = vcmp.eq.s32.totalorder %v11292_v17, 1  ;;  %vm1625_vm8 = vcmp.eq.s32.totalorder %v11293_v9, 1  ;;  %v11294_v11 = vld [vmem:[#allocation181_spill] sm:$0xff]  ;;  %3556 = vperm.xlu0 %4514, %v3404_v8  }
 0x36d   : > { %11287 = vst [vmem:[#allocation51_spill] sm:$0xff] %v8010_v15  ;;  %11289 = vst [vmem:[#allocation55_spill] sm:$0xff] %v8013_v58  ;;  %vm1624_vm9 = vcmp.eq.s32.totalorder %v11294_v11, 1  ;;  %v8030_v58 = vadd.f32 %v1685_v52, %v11295_v4  ;;  %v11297_v2 = vld [vmem:[#allocation183_spill] sm:$0xff]  ;;  %v3407_v43 = vsel %vm3344_vm5, 1, %v10973_v53  ;;  %v3406_v37 = vsel %vm3343_vm6, 1, %v10973_v53 }
 0x36e   : > { %vm1627_vm10 = vcmp.eq.s32.totalorder %v11297_v2, 1  ;;  %v11298_v61 = vld [vmem:[#allocation98_spill] sm:$0xff]  ;;  %v11300_v15 = vld [vmem:[#allocation93_spill] sm:$0xff]  ;;  %v11302_v52 = vld [vmem:[#allocation100_spill] sm:$0xff]  ;;  %v1689_v5 = vsel %vm1622_vm7, %v7604_v29, 0.0  ;;  %v1692_v56 = vsel %vm1625_vm8, %v7604_v29, 0.0 }
 0x36f   : > { %11296 = vst [vmem:[#allocation128_spill] sm:$0xff] %v8030_v58  ;;  %v8038_v38 = vadd.f32 %v1688_v54, %v11298_v61  ;;  %v8041_v10 = vadd.f32 %v1687_v62, %v11300_v15  ;;  %v4665_v26 = vld [vmem:[%s4888_s28 + $0x188] sm:$0xff]  ;;  %v4666_v34 = vld [vmem:[%s4888_s28 + $0x180] sm:$0xff]  ;;  %v8046_v8 = vadd.f32 %v1690_v30, %v11302_v52  ;;  %v1691_v61 = vsel %vm1624_vm9, %v7604_v29, 0.0  ;;  %v8057_v15 = vpop.permute.xlu1 %3053  ;;  %v8059_v54 = vpop.permute.xlu0 %3050  ;;  %v11306_v30 = vld [vmem:[#allocation184_spill] sm:$0xff]  ;;  %3565 = vperm.xlu1 %4515, %v3407_v43  }
 0x370   : > { %vm3346_vm11 = vcmp.eq.s32.totalorder %v4665_v26, 6  ;;  %vm3345_vm12 = vcmp.eq.s32.totalorder %v4666_v34, 6  ;;  %11304 = vst [vmem:[#allocation130_spill] sm:$0xff] %v8057_v15  ;;  %11305 = vst [vmem:[#allocation62_spill] sm:$0xff] %v8059_v54  ;;  %v1694_v62 = vsel %vm1627_vm10, %v7604_v29, 0.0  ;;  %vm1626_vm13 = vcmp.eq.s32.totalorder %v11306_v30, 1  ;;  %3562 = vperm.xlu0 %4514, %v3406_v37  }
 0x371   : > { %11299 = vst [vmem:[#allocation129_spill] sm:$0xff] %v8038_v38  ;;  %11301 = vst [vmem:[#allocation57_spill] sm:$0xff] %v8041_v10  ;;  %v11307_v17 = vld [vmem:[#allocation187_spill] sm:$0xff]  ;;  %v11308_v4 = vld [vmem:[#allocation188_spill] sm:$0xff]  ;;  %v3409_v2 = vsel %vm3346_vm11, 1, %v10973_v53  ;;  %v3408_v52 = vsel %vm3345_vm12, 1, %v10973_v53  ;;  %v8083_v58 = vadd.f32 %v1694_v62, %v7541_v41 }
 0x372   : > { %11303 = vst [vmem:[#allocation60_spill] sm:$0xff] %v8046_v8  ;;  %vm1629_vm14 = vcmp.eq.s32.totalorder %v11307_v17, 1  ;;  %vm1628_vm15 = vcmp.eq.s32.totalorder %v11308_v4, 1  ;;  %v11309_v9 = vld [vmem:[#allocation191_spill] sm:$0xff]  ;;  %v11310_v11 = vld [vmem:[#allocation192_spill] sm:$0xff]  ;;  %v8075_v8 = vadd.f32 %v1692_v56, %v7533_v27  ;;  %v1693_v26 = vsel %vm1626_vm13, %v7604_v29, 0.0 }
 0x373   : > { %vm1631_vm0 = vcmp.eq.s32.totalorder %v11309_v9, 1  ;;  %vm1630_vm1 = vcmp.eq.s32.totalorder %v11310_v11, 1  ;;  %v11311_v54 = vld [vmem:[#allocation95_spill] sm:$0xff]  ;;  %v4667_v38 = vld [vmem:[%s4888_s28 + $0x198] sm:$0xff]  ;;  %v1696_v27 = vsel %vm1629_vm14, %v7604_v29, 0.0  ;;  %v8091_v34 = vpop.permute.xlu1 %3059  ;;  %v1695_v56 = vsel %vm1628_vm15, %v7604_v29, 0.0  ;;  %3571 = vperm.xlu1 %4515, %v3409_v2  }
 0x374   : > { %v8072_v15 = vadd.f32 %v1689_v5, %v11311_v54  ;;  %vm3348_vm2 = vcmp.eq.s32.totalorder %v4667_v38, 6  ;;  %v4668_v43 = vld [vmem:[%s4888_s28 + $0x190] sm:$0xff]  ;;  %11313 = vst [vmem:[#allocation131_spill] sm:$0xff] %v8091_v34  ;;  %v8093_v5 = vpop.permute.xlu0 %3056  ;;  %v1698_v41 = vsel %vm1631_vm0, %v7604_v29, 0.0  ;;  %3568 = vperm.xlu0 %4514, %v3408_v52   ;;  %v11316_v62 = vld [vmem:[#allocation196_spill] sm:$0xff]  ;;  %v11317_v30 = vld [vmem:[#allocation197_spill] sm:$0xff]  ;;  %v8115_v11 = vadd.f32 %v1696_v27, %v7573_v24 }
 0x375   : > { %vm3347_vm3 = vcmp.eq.s32.totalorder %v4668_v43, 6  ;;  %v11312_v37 = vld [vmem:[#allocation99_spill] sm:$0xff]  ;;  %11314 = vst [vmem:[#allocation132_spill] sm:$0xff] %v8093_v5  ;;  %vm1632_vm5 = vcmp.eq.s32.totalorder %v11316_v62, 1  ;;  %vm1635_vm6 = vcmp.eq.s32.totalorder %v11317_v30, 1  ;;  %v3411_v17 = vsel %vm3348_vm2, 1, %v10973_v53 }
 0x376   : > { %v8080_v10 = vadd.f32 %v1691_v61, %v11312_v37  ;;  %v1697_v61 = vsel %vm1630_vm1, %v7604_v29, 0.0  ;;  %v11315_v54 = vld [vmem:[#allocation195_spill] sm:$0xff]  ;;  %v3410_v4 = vsel %vm3347_vm3, 1, %v10973_v53  ;;  %v11318_v9 = vld [vmem:[#allocation101_spill] sm:$0xff]  ;;  %v4669_v5 = vld [vmem:[%s4888_s28 + $0x1a8] sm:$0xff]  ;;  %v8120_v52 = vadd.f32 %v1695_v56, %v7536_v40 }
 0x377   : > { %vm1633_vm4 = vcmp.eq.s32.totalorder %v11315_v54, 1  ;;  %v8112_v37 = vadd.f32 %v1693_v26, %v11318_v9  ;;  %vm3350_vm7 = vcmp.eq.s32.totalorder %v4669_v5, 6  ;;  %v4670_v2 = vld [vmem:[%s4888_s28 + $0x1a0] sm:$0xff]  ;;  %v8123_v54 = vadd.f32 %v1698_v41, %v7581_v14  ;;  %v11320_v43 = vld [vmem:[#allocation198_spill] sm:$0xff]  ;;  %v8127_v26 = vpop.permute.xlu1 %3065  ;;  %v11323_v27 = vld [vmem:[#allocation199_spill] sm:$0xff]  ;;  %3577 = vperm.xlu1 %4515, %v3411_v17  }
 0x378   : > { %vm3349_vm8 = vcmp.eq.s32.totalorder %v4670_v2, 6  ;;  %v1700_v38 = vsel %vm1633_vm4, %v7604_v29, 0.0  ;;  %vm1634_vm9 = vcmp.eq.s32.totalorder %v11320_v43, 1  ;;  %11321 = vst [vmem:[#allocation10_spill] sm:$0xff] %v8127_v26  ;;  %v8129_v9 = vpop.permute.xlu0 %3062  ;;  %v8132_v24 = vadd.f32 %v1697_v61, %v7544_v1  ;;  %3574 = vperm.xlu0 %4514, %v3410_v4   ;;  %v11324_v56 = vld [vmem:[#allocation200_spill] sm:$0xff]  ;;  %v11325_v1 = vld [vmem:[#allocation201_spill] sm:$0xff] }
 0x379   : > { %11319 = vst [vmem:[#allocation133_spill] sm:$0xff] %v8123_v54  ;;  %11322 = vst [vmem:[#allocation65_spill] sm:$0xff] %v8129_v9  ;;  %v1699_v40 = vsel %vm1632_vm5, %v7604_v29, 0.0  ;;  %v1702_v14 = vsel %vm1635_vm6, %v7604_v29, 0.0  ;;  %vm1637_vm10 = vcmp.eq.s32.totalorder %v11323_v27, 1  ;;  %vm1636_vm11 = vcmp.eq.s32.totalorder %v11324_v56, 1 }
 0x37a   : > { %v8145_v41 = vld [vmem:[%s10279_s1 + $0x3] ss:$0 sm:$0xff]  ;;  %vm2085_vm12 = vcmp.eq.s32.totalorder %v11325_v1, 1  ;;  %v3413_v61 = vsel %vm3350_vm7, 1, %v10973_v53  ;;  %v3412_v62 = vsel %vm3349_vm8, 1, %v10973_v53  ;;  %v11326_v30 = vld [vmem:[#allocation110_spill] sm:$0xff]  ;;  %v8162_v54 = vadd.f32 %v1702_v14, %v7620_v51 }
 0x37b   : > { %v8153_v43 = vadd.f32 %v1700_v38, %v11326_v30  ;;  %v1701_v17 = vsel %vm1634_vm9, %v7604_v29, 0.0  ;;  %v4671_v4 = vld [vmem:[%s4888_s28 + $0x1b8] sm:$0xff]  ;;  %v4672_v9 = vld [vmem:[%s4888_s28 + $0x1b0] sm:$0xff]  ;;  %v11328_v26 = vld [vmem:[#allocation106_spill] sm:$0xff]  ;;  %v1704_v5 = vsel %vm1637_vm10, %v7604_v29, 0.0  ;;  %v8168_v38 = vpop.permute.xlu1 %3071  ;;  %v2152_v51 = vsel %vm2085_vm12, %v8145_v41, 0.0  ;;  %3583 = vperm.xlu1 %4515, %v3413_v61  }
 0x37c   : > { %vm3352_vm13 = vcmp.eq.s32.totalorder %v4671_v4, 6  ;;  %vm3351_vm14 = vcmp.eq.s32.totalorder %v4672_v9, 6  ;;  %v8159_v34 = vadd.f32 %v1699_v40, %v11328_v26  ;;  %11329 = vst [vmem:[#allocation135_spill] sm:$0xff] %v8162_v54  ;;  %v11330_v2 = vld [vmem:[#allocation202_spill] sm:$0xff]  ;;  %11331 = vst [vmem:[#allocation136_spill] sm:$0xff] %v8168_v38  ;;  %v8170_v30 = vpop.permute.xlu0 %3068  ;;  %v1703_v26 = vsel %vm1636_vm11, %v7604_v29, 0.0  ;;  %3580 = vperm.xlu0 %4514, %v3412_v62  }
 0x37d   : > { %11327 = vst [vmem:[#allocation134_spill] sm:$0xff] %v8153_v43  ;;  %vm1638_vm15 = vcmp.eq.s32.totalorder %v11330_v2, 1  ;;  %11332 = vst [vmem:[#allocation66_spill] sm:$0xff] %v8170_v30  ;;  %v11333_v40 = vld [vmem:[#allocation203_spill] sm:$0xff]  ;;  %v11334_v14 = vld [vmem:[#allocation204_spill] sm:$0xff]  ;;  %v3415_v30 = vsel %vm3352_vm13, 1, %v10973_v53  ;;  %v8189_v1 = vadd.f32 %v1704_v5, %v7640_v36  ;;  %v8195_v62 = vadd.f32 %v1703_v26, %v7614_v23 }
 0x37e   : > { %vm2087_vm0 = vcmp.eq.s32.totalorder %v11333_v40, 1  ;;  %vm2086_vm1 = vcmp.eq.s32.totalorder %v11334_v14, 1  ;;  %v11335_v27 = vld [vmem:[#allocation107_spill] sm:$0xff]  ;;  %v11336_v38 = vld [vmem:[#allocation205_spill] sm:$0xff]  ;;  %v3414_v56 = vsel %vm3351_vm14, 1, %v10973_v53  ;;  %v1705_v54 = vsel %vm1638_vm15, %v7604_v29, 0.0 }
 0x37f   : > { %v8181_v2 = vadd.f32 %v1701_v17, %v11335_v27  ;;  %vm2089_vm2 = vcmp.eq.s32.totalorder %v11336_v38, 1  ;;  %11337 = vst [vmem:[#allocation137_spill] sm:$0xff] %v8189_v1  ;;  %v4673_v43 = vld [vmem:[%s4888_s28 + $0x1c8] sm:$0xff]  ;;  %v4674_v61 = vld [vmem:[%s4888_s28 + $0x1c0] sm:$0xff]  ;;  %v8198_v17 = vadd.f32 %v2152_v51, %v7654_v7  ;;  %v2154_v9 = vsel %vm2087_vm0, %v8145_v41, 0.0  ;;  %v8206_v29 = vpop.permute.xlu1 %3077  ;;  %v11342_v7 = vld [vmem:[#allocation207_spill] sm:$0xff]  ;;  %3589 = vperm.xlu1 %4515, %v3415_v30  }
 0x380   : > { %vm3354_vm3 = vcmp.eq.s32.totalorder %v4673_v43, 6  ;;  %vm3353_vm4 = vcmp.eq.s32.totalorder %v4674_v61, 6  ;;  %v2153_v36 = vsel %vm2086_vm1, %v8145_v41, 0.0  ;;  %11339 = vst [vmem:[#allocation139_spill] sm:$0xff] %v8206_v29  ;;  %v8208_v4 = vpop.permute.xlu0 %3074  ;;  %v2156_v23 = vsel %vm2089_vm2, %v8145_v41, 0.0  ;;  %v11341_v5 = vld [vmem:[#allocation206_spill] sm:$0xff]  ;;  %3586 = vperm.xlu0 %4514, %v3414_v56  }
 0x381   : > { %11338 = vst [vmem:[#allocation138_spill] sm:$0xff] %v8198_v17  ;;  %11340 = vst [vmem:[#allocation140_spill] sm:$0xff] %v8208_v4  ;;  %vm2088_vm5 = vcmp.eq.s32.totalorder %v11341_v5, 1  ;;  %vm2091_vm6 = vcmp.eq.s32.totalorder %v11342_v7, 1  ;;  %v11343_v38 = vld [vmem:[#allocation208_spill] sm:$0xff]  ;;  %v11344_v26 = vld [vmem:[#allocation111_spill] sm:$0xff]  ;;  %v8223_v4 = vadd.f32 %v2154_v9, %v7674_v12 }
 0x382   : > { %vm2090_vm7 = vcmp.eq.s32.totalorder %v11343_v38, 1  ;;  %v8215_v51 = vadd.f32 %v1705_v54, %v11344_v26  ;;  %v11345_v40 = vld [vmem:[#allocation209_spill] sm:$0xff]  ;;  %v3417_v14 = vsel %vm3354_vm3, 1, %v10973_v53  ;;  %v3416_v27 = vsel %vm3353_vm4, 1, %v10973_v53  ;;  %v11347_v29 = vld [vmem:[#allocation114_spill] sm:$0xff]  ;;  %v4675_v1 = vld [vmem:[%s4888_s28 + $0x1d8] sm:$0xff] }
 0x383   : > { %vm2093_vm8 = vcmp.eq.s32.totalorder %v11345_v40, 1  ;;  %11346 = vst [vmem:[#allocation69_spill] sm:$0xff] %v8223_v4  ;;  %v8226_v17 = vadd.f32 %v2153_v36, %v11347_v29  ;;  %vm3356_vm9 = vcmp.eq.s32.totalorder %v4675_v1, 6  ;;  %v4676_v30 = vld [vmem:[%s4888_s28 + $0x1d0] sm:$0xff]  ;;  %v8231_v54 = vadd.f32 %v2156_v23, %v7685_v50  ;;  %v8242_v61 = vpop.permute.xlu1 %3083  ;;  %v11352_v36 = vld [vmem:[#allocation210_spill] sm:$0xff]  ;;  %v11354_v23 = vld [vmem:[#allocation212_spill] sm:$0xff]  ;;  %3595 = vperm.xlu1 %4515, %v3417_v14  }
 0x384   : > { %vm3355_vm10 = vcmp.eq.s32.totalorder %v4676_v30, 6  ;;  %v2155_v43 = vsel %vm2088_vm5, %v8145_v41, 0.0  ;;  %v2158_v56 = vsel %vm2091_vm6, %v8145_v41, 0.0  ;;  %v2157_v12 = vsel %vm2090_vm7, %v8145_v41, 0.0  ;;  %11350 = vst [vmem:[#allocation143_spill] sm:$0xff] %v8242_v61  ;;  %v8244_v9 = vpop.permute.xlu0 %3080  ;;  %v11353_v29 = vld [vmem:[#allocation211_spill] sm:$0xff]  ;;  %3592 = vperm.xlu0 %4514, %v3416_v27  }
 0x385   : > { %11348 = vst [vmem:[#allocation141_spill] sm:$0xff] %v8226_v17  ;;  %11349 = vst [vmem:[#allocation142_spill] sm:$0xff] %v8231_v54  ;;  %v2160_v50 = vsel %vm2093_vm8, %v8145_v41, 0.0  ;;  %vm2092_vm11 = vcmp.eq.s32.totalorder %v11352_v36, 1  ;;  %vm2095_vm12 = vcmp.eq.s32.totalorder %v11353_v29, 1  ;;  %vm2094_vm13 = vcmp.eq.s32.totalorder %v11354_v23, 1 }
 0x386   : > { %11351 = vst [vmem:[#allocation144_spill] sm:$0xff] %v8244_v9  ;;  %v11355_v5 = vld [vmem:[#allocation213_spill] sm:$0xff]  ;;  %v11356_v7 = vld [vmem:[#allocation214_spill] sm:$0xff]  ;;  %v3419_v38 = vsel %vm3356_vm9, 1, %v10973_v53  ;;  %v3418_v26 = vsel %vm3355_vm10, 1, %v10973_v53  ;;  %v11357_v40 = vld [vmem:[#allocation115_spill] sm:$0xff]  ;;  %v8260_v61 = vadd.f32 %v2158_v56, %v7716_v32  ;;  %v8268_v17 = vadd.f32 %v2160_v50, %v7724_v16 }
 0x387   : > { %vm2097_vm14 = vcmp.eq.s32.totalorder %v11355_v5, 1  ;;  %vm2096_vm15 = vcmp.eq.s32.totalorder %v11356_v7, 1  ;;  %v8257_v9 = vadd.f32 %v2155_v43, %v11357_v40  ;;  %v4677_v54 = vld [vmem:[%s4888_s28 + $0x1e8] sm:$0xff]  ;;  %v4678_v14 = vld [vmem:[%s4888_s28 + $0x1e0] sm:$0xff]  ;;  %v2159_v1 = vsel %vm2092_vm11, %v8145_v41, 0.0  ;;  %v8276_v30 = vpop.permute.xlu1 %3089  ;;  %v11361_v50 = vld [vmem:[#allocation215_spill] sm:$0xff]  ;;  %3601 = vperm.xlu1 %4515, %v3419_v38  }
 0x388   : > { %vm3358_vm0 = vcmp.eq.s32.totalorder %v4677_v54, 6  ;;  %vm3357_vm1 = vcmp.eq.s32.totalorder %v4678_v14, 6  ;;  %v11358_v27 = vld [vmem:[#allocation118_spill] sm:$0xff]  ;;  %v2162_v32 = vsel %vm2095_vm12, %v8145_v41, 0.0  ;;  %11359 = vst [vmem:[#allocation145_spill] sm:$0xff] %v8276_v30  ;;  %v8278_v43 = vpop.permute.xlu0 %3086  ;;  %v2161_v56 = vsel %vm2094_vm13, %v8145_v41, 0.0  ;;  %3598 = vperm.xlu0 %4514, %v3418_v26  }
 0x389   : > { %v8265_v4 = vadd.f32 %v2157_v12, %v11358_v27  ;;  %11360 = vst [vmem:[#allocation146_spill] sm:$0xff] %v8278_v43  ;;  %v2164_v16 = vsel %vm2097_vm14, %v8145_v41, 0.0  ;;  %v2163_v12 = vsel %vm2096_vm15, %v8145_v41, 0.0  ;;  %vm2099_vm2 = vcmp.eq.s32.totalorder %v11361_v50, 1  ;;  %v11362_v36 = vld [vmem:[#allocation216_spill] sm:$0xff]  ;;  %v11363_v29 = vld [vmem:[#allocation217_spill] sm:$0xff] }
 0x38a   : > { %vm2098_vm3 = vcmp.eq.s32.totalorder %v11362_v36, 1  ;;  %vm2101_vm4 = vcmp.eq.s32.totalorder %v11363_v29, 1  ;;  %v3421_v23 = vsel %vm3358_vm0, 1, %v10973_v53  ;;  %v3420_v40 = vsel %vm3357_vm1, 1, %v10973_v53  ;;  %v11364_v5 = vld [vmem:[#allocation119_spill] sm:$0xff]  ;;  %v4679_v43 = vld [vmem:[%s4888_s28] sm:$0xff] }
 0x38b   : > { %v8297_v27 = vadd.f32 %v2159_v1, %v11364_v5  ;;  %v8300_v7 = vadd.f32 %v2162_v32, %v7756_v22  ;;  %vm3806_vm5 = vcmp.eq.s32.totalorder %v4679_v43, 7  ;;  %v4680_v38 = vld [vmem:[%s4888_s28 + $0x1f0] sm:$0xff]  ;;  %v8305_v26 = vadd.f32 %v2161_v56, %v7719_v13  ;;  %v11365_v14 = vld [vmem:[#allocation218_spill] sm:$0xff]  ;;  %v8312_v1 = vpop.permute.xlu1 %3095  ;;  %3607 = vperm.xlu1 %4515, %v3421_v23   ;;  %v11370_v5 = vld [vmem:[#allocation221_spill] sm:$0xff] }
 0x38c   : > { %vm3359_vm6 = vcmp.eq.s32.totalorder %v4680_v38, 6  ;;  %v8308_v50 = vadd.f32 %v2164_v16, %v7764_v42  ;;  %v2166_v54 = vsel %vm2099_vm2, %v8145_v41, 0.0  ;;  %vm2100_vm7 = vcmp.eq.s32.totalorder %v11365_v14, 1  ;;  %11366 = vst [vmem:[#allocation14_spill] sm:$0xff] %v8312_v1  ;;  %v8314_v22 = vpop.permute.xlu0 %3092  ;;  %v11368_v56 = vld [vmem:[#allocation219_spill] sm:$0xff]  ;;  %3604 = vperm.xlu0 %4514, %v3420_v40   ;;  %v11369_v16 = vld [vmem:[#allocation220_spill] sm:$0xff] }
 0x38d   : > { %11367 = vst [vmem:[#allocation147_spill] sm:$0xff] %v8314_v22  ;;  %v8317_v32 = vadd.f32 %v2163_v12, %v7727_v20  ;;  %v2165_v13 = vsel %vm2098_vm3, %v8145_v41, 0.0  ;;  %v2168_v42 = vsel %vm2101_vm4, %v8145_v41, 0.0  ;;  %vm2103_vm8 = vcmp.eq.s32.totalorder %v11368_v56, 1  ;;  %v4681_v14 = vld [vmem:[%s4888_s28 + $0x10] sm:$0xff]  ;;  %v4682_v56 = vld [vmem:[%s4888_s28 + $0x8] sm:$0xff] }
 0x38e   : > { %vm2102_vm9 = vcmp.eq.s32.totalorder %v11369_v16, 1  ;;  %vm2105_vm10 = vcmp.eq.s32.totalorder %v11370_v5, 1  ;;  %v3869_v20 = vsel %vm3806_vm5, 1, %v10973_v53  ;;  %v3422_v12 = vsel %vm3359_vm6, 1, %v10973_v53  ;;  %v11371_v22 = vld [vmem:[#allocation222_spill] sm:$0xff]  ;;  %v4683_v1 = vld [vmem:[%s4888_s28 + $0x20] sm:$0xff] }
 0x38f   : > { %v8333_v36 = vadd.f32 %v2166_v54, %v7776_v18  ;;  %v2167_v29 = vsel %vm2100_vm7, %v8145_v41, 0.0  ;;  %vm3808_vm11 = vcmp.eq.s32.totalorder %v4681_v14, 7  ;;  %vm3807_vm12 = vcmp.eq.s32.totalorder %v4682_v56, 7  ;;  %v8346_v38 = vpop.permute.xlu1 %3101  ;;  %3933 = vperm.xlu1 %4515, %v3869_v20   ;;  %v4684_v20 = vld [vmem:[%s4888_s28 + $0x18] sm:$0xff] }
 0x390   : > { %v8339_v23 = vadd.f32 %v2165_v13, %v7759_v0  ;;  %v8342_v40 = vadd.f32 %v2168_v42, %v7798_v19  ;;  %v2170_v43 = vsel %vm2103_vm8, %v8145_v41, 0.0  ;;  %vm2104_vm13 = vcmp.eq.s32.totalorder %v11371_v22, 1  ;;  %11372 = vst [vmem:[#allocation148_spill] sm:$0xff] %v8346_v38  ;;  %v8348_v18 = vpop.permute.xlu0 %3098  ;;  %v11374_v19 = vld [vmem:[#allocation223_spill] sm:$0xff]  ;;  %v11375_v13 = vld [vmem:[#allocation224_spill] sm:$0xff]  ;;  %3610 = vperm.xlu0 %4514, %v3422_v12   ;;  %v11376_v42 = vld [vmem:[#allocation225_spill] sm:$0xff] }
 0x391   : > { %11373 = vst [vmem:[#allocation149_spill] sm:$0xff] %v8348_v18  ;;  %v2169_v54 = vsel %vm2102_vm9, %v8145_v41, 0.0  ;;  %v2172_v0 = vsel %vm2105_vm10, %v8145_v41, 0.0  ;;  %vm2107_vm14 = vcmp.eq.s32.totalorder %v11374_v19, 1  ;;  %vm2106_vm15 = vcmp.eq.s32.totalorder %v11375_v13, 1  ;;  %v11382_v19 = vld [vmem:[#allocation229_spill] sm:$0xff] }
 0x392   : > { %v8359_v22 = vadd.f32 %v2167_v29, %v7767_v57  ;;  %vm2109_vm0 = vcmp.eq.s32.totalorder %v11376_v42, 1  ;;  %v3871_v18 = vsel %vm3808_vm11, 1, %v10973_v53  ;;  %v3870_v16 = vsel %vm3807_vm12, 1, %v10973_v53 }
 0x393   : > { %v8367_v5 = vadd.f32 %v2170_v43, %v7818_v59  ;;  %v2171_v38 = vsel %vm2104_vm13, %v8145_v41, 0.0  ;;  %vm3810_vm1 = vcmp.eq.s32.totalorder %v4683_v1, 7  ;;  %vm3809_vm2 = vcmp.eq.s32.totalorder %v4684_v20, 7  ;;  %v8384_v14 = vpop.permute.xlu1 %3427  ;;  %v11379_v43 = vld [vmem:[#allocation226_spill] sm:$0xff]  ;;  %3939 = vperm.xlu1 %4515, %v3871_v18  }
 0x394   : > { %v8373_v57 = vadd.f32 %v2169_v54, %v7792_v46  ;;  %v8376_v12 = vadd.f32 %v2172_v0, %v7832_v33  ;;  %v2174_v29 = vsel %vm2107_vm14, %v8145_v41, 0.0  ;;  %v2173_v59 = vsel %vm2106_vm15, %v8145_v41, 0.0  ;;  %11377 = vst [vmem:[#allocation72_spill] sm:$0xff] %v8384_v14  ;;  %v8386_v56 = vpop.permute.xlu0 %3424  ;;  %v11380_v33 = vld [vmem:[#allocation227_spill] sm:$0xff]  ;;  %v11381_v54 = vld [vmem:[#allocation228_spill] sm:$0xff]  ;;  %3936 = vperm.xlu0 %4514, %v3870_v16   ;;  %v4686_v18 = vld [vmem:[%s4888_s28 + $0x28] sm:$0xff] }
 0x395   : > { %11378 = vst [vmem:[#allocation150_spill] sm:$0xff] %v8386_v56  ;;  %v2176_v46 = vsel %vm2109_vm0, %v8145_v41, 0.0  ;;  %vm2108_vm3 = vcmp.eq.s32.totalorder %v11379_v43, 1  ;;  %vm2111_vm4 = vcmp.eq.s32.totalorder %v11380_v33, 1  ;;  %vm2110_vm5 = vcmp.eq.s32.totalorder %v11381_v54, 1  ;;  %v4685_v56 = vld [vmem:[%s4888_s28 + $0x30] sm:$0xff] }
 0x396   : > { %v8393_v0 = vadd.f32 %v2171_v38, %v7801_v55  ;;  %vm2113_vm6 = vcmp.eq.s32.totalorder %v11382_v19, 1  ;;  %v3873_v13 = vsel %vm3810_vm1, 1, %v10973_v53  ;;  %v3872_v42 = vsel %vm3809_vm2, 1, %v10973_v53  ;;  %v11386_v20 = vld [vmem:[#allocation230_spill] sm:$0xff] }
 0x397   : > { %v8401_v30 = vadd.f32 %v2174_v29, %v7852_v63  ;;  %v8404_v14 = vadd.f32 %v2173_v59, %v7826_v44  ;;  %vm3812_vm7 = vcmp.eq.s32.totalorder %v4685_v56, 7  ;;  %vm3811_vm8 = vcmp.eq.s32.totalorder %v4686_v18, 7  ;;  %v8420_v63 = vpop.permute.xlu1 %3433  ;;  %v11387_v29 = vld [vmem:[#allocation231_spill] sm:$0xff]  ;;  %v11388_v59 = vld [vmem:[#allocation232_spill] sm:$0xff]  ;;  %3945 = vperm.xlu1 %4515, %v3873_v13   ;;  %v11390_v43 = vld [vmem:[#allocation234_spill] sm:$0xff] }
 0x398   : > { %v8409_v55 = vadd.f32 %v2176_v46, %v7863_v49  ;;  %v2175_v1 = vsel %vm2108_vm3, %v8145_v41, 0.0  ;;  %v2178_v38 = vsel %vm2111_vm4, %v8145_v41, 0.0  ;;  %v2177_v44 = vsel %vm2110_vm5, %v8145_v41, 0.0  ;;  %11384 = vst [vmem:[#allocation152_spill] sm:$0xff] %v8420_v63  ;;  %v8422_v16 = vpop.permute.xlu0 %3430  ;;  %3942 = vperm.xlu0 %4514, %v3872_v42   ;;  %v11389_v46 = vld [vmem:[#allocation233_spill] sm:$0xff]  ;;  %v4688_v13 = vld [vmem:[%s4888_s28 + $0x38] sm:$0xff] }
 0x399   : > { %11385 = vst [vmem:[#allocation153_spill] sm:$0xff] %v8422_v16  ;;  %v2180_v49 = vsel %vm2113_vm6, %v8145_v41, 0.0  ;;  %vm2112_vm9 = vcmp.eq.s32.totalorder %v11386_v20, 1  ;;  %vm2115_vm10 = vcmp.eq.s32.totalorder %v11387_v29, 1  ;;  %vm2114_vm11 = vcmp.eq.s32.totalorder %v11388_v59, 1  ;;  %v4687_v16 = vld [vmem:[%s4888_s28 + $0x40] sm:$0xff] }
 0x39a   : > { %11383 = vst [vmem:[#allocation151_spill] sm:$0xff] %v8409_v55  ;;  %vm2117_vm12 = vcmp.eq.s32.totalorder %v11389_v46, 1  ;;  %vm2116_vm13 = vcmp.eq.s32.totalorder %v11390_v43, 1  ;;  %v3875_v33 = vsel %vm3812_vm7, 1, %v10973_v53  ;;  %v3874_v54 = vsel %vm3811_vm8, 1, %v10973_v53  ;;  %v11396_v59 = vld [vmem:[#allocation122_spill] sm:$0xff] }
 0x39b   : > { %v8435_v19 = vadd.f32 %v2175_v1, %v7835_v48  ;;  %v8438_v63 = vadd.f32 %v2178_v38, %v7894_v45  ;;  %vm3814_vm14 = vcmp.eq.s32.totalorder %v4687_v16, 7  ;;  %vm3813_vm15 = vcmp.eq.s32.totalorder %v4688_v13, 7  ;;  %v8454_v45 = vpop.permute.xlu1 %3439  ;;  %v11393_v38 = vld [vmem:[#allocation235_spill] sm:$0xff]  ;;  %3951 = vperm.xlu1 %4515, %v3875_v33   ;;  %v4690_v33 = vld [vmem:[%s4888_s28 + $0x48] sm:$0xff] }
 0x39c   : > { %v8443_v42 = vadd.f32 %v2177_v44, %v7860_v31  ;;  %v8446_v55 = vadd.f32 %v2180_v49, %v7902_v28  ;;  %v2179_v56 = vsel %vm2112_vm9, %v8145_v41, 0.0  ;;  %v2182_v48 = vsel %vm2115_vm10, %v8145_v41, 0.0  ;;  %11391 = vst [vmem:[#allocation154_spill] sm:$0xff] %v8454_v45  ;;  %v8456_v18 = vpop.permute.xlu0 %3436  ;;  %3948 = vperm.xlu0 %4514, %v3874_v54   ;;  %v11394_v44 = vld [vmem:[#allocation236_spill] sm:$0xff]  ;;  %v11395_v49 = vld [vmem:[#allocation237_spill] sm:$0xff]  ;;  %v4689_v45 = vld [vmem:[%s4888_s28 + $0x50] sm:$0xff] }
 0x39d   : > { %11392 = vst [vmem:[#allocation155_spill] sm:$0xff] %v8456_v18  ;;  %v2181_v31 = vsel %vm2114_vm11, %v8145_v41, 0.0  ;;  %v2184_v28 = vsel %vm2117_vm12, %v8145_v41, 0.0  ;;  %v2183_v1 = vsel %vm2116_vm13, %v8145_v41, 0.0  ;;  %vm2119_vm0 = vcmp.eq.s32.totalorder %v11393_v38, 1  ;;  %v11397_v13 = vld [vmem:[#allocation238_spill] sm:$0xff] }
 0x39e   : > { %vm2118_vm1 = vcmp.eq.s32.totalorder %v11394_v44, 1  ;;  %vm2121_vm2 = vcmp.eq.s32.totalorder %v11395_v49, 1  ;;  %v3877_v20 = vsel %vm3814_vm14, 1, %v10973_v53  ;;  %v3876_v29 = vsel %vm3813_vm15, 1, %v10973_v53  ;;  %v4693_v18 = vld [vmem:[%s4888_s28 + $0x70] sm:$0xff] }
 0x39f   : > { %v8475_v46 = vadd.f32 %v2179_v56, %v11396_v59  ;;  %v8478_v43 = vadd.f32 %v2182_v48, %v7934_v47  ;;  %vm3816_vm3 = vcmp.eq.s32.totalorder %v4689_v45, 7  ;;  %vm3815_vm4 = vcmp.eq.s32.totalorder %v4690_v33, 7  ;;  %v8490_v56 = vpop.permute.xlu1 %3445  ;;  %3957 = vperm.xlu1 %4515, %v3877_v20   ;;  %v11402_v59 = vld [vmem:[#allocation241_spill] sm:$0xff] }
 0x3a0   : > { %v8483_v54 = vadd.f32 %v2181_v31, %v7897_v6  ;;  %v8486_v38 = vadd.f32 %v2184_v28, %v7942_v35  ;;  %v2186_v16 = vsel %vm2119_vm0, %v8145_v41, 0.0  ;;  %vm2120_vm5 = vcmp.eq.s32.totalorder %v11397_v13, 1  ;;  %11398 = vst [vmem:[#allocation156_spill] sm:$0xff] %v8490_v56  ;;  %v8492_v47 = vpop.permute.xlu0 %3442  ;;  %v11400_v31 = vld [vmem:[#allocation239_spill] sm:$0xff]  ;;  %3954 = vperm.xlu0 %4514, %v3876_v29   ;;  %v11401_v28 = vld [vmem:[#allocation240_spill] sm:$0xff]  ;;  %v4691_v13 = vld [vmem:[%s4888_s28 + $0x60] sm:$0xff] }
 0x3a1   : > { %11399 = vst [vmem:[#allocation157_spill] sm:$0xff] %v8492_v47  ;;  %v8495_v48 = vadd.f32 %v2183_v1, %v7905_v3  ;;  %v2185_v6 = vsel %vm2118_vm1, %v8145_v41, 0.0  ;;  %v2188_v35 = vsel %vm2121_vm2, %v8145_v41, 0.0  ;;  %vm2123_vm6 = vcmp.eq.s32.totalorder %v11400_v31, 1  ;;  %v4692_v31 = vld [vmem:[%s4888_s28 + $0x58] sm:$0xff]  ;;  %v11405_v56 = vld [vmem:[#allocation242_spill] sm:$0xff] }
 0x3a2   : > { %vm2122_vm7 = vcmp.eq.s32.totalorder %v11401_v28, 1  ;;  %vm2125_vm8 = vcmp.eq.s32.totalorder %v11402_v59, 1  ;;  %v3879_v3 = vsel %vm3816_vm3, 1, %v10973_v53  ;;  %v3878_v1 = vsel %vm3815_vm4, 1, %v10973_v53 }
 0x3a3   : > { %v8511_v44 = vadd.f32 %v2186_v16, %v7954_v25  ;;  %v2187_v49 = vsel %vm2120_vm5, %v8145_v41, 0.0  ;;  %vm3818_vm9 = vcmp.eq.s32.totalorder %v4691_v13, 7  ;;  %vm3817_vm10 = vcmp.eq.s32.totalorder %v4692_v31, 7  ;;  %v8524_v33 = vpop.permute.xlu1 %3451  ;;  %3963 = vperm.xlu1 %4515, %v3879_v3   ;;  %v4694_v3 = vld [vmem:[%s4888_s28 + $0x68] sm:$0xff] }
 0x3a4   : > { %v8517_v20 = vadd.f32 %v2185_v6, %v7937_v21  ;;  %v8520_v29 = vadd.f32 %v2188_v35, %v7976_v60  ;;  %v2190_v45 = vsel %vm2123_vm6, %v8145_v41, 0.0  ;;  %vm2124_vm11 = vcmp.eq.s32.totalorder %v11405_v56, 1  ;;  %11406 = vst [vmem:[#allocation160_spill] sm:$0xff] %v8524_v33  ;;  %v8526_v25 = vpop.permute.xlu0 %3448  ;;  %v11408_v60 = vld [vmem:[#allocation243_spill] sm:$0xff]  ;;  %v11409_v6 = vld [vmem:[#allocation244_spill] sm:$0xff]  ;;  %3960 = vperm.xlu0 %4514, %v3878_v1   ;;  %v11411_v35 = vld [vmem:[#allocation245_spill] sm:$0xff] }
 0x3a5   : > { %11403 = vst [vmem:[#allocation158_spill] sm:$0xff] %v8511_v44  ;;  %11407 = vst [vmem:[#allocation161_spill] sm:$0xff] %v8526_v25  ;;  %v2189_v16 = vsel %vm2122_vm7, %v8145_v41, 0.0  ;;  %v2192_v21 = vsel %vm2125_vm8, %v8145_v41, 0.0  ;;  %vm2127_vm12 = vcmp.eq.s32.totalorder %v11408_v60, 1  ;;  %vm2126_vm13 = vcmp.eq.s32.totalorder %v11409_v6, 1 }
 0x3a6   : > { %11404 = vst [vmem:[#allocation159_spill] sm:$0xff] %v8520_v29  ;;  %v8537_v56 = vadd.f32 %v2187_v49, %v7945_v39  ;;  %vm2129_vm14 = vcmp.eq.s32.totalorder %v11411_v35, 1  ;;  %v3881_v33 = vsel %vm3818_vm9, 1, %v10973_v53  ;;  %v3880_v28 = vsel %vm3817_vm10, 1, %v10973_v53  ;;  %v11412_v25 = vld [vmem:[#allocation17_spill] sm:$0xff]  ;;  %v11414_v1 = vld [vmem:[#allocation56_spill] sm:$0xff] }
 0x3a7   : > { %v8545_v59 = vadd.f32 %v2190_v45, %v11412_v25  ;;  %v2191_v47 = vsel %vm2124_vm11, %v8145_v41, 0.0  ;;  %vm3820_vm15 = vcmp.eq.s32.totalorder %v4693_v18, 7  ;;  %vm3819_vm0 = vcmp.eq.s32.totalorder %v4694_v3, 7  ;;  %v11416_v49 = vld [vmem:[#allocation51_spill] sm:$0xff]  ;;  %v8562_v45 = vpop.permute.xlu1 %3457  ;;  %3969 = vperm.xlu1 %4515, %v3881_v33   ;;  %v11423_v60 = vld [vmem:[#allocation124_spill] sm:$0xff]  ;;  %v11425_v6 = vld [vmem:[#allocation249_spill] sm:$0xff] }
 0x3a8   : > { %11410 = vst [vmem:[#allocation162_spill] sm:$0xff] %v8537_v56  ;;  %v8551_v39 = vadd.f32 %v2189_v16, %v11414_v1  ;;  %v8554_v35 = vadd.f32 %v2192_v21, %v11416_v49  ;;  %v2194_v13 = vsel %vm2127_vm12, %v8145_v41, 0.0  ;;  %v2193_v31 = vsel %vm2126_vm13, %v8145_v41, 0.0  ;;  %11418 = vst [vmem:[#allocation166_spill] sm:$0xff] %v8562_v45  ;;  %v8564_v25 = vpop.permute.xlu0 %3454  ;;  %v11420_v1 = vld [vmem:[#allocation246_spill] sm:$0xff]  ;;  %v11421_v21 = vld [vmem:[#allocation247_spill] sm:$0xff]  ;;  %3966 = vperm.xlu0 %4514, %v3880_v28  }
 0x3a9   : > { %11413 = vst [vmem:[#allocation163_spill] sm:$0xff] %v8545_v59  ;;  %11419 = vst [vmem:[#allocation167_spill] sm:$0xff] %v8564_v25  ;;  %v2196_v16 = vsel %vm2129_vm14, %v8145_v41, 0.0  ;;  %vm2128_vm1 = vcmp.eq.s32.totalorder %v11420_v1, 1  ;;  %vm2131_vm2 = vcmp.eq.s32.totalorder %v11421_v21, 1  ;;  %v11422_v49 = vld [vmem:[#allocation248_spill] sm:$0xff] }
 0x3aa   : > { %11415 = vst [vmem:[#allocation164_spill] sm:$0xff] %v8551_v39  ;;  %11417 = vst [vmem:[#allocation165_spill] sm:$0xff] %v8554_v35  ;;  %vm2130_vm3 = vcmp.eq.s32.totalorder %v11422_v49, 1  ;;  %v8571_v35 = vadd.f32 %v2191_v47, %v11423_v60  ;;  %vm2133_vm4 = vcmp.eq.s32.totalorder %v11425_v6, 1  ;;  %v3883_v45 = vsel %vm3820_vm15, 1, %v10973_v53  ;;  %v11426_v59 = vld [vmem:[#allocation128_spill] sm:$0xff] }
 0x3ab   : > { %v3882_v25 = vsel %vm3819_vm0, 1, %v10973_v53  ;;  %v8579_v29 = vadd.f32 %v2194_v13, %v11426_v59  ;;  %v11428_v39 = vld [vmem:[#allocation127_spill] sm:$0xff]  ;;  %v4695_v56 = vld [vmem:[%s4888_s28 + $0x80] sm:$0xff]  ;;  %v4696_v33 = vld [vmem:[%s4888_s28 + $0x78] sm:$0xff]  ;;  %v2195_v18 = vsel %vm2128_vm1, %v8145_v41, 0.0  ;;  %v2198_v3 = vsel %vm2131_vm2, %v8145_v41, 0.0  ;;  %3975 = vperm.xlu1 %4515, %v3883_v45  }
 0x3ac   : > { %11424 = vst [vmem:[#allocation168_spill] sm:$0xff] %v8571_v35  ;;  %v8582_v44 = vadd.f32 %v2193_v31, %v11428_v39  ;;  %vm3822_vm5 = vcmp.eq.s32.totalorder %v4695_v56, 7  ;;  %vm3821_vm6 = vcmp.eq.s32.totalorder %v4696_v33, 7  ;;  %v11430_v47 = vld [vmem:[#allocation57_spill] sm:$0xff]  ;;  %v2197_v59 = vsel %vm2130_vm3, %v8145_v41, 0.0  ;;  %v8598_v39 = vpop.permute.xlu1 %3463  ;;  %v8600_v13 = vpop.permute.xlu0 %3460  ;;  %v11435_v1 = vld [vmem:[#allocation179_spill] sm:$0xff]  ;;  %3972 = vperm.xlu0 %4514, %v3882_v25  }
 0x3ad   : > { %11427 = vst [vmem:[#allocation169_spill] sm:$0xff] %v8579_v29  ;;  %v8587_v28 = vadd.f32 %v2196_v16, %v11430_v47  ;;  %11432 = vst [vmem:[#allocation172_spill] sm:$0xff] %v8598_v39  ;;  %v2200_v31 = vsel %vm2133_vm4, %v8145_v41, 0.0  ;;  %v11434_v16 = vld [vmem:[#allocation250_spill] sm:$0xff]  ;;  %vm2135_vm8 = vcmp.eq.s32.totalorder %v11435_v1, 1  ;;  %v11436_v60 = vld [vmem:[#allocation251_spill] sm:$0xff] }
 0x3ae   : > { %11429 = vst [vmem:[#allocation170_spill] sm:$0xff] %v8582_v44  ;;  %11433 = vst [vmem:[#allocation173_spill] sm:$0xff] %v8600_v13  ;;  %vm2132_vm7 = vcmp.eq.s32.totalorder %v11434_v16, 1  ;;  %vm2134_vm9 = vcmp.eq.s32.totalorder %v11436_v60, 1  ;;  %v11437_v21 = vld [vmem:[#allocation186_spill] sm:$0xff]  ;;  %v3885_v6 = vsel %vm3822_vm5, 1, %v10973_v53  ;;  %v8624_v35 = vadd.f32 %v2200_v31, %v8080_v10 }
 0x3af   : > { %11431 = vst [vmem:[#allocation171_spill] sm:$0xff] %v8587_v28  ;;  %vm2137_vm10 = vcmp.eq.s32.totalorder %v11437_v21, 1  ;;  %v11438_v49 = vld [vmem:[#allocation182_spill] sm:$0xff]  ;;  %v3884_v47 = vsel %vm3821_vm6, 1, %v10973_v53  ;;  %v11439_v39 = vld [vmem:[#allocation55_spill] sm:$0xff]  ;;  %v8616_v28 = vadd.f32 %v2198_v3, %v8072_v15  ;;  %v11440_v25 = vld [vmem:[#allocation129_spill] sm:$0xff]  ;;  %3981 = vperm.xlu1 %4515, %v3885_v6  }
 0x3b0   : > { %vm2136_vm11 = vcmp.eq.s32.totalorder %v11438_v49, 1  ;;  %v8613_v13 = vadd.f32 %v2195_v18, %v11439_v39  ;;  %v4697_v29 = vld [vmem:[%s4888_s28 + $0x90] sm:$0xff]  ;;  %v4698_v45 = vld [vmem:[%s4888_s28 + $0x88] sm:$0xff]  ;;  %v8621_v44 = vadd.f32 %v2197_v59, %v11440_v25  ;;  %v2199_v56 = vsel %vm2132_vm7, %v8145_v41, 0.0  ;;  %v8632_v33 = vpop.permute.xlu1 %3469  ;;  %v8634_v18 = vpop.permute.xlu0 %3466  ;;  %3978 = vperm.xlu0 %4514, %v3884_v47   ;;  %v11444_v31 = vld [vmem:[#allocation185_spill] sm:$0xff] }
 0x3b1   : > { %vm3824_vm12 = vcmp.eq.s32.totalorder %v4697_v29, 7  ;;  %vm3823_vm13 = vcmp.eq.s32.totalorder %v4698_v45, 7  ;;  %v2202_v15 = vsel %vm2135_vm8, %v8145_v41, 0.0  ;;  %11441 = vst [vmem:[#allocation174_spill] sm:$0xff] %v8632_v33  ;;  %11442 = vst [vmem:[#allocation175_spill] sm:$0xff] %v8634_v18  ;;  %v2201_v3 = vsel %vm2134_vm9, %v8145_v41, 0.0 }
 0x3b2   : > { %v2204_v10 = vsel %vm2137_vm10, %v8145_v41, 0.0  ;;  %v2203_v59 = vsel %vm2136_vm11, %v8145_v41, 0.0  ;;  %v11443_v39 = vld [vmem:[#allocation190_spill] sm:$0xff]  ;;  %vm2138_vm15 = vcmp.eq.s32.totalorder %v11444_v31, 1  ;;  %v3887_v1 = vsel %vm3824_vm12, 1, %v10973_v53  ;;  %v11446_v21 = vld [vmem:[#allocation60_spill] sm:$0xff] }
 0x3b3   : > { %vm2139_vm14 = vcmp.eq.s32.totalorder %v11443_v39, 1  ;;  %v11445_v16 = vld [vmem:[#allocation194_spill] sm:$0xff]  ;;  %v3886_v60 = vsel %vm3823_vm13, 1, %v10973_v53  ;;  %v8653_v25 = vadd.f32 %v2199_v56, %v11446_v21  ;;  %v8656_v49 = vadd.f32 %v2202_v15, %v8112_v37  ;;  %v4699_v33 = vld [vmem:[%s4888_s28 + $0xa0] sm:$0xff]  ;;  %v4700_v6 = vld [vmem:[%s4888_s28 + $0x98] sm:$0xff]  ;;  %3987 = vperm.xlu1 %4515, %v3887_v1  }
 0x3b4   : > { %vm2141_vm0 = vcmp.eq.s32.totalorder %v11445_v16, 1  ;;  %vm3826_vm1 = vcmp.eq.s32.totalorder %v4699_v33, 7  ;;  %vm3825_vm2 = vcmp.eq.s32.totalorder %v4700_v6, 7  ;;  %v8661_v47 = vadd.f32 %v2201_v3, %v8075_v8  ;;  %v11447_v45 = vld [vmem:[#allocation189_spill] sm:$0xff]  ;;  %v8668_v56 = vpop.permute.xlu1 %3475  ;;  %v8670_v37 = vpop.permute.xlu0 %3472  ;;  %3984 = vperm.xlu0 %4514, %v3886_v60  }
 0x3b5   : > { %v8664_v39 = vadd.f32 %v2204_v10, %v8120_v52  ;;  %v2206_v29 = vsel %vm2139_vm14, %v8145_v41, 0.0  ;;  %vm2140_vm3 = vcmp.eq.s32.totalorder %v11447_v45, 1  ;;  %11448 = vst [vmem:[#allocation176_spill] sm:$0xff] %v8668_v56  ;;  %11449 = vst [vmem:[#allocation85_spill] sm:$0xff] %v8670_v37  ;;  %v8673_v15 = vadd.f32 %v2203_v59, %v8083_v58  ;;  %v11450_v3 = vld [vmem:[#allocation193_spill] sm:$0xff]  ;;  %v11451_v10 = vld [vmem:[#allocation252_spill] sm:$0xff] }
 0x3b6   : > { %v2205_v8 = vsel %vm2138_vm15, %v8145_v41, 0.0  ;;  %v2208_v52 = vsel %vm2141_vm0, %v8145_v41, 0.0  ;;  %vm2143_vm4 = vcmp.eq.s32.totalorder %v11450_v3, 1  ;;  %vm2142_vm5 = vcmp.eq.s32.totalorder %v11451_v10, 1  ;;  %v11452_v21 = vld [vmem:[#allocation253_spill] sm:$0xff]  ;;  %v4701_v45 = vld [vmem:[%s4888_s28 + $0xb0] sm:$0xff] }
 0x3b7   : > { %vm2145_vm6 = vcmp.eq.s32.totalorder %v11452_v21, 1  ;;  %v3889_v58 = vsel %vm3826_vm1, 1, %v10973_v53  ;;  %v3888_v59 = vsel %vm3825_vm2, 1, %v10973_v53  ;;  %v8689_v31 = vadd.f32 %v2206_v29, %v8132_v24  ;;  %v4702_v3 = vld [vmem:[%s4888_s28 + $0xa8] sm:$0xff]  ;;  %v11460_v10 = vld [vmem:[#allocation257_spill] sm:$0xff] }
 0x3b8   : > { %v2207_v16 = vsel %vm2140_vm3, %v8145_v41, 0.0  ;;  %vm3828_vm7 = vcmp.eq.s32.totalorder %v4701_v45, 7  ;;  %vm3827_vm8 = vcmp.eq.s32.totalorder %v4702_v3, 7  ;;  %v8695_v1 = vadd.f32 %v2205_v8, %v8115_v11  ;;  %v11454_v56 = vld [vmem:[#allocation254_spill] sm:$0xff]  ;;  %v8702_v6 = vpop.permute.xlu1 %3481  ;;  %v8704_v24 = vpop.permute.xlu0 %3478  ;;  %v11458_v8 = vld [vmem:[#allocation256_spill] sm:$0xff]  ;;  %3993 = vperm.xlu1 %4515, %v3889_v58   ;;  %3990 = vperm.xlu0 %4514, %v3888_v59   ;;  %v4703_v59 = vld [vmem:[%s4888_s28 + $0xc0] sm:$0xff] }
 0x3b9   : > { %v8698_v60 = vadd.f32 %v2208_v52, %v8159_v34  ;;  %v2210_v33 = vsel %vm2143_vm4, %v8145_v41, 0.0  ;;  %vm2144_vm9 = vcmp.eq.s32.totalorder %v11454_v56, 1  ;;  %11455 = vst [vmem:[#allocation92_spill] sm:$0xff] %v8702_v6  ;;  %11456 = vst [vmem:[#allocation88_spill] sm:$0xff] %v8704_v24  ;;  %v2209_v29 = vsel %vm2142_vm5, %v8145_v41, 0.0  ;;  %v11457_v34 = vld [vmem:[#allocation255_spill] sm:$0xff] }
 0x3ba   : > { %v2212_v11 = vsel %vm2145_vm6, %v8145_v41, 0.0  ;;  %vm2147_vm10 = vcmp.eq.s32.totalorder %v11457_v34, 1  ;;  %vm2146_vm11 = vcmp.eq.s32.totalorder %v11458_v8, 1  ;;  %v11459_v56 = vld [vmem:[#allocation133_spill] sm:$0xff]  ;;  %vm2595_vm12 = vcmp.eq.s32.totalorder %v11460_v10, 1  ;;  %v11470_v34 = vld [vmem:[#allocation135_spill] sm:$0xff] }
 0x3bb   : > { %11453 = vst [vmem:[#allocation177_spill] sm:$0xff] %v8698_v60  ;;  %v8715_v52 = vadd.f32 %v2207_v16, %v11459_v56  ;;  %v8720_v6 = vld [vmem:[%s10279_s1 + $0x4] ss:$0 sm:$0xff]  ;;  %v3891_v21 = vsel %vm3828_vm7, 1, %v10973_v53  ;;  %v3890_v24 = vsel %vm3827_vm8, 1, %v10973_v53  ;;  %v8728_v37 = vadd.f32 %v2210_v33, %v8181_v2  ;;  %v4704_v16 = vld [vmem:[%s4888_s28 + $0xb8] sm:$0xff] }
 0x3bc   : > { %v2211_v58 = vsel %vm2144_vm9, %v8145_v41, 0.0  ;;  %vm3830_vm13 = vcmp.eq.s32.totalorder %v4703_v59, 7  ;;  %vm3829_vm14 = vcmp.eq.s32.totalorder %v4704_v16, 7  ;;  %v11462_v56 = vld [vmem:[#allocation134_spill] sm:$0xff]  ;;  %v8737_v10 = vadd.f32 %v2212_v11, %v8195_v62  ;;  %v8745_v3 = vpop.permute.xlu1 %3487  ;;  %v8747_v33 = vpop.permute.xlu0 %3484  ;;  %v11468_v62 = vld [vmem:[#allocation259_spill] sm:$0xff]  ;;  %v11469_v11 = vld [vmem:[#allocation260_spill] sm:$0xff]  ;;  %3999 = vperm.xlu1 %4515, %v3891_v21   ;;  %3996 = vperm.xlu0 %4514, %v3890_v24  }
 0x3bd   : > { %11461 = vst [vmem:[#allocation94_spill] sm:$0xff] %v8728_v37  ;;  %v8734_v18 = vadd.f32 %v2209_v29, %v11462_v56  ;;  %v2214_v45 = vsel %vm2147_vm10, %v8145_v41, 0.0  ;;  %v2213_v2 = vsel %vm2146_vm11, %v8145_v41, 0.0  ;;  %11465 = vst [vmem:[#allocation181_spill] sm:$0xff] %v8745_v3  ;;  %v2662_v29 = vsel %vm2595_vm12, %v8720_v6, 0.0  ;;  %v11467_v56 = vld [vmem:[#allocation258_spill] sm:$0xff] }
 0x3be   : > { %11464 = vst [vmem:[#allocation180_spill] sm:$0xff] %v8737_v10  ;;  %11466 = vst [vmem:[#allocation89_spill] sm:$0xff] %v8747_v33  ;;  %vm2594_vm15 = vcmp.eq.s32.totalorder %v11467_v56, 1  ;;  %vm2597_vm0 = vcmp.eq.s32.totalorder %v11468_v62, 1  ;;  %vm2596_vm1 = vcmp.eq.s32.totalorder %v11469_v11, 1  ;;  %v8754_v10 = vadd.f32 %v2211_v58, %v11470_v34  ;;  %v11472_v8 = vld [vmem:[#allocation261_spill] sm:$0xff] }
 0x3bf   : > { %11463 = vst [vmem:[#allocation178_spill] sm:$0xff] %v8734_v18  ;;  %vm2599_vm2 = vcmp.eq.s32.totalorder %v11472_v8, 1  ;;  %v3893_v41 = vsel %vm3830_vm13, 1, %v10973_v53  ;;  %v3892_v3 = vsel %vm3829_vm14, 1, %v10973_v53  ;;  %v8762_v33 = vadd.f32 %v2214_v45, %v8215_v51  ;;  %v11474_v37 = vld [vmem:[#allocation137_spill] sm:$0xff]  ;;  %v4705_v18 = vld [vmem:[%s4888_s28 + $0xd0] sm:$0xff] }
 0x3c0   : > { %11471 = vst [vmem:[#allocation183_spill] sm:$0xff] %v8754_v10  ;;  %v8765_v60 = vadd.f32 %v2213_v2, %v11474_v37  ;;  %vm3832_vm3 = vcmp.eq.s32.totalorder %v4705_v18, 7  ;;  %v4706_v24 = vld [vmem:[%s4888_s28 + $0xc8] sm:$0xff]  ;;  %v11476_v21 = vld [vmem:[#allocation141_spill] sm:$0xff]  ;;  %v2661_v59 = vsel %vm2594_vm15, %v8720_v6, 0.0  ;;  %v2664_v16 = vsel %vm2597_vm0, %v8720_v6, 0.0  ;;  %v8781_v37 = vpop.permute.xlu1 %3493  ;;  %v8783_v45 = vpop.permute.xlu0 %3490  ;;  %4005 = vperm.xlu1 %4515, %v3893_v41   ;;  %4002 = vperm.xlu0 %4514, %v3892_v3  }
 0x3c1   : > { %11473 = vst [vmem:[#allocation98_spill] sm:$0xff] %v8762_v33  ;;  %vm3831_vm4 = vcmp.eq.s32.totalorder %v4706_v24, 7  ;;  %v8770_v58 = vadd.f32 %v2662_v29, %v11476_v21  ;;  %v2663_v51 = vsel %vm2596_vm1, %v8720_v6, 0.0  ;;  %11478 = vst [vmem:[#allocation184_spill] sm:$0xff] %v8781_v37  ;;  %v2666_v2 = vsel %vm2599_vm2, %v8720_v6, 0.0  ;;  %v11480_v29 = vld [vmem:[#allocation262_spill] sm:$0xff] }
 0x3c2   : > { %11475 = vst [vmem:[#allocation93_spill] sm:$0xff] %v8765_v60  ;;  %11479 = vst [vmem:[#allocation187_spill] sm:$0xff] %v8783_v45  ;;  %vm2598_vm5 = vcmp.eq.s32.totalorder %v11480_v29, 1  ;;  %v11481_v56 = vld [vmem:[#allocation263_spill] sm:$0xff]  ;;  %v11482_v34 = vld [vmem:[#allocation264_spill] sm:$0xff]  ;;  %v3895_v8 = vsel %vm3832_vm3, 1, %v10973_v53  ;;  %v8799_v37 = vadd.f32 %v2664_v16, %v8257_v9  ;;  %v8807_v10 = vadd.f32 %v2666_v2, %v8265_v4 }
 0x3c3   : > { %11477 = vst [vmem:[#allocation100_spill] sm:$0xff] %v8770_v58  ;;  %vm2601_vm6 = vcmp.eq.s32.totalorder %v11481_v56, 1  ;;  %vm2600_vm7 = vcmp.eq.s32.totalorder %v11482_v34, 1  ;;  %v11483_v62 = vld [vmem:[#allocation265_spill] sm:$0xff]  ;;  %v11484_v11 = vld [vmem:[#allocation266_spill] sm:$0xff]  ;;  %v3894_v21 = vsel %vm3831_vm4, 1, %v10973_v53 }
 0x3c4   : > { %vm2603_vm8 = vcmp.eq.s32.totalorder %v11483_v62, 1  ;;  %vm2602_vm9 = vcmp.eq.s32.totalorder %v11484_v11, 1  ;;  %v11485_v33 = vld [vmem:[#allocation138_spill] sm:$0xff]  ;;  %v4707_v45 = vld [vmem:[%s4888_s28 + $0xe0] sm:$0xff]  ;;  %v4708_v41 = vld [vmem:[%s4888_s28 + $0xd8] sm:$0xff]  ;;  %v2665_v18 = vsel %vm2598_vm5, %v8720_v6, 0.0  ;;  %v8817_v24 = vpop.permute.xlu0 %3496  ;;  %4011 = vperm.xlu1 %4515, %v3895_v8   ;;  %4008 = vperm.xlu0 %4514, %v3894_v21  }
 0x3c5   : > { %v8796_v60 = vadd.f32 %v2661_v59, %v11485_v33  ;;  %vm3834_vm10 = vcmp.eq.s32.totalorder %v4707_v45, 7  ;;  %vm3833_vm11 = vcmp.eq.s32.totalorder %v4708_v41, 7  ;;  %v11486_v3 = vld [vmem:[#allocation69_spill] sm:$0xff]  ;;  %v2668_v9 = vsel %vm2601_vm6, %v8720_v6, 0.0  ;;  %v8815_v33 = vpop.permute.xlu1 %3499  ;;  %11488 = vst [vmem:[#allocation191_spill] sm:$0xff] %v8817_v24  ;;  %v11490_v2 = vld [vmem:[#allocation268_spill] sm:$0xff] }
 0x3c6   : > { %v8804_v58 = vadd.f32 %v2663_v51, %v11486_v3  ;;  %11487 = vst [vmem:[#allocation188_spill] sm:$0xff] %v8815_v33  ;;  %v2667_v59 = vsel %vm2600_vm7, %v8720_v6, 0.0  ;;  %v2670_v4 = vsel %vm2603_vm8, %v8720_v6, 0.0  ;;  %v2669_v16 = vsel %vm2602_vm9, %v8720_v6, 0.0  ;;  %v11489_v51 = vld [vmem:[#allocation267_spill] sm:$0xff]  ;;  %v11491_v29 = vld [vmem:[#allocation269_spill] sm:$0xff] }
 0x3c7   : > { %vm2605_vm12 = vcmp.eq.s32.totalorder %v11489_v51, 1  ;;  %vm2604_vm13 = vcmp.eq.s32.totalorder %v11490_v2, 1  ;;  %vm2607_vm14 = vcmp.eq.s32.totalorder %v11491_v29, 1  ;;  %v3897_v56 = vsel %vm3834_vm10, 1, %v10973_v53  ;;  %v11492_v62 = vld [vmem:[#allocation142_spill] sm:$0xff]  ;;  %v4709_v33 = vld [vmem:[%s4888_s28 + $0xf0] sm:$0xff] }
 0x3c8   : > { %v3896_v34 = vsel %vm3833_vm11, 1, %v10973_v53  ;;  %v8836_v3 = vadd.f32 %v2665_v18, %v11492_v62  ;;  %v8839_v11 = vadd.f32 %v2668_v9, %v8297_v27  ;;  %vm3836_vm15 = vcmp.eq.s32.totalorder %v4709_v33, 7  ;;  %v4710_v8 = vld [vmem:[%s4888_s28 + $0xe8] sm:$0xff]  ;;  %v8853_v27 = vpop.permute.xlu0 %3502  ;;  %4017 = vperm.xlu1 %4515, %v3897_v56   ;;  %v11498_v62 = vld [vmem:[#allocation273_spill] sm:$0xff] }
 0x3c9   : > { %vm3835_vm0 = vcmp.eq.s32.totalorder %v4710_v8, 7  ;;  %v8844_v21 = vadd.f32 %v2667_v59, %v8260_v61  ;;  %v8847_v51 = vadd.f32 %v2670_v4, %v8305_v26  ;;  %v2672_v45 = vsel %vm2605_vm12, %v8720_v6, 0.0  ;;  %v11493_v41 = vld [vmem:[#allocation270_spill] sm:$0xff]  ;;  %v8851_v18 = vpop.permute.xlu1 %3505  ;;  %11495 = vst [vmem:[#allocation95_spill] sm:$0xff] %v8853_v27  ;;  %v11496_v59 = vld [vmem:[#allocation271_spill] sm:$0xff]  ;;  %4014 = vperm.xlu0 %4514, %v3896_v34   ;;  %v11497_v4 = vld [vmem:[#allocation272_spill] sm:$0xff] }
 0x3ca   : > { %vm2606_vm1 = vcmp.eq.s32.totalorder %v11493_v41, 1  ;;  %11494 = vst [vmem:[#allocation192_spill] sm:$0xff] %v8851_v18  ;;  %v8856_v9 = vadd.f32 %v2669_v16, %v8268_v17  ;;  %v2671_v61 = vsel %vm2604_vm13, %v8720_v6, 0.0  ;;  %v2674_v26 = vsel %vm2607_vm14, %v8720_v6, 0.0  ;;  %v4711_v41 = vld [vmem:[%s4888_s28 + $0x100] sm:$0xff]  ;;  %v11499_v18 = vld [vmem:[#allocation274_spill] sm:$0xff] }
 0x3cb   : > { %vm2609_vm2 = vcmp.eq.s32.totalorder %v11496_v59, 1  ;;  %vm2608_vm3 = vcmp.eq.s32.totalorder %v11497_v4, 1  ;;  %vm2611_vm4 = vcmp.eq.s32.totalorder %v11498_v62, 1  ;;  %v3899_v17 = vsel %vm3836_vm15, 1, %v10973_v53  ;;  %v4712_v59 = vld [vmem:[%s4888_s28 + $0xf8] sm:$0xff]  ;;  %v4713_v27 = vld [vmem:[%s4888_s28 + $0x110] sm:$0xff] }
 0x3cc   : > { %v3898_v16 = vsel %vm3835_vm0, 1, %v10973_v53  ;;  %v8872_v2 = vadd.f32 %v2672_v45, %v8317_v32  ;;  %v2673_v29 = vsel %vm2606_vm1, %v8720_v6, 0.0  ;;  %vm3838_vm5 = vcmp.eq.s32.totalorder %v4711_v41, 7  ;;  %v8887_v32 = vpop.permute.xlu0 %3508  ;;  %4023 = vperm.xlu1 %4515, %v3899_v17   ;;  %v4714_v17 = vld [vmem:[%s4888_s28 + $0x108] sm:$0xff]  ;;  %v4715_v24 = vld [vmem:[%s4888_s28 + $0x120] sm:$0xff] }
 0x3cd   : > { %vm3837_vm6 = vcmp.eq.s32.totalorder %v4712_v59, 7  ;;  %v8878_v56 = vadd.f32 %v2671_v61, %v8300_v7  ;;  %v8881_v34 = vadd.f32 %v2674_v26, %v8339_v23  ;;  %v2676_v33 = vsel %vm2609_vm2, %v8720_v6, 0.0  ;;  %v8885_v8 = vpop.permute.xlu1 %3511  ;;  %11501 = vst [vmem:[#allocation195_spill] sm:$0xff] %v8887_v32  ;;  %v11502_v23 = vld [vmem:[#allocation275_spill] sm:$0xff]  ;;  %v11503_v61 = vld [vmem:[#allocation276_spill] sm:$0xff]  ;;  %4020 = vperm.xlu0 %4514, %v3898_v16  }
 0x3ce   : > { %vm2610_vm7 = vcmp.eq.s32.totalorder %v11499_v18, 1  ;;  %11500 = vst [vmem:[#allocation99_spill] sm:$0xff] %v8885_v8  ;;  %v2675_v45 = vsel %vm2608_vm3, %v8720_v6, 0.0  ;;  %v2678_v7 = vsel %vm2611_vm4, %v8720_v6, 0.0  ;;  %vm2613_vm8 = vcmp.eq.s32.totalorder %v11502_v23, 1  ;;  %v11504_v26 = vld [vmem:[#allocation19_spill] sm:$0xff] }
 0x3cf   : > { %vm2612_vm9 = vcmp.eq.s32.totalorder %v11503_v61, 1  ;;  %v8898_v18 = vadd.f32 %v2673_v29, %v8308_v50  ;;  %vm2615_vm10 = vcmp.eq.s32.totalorder %v11504_v26, 1  ;;  %v3901_v8 = vsel %vm3838_vm5, 1, %v10973_v53  ;;  %v11510_v23 = vld [vmem:[#allocation23_spill] sm:$0xff] }
 0x3d0   : > { %v3900_v4 = vsel %vm3837_vm6, 1, %v10973_v53  ;;  %v8906_v62 = vadd.f32 %v2676_v33, %v8359_v22  ;;  %v2677_v32 = vsel %vm2610_vm7, %v8720_v6, 0.0  ;;  %vm3840_vm11 = vcmp.eq.s32.totalorder %v4713_v27, 7  ;;  %v8925_v59 = vpop.permute.xlu0 %3514  ;;  %v11507_v33 = vld [vmem:[#allocation20_spill] sm:$0xff]  ;;  %4029 = vperm.xlu1 %4515, %v3901_v8  }
 0x3d1   : > { %vm3839_vm12 = vcmp.eq.s32.totalorder %v4714_v17, 7  ;;  %v8912_v50 = vadd.f32 %v2675_v45, %v8333_v36  ;;  %v8915_v16 = vadd.f32 %v2678_v7, %v8373_v57  ;;  %v2680_v29 = vsel %vm2613_vm8, %v8720_v6, 0.0  ;;  %v8923_v41 = vpop.permute.xlu1 %3517  ;;  %11506 = vst [vmem:[#allocation197_spill] sm:$0xff] %v8925_v59  ;;  %v11508_v57 = vld [vmem:[#allocation21_spill] sm:$0xff]  ;;  %v11509_v45 = vld [vmem:[#allocation22_spill] sm:$0xff]  ;;  %4026 = vperm.xlu0 %4514, %v3900_v4   ;;  %v4716_v8 = vld [vmem:[%s4888_s28 + $0x118] sm:$0xff] }
 0x3d2   : > { %v2679_v22 = vsel %vm2612_vm9, %v8720_v6, 0.0  ;;  %11505 = vst [vmem:[#allocation196_spill] sm:$0xff] %v8923_v41  ;;  %v2682_v36 = vsel %vm2615_vm10, %v8720_v6, 0.0  ;;  %vm2614_vm13 = vcmp.eq.s32.totalorder %v11507_v33, 1  ;;  %vm2617_vm14 = vcmp.eq.s32.totalorder %v11508_v57, 1  ;;  %v11514_v17 = vld [vmem:[#allocation24_spill] sm:$0xff] }
 0x3d3   : > { %vm2616_vm15 = vcmp.eq.s32.totalorder %v11509_v45, 1  ;;  %v8932_v7 = vadd.f32 %v2677_v32, %v8342_v40  ;;  %vm2619_vm0 = vcmp.eq.s32.totalorder %v11510_v23, 1  ;;  %v3903_v61 = vsel %vm3840_vm11, 1, %v10973_v53  ;;  %v11518_v33 = vld [vmem:[#allocation28_spill] sm:$0xff] }
 0x3d4   : > { %v3902_v26 = vsel %vm3839_vm12, 1, %v10973_v53  ;;  %v8940_v41 = vadd.f32 %v2680_v29, %v8393_v0  ;;  %v8943_v59 = vadd.f32 %v2679_v22, %v8367_v5  ;;  %vm3842_vm1 = vcmp.eq.s32.totalorder %v4715_v24, 7  ;;  %v8961_v4 = vpop.permute.xlu0 %3520  ;;  %v11515_v29 = vld [vmem:[#allocation25_spill] sm:$0xff]  ;;  %v11516_v22 = vld [vmem:[#allocation26_spill] sm:$0xff]  ;;  %4035 = vperm.xlu1 %4515, %v3903_v61  }
 0x3d5   : > { %vm3841_vm2 = vcmp.eq.s32.totalorder %v4716_v8, 7  ;;  %v8948_v40 = vadd.f32 %v2682_v36, %v8404_v14  ;;  %v2681_v27 = vsel %vm2614_vm13, %v8720_v6, 0.0  ;;  %v2684_v32 = vsel %vm2617_vm14, %v8720_v6, 0.0  ;;  %v8959_v0 = vpop.permute.xlu1 %3523  ;;  %11513 = vst [vmem:[#allocation199_spill] sm:$0xff] %v8961_v4  ;;  %4032 = vperm.xlu0 %4514, %v3902_v26   ;;  %v11517_v36 = vld [vmem:[#allocation27_spill] sm:$0xff]  ;;  %v4718_v61 = vld [vmem:[%s4888_s28 + $0x128] sm:$0xff] }
 0x3d6   : > { %v2683_v5 = vsel %vm2616_vm15, %v8720_v6, 0.0  ;;  %11512 = vst [vmem:[#allocation198_spill] sm:$0xff] %v8959_v0  ;;  %v2686_v14 = vsel %vm2619_vm0, %v8720_v6, 0.0  ;;  %vm2618_vm3 = vcmp.eq.s32.totalorder %v11514_v17, 1  ;;  %vm2621_vm4 = vcmp.eq.s32.totalorder %v11515_v29, 1  ;;  %v4717_v4 = vld [vmem:[%s4888_s28 + $0x130] sm:$0xff] }
 0x3d7   : > { %11511 = vst [vmem:[#allocation101_spill] sm:$0xff] %v8948_v40  ;;  %vm2620_vm5 = vcmp.eq.s32.totalorder %v11516_v22, 1  ;;  %vm2623_vm6 = vcmp.eq.s32.totalorder %v11517_v36, 1  ;;  %vm2622_vm7 = vcmp.eq.s32.totalorder %v11518_v33, 1  ;;  %v3905_v57 = vsel %vm3842_vm1, 1, %v10973_v53  ;;  %v11524_v22 = vld [vmem:[#allocation151_spill] sm:$0xff] }
 0x3d8   : > { %v3904_v45 = vsel %vm3841_vm2, 1, %v10973_v53  ;;  %v8974_v23 = vadd.f32 %v2681_v27, %v8376_v12  ;;  %v8977_v0 = vadd.f32 %v2684_v32, %v8435_v19  ;;  %vm3844_vm8 = vcmp.eq.s32.totalorder %v4717_v4, 7  ;;  %v8995_v8 = vpop.permute.xlu0 %3526  ;;  %v11521_v32 = vld [vmem:[#allocation29_spill] sm:$0xff]  ;;  %4041 = vperm.xlu1 %4515, %v3905_v57   ;;  %v4720_v57 = vld [vmem:[%s4888_s28 + $0x138] sm:$0xff] }
 0x3d9   : > { %vm3843_vm9 = vcmp.eq.s32.totalorder %v4718_v61, 7  ;;  %v8982_v26 = vadd.f32 %v2683_v5, %v8401_v30  ;;  %v8985_v40 = vadd.f32 %v2686_v14, %v8443_v42  ;;  %v2685_v24 = vsel %vm2618_vm3, %v8720_v6, 0.0  ;;  %v8993_v19 = vpop.permute.xlu1 %3529  ;;  %11520 = vst [vmem:[#allocation201_spill] sm:$0xff] %v8995_v8  ;;  %4038 = vperm.xlu0 %4514, %v3904_v45   ;;  %v11522_v5 = vld [vmem:[#allocation30_spill] sm:$0xff]  ;;  %v11523_v14 = vld [vmem:[#allocation31_spill] sm:$0xff]  ;;  %v11525_v61 = vld [vmem:[#allocation32_spill] sm:$0xff] }
 0x3da   : > { %v2688_v12 = vsel %vm2621_vm4, %v8720_v6, 0.0  ;;  %11519 = vst [vmem:[#allocation200_spill] sm:$0xff] %v8993_v19  ;;  %v2687_v30 = vsel %vm2620_vm5, %v8720_v6, 0.0  ;;  %v2690_v42 = vsel %vm2623_vm6, %v8720_v6, 0.0  ;;  %v2689_v27 = vsel %vm2622_vm7, %v8720_v6, 0.0  ;;  %v4719_v19 = vld [vmem:[%s4888_s28 + $0x140] sm:$0xff] }
 0x3db   : > { %vm2625_vm10 = vcmp.eq.s32.totalorder %v11521_v32, 1  ;;  %vm2624_vm11 = vcmp.eq.s32.totalorder %v11522_v5, 1  ;;  %vm2627_vm12 = vcmp.eq.s32.totalorder %v11523_v14, 1  ;;  %v3907_v17 = vsel %vm3844_vm8, 1, %v10973_v53  ;;  %v4723_v8 = vld [vmem:[%s4888_s28 + $0x160] sm:$0xff] }
 0x3dc   : > { %v3906_v29 = vsel %vm3843_vm9, 1, %v10973_v53  ;;  %v9014_v36 = vadd.f32 %v2685_v24, %v11524_v22  ;;  %v9017_v33 = vadd.f32 %v2688_v12, %v8475_v46  ;;  %vm3846_vm13 = vcmp.eq.s32.totalorder %v4719_v19, 7  ;;  %v9031_v46 = vpop.permute.xlu0 %3532  ;;  %4047 = vperm.xlu1 %4515, %v3907_v17   ;;  %v11530_v22 = vld [vmem:[#allocation35_spill] sm:$0xff] }
 0x3dd   : > { %vm3845_vm14 = vcmp.eq.s32.totalorder %v4720_v57, 7  ;;  %v9022_v45 = vadd.f32 %v2687_v30, %v8438_v63  ;;  %v9025_v32 = vadd.f32 %v2690_v42, %v8483_v54  ;;  %v2692_v4 = vsel %vm2625_vm10, %v8720_v6, 0.0  ;;  %v9029_v24 = vpop.permute.xlu1 %3535  ;;  %11527 = vst [vmem:[#allocation106_spill] sm:$0xff] %v9031_v46  ;;  %v11528_v30 = vld [vmem:[#allocation33_spill] sm:$0xff]  ;;  %4044 = vperm.xlu0 %4514, %v3906_v29   ;;  %v11529_v42 = vld [vmem:[#allocation34_spill] sm:$0xff] }
 0x3de   : > { %vm2626_vm15 = vcmp.eq.s32.totalorder %v11525_v61, 1  ;;  %11526 = vst [vmem:[#allocation110_spill] sm:$0xff] %v9029_v24  ;;  %v9034_v12 = vadd.f32 %v2689_v27, %v8446_v55  ;;  %v2691_v63 = vsel %vm2624_vm11, %v8720_v6, 0.0  ;;  %v2694_v54 = vsel %vm2627_vm12, %v8720_v6, 0.0  ;;  %v4721_v61 = vld [vmem:[%s4888_s28 + $0x150] sm:$0xff]  ;;  %v11533_v24 = vld [vmem:[#allocation36_spill] sm:$0xff] }
 0x3df   : > { %vm2629_vm0 = vcmp.eq.s32.totalorder %v11528_v30, 1  ;;  %vm2628_vm1 = vcmp.eq.s32.totalorder %v11529_v42, 1  ;;  %vm2631_vm2 = vcmp.eq.s32.totalorder %v11530_v22, 1  ;;  %v3909_v55 = vsel %vm3846_vm13, 1, %v10973_v53  ;;  %v4722_v30 = vld [vmem:[%s4888_s28 + $0x148] sm:$0xff] }
 0x3e0   : > { %v3908_v27 = vsel %vm3845_vm14, 1, %v10973_v53  ;;  %v9050_v5 = vadd.f32 %v2692_v4, %v8495_v48  ;;  %v2693_v14 = vsel %vm2626_vm15, %v8720_v6, 0.0  ;;  %vm3848_vm3 = vcmp.eq.s32.totalorder %v4721_v61, 7  ;;  %v9065_v48 = vpop.permute.xlu0 %3538  ;;  %4053 = vperm.xlu1 %4515, %v3909_v55   ;;  %v4724_v55 = vld [vmem:[%s4888_s28 + $0x158] sm:$0xff] }
 0x3e1   : > { %vm3847_vm4 = vcmp.eq.s32.totalorder %v4722_v30, 7  ;;  %v9056_v17 = vadd.f32 %v2691_v63, %v8478_v43  ;;  %v9059_v29 = vadd.f32 %v2694_v54, %v8517_v20  ;;  %v2696_v19 = vsel %vm2629_vm0, %v8720_v6, 0.0  ;;  %v9063_v57 = vpop.permute.xlu1 %3541  ;;  %11535 = vst [vmem:[#allocation107_spill] sm:$0xff] %v9065_v48  ;;  %v11536_v20 = vld [vmem:[#allocation37_spill] sm:$0xff]  ;;  %v11537_v63 = vld [vmem:[#allocation38_spill] sm:$0xff]  ;;  %4050 = vperm.xlu0 %4514, %v3908_v27   ;;  %v11539_v54 = vld [vmem:[#allocation39_spill] sm:$0xff] }
 0x3e2   : > { %11531 = vst [vmem:[#allocation202_spill] sm:$0xff] %v9050_v5  ;;  %vm2630_vm5 = vcmp.eq.s32.totalorder %v11533_v24, 1  ;;  %11534 = vst [vmem:[#allocation204_spill] sm:$0xff] %v9063_v57  ;;  %v2695_v4 = vsel %vm2628_vm1, %v8720_v6, 0.0  ;;  %v2698_v43 = vsel %vm2631_vm2, %v8720_v6, 0.0  ;;  %vm2633_vm6 = vcmp.eq.s32.totalorder %v11536_v20, 1 }
 0x3e3   : > { %11532 = vst [vmem:[#allocation203_spill] sm:$0xff] %v9059_v29  ;;  %vm2632_vm7 = vcmp.eq.s32.totalorder %v11537_v63, 1  ;;  %v9076_v24 = vadd.f32 %v2693_v14, %v8486_v38  ;;  %vm2635_vm8 = vcmp.eq.s32.totalorder %v11539_v54, 1  ;;  %v3911_v57 = vsel %vm3848_vm3, 1, %v10973_v53  ;;  %v11540_v48 = vld [vmem:[#allocation162_spill] sm:$0xff]  ;;  %v11544_v14 = vld [vmem:[#allocation164_spill] sm:$0xff] }
 0x3e4   : > { %v3910_v42 = vsel %vm3847_vm4, 1, %v10973_v53  ;;  %v9084_v22 = vadd.f32 %v2696_v19, %v11540_v48  ;;  %v2697_v46 = vsel %vm2630_vm5, %v8720_v6, 0.0  ;;  %vm3850_vm9 = vcmp.eq.s32.totalorder %v4723_v8, 7  ;;  %v11542_v27 = vld [vmem:[#allocation158_spill] sm:$0xff]  ;;  %v9103_v48 = vpop.permute.xlu0 %3544  ;;  %4059 = vperm.xlu1 %4515, %v3911_v57   ;;  %v11551_v20 = vld [vmem:[#allocation159_spill] sm:$0xff] }
 0x3e5   : > { %11538 = vst [vmem:[#allocation205_spill] sm:$0xff] %v9076_v24  ;;  %vm3849_vm10 = vcmp.eq.s32.totalorder %v4724_v55, 7  ;;  %v9090_v38 = vadd.f32 %v2695_v4, %v11542_v27  ;;  %v9093_v54 = vadd.f32 %v2698_v43, %v11544_v14  ;;  %v2700_v61 = vsel %vm2633_vm6, %v8720_v6, 0.0  ;;  %v9101_v19 = vpop.permute.xlu1 %3547  ;;  %11547 = vst [vmem:[#allocation209_spill] sm:$0xff] %v9103_v48  ;;  %v11548_v27 = vld [vmem:[#allocation40_spill] sm:$0xff]  ;;  %v11549_v43 = vld [vmem:[#allocation42_spill] sm:$0xff]  ;;  %4056 = vperm.xlu0 %4514, %v3910_v42  }
 0x3e6   : > { %11541 = vst [vmem:[#allocation206_spill] sm:$0xff] %v9084_v22  ;;  %v2699_v30 = vsel %vm2632_vm7, %v8720_v6, 0.0  ;;  %11546 = vst [vmem:[#allocation111_spill] sm:$0xff] %v9101_v19  ;;  %v2702_v4 = vsel %vm2635_vm8, %v8720_v6, 0.0  ;;  %vm2634_vm11 = vcmp.eq.s32.totalorder %v11548_v27, 1  ;;  %vm2637_vm12 = vcmp.eq.s32.totalorder %v11549_v43, 1 }
 0x3e7   : > { %11543 = vst [vmem:[#allocation207_spill] sm:$0xff] %v9090_v38  ;;  %11545 = vst [vmem:[#allocation208_spill] sm:$0xff] %v9093_v54  ;;  %v11550_v14 = vld [vmem:[#allocation43_spill] sm:$0xff]  ;;  %v9110_v54 = vadd.f32 %v2697_v46, %v11551_v20  ;;  %v11553_v63 = vld [vmem:[#allocation46_spill] sm:$0xff]  ;;  %v3913_v19 = vsel %vm3850_vm9, 1, %v10973_v53  ;;  %v3912_v48 = vsel %vm3849_vm10, 1, %v10973_v53 }
 0x3e8   : > { %vm2636_vm13 = vcmp.eq.s32.totalorder %v11550_v14, 1  ;;  %vm2639_vm14 = vcmp.eq.s32.totalorder %v11553_v63, 1  ;;  %v11554_v22 = vld [vmem:[#allocation168_spill] sm:$0xff]  ;;  %v11556_v38 = vld [vmem:[#allocation163_spill] sm:$0xff]  ;;  %v4726_v57 = vld [vmem:[%s4888_s28 + $0x168] sm:$0xff]  ;;  %v2701_v8 = vsel %vm2634_vm11, %v8720_v6, 0.0  ;;  %4065 = vperm.xlu1 %4515, %v3913_v19  }
 0x3e9   : > { %11552 = vst [vmem:[#allocation114_spill] sm:$0xff] %v9110_v54  ;;  %v9118_v29 = vadd.f32 %v2700_v61, %v11554_v22  ;;  %v9121_v5 = vadd.f32 %v2699_v30, %v11556_v38  ;;  %v4725_v24 = vld [vmem:[%s4888_s28 + $0x170] sm:$0xff]  ;;  %vm3851_vm0 = vcmp.eq.s32.totalorder %v4726_v57, 7  ;;  %v11558_v46 = vld [vmem:[#allocation170_spill] sm:$0xff]  ;;  %v2704_v55 = vsel %vm2637_vm12, %v8720_v6, 0.0  ;;  %v9137_v38 = vpop.permute.xlu1 %3553  ;;  %v9139_v61 = vpop.permute.xlu0 %3550  ;;  %v11563_v27 = vld [vmem:[#allocation52_spill] sm:$0xff]  ;;  %4062 = vperm.xlu0 %4514, %v3912_v48  }
 0x3ea   : > { %vm3852_vm15 = vcmp.eq.s32.totalorder %v4725_v24, 7  ;;  %v9126_v42 = vadd.f32 %v2702_v4, %v11558_v46  ;;  %v2703_v22 = vsel %vm2636_vm13, %v8720_v6, 0.0  ;;  %11560 = vst [vmem:[#allocation213_spill] sm:$0xff] %v9137_v38  ;;  %11561 = vst [vmem:[#allocation214_spill] sm:$0xff] %v9139_v61  ;;  %v2706_v30 = vsel %vm2639_vm14, %v8720_v6, 0.0  ;;  %v11562_v4 = vld [vmem:[#allocation47_spill] sm:$0xff] }
 0x3eb   : > { %11555 = vst [vmem:[#allocation210_spill] sm:$0xff] %v9118_v29  ;;  %11557 = vst [vmem:[#allocation211_spill] sm:$0xff] %v9121_v5  ;;  %vm2638_vm1 = vcmp.eq.s32.totalorder %v11562_v4, 1  ;;  %vm2641_vm2 = vcmp.eq.s32.totalorder %v11563_v27, 1  ;;  %v11564_v20 = vld [vmem:[#allocation53_spill] sm:$0xff]  ;;  %v11565_v43 = vld [vmem:[#allocation58_spill] sm:$0xff]  ;;  %v9163_v54 = vadd.f32 %v2706_v30, %v8621_v44 }
 0x3ec   : > { %11559 = vst [vmem:[#allocation212_spill] sm:$0xff] %v9126_v42  ;;  %vm2640_vm3 = vcmp.eq.s32.totalorder %v11564_v20, 1  ;;  %vm2643_vm4 = vcmp.eq.s32.totalorder %v11565_v43, 1  ;;  %v11566_v14 = vld [vmem:[#allocation59_spill] sm:$0xff]  ;;  %v3915_v63 = vsel %vm3852_vm15, 1, %v10973_v53  ;;  %v3914_v46 = vsel %vm3851_vm0, 1, %v10973_v53 }
 0x3ed   : > { %vm2642_vm5 = vcmp.eq.s32.totalorder %v11566_v14, 1  ;;  %v11567_v38 = vld [vmem:[#allocation165_spill] sm:$0xff]  ;;  %v9155_v42 = vadd.f32 %v2704_v55, %v8613_v13  ;;  %v4728_v19 = vld [vmem:[%s4888_s28 + $0x178] sm:$0xff]  ;;  %v2705_v24 = vsel %vm2638_vm1, %v8720_v6, 0.0  ;;  %v2708_v13 = vsel %vm2641_vm2, %v8720_v6, 0.0  ;;  %v9171_v57 = vpop.permute.xlu1 %3559  ;;  %4071 = vperm.xlu1 %4515, %v3915_v63   ;;  %4068 = vperm.xlu0 %4514, %v3914_v46   ;;  %v11573_v4 = vld [vmem:[#allocation67_spill] sm:$0xff] }
 0x3ee   : > { %v9152_v61 = vadd.f32 %v2701_v8, %v11567_v38  ;;  %v4727_v29 = vld [vmem:[%s4888_s28 + $0x180] sm:$0xff]  ;;  %vm3853_vm7 = vcmp.eq.s32.totalorder %v4728_v19, 7  ;;  %11569 = vst [vmem:[#allocation115_spill] sm:$0xff] %v9171_v57  ;;  %v9173_v8 = vpop.permute.xlu0 %3556  ;;  %v2707_v55 = vsel %vm2640_vm3, %v8720_v6, 0.0  ;;  %v2710_v44 = vsel %vm2643_vm4, %v8720_v6, 0.0  ;;  %v11571_v38 = vld [vmem:[#allocation63_spill] sm:$0xff] }
 0x3ef   : > { %vm3854_vm6 = vcmp.eq.s32.totalorder %v4727_v29, 7  ;;  %v11568_v48 = vld [vmem:[#allocation169_spill] sm:$0xff]  ;;  %11570 = vst [vmem:[#allocation118_spill] sm:$0xff] %v9173_v8  ;;  %vm2645_vm8 = vcmp.eq.s32.totalorder %v11571_v38, 1  ;;  %v11572_v30 = vld [vmem:[#allocation64_spill] sm:$0xff]  ;;  %vm2647_vm10 = vcmp.eq.s32.totalorder %v11573_v4, 1  ;;  %v9195_v14 = vadd.f32 %v2708_v13, %v8653_v25 }
 0x3f0   : > { %v9160_v5 = vadd.f32 %v2703_v22, %v11568_v48  ;;  %v2709_v22 = vsel %vm2642_vm5, %v8720_v6, 0.0  ;;  %vm2644_vm9 = vcmp.eq.s32.totalorder %v11572_v30, 1  ;;  %v3917_v27 = vsel %vm3854_vm6, 1, %v10973_v53  ;;  %v11574_v43 = vld [vmem:[#allocation171_spill] sm:$0xff]  ;;  %v4730_v63 = vld [vmem:[%s4888_s28 + $0x188] sm:$0xff]  ;;  %v11577_v13 = vld [vmem:[#allocation12_spill] sm:$0xff] }
 0x3f1   : > { %v3916_v20 = vsel %vm3853_vm7, 1, %v10973_v53  ;;  %v9192_v48 = vadd.f32 %v2705_v24, %v11574_v43  ;;  %v4729_v57 = vld [vmem:[%s4888_s28 + $0x190] sm:$0xff]  ;;  %vm3855_vm12 = vcmp.eq.s32.totalorder %v4730_v63, 7  ;;  %v9200_v46 = vadd.f32 %v2707_v55, %v8616_v28  ;;  %v9211_v25 = vpop.permute.xlu1 %3565  ;;  %4077 = vperm.xlu1 %4515, %v3917_v27   ;;  %v11578_v55 = vld [vmem:[#allocation70_spill] sm:$0xff]  ;;  %v11581_v4 = vld [vmem:[#allocation16_spill] sm:$0xff] }
 0x3f2   : > { %vm3856_vm11 = vcmp.eq.s32.totalorder %v4729_v57, 7  ;;  %v9203_v8 = vadd.f32 %v2710_v44, %v8661_v47  ;;  %v9206_v29 = vadd.f32 %v2709_v22, %v8624_v35  ;;  %v2712_v19 = vsel %vm2645_vm8, %v8720_v6, 0.0  ;;  %11575 = vst [vmem:[#allocation215_spill] sm:$0xff] %v9211_v25  ;;  %v9213_v24 = vpop.permute.xlu0 %3562  ;;  %v11576_v35 = vld [vmem:[#allocation68_spill] sm:$0xff]  ;;  %4074 = vperm.xlu0 %4514, %v3916_v20   ;;  %v11579_v44 = vld [vmem:[#allocation71_spill] sm:$0xff]  ;;  %v4731_v43 = vld [vmem:[%s4888_s28 + $0x1a0] sm:$0xff] }
 0x3f3   : > { %v2711_v28 = vsel %vm2644_vm9, %v8720_v6, 0.0  ;;  %v2714_v47 = vsel %vm2647_vm10, %v8720_v6, 0.0  ;;  %vm2646_vm13 = vcmp.eq.s32.totalorder %v11576_v35, 1  ;;  %vm2649_vm14 = vcmp.eq.s32.totalorder %v11577_v13, 1  ;;  %v4732_v25 = vld [vmem:[%s4888_s28 + $0x198] sm:$0xff]  ;;  %v11583_v63 = vld [vmem:[#allocation73_spill] sm:$0xff] }
 0x3f4   : > { %vm2648_vm15 = vcmp.eq.s32.totalorder %v11578_v55, 1  ;;  %vm2651_vm0 = vcmp.eq.s32.totalorder %v11579_v44, 1  ;;  %v3919_v22 = vsel %vm3856_vm11, 1, %v10973_v53  ;;  %v3918_v38 = vsel %vm3855_vm12, 1, %v10973_v53 }
 0x3f5   : > { %v9230_v30 = vadd.f32 %v2712_v19, %v8673_v15  ;;  %vm2650_vm1 = vcmp.eq.s32.totalorder %v11581_v4, 1  ;;  %vm3858_vm2 = vcmp.eq.s32.totalorder %v4731_v43, 7  ;;  %vm3857_vm3 = vcmp.eq.s32.totalorder %v4732_v25, 7  ;;  %v9245_v15 = vpop.permute.xlu1 %3571  ;;  %4083 = vperm.xlu1 %4515, %v3919_v22   ;;  %v4734_v22 = vld [vmem:[%s4888_s28 + $0x1a8] sm:$0xff] }
 0x3f6   : > { %v9236_v27 = vadd.f32 %v2711_v28, %v8656_v49  ;;  %v9239_v20 = vadd.f32 %v2714_v47, %v8695_v1  ;;  %v2713_v57 = vsel %vm2646_vm13, %v8720_v6, 0.0  ;;  %vm2653_vm4 = vcmp.eq.s32.totalorder %v11583_v63, 1  ;;  %11584 = vst [vmem:[#allocation119_spill] sm:$0xff] %v9245_v15  ;;  %v9247_v19 = vpop.permute.xlu0 %3568  ;;  %v11586_v47 = vld [vmem:[#allocation74_spill] sm:$0xff]  ;;  %4080 = vperm.xlu0 %4514, %v3918_v38   ;;  %v11587_v63 = vld [vmem:[#allocation75_spill] sm:$0xff] }
 0x3f7   : > { %11580 = vst [vmem:[#allocation216_spill] sm:$0xff] %v9230_v30  ;;  %11585 = vst [vmem:[#allocation218_spill] sm:$0xff] %v9247_v19  ;;  %v2716_v49 = vsel %vm2649_vm14, %v8720_v6, 0.0  ;;  %v2715_v1 = vsel %vm2648_vm15, %v8720_v6, 0.0  ;;  %v2718_v28 = vsel %vm2651_vm0, %v8720_v6, 0.0  ;;  %vm2652_vm5 = vcmp.eq.s32.totalorder %v11586_v47, 1 }
 0x3f8   : > { %11582 = vst [vmem:[#allocation217_spill] sm:$0xff] %v9239_v20  ;;  %v2717_v35 = vsel %vm2650_vm1, %v8720_v6, 0.0  ;;  %vm2654_vm6 = vcmp.eq.s32.totalorder %v11587_v63, 1  ;;  %v3921_v13 = vsel %vm3858_vm2, 1, %v10973_v53  ;;  %v3920_v55 = vsel %vm3857_vm3, 1, %v10973_v53  ;;  %v4733_v47 = vld [vmem:[%s4888_s28 + $0x1b0] sm:$0xff] }
 0x3f9   : > { %v9268_v20 = vadd.f32 %v2713_v57, %v8664_v39  ;;  %v2720_v44 = vsel %vm2653_vm4, %v8720_v6, 0.0  ;;  %vm3860_vm7 = vcmp.eq.s32.totalorder %v4733_v47, 7  ;;  %vm3859_vm8 = vcmp.eq.s32.totalorder %v4734_v22, 7  ;;  %v11591_v15 = vld [vmem:[#allocation6_spill] sm:$0xff]  ;;  %v9281_v25 = vpop.permute.xlu1 %3577  ;;  %4089 = vperm.xlu1 %4515, %v3921_v13   ;;  %v4736_v13 = vld [vmem:[%s4888_s28 + $0x1b8] sm:$0xff] }
 0x3fa   : > { %v9274_v38 = vadd.f32 %v2716_v49, %v8715_v52  ;;  %v9277_v4 = vadd.f32 %v2715_v1, %v8689_v31  ;;  %v2719_v43 = vsel %vm2652_vm5, %v8720_v6, 0.0  ;;  %vm2655_vm9 = vcmp.eq.s32.totalorder %v11591_v15, 1  ;;  %v9283_v39 = vpop.permute.xlu0 %3574  ;;  %v11592_v57 = vld [vmem:[#allocation178_spill] sm:$0xff]  ;;  %v9297_v52 = vld [vmem:[%s10279_s1 + $0x5] ss:$0 sm:$0xff]  ;;  %4086 = vperm.xlu0 %4514, %v3920_v55   ;;  %v11597_v49 = vld [vmem:[#allocation183_spill] sm:$0xff] }
 0x3fb   : > { %11588 = vst [vmem:[#allocation219_spill] sm:$0xff] %v9268_v20  ;;  %v9286_v30 = vadd.f32 %v2718_v28, %v11592_v57  ;;  %v11594_v20 = vld [vmem:[#allocation177_spill] sm:$0xff]  ;;  %v2721_v31 = vsel %vm2654_vm6, %v8720_v6, 0.0  ;;  %v9301_v1 = vadd.f32 %v2720_v44, %v11597_v49  ;;  %v11600_v63 = vld [vmem:[#allocation94_spill] sm:$0xff]  ;;  %vm3861_vm13 = vcmp.eq.s32.totalorder %v4736_v13, 7  ;;  %v11603_v55 = vld [vmem:[#allocation180_spill] sm:$0xff] }
 0x3fc   : > { %11589 = vst [vmem:[#allocation220_spill] sm:$0xff] %v9274_v38  ;;  %11590 = vst [vmem:[#allocation221_spill] sm:$0xff] %v9277_v4  ;;  %v9289_v19 = vadd.f32 %v2717_v35, %v11594_v20  ;;  %v11596_v15 = vld [vmem:[#allocation5_spill] sm:$0xff]  ;;  %v3923_v20 = vsel %vm3860_vm7, 1, %v10973_v53  ;;  %v3922_v35 = vsel %vm3859_vm8, 1, %v10973_v53  ;;  %v9309_v57 = vadd.f32 %v2719_v43, %v11600_v63  ;;  %v11605_v47 = vld [vmem:[#allocation76_spill] sm:$0xff] }
 0x3fd   : > { %11593 = vst [vmem:[#allocation222_spill] sm:$0xff] %v9286_v30  ;;  %vm3103_vm10 = vcmp.eq.s32.totalorder %v11596_v15, 1  ;;  %11598 = vst [vmem:[#allocation224_spill] sm:$0xff] %v9301_v1  ;;  %v11599_v28 = vld [vmem:[#allocation77_spill] sm:$0xff]  ;;  %v9312_v30 = vsel %vm2655_vm9, %v8720_v6, 0.0  ;;  %v9317_v44 = vadd.f32 %v2721_v31, %v11603_v55  ;;  %vm2656_vm14 = vcmp.eq.s32.totalorder %v11605_v47, 1  ;;  %v9322_v22 = vpop.permute.xlu1 %3583  ;;  %4095 = vperm.xlu1 %4515, %v3923_v20  }
 0x3fe   : > { %11595 = vst [vmem:[#allocation223_spill] sm:$0xff] %v9289_v19  ;;  %vm3105_vm11 = vcmp.eq.s32.totalorder %v11599_v28, 1  ;;  %11601 = vst [vmem:[#allocation225_spill] sm:$0xff] %v9309_v57  ;;  %v4735_v15 = vld [vmem:[%s4888_s28 + $0x1c0] sm:$0xff]  ;;  %v3170_v49 = vsel %vm3103_vm10, %v9297_v52, 0.0  ;;  %v11606_v28 = vld [vmem:[#allocation78_spill] sm:$0xff]  ;;  %v9324_v43 = vpop.permute.xlu0 %3580  ;;  %4092 = vperm.xlu0 %4514, %v3922_v35  }
 0x3ff   : > { %11602 = vst [vmem:[#allocation226_spill] sm:$0xff] %v9312_v30  ;;  %vm3862_vm12 = vcmp.eq.s32.totalorder %v4735_v15, 7  ;;  %11604 = vst [vmem:[#allocation227_spill] sm:$0xff] %v9317_v44  ;;  %vm3104_vm15 = vcmp.eq.s32.totalorder %v11606_v28, 1  ;;  %v3172_v63 = vsel %vm3105_vm11, %v9297_v52, 0.0  ;;  %v11609_v30 = vld [vmem:[#allocation79_spill] sm:$0xff]  ;;  %v9337_v38 = vadd.f32 %v3170_v49, %v8796_v60 }
 0x400   : > { %11607 = vst [vmem:[#allocation228_spill] sm:$0xff] %v9322_v22  ;;  %11608 = vst [vmem:[#allocation229_spill] sm:$0xff] %v9324_v43  ;;  %vm3107_vm0 = vcmp.eq.s32.totalorder %v11609_v30, 1  ;;  %v11610_v1 = vld [vmem:[#allocation80_spill] sm:$0xff]  ;;  %v11611_v31 = vld [vmem:[#allocation81_spill] sm:$0xff]  ;;  %v3925_v44 = vsel %vm3862_vm12, 1, %v10973_v53  ;;  %v9345_v35 = vadd.f32 %v3172_v63, %v8804_v58 }
 0x401   : > { %vm3106_vm1 = vcmp.eq.s32.totalorder %v11610_v1, 1  ;;  %vm3109_vm2 = vcmp.eq.s32.totalorder %v11611_v31, 1  ;;  %v11612_v55 = vld [vmem:[#allocation82_spill] sm:$0xff]  ;;  %v11613_v47 = vld [vmem:[#allocation83_spill] sm:$0xff]  ;;  %v3924_v57 = vsel %vm3861_vm13, 1, %v10973_v53  ;;  %v9340_v19 = vsel %vm2656_vm14, %v8720_v6, 0.0  ;;  %v9356_v6 = vpop.permute.xlu1 %3589  ;;  %4101 = vperm.xlu1 %4515, %v3925_v44  }
 0x402   : > { %vm3108_vm3 = vcmp.eq.s32.totalorder %v11612_v55, 1  ;;  %vm3111_vm4 = vcmp.eq.s32.totalorder %v11613_v47, 1  ;;  %11614 = vst [vmem:[#allocation230_spill] sm:$0xff] %v9340_v19  ;;  %v4737_v22 = vld [vmem:[%s4888_s28 + $0x1d0] sm:$0xff]  ;;  %v4738_v20 = vld [vmem:[%s4888_s28 + $0x1c8] sm:$0xff]  ;;  %v3171_v15 = vsel %vm3104_vm15, %v9297_v52, 0.0  ;;  %v9358_v49 = vpop.permute.xlu0 %3586  ;;  %4098 = vperm.xlu0 %4514, %v3924_v57  }
 0x403   : > { %vm3864_vm5 = vcmp.eq.s32.totalorder %v4737_v22, 7  ;;  %vm3863_vm6 = vcmp.eq.s32.totalorder %v4738_v20, 7  ;;  %v3174_v13 = vsel %vm3107_vm0, %v9297_v52, 0.0  ;;  %v3173_v60 = vsel %vm3106_vm1, %v9297_v52, 0.0  ;;  %11615 = vst [vmem:[#allocation231_spill] sm:$0xff] %v9356_v6  ;;  %11616 = vst [vmem:[#allocation232_spill] sm:$0xff] %v9358_v49 }
 0x404   : > { %v3176_v58 = vsel %vm3109_vm2, %v9297_v52, 0.0  ;;  %v3175_v28 = vsel %vm3108_vm3, %v9297_v52, 0.0  ;;  %v3178_v30 = vsel %vm3111_vm4, %v9297_v52, 0.0  ;;  %v11617_v1 = vld [vmem:[#allocation84_spill] sm:$0xff]  ;;  %v11618_v63 = vld [vmem:[#allocation86_spill] sm:$0xff]  ;;  %v11619_v19 = vld [vmem:[#allocation87_spill] sm:$0xff]  ;;  %v9380_v47 = vadd.f32 %v3174_v13, %v8836_v3 }
 0x405   : > { %vm3110_vm7 = vcmp.eq.s32.totalorder %v11617_v1, 1  ;;  %vm3113_vm8 = vcmp.eq.s32.totalorder %v11618_v63, 1  ;;  %vm3112_vm9 = vcmp.eq.s32.totalorder %v11619_v19, 1  ;;  %v3927_v31 = vsel %vm3864_vm5, 1, %v10973_v53  ;;  %v11620_v55 = vld [vmem:[#allocation100_spill] sm:$0xff]  ;;  %v4739_v4 = vld [vmem:[%s4888_s28 + $0x1e0] sm:$0xff] }
 0x406   : > { %v3926_v6 = vsel %vm3863_vm6, 1, %v10973_v53  ;;  %v9377_v49 = vadd.f32 %v3171_v15, %v11620_v55  ;;  %vm3866_vm10 = vcmp.eq.s32.totalorder %v4739_v4, 7  ;;  %v4740_v44 = vld [vmem:[%s4888_s28 + $0x1d8] sm:$0xff]  ;;  %v9385_v57 = vadd.f32 %v3173_v60, %v8799_v37  ;;  %v11621_v20 = vld [vmem:[#allocation90_spill] sm:$0xff]  ;;  %v9392_v15 = vpop.permute.xlu1 %3595  ;;  %v9394_v3 = vpop.permute.xlu0 %3592  ;;  %4107 = vperm.xlu1 %4515, %v3927_v31   ;;  %v11624_v60 = vld [vmem:[#allocation91_spill] sm:$0xff] }
 0x407   : > { %vm3865_vm11 = vcmp.eq.s32.totalorder %v4740_v44, 7  ;;  %v9388_v1 = vadd.f32 %v3176_v58, %v8844_v21  ;;  %v3177_v22 = vsel %vm3110_vm7, %v9297_v52, 0.0  ;;  %vm3115_vm12 = vcmp.eq.s32.totalorder %v11621_v20, 1  ;;  %11622 = vst [vmem:[#allocation233_spill] sm:$0xff] %v9392_v15  ;;  %11623 = vst [vmem:[#allocation234_spill] sm:$0xff] %v9394_v3  ;;  %4104 = vperm.xlu0 %4514, %v3926_v6   ;;  %v11625_v58 = vld [vmem:[#allocation96_spill] sm:$0xff] }
 0x408   : > { %v9397_v13 = vadd.f32 %v3175_v28, %v8807_v10  ;;  %v9400_v55 = vadd.f32 %v3178_v30, %v8856_v9  ;;  %v3180_v37 = vsel %vm3113_vm8, %v9297_v52, 0.0  ;;  %v3179_v21 = vsel %vm3112_vm9, %v9297_v52, 0.0  ;;  %v4741_v63 = vld [vmem:[%s4888_s28 + $0x1f0] sm:$0xff]  ;;  %v4742_v19 = vld [vmem:[%s4888_s28 + $0x1e8] sm:$0xff]  ;;  %v11626_v31 = vld [vmem:[#allocation97_spill] sm:$0xff]  ;;  %s9494_s28 = smul.u32 504, %s162_s27 }
 0x409   : > { %vm3114_vm13 = vcmp.eq.s32.totalorder %v11624_v60, 1  ;;  %vm3117_vm14 = vcmp.eq.s32.totalorder %v11625_v58, 1  ;;  %v3929_v10 = vsel %vm3866_vm10, 1, %v10973_v53  ;;  %v3928_v9 = vsel %vm3865_vm11, 1, %v10973_v53  ;;  %v11627_v20 = vld [vmem:[#allocation102_spill] sm:$0xff]  ;;  %v11628_v4 = vld [vmem:[#allocation103_spill] sm:$0xff] }
 0x40a   : > { %v9415_v28 = vadd.f32 %v3177_v22, %v8839_v11  ;;  %v3182_v30 = vsel %vm3115_vm12, %v9297_v52, 0.0  ;;  %vm3868_vm15 = vcmp.eq.s32.totalorder %v4741_v63, 7  ;;  %vm3867_vm0 = vcmp.eq.s32.totalorder %v4742_v19, 7  ;;  %v9426_v44 = vpop.permute.xlu1 %3601  ;;  %v9428_v15 = vpop.permute.xlu0 %3598  ;;  %4113 = vperm.xlu1 %4515, %v3929_v10   ;;  %v11633_v10 = vld [vmem:[#allocation150_spill] sm:$0xff]  ;;  %v11634_v63 = vld [vmem:[#allocation108_spill] sm:$0xff]  ;;  %s9546_s4 = scalar_lea.vmem [#allocation2], %s9494_s28 }
 0x40b   : > { %v9421_v6 = vadd.f32 %v3180_v37, %v8878_v56  ;;  %vm3116_vm1 = vcmp.eq.s32.totalorder %v11626_v31, 1  ;;  %vm3119_vm2 = vcmp.eq.s32.totalorder %v11627_v20, 1  ;;  %vm3118_vm3 = vcmp.eq.s32.totalorder %v11628_v4, 1  ;;  %11629 = vst [vmem:[#allocation235_spill] sm:$0xff] %v9426_v44  ;;  %11630 = vst [vmem:[#allocation236_spill] sm:$0xff] %v9428_v15  ;;  %v11631_v37 = vld [vmem:[#allocation104_spill] sm:$0xff]  ;;  %4110 = vperm.xlu0 %4514, %v3928_v9  }
 0x40c   : > { %v9431_v11 = vadd.f32 %v3179_v21, %v8847_v51  ;;  %v3181_v22 = vsel %vm3114_vm13, %v9297_v52, 0.0  ;;  %v3184_v56 = vsel %vm3117_vm14, %v9297_v52, 0.0  ;;  %vm3121_vm4 = vcmp.eq.s32.totalorder %v11631_v37, 1  ;;  %v11632_v15 = vld [vmem:[#allocation105_spill] sm:$0xff]  ;;  %v11638_v37 = vld [vmem:[#allocation112_spill] sm:$0xff]  ;;  %s4391_s17 = sshll.u32 %s9546_s4, 4  ;;  %s10231_s17 = int_to_ptr.vmem [resolvable:$true] %s4391_s17 }
 0x40d   : > { %v9441_v44 = vadd.f32 %v3182_v30, %v8898_v18  ;;  %vm3120_vm5 = vcmp.eq.s32.totalorder %v11632_v15, 1  ;;  %v9447_v51 = vld [vmem:[%s10279_s1 + $0x6] ss:$0 sm:$0xff]  ;;  %v3931_v21 = vsel %vm3868_vm15, 1, %v10973_v53  ;;  %v3930_v60 = vsel %vm3867_vm0, 1, %v10973_v53  ;;  %s4746_s25 = scalar_lea.vmem %s10231_s17, 8064 }
 0x40e   : > { %v3183_v58 = vsel %vm3116_vm1, %v9297_v52, 0.0  ;;  %v3186_v18 = vsel %vm3119_vm2, %v9297_v52, 0.0  ;;  %v3185_v15 = vsel %vm3118_vm3, %v9297_v52, 0.0  ;;  %vm3612_vm6 = vcmp.eq.s32.totalorder %v11633_v10, 1  ;;  %v9472_v19 = vpop.permute.xlu1 %3607  ;;  %v9474_v31 = vpop.permute.xlu0 %3604  ;;  %v11637_v4 = vld [vmem:[#allocation109_spill] sm:$0xff]  ;;  %4119 = vperm.xlu1 %4515, %v3931_v21   ;;  %p4747_p11 = scmp.ne.s32.totalorder %s10231_s17, %s4746_s25  ;;  %s4750_s28 = sshll.u32 %s4811_s26, 4  ;;  %s4751_s28 = int_to_ptr.vmem [resolvable:$false] %s4750_s28 }
 0x40f   : > { %v9465_v9 = vadd.f32 %v3181_v22, %v8872_v2  ;;  %v9468_v53 = vadd.f32 %v3184_v56, %v8912_v50  ;;  %v3188_v30 = vsel %vm3121_vm4, %v9297_v52, 0.0  ;;  %vm3123_vm7 = vcmp.eq.s32.totalorder %v11634_v63, 1  ;;  %11635 = vst [vmem:[#allocation237_spill] sm:$0xff] %v9472_v19  ;;  %11636 = vst [vmem:[#allocation122_spill] sm:$0xff] %v9474_v31  ;;  %v11639_v2 = vld [vmem:[#allocation113_spill] sm:$0xff]  ;;  %4116 = vperm.xlu0 %4514, %v3930_v60   ;;  %s4752_s29 = scalar_lea.vmem %s4751_s28, 16128  ;;  %p4753_p0 = scmp.lt.s32.totalorder %s10231_s17, %s4751_s28 }
 0x410   : > { %v3187_v20 = vsel %vm3120_vm5, %v9297_v52, 0.0  ;;  %vm3122_vm8 = vcmp.eq.s32.totalorder %v11637_v4, 1  ;;  %vm3125_vm9 = vcmp.eq.s32.totalorder %v11638_v37, 1  ;;  %vm3124_vm10 = vcmp.eq.s32.totalorder %v11639_v2, 1  ;;  %v11641_v60 = vld [vmem:[#allocation153_spill] sm:$0xff]  ;;  %p4748_p12 = pnand %p4747_p11, %p4872_p5  ;;  %p4754_p1 = scmp.lt.s32.totalorder %s4752_s29, %s4746_s25 }
 0x411   : > { %v9481_v50 = vadd.f32 %v3183_v58, %v8881_v34  ;;  %v9484_v22 = vadd.f32 %v3186_v18, %v8932_v7  ;;  %v9487_v56 = vadd.f32 %v3185_v15, %v8906_v62  ;;  %v3679_v63 = vsel %vm3612_vm6, %v9447_v51, 0.0  ;;  %v11640_v34 = vld [vmem:[#allocation72_spill] sm:$0xff]  ;;  %v9505_v62 = vld [vmem:[%s10279_s1 + $0x7] ss:$0 sm:$0xff] }
 0x412   : > { %v9497_v19 = vadd.f32 %v3188_v30, %v8943_v59  ;;  %v3190_v21 = vsel %vm3123_vm7, %v9297_v52, 0.0  ;;  %vm3613_vm11 = vcmp.eq.s32.totalorder %v11640_v34, 1  ;;  %vm3614_vm12 = vcmp.eq.s32.totalorder %v11641_v60, 1  ;;  %v3934_v15 = vpop.permute.xlu1 %3933  ;;  %v9519_v10 = vpop.permute.xlu0 %3610  ;;  %v11643_v30 = vld [vmem:[#allocation116_spill] sm:$0xff]  ;;  %v11644_v34 = vld [vmem:[#allocation117_spill] sm:$0xff]  ;;  %p4749_p13 = pneg %p4748_p12  ;;  %p4755_p2 = por %p4754_p1, %p4753_p0 }
 0x413   : > { %v9508_v7 = vadd.f32 %v3187_v20, %v8915_v16  ;;  %v3189_v58 = vsel %vm3122_vm8, %v9297_v52, 0.0  ;;  %v3192_v59 = vsel %vm3125_vm9, %v9297_v52, 0.0  ;;  %v3191_v18 = vsel %vm3124_vm10, %v9297_v52, 0.0  ;;  %11642 = vst [vmem:[#allocation238_spill] sm:$0xff] %v9519_v10  ;;  %v11645_v10 = vld [vmem:[#allocation152_spill] sm:$0xff] }
 0x414   : > { %vm3127_vm13 = vcmp.eq.s32.totalorder %v11643_v30, 1  ;;  %vm3126_vm14 = vcmp.eq.s32.totalorder %v11644_v34, 1  ;;  %v3742_v16 = vadd.f32 %v3679_v63, %v9337_v38  ;;  %vm4121_vm15 = vcmp.eq.s32.totalorder %v3934_v15, 1  ;;  %v11646_v30 = vld [vmem:[#allocation155_spill] sm:$0xff]  ;;  %p4756_p3 = pnand %p4755_p2, %p4749_p13 }
 0x415   : > { %v9525_v20 = vadd.f32 %v3190_v21, %v8974_v23  ;;  %v3680_v4 = vsel %vm3613_vm11, %v9447_v51, 0.0  ;;  %v3681_v37 = vsel %vm3614_vm12, %v9447_v51, 0.0  ;;  %v4188_v2 = vsel %vm4121_vm15, %v9505_v62, 0.0  ;;  %v11647_v23 = vld [vmem:[#allocation101_spill] sm:$0xff] }
 0x416   : > { %v9531_v60 = vadd.f32 %v3189_v58, %v8940_v41  ;;  %vm3615_vm0 = vcmp.eq.s32.totalorder %v11645_v10, 1  ;;  %vm3616_vm1 = vcmp.eq.s32.totalorder %v11646_v30, 1  ;;  %v4251_v34 = vadd.f32 %v4188_v2, %v3742_v16  ;;  %v3940_v31 = vpop.permute.xlu1 %3939  ;;  %v3937_v3 = vpop.permute.xlu0 %3936  ;;  %v11648_v16 = vld [vmem:[#allocation154_spill] sm:$0xff]  ;;  %v11651_v2 = vld [vmem:[#allocation7_spill] sm:$0xff] }
 0x417   : > { %v9536_v38 = vadd.f32 %v3192_v59, %v8982_v26  ;;  %v9539_v63 = vadd.f32 %v3191_v18, %v11647_v23  ;;  %v3194_v21 = vsel %vm3127_vm13, %v9297_v52, 0.0  ;;  %v3193_v15 = vsel %vm3126_vm14, %v9297_v52, 0.0 }
 0x418   : > { %v3743_v41 = vadd.f32 %v3680_v4, %v9377_v49  ;;  %v3744_v58 = vadd.f32 %v3681_v37, %v9345_v35  ;;  %4314 = vst [vmem:[%s9546_s4] sm:$0xff] %v4251_v34  ;;  %vm4123_vm2 = vcmp.eq.s32.totalorder %v3940_v31, 1  ;;  %vm4122_vm3 = vcmp.eq.s32.totalorder %v3937_v3, 1  ;;  %v11649_v49 = vld [vmem:[#allocation157_spill] sm:$0xff]  ;;  %v11650_v31 = vld [vmem:[#allocation120_spill] sm:$0xff] }
 0x419   : > { %v3682_v26 = vsel %vm3615_vm0, %v9447_v51, 0.0  ;;  %v3683_v59 = vsel %vm3616_vm1, %v9447_v51, 0.0  ;;  %v4190_v18 = vsel %vm4123_vm2, %v9505_v62, 0.0  ;;  %v4189_v10 = vsel %vm4122_vm3, %v9505_v62, 0.0 }
 0x41a   : > { %vm3617_vm4 = vcmp.eq.s32.totalorder %v11648_v16, 1  ;;  %vm3618_vm5 = vcmp.eq.s32.totalorder %v11649_v49, 1  ;;  %v4253_v35 = vadd.f32 %v4190_v18, %v3744_v58  ;;  %v4252_v4 = vadd.f32 %v4189_v10, %v3743_v41  ;;  %v3946_v30 = vpop.permute.xlu1 %3945  ;;  %v3943_v34 = vpop.permute.xlu0 %3942  ;;  %v11654_v18 = vld [vmem:[#allocation121_spill] sm:$0xff]  ;;  %v11655_v10 = vld [vmem:[#allocation8_spill] sm:$0xff] }
 0x41b   : > { %v9556_v37 = vadd.f32 %v3194_v21, %v9014_v36  ;;  %v9559_v3 = vadd.f32 %v3193_v15, %v8977_v0  ;;  %vm3129_vm6 = vcmp.eq.s32.totalorder %v11650_v31, 1  ;;  %vm3128_vm7 = vcmp.eq.s32.totalorder %v11651_v2, 1  ;;  %v11652_v15 = vld [vmem:[#allocation156_spill] sm:$0xff] }
 0x41c   : > { %v3745_v23 = vadd.f32 %v3682_v26, %v9385_v57  ;;  %v3746_v43 = vadd.f32 %v3683_v59, %v9380_v47  ;;  %4316 = vst [vmem:[%s9546_s4 + $0x10] sm:$0xff] %v4253_v35  ;;  %4315 = vst [vmem:[%s9546_s4 + $0x8] sm:$0xff] %v4252_v4  ;;  %vm4125_vm8 = vcmp.eq.s32.totalorder %v3946_v30, 1  ;;  %vm4124_vm9 = vcmp.eq.s32.totalorder %v3943_v34, 1  ;;  %v11653_v47 = vld [vmem:[#allocation161_spill] sm:$0xff]  ;;  %v11656_v30 = vld [vmem:[#allocation160_spill] sm:$0xff] }
 0x41d   : > { %v3684_v36 = vsel %vm3617_vm4, %v9447_v51, 0.0  ;;  %v3685_v0 = vsel %vm3618_vm5, %v9447_v51, 0.0  ;;  %v4192_v21 = vsel %vm4125_vm8, %v9505_v62, 0.0  ;;  %v4191_v57 = vsel %vm4124_vm9, %v9505_v62, 0.0 }
 0x41e   : > { %vm3619_vm10 = vcmp.eq.s32.totalorder %v11652_v15, 1  ;;  %vm3620_vm11 = vcmp.eq.s32.totalorder %v11653_v47, 1  ;;  %v4255_v41 = vadd.f32 %v4192_v21, %v3746_v43  ;;  %v4254_v58 = vadd.f32 %v4191_v57, %v3745_v23  ;;  %v3952_v16 = vpop.permute.xlu1 %3951  ;;  %v3949_v49 = vpop.permute.xlu0 %3948 }
 0x41f   : > { %v3196_v26 = vsel %vm3129_vm6, %v9297_v52, 0.0  ;;  %v3195_v59 = vsel %vm3128_vm7, %v9297_v52, 0.0  ;;  %vm3131_vm12 = vcmp.eq.s32.totalorder %v11654_v18, 1  ;;  %vm3130_vm13 = vcmp.eq.s32.totalorder %v11655_v10, 1 }
 0x420   : > { %v3747_v35 = vadd.f32 %v3684_v36, %v9397_v13  ;;  %v3748_v4 = vadd.f32 %v3685_v0, %v9388_v1  ;;  %4318 = vst [vmem:[%s9546_s4 + $0x20] sm:$0xff] %v4255_v41  ;;  %4317 = vst [vmem:[%s9546_s4 + $0x18] sm:$0xff] %v4254_v58  ;;  %vm4127_vm14 = vcmp.eq.s32.totalorder %v3952_v16, 1  ;;  %vm4126_vm15 = vcmp.eq.s32.totalorder %v3949_v49, 1  ;;  %v11657_v1 = vld [vmem:[#allocation167_spill] sm:$0xff] }
 0x421   : > { %v3686_v43 = vsel %vm3619_vm10, %v9447_v51, 0.0  ;;  %v3687_v31 = vsel %vm3620_vm11, %v9447_v51, 0.0  ;;  %v4194_v2 = vsel %vm4127_vm14, %v9505_v62, 0.0  ;;  %v4193_v13 = vsel %vm4126_vm15, %v9505_v62, 0.0 }
 0x422   : > { %vm3621_vm0 = vcmp.eq.s32.totalorder %v11656_v30, 1  ;;  %vm3622_vm1 = vcmp.eq.s32.totalorder %v11657_v1, 1  ;;  %v4257_v34 = vadd.f32 %v4194_v2, %v3748_v4  ;;  %v4256_v23 = vadd.f32 %v4193_v13, %v3747_v35  ;;  %v3958_v15 = vpop.permute.xlu1 %3957  ;;  %v3955_v47 = vpop.permute.xlu0 %3954  ;;  %v11660_v35 = vld [vmem:[#allocation9_spill] sm:$0xff]  ;;  %v11662_v1 = vld [vmem:[#allocation172_spill] sm:$0xff] }
 0x423   : > { %v9600_v36 = vadd.f32 %v3196_v26, %v9022_v45  ;;  %v9603_v0 = vadd.f32 %v3195_v59, %v8985_v40  ;;  %v3198_v21 = vsel %vm3131_vm12, %v9297_v52, 0.0  ;;  %v3197_v57 = vsel %vm3130_vm13, %v9297_v52, 0.0  ;;  %v11658_v59 = vld [vmem:[#allocation166_spill] sm:$0xff]  ;;  %v11661_v4 = vld [vmem:[#allocation41_spill] sm:$0xff] }
 0x424   : > { %v3749_v41 = vadd.f32 %v3686_v43, %v9415_v28  ;;  %v3750_v58 = vadd.f32 %v3687_v31, %v9400_v55  ;;  %4320 = vst [vmem:[%s9546_s4 + $0x30] sm:$0xff] %v4257_v34  ;;  %4319 = vst [vmem:[%s9546_s4 + $0x28] sm:$0xff] %v4256_v23  ;;  %vm4129_vm2 = vcmp.eq.s32.totalorder %v3958_v15, 1  ;;  %vm4128_vm3 = vcmp.eq.s32.totalorder %v3955_v47, 1  ;;  %v11659_v55 = vld [vmem:[#allocation173_spill] sm:$0xff]  ;;  %v11664_v15 = vld [vmem:[#allocation11_spill] sm:$0xff] }
 0x425   : > { %v3688_v40 = vsel %vm3621_vm0, %v9447_v51, 0.0  ;;  %v3689_v45 = vsel %vm3622_vm1, %v9447_v51, 0.0  ;;  %v4196_v26 = vsel %vm4129_vm2, %v9505_v62, 0.0  ;;  %v4195_v28 = vsel %vm4128_vm3, %v9505_v62, 0.0  ;;  %v11665_v47 = vld [vmem:[#allocation48_spill] sm:$0xff] }
 0x426   : > { %vm3623_vm4 = vcmp.eq.s32.totalorder %v11658_v59, 1  ;;  %vm3624_vm5 = vcmp.eq.s32.totalorder %v11659_v55, 1  ;;  %v4259_v18 = vadd.f32 %v4196_v26, %v3750_v58  ;;  %v4258_v10 = vadd.f32 %v4195_v28, %v3749_v41  ;;  %v3964_v43 = vpop.permute.xlu1 %3963  ;;  %v3961_v31 = vpop.permute.xlu0 %3960  ;;  %v11666_v55 = vld [vmem:[#allocation174_spill] sm:$0xff] }
 0x427   : > { %v9626_v16 = vadd.f32 %v3198_v21, %v9034_v12  ;;  %v9629_v49 = vadd.f32 %v3197_v57, %v9017_v33  ;;  %vm3133_vm6 = vcmp.eq.s32.totalorder %v11660_v35, 1  ;;  %vm3132_vm7 = vcmp.eq.s32.totalorder %v11661_v4, 1 }
 0x428   : > { %v3751_v2 = vadd.f32 %v3688_v40, %v9431_v11  ;;  %v3752_v13 = vadd.f32 %v3689_v45, %v9421_v6  ;;  %4322 = vst [vmem:[%s9546_s4 + $0x40] sm:$0xff] %v4259_v18  ;;  %4321 = vst [vmem:[%s9546_s4 + $0x38] sm:$0xff] %v4258_v10  ;;  %vm4131_vm8 = vcmp.eq.s32.totalorder %v3964_v43, 1  ;;  %vm4130_vm9 = vcmp.eq.s32.totalorder %v3961_v31, 1  ;;  %v11663_v6 = vld [vmem:[#allocation175_spill] sm:$0xff] }
 0x429   : > { %v3690_v12 = vsel %vm3623_vm4, %v9447_v51, 0.0  ;;  %v3691_v33 = vsel %vm3624_vm5, %v9447_v51, 0.0  ;;  %v4198_v30 = vsel %vm4131_vm8, %v9505_v62, 0.0  ;;  %v4197_v11 = vsel %vm4130_vm9, %v9505_v62, 0.0 }
 0x42a   : > { %vm3625_vm10 = vcmp.eq.s32.totalorder %v11662_v1, 1  ;;  %vm3626_vm11 = vcmp.eq.s32.totalorder %v11663_v6, 1  ;;  %v4261_v34 = vadd.f32 %v4198_v30, %v3752_v13  ;;  %v4260_v23 = vadd.f32 %v4197_v11, %v3751_v2  ;;  %v3970_v41 = vpop.permute.xlu1 %3969  ;;  %v3967_v58 = vpop.permute.xlu0 %3966  ;;  %v11668_v11 = vld [vmem:[#allocation176_spill] sm:$0xff] }
 0x42b   : > { %v3200_v21 = vsel %vm3133_vm6, %v9297_v52, 0.0  ;;  %v3199_v57 = vsel %vm3132_vm7, %v9297_v52, 0.0  ;;  %vm3135_vm12 = vcmp.eq.s32.totalorder %v11664_v15, 1  ;;  %vm3134_vm13 = vcmp.eq.s32.totalorder %v11665_v47, 1  ;;  %v11672_v15 = vld [vmem:[#allocation44_spill] sm:$0xff]  ;;  %v11673_v47 = vld [vmem:[#allocation50_spill] sm:$0xff] }
 0x42c   : > { %v3753_v40 = vadd.f32 %v3690_v12, %v9465_v9  ;;  %v3754_v45 = vadd.f32 %v3691_v33, %v9441_v44  ;;  %4324 = vst [vmem:[%s9546_s4 + $0x50] sm:$0xff] %v4261_v34  ;;  %4323 = vst [vmem:[%s9546_s4 + $0x48] sm:$0xff] %v4260_v23  ;;  %vm4133_vm14 = vcmp.eq.s32.totalorder %v3970_v41, 1  ;;  %vm4132_vm15 = vcmp.eq.s32.totalorder %v3967_v58, 1  ;;  %v11667_v44 = vld [vmem:[#allocation85_spill] sm:$0xff] }
 0x42d   : > { %v3692_v26 = vsel %vm3625_vm10, %v9447_v51, 0.0  ;;  %v3693_v28 = vsel %vm3626_vm11, %v9447_v51, 0.0  ;;  %v4200_v59 = vsel %vm4133_vm14, %v9505_v62, 0.0  ;;  %v4199_v9 = vsel %vm4132_vm15, %v9505_v62, 0.0  ;;  %v11670_v34 = vld [vmem:[#allocation205_spill] sm:$0xff] }
 0x42e   : > { %vm3627_vm0 = vcmp.eq.s32.totalorder %v11666_v55, 1  ;;  %vm3628_vm1 = vcmp.eq.s32.totalorder %v11667_v44, 1  ;;  %v4263_v18 = vadd.f32 %v4200_v59, %v3754_v45  ;;  %v4262_v10 = vadd.f32 %v4199_v9, %v3753_v40  ;;  %v3976_v2 = vpop.permute.xlu1 %3975  ;;  %v3973_v13 = vpop.permute.xlu0 %3972  ;;  %v11674_v9 = vld [vmem:[#allocation92_spill] sm:$0xff] }
 0x42f   : > { %v9670_v35 = vadd.f32 %v3200_v21, %v9056_v17  ;;  %v9673_v4 = vadd.f32 %v3199_v57, %v9025_v32  ;;  %v3202_v43 = vsel %vm3135_vm12, %v9297_v52, 0.0  ;;  %v3201_v31 = vsel %vm3134_vm13, %v9297_v52, 0.0  ;;  %v11671_v21 = vld [vmem:[#allocation202_spill] sm:$0xff] }
 0x430   : > { %v3755_v12 = vadd.f32 %v3692_v26, %v9481_v50  ;;  %v3756_v33 = vadd.f32 %v3693_v28, %v9468_v53  ;;  %4326 = vst [vmem:[%s9546_s4 + $0x60] sm:$0xff] %v4263_v18  ;;  %4325 = vst [vmem:[%s9546_s4 + $0x58] sm:$0xff] %v4262_v10  ;;  %vm4135_vm2 = vcmp.eq.s32.totalorder %v3976_v2, 1  ;;  %vm4134_vm3 = vcmp.eq.s32.totalorder %v3973_v13, 1  ;;  %v11669_v53 = vld [vmem:[#allocation88_spill] sm:$0xff] }
 0x431   : > { %v3694_v32 = vsel %vm3627_vm0, %v9447_v51, 0.0  ;;  %v3695_v17 = vsel %vm3628_vm1, %v9447_v51, 0.0  ;;  %v4202_v30 = vsel %vm4135_vm2, %v9505_v62, 0.0  ;;  %v4201_v50 = vsel %vm4134_vm3, %v9505_v62, 0.0 }
 0x432   : > { %vm3629_vm4 = vcmp.eq.s32.totalorder %v11668_v11, 1  ;;  %vm3630_vm5 = vcmp.eq.s32.totalorder %v11669_v53, 1  ;;  %v4265_v1 = vadd.f32 %v4202_v30, %v3756_v33  ;;  %v4264_v6 = vadd.f32 %v4201_v50, %v3755_v12  ;;  %v3982_v41 = vpop.permute.xlu1 %3981  ;;  %v3979_v58 = vpop.permute.xlu0 %3978  ;;  %v11678_v50 = vld [vmem:[#allocation181_spill] sm:$0xff] }
 0x433   : > { %v9696_v23 = vadd.f32 %v3202_v43, %v11670_v34  ;;  %v9699_v57 = vadd.f32 %v3201_v31, %v11671_v21  ;;  %vm3137_vm6 = vcmp.eq.s32.totalorder %v11672_v15, 1  ;;  %vm3136_vm7 = vcmp.eq.s32.totalorder %v11673_v47, 1  ;;  %v11676_v43 = vld [vmem:[#allocation13_spill] sm:$0xff]  ;;  %v11677_v31 = vld [vmem:[#allocation123_spill] sm:$0xff] }
 0x434   : > { %v3757_v40 = vadd.f32 %v3694_v32, %v9487_v56  ;;  %v3758_v45 = vadd.f32 %v3695_v17, %v9484_v22  ;;  %4328 = vst [vmem:[%s9546_s4 + $0x70] sm:$0xff] %v4265_v1  ;;  %4327 = vst [vmem:[%s9546_s4 + $0x68] sm:$0xff] %v4264_v6  ;;  %vm4137_vm8 = vcmp.eq.s32.totalorder %v3982_v41, 1  ;;  %vm4136_vm9 = vcmp.eq.s32.totalorder %v3979_v58, 1  ;;  %v11675_v22 = vld [vmem:[#allocation89_spill] sm:$0xff]  ;;  %v11680_v1 = vld [vmem:[#allocation207_spill] sm:$0xff] }
 0x435   : > { %v3696_v26 = vsel %vm3629_vm4, %v9447_v51, 0.0  ;;  %v3697_v28 = vsel %vm3630_vm5, %v9447_v51, 0.0  ;;  %v4204_v59 = vsel %vm4137_vm8, %v9505_v62, 0.0  ;;  %v4203_v56 = vsel %vm4136_vm9, %v9505_v62, 0.0  ;;  %v11681_v34 = vld [vmem:[#allocation203_spill] sm:$0xff] }
 0x436   : > { %vm3631_vm10 = vcmp.eq.s32.totalorder %v11674_v9, 1  ;;  %vm3632_vm11 = vcmp.eq.s32.totalorder %v11675_v22, 1  ;;  %v4267_v55 = vadd.f32 %v4204_v59, %v3758_v45  ;;  %v4266_v44 = vadd.f32 %v4203_v56, %v3757_v40  ;;  %v3988_v2 = vpop.permute.xlu1 %3987  ;;  %v3985_v13 = vpop.permute.xlu0 %3984  ;;  %v11682_v56 = vld [vmem:[#allocation184_spill] sm:$0xff] }
 0x437   : > { %v3204_v18 = vsel %vm3137_vm6, %v9297_v52, 0.0  ;;  %v3203_v10 = vsel %vm3136_vm7, %v9297_v52, 0.0  ;;  %vm3139_vm12 = vcmp.eq.s32.totalorder %v11676_v43, 1  ;;  %vm3138_vm13 = vcmp.eq.s32.totalorder %v11677_v31, 1  ;;  %v11686_v43 = vld [vmem:[#allocation45_spill] sm:$0xff]  ;;  %v11687_v31 = vld [vmem:[#allocation15_spill] sm:$0xff] }
 0x438   : > { %v3759_v12 = vadd.f32 %v3696_v26, %v9508_v7  ;;  %v3760_v33 = vadd.f32 %v3697_v28, %v9497_v19  ;;  %4330 = vst [vmem:[%s9546_s4 + $0x80] sm:$0xff] %v4267_v55  ;;  %4329 = vst [vmem:[%s9546_s4 + $0x78] sm:$0xff] %v4266_v44  ;;  %vm4139_vm14 = vcmp.eq.s32.totalorder %v3988_v2, 1  ;;  %vm4138_vm15 = vcmp.eq.s32.totalorder %v3985_v13, 1  ;;  %v11679_v19 = vld [vmem:[#allocation187_spill] sm:$0xff]  ;;  %v11684_v55 = vld [vmem:[#allocation114_spill] sm:$0xff] }
 0x439   : > { %v3698_v32 = vsel %vm3631_vm10, %v9447_v51, 0.0  ;;  %v3699_v17 = vsel %vm3632_vm11, %v9447_v51, 0.0  ;;  %v4206_v30 = vsel %vm4139_vm14, %v9505_v62, 0.0  ;;  %v4205_v7 = vsel %vm4138_vm15, %v9505_v62, 0.0 }
 0x43a   : > { %vm3633_vm0 = vcmp.eq.s32.totalorder %v11678_v50, 1  ;;  %vm3634_vm1 = vcmp.eq.s32.totalorder %v11679_v19, 1  ;;  %v4269_v11 = vadd.f32 %v4206_v30, %v3760_v33  ;;  %v4268_v53 = vadd.f32 %v4205_v7, %v3759_v12  ;;  %v3994_v41 = vpop.permute.xlu1 %3993  ;;  %v3991_v58 = vpop.permute.xlu0 %3990  ;;  %v11688_v7 = vld [vmem:[#allocation188_spill] sm:$0xff] }
 0x43b   : > { %v9740_v6 = vadd.f32 %v3204_v18, %v11680_v1  ;;  %v9743_v21 = vadd.f32 %v3203_v10, %v11681_v34  ;;  %v3206_v15 = vsel %vm3139_vm12, %v9297_v52, 0.0  ;;  %v3205_v47 = vsel %vm3138_vm13, %v9297_v52, 0.0  ;;  %v11685_v18 = vld [vmem:[#allocation206_spill] sm:$0xff]  ;;  %v11691_v34 = vld [vmem:[#allocation49_spill] sm:$0xff] }
 0x43c   : > { %v3761_v40 = vadd.f32 %v3698_v32, %v9531_v60  ;;  %v3762_v45 = vadd.f32 %v3699_v17, %v9525_v20  ;;  %4332 = vst [vmem:[%s9546_s4 + $0x90] sm:$0xff] %v4269_v11  ;;  %4331 = vst [vmem:[%s9546_s4 + $0x88] sm:$0xff] %v4268_v53  ;;  %vm4141_vm2 = vcmp.eq.s32.totalorder %v3994_v41, 1  ;;  %vm4140_vm3 = vcmp.eq.s32.totalorder %v3991_v58, 1  ;;  %v11683_v20 = vld [vmem:[#allocation191_spill] sm:$0xff]  ;;  %v11690_v1 = vld [vmem:[#allocation54_spill] sm:$0xff] }
 0x43d   : > { %v3700_v26 = vsel %vm3633_vm0, %v9447_v51, 0.0  ;;  %v3701_v28 = vsel %vm3634_vm1, %v9447_v51, 0.0  ;;  %v4208_v59 = vsel %vm4141_vm2, %v9505_v62, 0.0  ;;  %v4207_v60 = vsel %vm4140_vm3, %v9505_v62, 0.0 }
 0x43e   : > { %vm3635_vm4 = vcmp.eq.s32.totalorder %v11682_v56, 1  ;;  %vm3636_vm5 = vcmp.eq.s32.totalorder %v11683_v20, 1  ;;  %v4271_v9 = vadd.f32 %v4208_v59, %v3762_v45  ;;  %v4270_v22 = vadd.f32 %v4207_v60, %v3761_v40  ;;  %v4000_v2 = vpop.permute.xlu1 %3999  ;;  %v3997_v13 = vpop.permute.xlu0 %3996  ;;  %v11694_v56 = vld [vmem:[#allocation211_spill] sm:$0xff] }
 0x43f   : > { %v9766_v44 = vadd.f32 %v3206_v15, %v11684_v55  ;;  %v9769_v10 = vadd.f32 %v3205_v47, %v11685_v18  ;;  %vm3141_vm6 = vcmp.eq.s32.totalorder %v11686_v43, 1  ;;  %vm3140_vm7 = vcmp.eq.s32.totalorder %v11687_v31, 1 }
 0x440   : > { %v3763_v12 = vadd.f32 %v3700_v26, %v9539_v63  ;;  %v3764_v33 = vadd.f32 %v3701_v28, %v9536_v38  ;;  %4334 = vst [vmem:[%s9546_s4 + $0xa0] sm:$0xff] %v4271_v9  ;;  %4333 = vst [vmem:[%s9546_s4 + $0x98] sm:$0xff] %v4270_v22  ;;  %vm4143_vm8 = vcmp.eq.s32.totalorder %v4000_v2, 1  ;;  %vm4142_vm9 = vcmp.eq.s32.totalorder %v3997_v13, 1  ;;  %v11689_v38 = vld [vmem:[#allocation95_spill] sm:$0xff]  ;;  %v11692_v28 = vld [vmem:[#allocation192_spill] sm:$0xff] }
 0x441   : > { %v3702_v32 = vsel %vm3635_vm4, %v9447_v51, 0.0  ;;  %v3703_v17 = vsel %vm3636_vm5, %v9447_v51, 0.0  ;;  %v4210_v30 = vsel %vm4143_vm8, %v9505_v62, 0.0  ;;  %v4209_v63 = vsel %vm4142_vm9, %v9505_v62, 0.0  ;;  %v11695_v9 = vld [vmem:[#allocation208_spill] sm:$0xff] }
 0x442   : > { %vm3637_vm10 = vcmp.eq.s32.totalorder %v11688_v7, 1  ;;  %vm3638_vm11 = vcmp.eq.s32.totalorder %v11689_v38, 1  ;;  %v4273_v50 = vadd.f32 %v4210_v30, %v3764_v33  ;;  %v4272_v19 = vadd.f32 %v4209_v63, %v3763_v12  ;;  %v4006_v15 = vpop.permute.xlu1 %4005  ;;  %v4003_v47 = vpop.permute.xlu0 %4002  ;;  %v11698_v38 = vld [vmem:[#allocation210_spill] sm:$0xff] }
 0x443   : > { %v3208_v11 = vsel %vm3141_vm6, %v9297_v52, 0.0  ;;  %v3207_v53 = vsel %vm3140_vm7, %v9297_v52, 0.0  ;;  %vm3143_vm12 = vcmp.eq.s32.totalorder %v11690_v1, 1  ;;  %vm3142_vm13 = vcmp.eq.s32.totalorder %v11691_v34, 1 }
 0x444   : > { %v3765_v41 = vadd.f32 %v3702_v32, %v9559_v3  ;;  %v3766_v58 = vadd.f32 %v3703_v17, %v9556_v37  ;;  %4336 = vst [vmem:[%s9546_s4 + $0xb0] sm:$0xff] %v4273_v50  ;;  %4335 = vst [vmem:[%s9546_s4 + $0xa8] sm:$0xff] %v4272_v19  ;;  %vm4145_vm14 = vcmp.eq.s32.totalorder %v4006_v15, 1  ;;  %vm4144_vm15 = vcmp.eq.s32.totalorder %v4003_v47, 1  ;;  %v11693_v37 = vld [vmem:[#allocation195_spill] sm:$0xff]  ;;  %v11699_v19 = vld [vmem:[#allocation125_spill] sm:$0xff] }
 0x445   : > { %v3704_v40 = vsel %vm3637_vm10, %v9447_v51, 0.0  ;;  %v3705_v45 = vsel %vm3638_vm11, %v9447_v51, 0.0  ;;  %v4212_v26 = vsel %vm4145_vm14, %v9505_v62, 0.0  ;;  %v4211_v3 = vsel %vm4144_vm15, %v9505_v62, 0.0  ;;  %v11696_v17 = vld [vmem:[#allocation99_spill] sm:$0xff] }
 0x446   : > { %vm3639_vm0 = vcmp.eq.s32.totalorder %v11692_v28, 1  ;;  %vm3640_vm1 = vcmp.eq.s32.totalorder %v11693_v37, 1  ;;  %v4275_v59 = vadd.f32 %v4212_v26, %v3766_v58  ;;  %v4274_v60 = vadd.f32 %v4211_v3, %v3765_v41  ;;  %v4012_v43 = vpop.permute.xlu1 %4011  ;;  %v4009_v31 = vpop.permute.xlu0 %4008  ;;  %v11701_v58 = vld [vmem:[#allocation196_spill] sm:$0xff]  ;;  %v11703_v28 = vld [vmem:[#allocation61_spill] sm:$0xff]  ;;  %v11704_v37 = vld [vmem:[#allocation18_spill] sm:$0xff] }
 0x447   : > { %v9810_v20 = vadd.f32 %v3208_v11, %v11694_v56  ;;  %v9813_v22 = vadd.f32 %v3207_v53, %v11695_v9  ;;  %v3210_v55 = vsel %vm3143_vm12, %v9297_v52, 0.0  ;;  %v3209_v18 = vsel %vm3142_vm13, %v9297_v52, 0.0  ;;  %v11700_v11 = vld [vmem:[#allocation126_spill] sm:$0xff] }
 0x448   : > { %v3767_v2 = vadd.f32 %v3704_v40, %v9603_v0  ;;  %v3768_v13 = vadd.f32 %v3705_v45, %v9600_v36  ;;  %4338 = vst [vmem:[%s9546_s4 + $0xc0] sm:$0xff] %v4275_v59  ;;  %4337 = vst [vmem:[%s9546_s4 + $0xb8] sm:$0xff] %v4274_v60  ;;  %vm4147_vm2 = vcmp.eq.s32.totalorder %v4012_v43, 1  ;;  %vm4146_vm3 = vcmp.eq.s32.totalorder %v4009_v31, 1  ;;  %v11697_v36 = vld [vmem:[#allocation197_spill] sm:$0xff]  ;;  %v11705_v31 = vld [vmem:[#allocation198_spill] sm:$0xff] }
 0x449   : > { %v3706_v12 = vsel %vm3639_vm0, %v9447_v51, 0.0  ;;  %v3707_v33 = vsel %vm3640_vm1, %v9447_v51, 0.0  ;;  %v4214_v32 = vsel %vm4147_vm2, %v9505_v62, 0.0  ;;  %v4213_v0 = vsel %vm4146_vm3, %v9505_v62, 0.0 }
 0x44a   : > { %vm3641_vm4 = vcmp.eq.s32.totalorder %v11696_v17, 1  ;;  %vm3642_vm5 = vcmp.eq.s32.totalorder %v11697_v36, 1  ;;  %v4277_v30 = vadd.f32 %v4214_v32, %v3768_v13  ;;  %v4276_v63 = vadd.f32 %v4213_v0, %v3767_v2  ;;  %v4018_v53 = vpop.permute.xlu1 %4017  ;;  %v4015_v1 = vpop.permute.xlu0 %4014 }
 0x44b   : > { %v9836_v7 = vadd.f32 %v3210_v55, %v9152_v61  ;;  %v9839_v50 = vadd.f32 %v3209_v18, %v11698_v38  ;;  %vm3145_vm6 = vcmp.eq.s32.totalorder %v11699_v19, 1  ;;  %vm3144_vm7 = vcmp.eq.s32.totalorder %v11700_v11, 1 }
 0x44c   : > { %v3769_v34 = vadd.f32 %v3706_v12, %v9629_v49  ;;  %v3770_v15 = vadd.f32 %v3707_v33, %v9626_v16  ;;  %4340 = vst [vmem:[%s9546_s4 + $0xd0] sm:$0xff] %v4277_v30  ;;  %4339 = vst [vmem:[%s9546_s4 + $0xc8] sm:$0xff] %v4276_v63  ;;  %vm4149_vm8 = vcmp.eq.s32.totalorder %v4018_v53, 1  ;;  %vm4148_vm9 = vcmp.eq.s32.totalorder %v4015_v1, 1  ;;  %v11702_v16 = vld [vmem:[#allocation199_spill] sm:$0xff]  ;;  %v11707_v33 = vld [vmem:[#allocation212_spill] sm:$0xff] }
 0x44d   : > { %v3708_v61 = vsel %vm3641_vm4, %v9447_v51, 0.0  ;;  %v3709_v47 = vsel %vm3642_vm5, %v9447_v51, 0.0  ;;  %v4216_v41 = vsel %vm4149_vm8, %v9505_v62, 0.0  ;;  %v4215_v49 = vsel %vm4148_vm9, %v9505_v62, 0.0  ;;  %v11708_v53 = vld [vmem:[#allocation200_spill] sm:$0xff] }
 0x44e   : > { %vm3643_vm10 = vcmp.eq.s32.totalorder %v11701_v58, 1  ;;  %vm3644_vm11 = vcmp.eq.s32.totalorder %v11702_v16, 1  ;;  %v4279_v40 = vadd.f32 %v4216_v41, %v3770_v15  ;;  %v4278_v45 = vadd.f32 %v4215_v49, %v3769_v34  ;;  %v4024_v59 = vpop.permute.xlu1 %4023  ;;  %v4021_v60 = vpop.permute.xlu0 %4020  ;;  %v11711_v41 = vld [vmem:[#allocation62_spill] sm:$0xff] }
 0x44f   : > { %v3212_v26 = vsel %vm3145_vm6, %v9297_v52, 0.0  ;;  %v3211_v3 = vsel %vm3144_vm7, %v9297_v52, 0.0  ;;  %vm3147_vm12 = vcmp.eq.s32.totalorder %v11703_v28, 1  ;;  %vm3146_vm13 = vcmp.eq.s32.totalorder %v11704_v37, 1 }
 0x450   : > { %v3771_v56 = vadd.f32 %v3708_v61, %v9673_v4  ;;  %v3772_v9 = vadd.f32 %v3709_v47, %v9670_v35  ;;  %4342 = vst [vmem:[%s9546_s4 + $0xe0] sm:$0xff] %v4279_v40  ;;  %4341 = vst [vmem:[%s9546_s4 + $0xd8] sm:$0xff] %v4278_v45  ;;  %vm4151_vm14 = vcmp.eq.s32.totalorder %v4024_v59, 1  ;;  %vm4150_vm15 = vcmp.eq.s32.totalorder %v4021_v60, 1  ;;  %v11706_v35 = vld [vmem:[#allocation201_spill] sm:$0xff]  ;;  %v11710_v47 = vld [vmem:[#allocation130_spill] sm:$0xff] }
 0x451   : > { %v3710_v55 = vsel %vm3643_vm10, %v9447_v51, 0.0  ;;  %v3711_v18 = vsel %vm3644_vm11, %v9447_v51, 0.0  ;;  %v4218_v43 = vsel %vm4151_vm14, %v9505_v62, 0.0  ;;  %v4217_v4 = vsel %vm4150_vm15, %v9505_v62, 0.0  ;;  %v11714_v60 = vld [vmem:[#allocation131_spill] sm:$0xff] }
 0x452   : > { %vm3645_vm0 = vcmp.eq.s32.totalorder %v11705_v31, 1  ;;  %vm3646_vm1 = vcmp.eq.s32.totalorder %v11706_v35, 1  ;;  %v4281_v2 = vadd.f32 %v4218_v43, %v3772_v9  ;;  %v4280_v13 = vadd.f32 %v4217_v4, %v3771_v56  ;;  %v4030_v36 = vpop.permute.xlu1 %4029  ;;  %v4027_v30 = vpop.permute.xlu0 %4026  ;;  %v11715_v56 = vld [vmem:[#allocation132_spill] sm:$0xff] }
 0x453   : > { %v9880_v12 = vadd.f32 %v3212_v26, %v9160_v5  ;;  %v9883_v32 = vadd.f32 %v3211_v3, %v11707_v33  ;;  %v3214_v0 = vsel %vm3147_vm12, %v9297_v52, 0.0  ;;  %v3213_v17 = vsel %vm3146_vm13, %v9297_v52, 0.0  ;;  %v11712_v26 = vld [vmem:[#allocation110_spill] sm:$0xff] }
 0x454   : > { %v3773_v63 = vadd.f32 %v3710_v55, %v9699_v57  ;;  %v3774_v38 = vadd.f32 %v3711_v18, %v9696_v23  ;;  %4344 = vst [vmem:[%s9546_s4 + $0xf0] sm:$0xff] %v4281_v2  ;;  %4343 = vst [vmem:[%s9546_s4 + $0xe8] sm:$0xff] %v4280_v13  ;;  %vm4153_vm2 = vcmp.eq.s32.totalorder %v4030_v36, 1  ;;  %vm4152_vm3 = vcmp.eq.s32.totalorder %v4027_v30, 1  ;;  %v11709_v23 = vld [vmem:[#allocation106_spill] sm:$0xff]  ;;  %v11716_v2 = vld [vmem:[#allocation204_spill] sm:$0xff] }
 0x455   : > { %v3712_v5 = vsel %vm3645_vm0, %v9447_v51, 0.0  ;;  %v3713_v19 = vsel %vm3646_vm1, %v9447_v51, 0.0  ;;  %v4220_v11 = vsel %vm4153_vm2, %v9505_v62, 0.0  ;;  %v4219_v57 = vsel %vm4152_vm3, %v9505_v62, 0.0 }
 0x456   : > { %vm3647_vm4 = vcmp.eq.s32.totalorder %v11708_v53, 1  ;;  %vm3648_vm5 = vcmp.eq.s32.totalorder %v11709_v23, 1  ;;  %v4283_v1 = vadd.f32 %v4220_v11, %v3774_v38  ;;  %v4282_v34 = vadd.f32 %v4219_v57, %v3773_v63  ;;  %v4036_v49 = vpop.permute.xlu1 %4035  ;;  %v4033_v58 = vpop.permute.xlu0 %4032  ;;  %v11718_v11 = vld [vmem:[#allocation111_spill] sm:$0xff] }
 0x457   : > { %v9906_v15 = vadd.f32 %v3214_v0, %v9192_v48  ;;  %v9909_v61 = vadd.f32 %v3213_v17, %v9155_v42  ;;  %vm3149_vm6 = vcmp.eq.s32.totalorder %v11710_v47, 1  ;;  %vm3148_vm7 = vcmp.eq.s32.totalorder %v11711_v41, 1  ;;  %v11721_v47 = vld [vmem:[#allocation65_spill] sm:$0xff] }
 0x458   : > { %v3775_v16 = vadd.f32 %v3712_v5, %v9743_v21  ;;  %v3776_v40 = vadd.f32 %v3713_v19, %v9740_v6  ;;  %4346 = vst [vmem:[%s9546_s4 + $0x100] sm:$0xff] %v4283_v1  ;;  %4345 = vst [vmem:[%s9546_s4 + $0xf8] sm:$0xff] %v4282_v34  ;;  %vm4155_vm8 = vcmp.eq.s32.totalorder %v4036_v49, 1  ;;  %vm4154_vm9 = vcmp.eq.s32.totalorder %v4033_v58, 1  ;;  %v11713_v6 = vld [vmem:[#allocation107_spill] sm:$0xff]  ;;  %v11720_v34 = vld [vmem:[#allocation10_spill] sm:$0xff] }
 0x459   : > { %v3714_v48 = vsel %vm3647_vm4, %v9447_v51, 0.0  ;;  %v3715_v42 = vsel %vm3648_vm5, %v9447_v51, 0.0  ;;  %v4222_v45 = vsel %vm4155_vm8, %v9505_v62, 0.0  ;;  %v4221_v21 = vsel %vm4154_vm9, %v9505_v62, 0.0 }
 0x45a   : > { %vm3649_vm10 = vcmp.eq.s32.totalorder %v11712_v26, 1  ;;  %vm3650_vm11 = vcmp.eq.s32.totalorder %v11713_v6, 1  ;;  %v4285_v3 = vadd.f32 %v4222_v45, %v3776_v40  ;;  %v4284_v28 = vadd.f32 %v4221_v21, %v3775_v16  ;;  %v4042_v9 = vpop.permute.xlu1 %4041  ;;  %v4039_v55 = vpop.permute.xlu0 %4038  ;;  %v10000_v21 = vld [vmem:[%s10279_s1 + $0x5] ss:$0 sm:$0xff] }
 0x45b   : > { %v3216_v37 = vsel %vm3149_vm6, %v9297_v52, 0.0  ;;  %v3215_v59 = vsel %vm3148_vm7, %v9297_v52, 0.0  ;;  %vm3151_vm12 = vcmp.eq.s32.totalorder %v11714_v60, 1  ;;  %vm3150_vm13 = vcmp.eq.s32.totalorder %v11715_v56, 1 }
 0x45c   : > { %v3777_v18 = vadd.f32 %v3714_v48, %v9769_v10  ;;  %v3778_v43 = vadd.f32 %v3715_v42, %v9766_v44  ;;  %4348 = vst [vmem:[%s9546_s4 + $0x110] sm:$0xff] %v4285_v3  ;;  %4347 = vst [vmem:[%s9546_s4 + $0x108] sm:$0xff] %v4284_v28  ;;  %vm4157_vm14 = vcmp.eq.s32.totalorder %v4042_v9, 1  ;;  %vm4156_vm15 = vcmp.eq.s32.totalorder %v4039_v55, 1  ;;  %v11717_v44 = vld [vmem:[#allocation209_spill] sm:$0xff]  ;;  %v11724_v3 = vld [vmem:[#allocation136_spill] sm:$0xff] }
 0x45d   : > { %v3716_v4 = vsel %vm3649_vm10, %v9447_v51, 0.0  ;;  %v3717_v31 = vsel %vm3650_vm11, %v9447_v51, 0.0  ;;  %v4224_v35 = vsel %vm4157_vm14, %v9505_v62, 0.0  ;;  %v4223_v10 = vsel %vm4156_vm15, %v9505_v62, 0.0  ;;  %v11722_v48 = vld [vmem:[#allocation213_spill] sm:$0xff]  ;;  %v11725_v28 = vld [vmem:[#allocation66_spill] sm:$0xff] }
 0x45e   : > { %vm3651_vm0 = vcmp.eq.s32.totalorder %v11716_v2, 1  ;;  %vm3652_vm1 = vcmp.eq.s32.totalorder %v11717_v44, 1  ;;  %v4287_v13 = vadd.f32 %v4224_v35, %v3778_v43  ;;  %v4286_v33 = vadd.f32 %v4223_v10, %v3777_v18  ;;  %v4048_v63 = vpop.permute.xlu1 %4047  ;;  %v4045_v38 = vpop.permute.xlu0 %4044  ;;  %v11726_v43 = vld [vmem:[#allocation115_spill] sm:$0xff] }
 0x45f   : > { %v9950_v0 = vadd.f32 %v3216_v37, %v9200_v46  ;;  %v9953_v17 = vadd.f32 %v3215_v59, %v9163_v54  ;;  %v3218_v36 = vsel %vm3151_vm12, %v9297_v52, 0.0  ;;  %v3217_v30 = vsel %vm3150_vm13, %v9297_v52, 0.0 }
 0x460   : > { %v3779_v5 = vadd.f32 %v3716_v4, %v9813_v22  ;;  %v3780_v19 = vadd.f32 %v3717_v31, %v9810_v20  ;;  %4350 = vst [vmem:[%s9546_s4 + $0x120] sm:$0xff] %v4287_v13  ;;  %4349 = vst [vmem:[%s9546_s4 + $0x118] sm:$0xff] %v4286_v33  ;;  %vm4159_vm2 = vcmp.eq.s32.totalorder %v4048_v63, 1  ;;  %vm4158_vm3 = vcmp.eq.s32.totalorder %v4045_v38, 1  ;;  %v11719_v20 = vld [vmem:[#allocation214_spill] sm:$0xff]  ;;  %v11727_v63 = vld [vmem:[#allocation215_spill] sm:$0xff] }
 0x461   : > { %v3718_v54 = vsel %vm3651_vm0, %v9447_v51, 0.0  ;;  %v3719_v46 = vsel %vm3652_vm1, %v9447_v51, 0.0  ;;  %v4226_v52 = vsel %vm4159_vm2, %v9505_v62, 0.0  ;;  %v4225_v22 = vsel %vm4158_vm3, %v9505_v62, 0.0 }
 0x462   : > { %vm3653_vm4 = vcmp.eq.s32.totalorder %v11718_v11, 1  ;;  %vm3654_vm5 = vcmp.eq.s32.totalorder %v11719_v20, 1  ;;  %v4289_v57 = vadd.f32 %v4226_v52, %v3780_v19  ;;  %v4288_v53 = vadd.f32 %v4225_v22, %v3779_v5  ;;  %v4054_v41 = vpop.permute.xlu1 %4053  ;;  %v4051_v49 = vpop.permute.xlu0 %4050  ;;  %v11729_v19 = vld [vmem:[#allocation219_spill] sm:$0xff]  ;;  %v11732_v22 = vld [vmem:[#allocation140_spill] sm:$0xff] }
 0x463   : > { %v9976_v23 = vadd.f32 %v3218_v36, %v9206_v29  ;;  %v9979_v1 = vadd.f32 %v3217_v30, %v9195_v14  ;;  %vm3153_vm6 = vcmp.eq.s32.totalorder %v11720_v34, 1  ;;  %vm3152_vm7 = vcmp.eq.s32.totalorder %v11721_v47, 1 }
 0x464   : > { %v3781_v58 = vadd.f32 %v3718_v54, %v9839_v50  ;;  %v3782_v16 = vadd.f32 %v3719_v46, %v9836_v7  ;;  %4352 = vst [vmem:[%s9546_s4 + $0x130] sm:$0xff] %v4289_v57  ;;  %4351 = vst [vmem:[%s9546_s4 + $0x128] sm:$0xff] %v4288_v53  ;;  %vm4161_vm8 = vcmp.eq.s32.totalorder %v4054_v41, 1  ;;  %vm4160_vm9 = vcmp.eq.s32.totalorder %v4051_v49, 1  ;;  %v11723_v7 = vld [vmem:[#allocation118_spill] sm:$0xff]  ;;  %v11730_v46 = vld [vmem:[#allocation216_spill] sm:$0xff] }
 0x465   : > { %v3720_v29 = vsel %vm3653_vm4, %v9447_v51, 0.0  ;;  %v3721_v14 = vsel %vm3654_vm5, %v9447_v51, 0.0  ;;  %v4228_v40 = vsel %vm4161_vm8, %v9505_v62, 0.0  ;;  %v4227_v50 = vsel %vm4160_vm9, %v9505_v62, 0.0  ;;  %v11733_v49 = vld [vmem:[#allocation119_spill] sm:$0xff] }
 0x466   : > { %vm3655_vm10 = vcmp.eq.s32.totalorder %v11722_v48, 1  ;;  %vm3656_vm11 = vcmp.eq.s32.totalorder %v11723_v7, 1  ;;  %v4291_v42 = vadd.f32 %v4228_v40, %v3782_v16  ;;  %v4290_v45 = vadd.f32 %v4227_v50, %v3781_v58  ;;  %v4060_v37 = vpop.permute.xlu1 %4059  ;;  %v4057_v59 = vpop.permute.xlu0 %4056 }
 0x467   : > { %v3220_v26 = vsel %vm3153_vm6, %v10000_v21, 0.0  ;;  %v3219_v6 = vsel %vm3152_vm7, %v10000_v21, 0.0  ;;  %vm3155_vm12 = vcmp.eq.s32.totalorder %v11724_v3, 1  ;;  %vm3154_vm13 = vcmp.eq.s32.totalorder %v11725_v28, 1 }
 0x468   : > { %v3783_v60 = vadd.f32 %v3720_v29, %v9883_v32  ;;  %v3784_v56 = vadd.f32 %v3721_v14, %v9880_v12  ;;  %4354 = vst [vmem:[%s9546_s4 + $0x140] sm:$0xff] %v4291_v42  ;;  %4353 = vst [vmem:[%s9546_s4 + $0x138] sm:$0xff] %v4290_v45  ;;  %vm4163_vm14 = vcmp.eq.s32.totalorder %v4060_v37, 1  ;;  %vm4162_vm15 = vcmp.eq.s32.totalorder %v4057_v59, 1  ;;  %v11735_v14 = vld [vmem:[#allocation144_spill] sm:$0xff]  ;;  %v11737_v37 = vld [vmem:[#allocation221_spill] sm:$0xff] }
 0x469   : > { %v3722_v9 = vsel %vm3655_vm10, %v9447_v51, 0.0  ;;  %v3723_v55 = vsel %vm3656_vm11, %v9447_v51, 0.0  ;;  %v4230_v18 = vsel %vm4163_vm14, %v9505_v62, 0.0  ;;  %v4229_v32 = vsel %vm4162_vm15, %v9505_v62, 0.0  ;;  %v10087_v42 = vld [vmem:[%s10279_s1 + $0x6] ss:$0 sm:$0xff] }
 0x46a   : > { %vm3657_vm0 = vcmp.eq.s32.totalorder %v11726_v43, 1  ;;  %vm3658_vm1 = vcmp.eq.s32.totalorder %v9213_v24, 1  ;;  %v4293_v12 = vadd.f32 %v4230_v18, %v3784_v56  ;;  %v4292_v4 = vadd.f32 %v4229_v32, %v3783_v60  ;;  %v4066_v44 = vpop.permute.xlu1 %4065  ;;  %v4063_v13 = vpop.permute.xlu0 %4062  ;;  %v11731_v24 = vld [vmem:[#allocation139_spill] sm:$0xff]  ;;  %v11738_v60 = vld [vmem:[#allocation217_spill] sm:$0xff] }
 0x46b   : > { %v10025_v31 = vadd.f32 %v3220_v26, %v9236_v27  ;;  %v10028_v35 = vadd.f32 %v3219_v6, %v9203_v8  ;;  %v3222_v10 = vsel %vm3155_vm12, %v10000_v21, 0.0  ;;  %v3221_v2 = vsel %vm3154_vm13, %v10000_v21, 0.0  ;;  %v11736_v6 = vld [vmem:[#allocation229_spill] sm:$0xff] }
 0x46c   : > { %v3785_v33 = vadd.f32 %v3722_v9, %v9909_v61  ;;  %v3786_v36 = vadd.f32 %v3723_v55, %v9906_v15  ;;  %4356 = vst [vmem:[%s9546_s4 + $0x150] sm:$0xff] %v4293_v12  ;;  %4355 = vst [vmem:[%s9546_s4 + $0x148] sm:$0xff] %v4292_v4  ;;  %vm4165_vm2 = vcmp.eq.s32.totalorder %v4066_v44, 1  ;;  %vm4164_vm3 = vcmp.eq.s32.totalorder %v4063_v13, 1  ;;  %v11728_v15 = vld [vmem:[#allocation218_spill] sm:$0xff]  ;;  %v11741_v13 = vld [vmem:[#allocation223_spill] sm:$0xff] }
 0x46d   : > { %v3724_v8 = vsel %vm3657_vm0, %v9447_v51, 0.0  ;;  %v3725_v27 = vsel %vm3658_vm1, %v9447_v51, 0.0  ;;  %v4232_v30 = vsel %vm4165_vm2, %v9505_v62, 0.0  ;;  %v4231_v61 = vsel %vm4164_vm3, %v9505_v62, 0.0  ;;  %v10120_v4 = vld [vmem:[%s10279_s1 + $0x7] ss:$0 sm:$0xff] }
 0x46e   : > { %vm3659_vm4 = vcmp.eq.s32.totalorder %v11727_v63, 1  ;;  %vm3660_vm5 = vcmp.eq.s32.totalorder %v11728_v15, 1  ;;  %v4295_v38 = vadd.f32 %v4232_v30, %v3786_v36  ;;  %v4294_v5 = vadd.f32 %v4231_v61, %v3785_v33  ;;  %v4072_v11 = vpop.permute.xlu1 %4071  ;;  %v4069_v20 = vpop.permute.xlu0 %4068  ;;  %v11742_v36 = vld [vmem:[#allocation220_spill] sm:$0xff]  ;;  %v11744_v30 = vld [vmem:[#allocation146_spill] sm:$0xff] }
 0x46f   : > { %v10051_v54 = vadd.f32 %v3222_v10, %v11729_v19  ;;  %v10054_v52 = vadd.f32 %v3221_v2, %v11730_v46  ;;  %vm3157_vm6 = vcmp.eq.s32.totalorder %v11731_v24, 1  ;;  %vm3156_vm7 = vcmp.eq.s32.totalorder %v11732_v22, 1  ;;  %v11739_v10 = vld [vmem:[#allocation228_spill] sm:$0xff]  ;;  %v11745_v24 = vld [vmem:[#allocation231_spill] sm:$0xff] }
 0x470   : > { %v3787_v57 = vadd.f32 %v3724_v8, %v9953_v17  ;;  %v3788_v53 = vadd.f32 %v3725_v27, %v9950_v0  ;;  %4358 = vst [vmem:[%s9546_s4 + $0x160] sm:$0xff] %v4295_v38  ;;  %4357 = vst [vmem:[%s9546_s4 + $0x158] sm:$0xff] %v4294_v5  ;;  %vm4167_vm8 = vcmp.eq.s32.totalorder %v4072_v11, 1  ;;  %vm4166_vm9 = vcmp.eq.s32.totalorder %v4069_v20, 1  ;;  %v11740_v2 = vld [vmem:[#allocation232_spill] sm:$0xff]  ;;  %v11743_v27 = vld [vmem:[#allocation145_spill] sm:$0xff] }
 0x471   : > { %v3726_v34 = vsel %vm3659_vm4, %v9447_v51, 0.0  ;;  %v3727_v47 = vsel %vm3660_vm5, %v9447_v51, 0.0  ;;  %v4234_v41 = vsel %vm4167_vm8, %v9505_v62, 0.0  ;;  %v4233_v17 = vsel %vm4166_vm9, %v9505_v62, 0.0  ;;  %v11734_v51 = vld [vmem:[#allocation143_spill] sm:$0xff] }
 0x472   : > { %vm3661_vm10 = vcmp.eq.s32.totalorder %v11733_v49, 1  ;;  %vm3662_vm11 = vcmp.eq.s32.totalorder %v9283_v39, 1  ;;  %v4297_v0 = vadd.f32 %v4234_v41, %v3788_v53  ;;  %v4296_v58 = vadd.f32 %v4233_v17, %v3787_v57  ;;  %v4078_v40 = vpop.permute.xlu1 %4077  ;;  %v4075_v50 = vpop.permute.xlu0 %4074  ;;  %v11747_v53 = vld [vmem:[#allocation14_spill] sm:$0xff] }
 0x473   : > { %v3224_v16 = vsel %vm3157_vm6, %v10000_v21, 0.0  ;;  %v3223_v29 = vsel %vm3156_vm7, %v10000_v21, 0.0  ;;  %vm3159_vm12 = vcmp.eq.s32.totalorder %v11734_v51, 1  ;;  %vm3158_vm13 = vcmp.eq.s32.totalorder %v11735_v14, 1  ;;  %v11749_v51 = vld [vmem:[#allocation233_spill] sm:$0xff]  ;;  %v11750_v14 = vld [vmem:[#allocation236_spill] sm:$0xff] }
 0x474   : > { %v3789_v48 = vadd.f32 %v3726_v34, %v9979_v1  ;;  %v3790_v7 = vadd.f32 %v3727_v47, %v9976_v23  ;;  %4360 = vst [vmem:[%s9546_s4 + $0x170] sm:$0xff] %v4297_v0  ;;  %4359 = vst [vmem:[%s9546_s4 + $0x168] sm:$0xff] %v4296_v58  ;;  %vm4169_vm14 = vcmp.eq.s32.totalorder %v4078_v40, 1  ;;  %vm4168_vm15 = vcmp.eq.s32.totalorder %v4075_v50, 1  ;;  %v11748_v34 = vld [vmem:[#allocation147_spill] sm:$0xff] }
 0x475   : > { %v3728_v45 = vsel %vm3661_vm10, %v10087_v42, 0.0  ;;  %v3729_v1 = vsel %vm3662_vm11, %v10087_v42, 0.0  ;;  %v4236_v23 = vsel %vm4169_vm14, %v9505_v62, 0.0  ;;  %v4235_v26 = vsel %vm4168_vm15, %v9505_v62, 0.0 }
 0x476   : > { %vm3663_vm0 = vcmp.eq.s32.totalorder %v9281_v25, 1  ;;  %vm3664_vm1 = vcmp.eq.s32.totalorder %v11736_v6, 1  ;;  %v4299_v3 = vadd.f32 %v4236_v23, %v3790_v7  ;;  %v4298_v28 = vadd.f32 %v4235_v26, %v3789_v48  ;;  %v4084_v55 = vpop.permute.xlu1 %4083  ;;  %v4081_v62 = vpop.permute.xlu0 %4080  ;;  %v11751_v48 = vld [vmem:[#allocation225_spill] sm:$0xff] }
 0x477   : > { %v3287_v59 = vadd.f32 %v3224_v16, %v11737_v37  ;;  %v3286_v56 = vadd.f32 %v3223_v29, %v11738_v60  ;;  %v3226_v39 = vsel %vm3159_vm12, %v10000_v21, 0.0  ;;  %v3225_v9 = vsel %vm3158_vm13, %v10000_v21, 0.0 }
 0x478   : > { %v3791_v18 = vadd.f32 %v3728_v45, %v10028_v35  ;;  %v3792_v32 = vadd.f32 %v3729_v1, %v10025_v31  ;;  %4362 = vst [vmem:[%s9546_s4 + $0x180] sm:$0xff] %v4299_v3  ;;  %4361 = vst [vmem:[%s9546_s4 + $0x178] sm:$0xff] %v4298_v28  ;;  %vm4171_vm2 = vcmp.eq.s32.totalorder %v4084_v55, 1  ;;  %vm4170_vm3 = vcmp.eq.s32.totalorder %v4081_v62, 1  ;;  %v11752_v45 = vld [vmem:[#allocation222_spill] sm:$0xff] }
 0x479   : > { %v3730_v43 = vsel %vm3663_vm0, %v10087_v42, 0.0  ;;  %v3731_v12 = vsel %vm3664_vm1, %v10087_v42, 0.0  ;;  %v4238_v31 = vsel %vm4171_vm2, %v10120_v4, 0.0  ;;  %v4237_v35 = vsel %vm4170_vm3, %v10120_v4, 0.0  ;;  %v11754_v55 = vld [vmem:[#allocation122_spill] sm:$0xff] }
 0x47a   : > { %vm3665_vm4 = vcmp.eq.s32.totalorder %v11739_v10, 1  ;;  %vm3666_vm5 = vcmp.eq.s32.totalorder %v11740_v2, 1  ;;  %v4301_v25 = vadd.f32 %v4238_v31, %v3792_v32  ;;  %v4300_v44 = vadd.f32 %v4237_v35, %v3791_v18  ;;  %v4090_v61 = vpop.permute.xlu1 %4089  ;;  %v4087_v63 = vpop.permute.xlu0 %4086  ;;  %v11755_v32 = vld [vmem:[#allocation227_spill] sm:$0xff]  ;;  %v11757_v35 = vld [vmem:[#allocation148_spill] sm:$0xff]  ;;  %v11758_v10 = vld [vmem:[#allocation149_spill] sm:$0xff] }
 0x47b   : > { %v3289_v33 = vadd.f32 %v3226_v39, %v11741_v13  ;;  %v3288_v8 = vadd.f32 %v3225_v9, %v11742_v36  ;;  %vm3161_vm6 = vcmp.eq.s32.totalorder %v11743_v27, 1  ;;  %vm3160_vm7 = vcmp.eq.s32.totalorder %v11744_v30, 1  ;;  %v11753_v9 = vld [vmem:[#allocation235_spill] sm:$0xff]  ;;  %v11759_v30 = vld [vmem:[#allocation237_spill] sm:$0xff] }
 0x47c   : > { %v3793_v15 = vadd.f32 %v3730_v43, %v10054_v52  ;;  %v3794_v38 = vadd.f32 %v3731_v12, %v10051_v54  ;;  %4364 = vst [vmem:[%s9546_s4 + $0x190] sm:$0xff] %v4301_v25  ;;  %4363 = vst [vmem:[%s9546_s4 + $0x188] sm:$0xff] %v4300_v44  ;;  %vm4173_vm8 = vcmp.eq.s32.totalorder %v4090_v61, 1  ;;  %vm4172_vm9 = vcmp.eq.s32.totalorder %v4087_v63, 1  ;;  %v11746_v54 = vld [vmem:[#allocation234_spill] sm:$0xff]  ;;  %v11756_v12 = vld [vmem:[#allocation224_spill] sm:$0xff] }
 0x47d   : > { %v3732_v5 = vsel %vm3665_vm4, %v10087_v42, 0.0  ;;  %v3733_v19 = vsel %vm3666_vm5, %v10087_v42, 0.0  ;;  %v4240_v46 = vsel %vm4173_vm8, %v10120_v4, 0.0  ;;  %v4239_v52 = vsel %vm4172_vm9, %v10120_v4, 0.0  ;;  %v11760_v61 = vld [vmem:[#allocation238_spill] sm:$0xff] }
 0x47e   : > { %vm3667_vm10 = vcmp.eq.s32.totalorder %v11745_v24, 1  ;;  %vm3668_vm11 = vcmp.eq.s32.totalorder %v11746_v54, 1  ;;  %v4303_v22 = vadd.f32 %v4240_v46, %v3794_v38  ;;  %v4302_v11 = vadd.f32 %v4239_v52, %v3793_v15  ;;  %v4096_v47 = vpop.permute.xlu1 %4095  ;;  %v4093_v41 = vpop.permute.xlu0 %4092  ;;  %v11761_v38 = vld [vmem:[#allocation93_spill] sm:$0xff]  ;;  %v11763_v46 = vld [vmem:[#allocation98_spill] sm:$0xff] }
 0x47f   : > { %v3228_v20 = vsel %vm3161_vm6, %v10000_v21, 0.0  ;;  %v3227_v57 = vsel %vm3160_vm7, %v10000_v21, 0.0  ;;  %vm3163_vm12 = vcmp.eq.s32.totalorder %v11747_v53, 1  ;;  %vm3162_vm13 = vcmp.eq.s32.totalorder %v11748_v34, 1  ;;  %v11764_v52 = vld [vmem:[#allocation230_spill] sm:$0xff] }
 0x480   : > { %v3795_v17 = vadd.f32 %v3732_v5, %v3286_v56  ;;  %v3796_v49 = vadd.f32 %v3733_v19, %v3287_v59  ;;  %4366 = vst [vmem:[%s9546_s4 + $0x1a0] sm:$0xff] %v4303_v22  ;;  %4365 = vst [vmem:[%s9546_s4 + $0x198] sm:$0xff] %v4302_v11  ;;  %vm4175_vm14 = vcmp.eq.s32.totalorder %v4096_v47, 1  ;;  %vm4174_vm15 = vcmp.eq.s32.totalorder %v4093_v41, 1  ;;  %v11762_v5 = vld [vmem:[#allocation226_spill] sm:$0xff] }
 0x481   : > { %v3734_v0 = vsel %vm3667_vm10, %v10087_v42, 0.0  ;;  %v3735_v58 = vsel %vm3668_vm11, %v10087_v42, 0.0  ;;  %v4242_v16 = vsel %vm4175_vm14, %v10120_v4, 0.0  ;;  %v4241_v29 = vsel %vm4174_vm15, %v10120_v4, 0.0 }
 0x482   : > { %vm3669_vm0 = vcmp.eq.s32.totalorder %v11749_v51, 1  ;;  %vm3670_vm1 = vcmp.eq.s32.totalorder %v11750_v14, 1  ;;  %v4305_v40 = vadd.f32 %v4242_v16, %v3796_v49  ;;  %v4304_v50 = vadd.f32 %v4241_v29, %v3795_v17  ;;  %v4102_v6 = vpop.permute.xlu1 %4101  ;;  %v4099_v3 = vpop.permute.xlu0 %4098 }
 0x483   : > { %v3291_v7 = vadd.f32 %v3228_v20, %v11751_v48  ;;  %v3290_v1 = vadd.f32 %v3227_v57, %v11752_v45  ;;  %v3230_v23 = vsel %vm3163_vm12, %v10000_v21, 0.0  ;;  %v3229_v26 = vsel %vm3162_vm13, %v10000_v21, 0.0 }
 0x484   : > { %v3797_v28 = vadd.f32 %v3734_v0, %v3288_v8  ;;  %v3798_v37 = vadd.f32 %v3735_v58, %v3289_v33  ;;  %4368 = vst [vmem:[%s9546_s4 + $0x1b0] sm:$0xff] %v4305_v40  ;;  %4367 = vst [vmem:[%s9546_s4 + $0x1a8] sm:$0xff] %v4304_v50  ;;  %vm4177_vm2 = vcmp.eq.s32.totalorder %v4102_v6, 1  ;;  %vm4176_vm3 = vcmp.eq.s32.totalorder %v4099_v3, 1 }
 0x485   : > { %v3736_v59 = vsel %vm3669_vm0, %v10087_v42, 0.0  ;;  %v3737_v60 = vsel %vm3670_vm1, %v10087_v42, 0.0  ;;  %v4244_v56 = vsel %vm4177_vm2, %v10120_v4, 0.0  ;;  %v4243_v39 = vsel %vm4176_vm3, %v10120_v4, 0.0 }
 0x486   : > { %vm3671_vm4 = vcmp.eq.s32.totalorder %v11753_v9, 1  ;;  %vm3672_vm5 = vcmp.eq.s32.totalorder %v11754_v55, 1  ;;  %v4307_v62 = vadd.f32 %v4244_v56, %v3798_v37  ;;  %v4306_v18 = vadd.f32 %v4243_v39, %v3797_v28  ;;  %v4108_v2 = vpop.permute.xlu1 %4107  ;;  %v4105_v25 = vpop.permute.xlu0 %4104 }
 0x487   : > { %v3293_v43 = vadd.f32 %v3230_v23, %v11755_v32  ;;  %v3292_v31 = vadd.f32 %v3229_v26, %v11756_v12  ;;  %vm3165_vm6 = vcmp.eq.s32.totalorder %v11757_v35, 1  ;;  %vm3164_vm7 = vcmp.eq.s32.totalorder %v11758_v10, 1 }
 0x488   : > { %v3799_v44 = vadd.f32 %v3736_v59, %v3290_v1  ;;  %v3800_v13 = vadd.f32 %v3737_v60, %v3291_v7  ;;  %4370 = vst [vmem:[%s9546_s4 + $0x1c0] sm:$0xff] %v4307_v62  ;;  %4369 = vst [vmem:[%s9546_s4 + $0x1b8] sm:$0xff] %v4306_v18  ;;  %vm4179_vm8 = vcmp.eq.s32.totalorder %v4108_v2, 1  ;;  %vm4178_vm9 = vcmp.eq.s32.totalorder %v4105_v25, 1 }
 0x489   : > { %v3738_v33 = vsel %vm3671_vm4, %v10087_v42, 0.0  ;;  %v3739_v36 = vsel %vm3672_vm5, %v10087_v42, 0.0  ;;  %v4246_v8 = vsel %vm4179_vm8, %v10120_v4, 0.0  ;;  %v4245_v27 = vsel %vm4178_vm9, %v10120_v4, 0.0 }
 0x48a   : > { %vm3673_vm10 = vcmp.eq.s32.totalorder %v11759_v30, 1  ;;  %vm3674_vm11 = vcmp.eq.s32.totalorder %v11760_v61, 1  ;;  %v4309_v63 = vadd.f32 %v4246_v8, %v3800_v13  ;;  %v4308_v15 = vadd.f32 %v4245_v27, %v3799_v44  ;;  %v4114_v11 = vpop.permute.xlu1 %4113  ;;  %v4111_v20 = vpop.permute.xlu0 %4110 }
 0x48b   : > { %v2785_v19 = vadd.f32 %v11762_v5, %v11761_v38  ;;  %v2786_v24 = vadd.f32 %v11764_v52, %v11763_v46  ;;  %v3232_v54 = vsel %vm3165_vm6, %v10000_v21, 0.0  ;;  %v3231_v22 = vsel %vm3164_vm7, %v10000_v21, 0.0 }
 0x48c   : > { %v3801_v57 = vadd.f32 %v3738_v33, %v3292_v31  ;;  %v3802_v53 = vadd.f32 %v3739_v36, %v3293_v43  ;;  %4372 = vst [vmem:[%s9546_s4 + $0x1d0] sm:$0xff] %v4309_v63  ;;  %4371 = vst [vmem:[%s9546_s4 + $0x1c8] sm:$0xff] %v4308_v15  ;;  %vm4181_vm12 = vcmp.eq.s32.totalorder %v4114_v11, 1  ;;  %vm4180_vm13 = vcmp.eq.s32.totalorder %v4111_v20, 1 }
 0x48d   : > { %v3740_v34 = vsel %vm3673_vm10, %v10087_v42, 0.0  ;;  %v3741_v47 = vsel %vm3674_vm11, %v10087_v42, 0.0  ;;  %v4248_v21 = vsel %vm4181_vm12, %v10120_v4, 0.0  ;;  %v4247_v41 = vsel %vm4180_vm13, %v10120_v4, 0.0 }
 0x48e   : > { %v3295_v17 = vadd.f32 %v3232_v54, %v2786_v24  ;;  %v3294_v49 = vadd.f32 %v3231_v22, %v2785_v19  ;;  %v4311_v0 = vadd.f32 %v4248_v21, %v3802_v53  ;;  %v4310_v58 = vadd.f32 %v4247_v41, %v3801_v57  ;;  %v4120_v16 = vpop.permute.xlu1 %4119  ;;  %v4117_v29 = vpop.permute.xlu0 %4116 }
 0x48f   : > { %vm4183_vm14 = vcmp.eq.s32.totalorder %v4120_v16, 1  ;;  %vm4182_vm15 = vcmp.eq.s32.totalorder %v4117_v29, 1 }
 0x490   : > { %v3803_v51 = vadd.f32 %v3740_v34, %v3294_v49  ;;  %v3804_v14 = vadd.f32 %v3741_v47, %v3295_v17  ;;  %4374 = vst [vmem:[%s9546_s4 + $0x1e0] sm:$0xff] %v4311_v0  ;;  %4373 = vst [vmem:[%s9546_s4 + $0x1d8] sm:$0xff] %v4310_v58  ;;  %v4250_v42 = vsel %vm4183_vm14, %v10120_v4, 0.0  ;;  %v4249_v40 = vsel %vm4182_vm15, %v10120_v4, 0.0 }
 0x492   : > { %v4313_v50 = vadd.f32 %v4250_v42, %v3804_v14  ;;  %v4312_v48 = vadd.f32 %v4249_v40, %v3803_v51 }
 0x494   : > { %4376 = vst [vmem:[%s9546_s4 + $0x1f0] sm:$0xff] %v4313_v50  ;;  %4375 = vst [vmem:[%s9546_s4 + $0x1e8] sm:$0xff] %v4312_v48 }
 0x495   : > { %4759 = shalt.err (!%p4756_p3)
}
 0x496   : > { %s4760_s27 = scalar_lea.hbm %s10229_s20, 8064  ;;  %s4764_s5 = scalar_lea.hbm %s10281_s3, 16128 }
 0x497   : > { %p4761_p4 = scmp.ne.s32.totalorder %s10229_s20, %s4760_s27  ;;  %p4765_p9 = scmp.lt.u32.totalorder %s10229_s20, %s10281_s3 }
 0x498   : > { %p4766_p10 = scmp.lt.u32.totalorder %s4764_s5, %s4760_s27  ;;  %p4768_p12 = scmp.lt.u32.totalorder %s4760_s27, %s10229_s20 }
 0x499   : > { %p4762_p7 = pnand %p4761_p4, %p4872_p5 }
 0x49a   : > { %p4767_p11 = por %p4766_p10, %p4765_p9 }
 0x49b   : > { %p4763_p8 = pneg %p4762_p7 }
 0x49c   : > { %p4769_p13 = por %p4768_p12, %p4767_p11 }
 0x49e   : > { %p4770_p0 = pnand %p4769_p13, %p4763_p8 }
 0x4a0   : > { %4773 = shalt.err (!%p4770_p0)
}
 0x4a1   : > { %s4812_s8 = smov 128   ;;  %s4813_s9 = smov 8  }
 0x4a2   : > { %4472 = dma.vmem_to_hbm [thread:$0]  (%p4872_p5), %s10231_s17, 8064, %s10229_s20, %s10237_s24, %s4812_s8, %s4812_s8, %s4813_s9  }
 0x4a3 PF: > { %p4478_p1 = scmp.ge.s32.totalorder %s4808_s15, 2  ;;  %s4406_s10 = sand.u32 1, %s4796_s12  }
 0x4a4   : > { %s4407_s11 = scalar_lea.sflag [#allocation3], %s4406_s10 }
 0x4a5   : > { %p4475_p2 = pnand %p4478_p1, %p4876_p6 }
 0x4a7   : > { %4791 = dma.done.wait (!%p4475_p2), %s4407_s11, 8064  }
 0x4a8   : > { %4793 = vsyncadd (!%p4475_p2), %s4407_s11, 4294959232  ;;  %p13_p3 = scmp.ge.s32.totalorder %s4859_s18, 4   ;;  %s11765_s12 = smov %s4800_s13 }
 0x4a9   : > { %s11766_s13 = smov %s4804_s14  ;;  %s11767_s14 = smov %s4870_s21 }
 0x4aa   : > { %s11768_s15 = smov %s4859_s18  ;;  %15 = sbr.rel (!%p13_p3) target bundleno = 3 (0x3), region = 67 }
 0x4b1   :  { %4412 = vsyncpa [#allocation3], 1 }
 0x4b2   :  { %4414 = vsyncpa [#allocation3 + $0x1], 1 }

</bundles_post_ra>
